<compile_context>
chip_gen: v6e
topology: v6e:2x2x1
jax: 0.10.0
libtpu: 0.0.40
codegen_flags: <defaults>
</compile_context>

<pallas_src>
import numpy as np

import jax
import jax.numpy as jnp
from jax.experimental import pallas as pl
from jax.experimental.pallas import tpu as pltpu

LANES = 128          # fc output feature dims padded to this (lane-dense stores)
H1_COLS = 896        # pooled conv1 features: 12*12*6 = 864, padded to 7*128
H2_COLS = 256        # pooled conv2 features: 4*4*16 = 256 (= 2*128, already aligned)
IN_COLS = 28 * 28    # flattened input image
TILE_B_CAP = 256     # max batch rows per grid step


# ---------------------------------------------------------------------------
# The fused kernel: conv1+pool -> conv2+pool -> fc1 -> fc2 -> fc3
# ---------------------------------------------------------------------------
def _lenet_kernel(x_ref, B1_ref, b1_ref, B2_ref, b2_ref,
                  w1_ref, c1_ref, w2_ref, c2_ref, w3_ref, c3_ref, o_ref):
    def conv_relu_pool(lhs, B_ref, bias_ref):
        # B_ref: (4, K, C) pooled-Toeplitz blocks, one per 2x2-pool offset.
        # max over the 4 f32 accumulators == maxpool2x2; then per-channel bias + relu.
        acc = jnp.dot(lhs, B_ref[0], preferred_element_type=jnp.float32)
        for k in range(1, 4):
            acc = jnp.maximum(
                acc, jnp.dot(lhs, B_ref[k], preferred_element_type=jnp.float32))
        return jnp.maximum(acc + bias_ref[...], 0.0).astype(jnp.bfloat16)

    x = x_ref[...].astype(jnp.bfloat16)                       # (TB, 784)
    h1 = conv_relu_pool(x, B1_ref, b1_ref)                    # (TB, 896)  (864 valid)
    h2 = conv_relu_pool(h1, B2_ref, b2_ref)                   # (TB, 256)  NHWC flatten
    z = jnp.dot(h2, w1_ref[...], preferred_element_type=jnp.float32) + c1_ref[...]
    z = jnp.maximum(z, 0.0).astype(jnp.bfloat16)
    z = jnp.dot(z, w2_ref[...], preferred_element_type=jnp.float32) + c2_ref[...]
    z = jnp.maximum(z, 0.0).astype(jnp.bfloat16)
    z = jnp.dot(z, w3_ref[...], preferred_element_type=jnp.float32) + c3_ref[...]
    o_ref[...] = z                                            # (TB, 128) f32, 10 valid


# ---------------------------------------------------------------------------
# pallas_call wrapper
# ---------------------------------------------------------------------------
def _batch_tiling(n):
    """(padded_batch, batch_tile): tile is a multiple of 8; >=2 grid steps whenever
    batch >= 16 so the 'parallel' axis can use both v7x TensorCores."""
    np8 = ((n + 7) // 8) * 8
    min_steps = 1 if np8 <= 8 else 2
    steps = max(min_steps, -(-np8 // TILE_B_CAP))
    tb = ((-(-np8 // steps)) + 7) // 8 * 8
    return steps * tb, tb


def _resident_spec(a):
    nd = a.ndim
    return pl.BlockSpec(a.shape, lambda i, nd=nd: (0,) * nd)   # VMEM-resident weight


@jax.jit
def net_forward(prepared, x):
    n = x.shape[0]
    npad, tb = _batch_tiling(n)
    xf = x.reshape(n, IN_COLS)
    if npad != n:
        xf = jnp.pad(xf, ((0, npad - n), (0, 0)))
    out = pl.pallas_call(
        _lenet_kernel,
        out_shape=jax.ShapeDtypeStruct((npad, LANES), jnp.float32),
        grid=(npad // tb,),
        in_specs=[pl.BlockSpec((tb, IN_COLS), lambda i: (i, 0))]
                 + [_resident_spec(w) for w in prepared],
        out_specs=pl.BlockSpec((tb, LANES), lambda i: (i, 0)),
        compiler_params=pltpu.CompilerParams(
            dimension_semantics=("parallel",),
            vmem_limit_bytes=48 * 1024 * 1024),
    )(xf, *prepared)
    return out[:n, :10]


# ---------------------------------------------------------------------------
# One-time parameter preparation (pooled-Toeplitz conv matrices, padded fc weights)
# ---------------------------------------------------------------------------
def _pooled_conv_matrix(w, in_h, in_w, block_cols):
    """Build (4, in_h*in_w*Cin, block_cols) matrices for VALID 5x5 conv + 2x2/2 maxpool.
    Input rows are (y, x, ci) flattened (ci-minor / NHWC); block k = 2*a + b is the pool
    offset (a, b); columns within a block are (py, px, co) flattened (co-minor), padded
    with zeros up to block_cols.  maxpool(relu(conv + bias)) == relu(max_k(x@B_k) + bias)."""
    w = np.asarray(w, np.float32)                       # (co, ci, kh, kw) torch layout
    co_n, ci_n, kh, kw = w.shape
    oh, ow = in_h - kh + 1, in_w - kw + 1
    ph, pw = oh // 2, ow // 2
    B = np.zeros((4, in_h * in_w * ci_n, block_cols), np.float32)
    for a in range(2):
        for b in range(2):
            k = 2 * a + b
            for py in range(ph):
                for px in range(pw):
                    col = (py * pw + px) * co_n
                    y0, x0 = 2 * py + a, 2 * px + b
                    for i in range(kh):
                        for j in range(kw):
                            row0 = ((y0 + i) * in_w + (x0 + j)) * ci_n
                            B[k, row0:row0 + ci_n, col:col + co_n] = w[:, :, i, j].T
    return B


def _pad2(w, rows, cols):
    w = np.asarray(w, np.float32)
    w = np.pad(w, ((0, rows - w.shape[0]), (0, cols - w.shape[1])))
    return jnp.asarray(w, dtype=jnp.bfloat16)


def _padb(b, cols):
    b = np.asarray(b, np.float32)
    return jnp.asarray(np.pad(b, (0, cols - b.size))[None, :], dtype=jnp.float32)


def _uniform(key, shape, fan_in):
    bound = 1.0 / (fan_in ** 0.5)
    return jax.random.uniform(key, shape, jnp.float32, -bound, bound)


def init_params(key):
    ks = jax.random.split(key, 10)
    return {
        "conv1_w": _uniform(ks[0], (6, 1, 5, 5), 1 * 5 * 5),
        "conv1_b": _uniform(ks[1], (6,), 1 * 5 * 5),
        "conv2_w": _uniform(ks[2], (16, 6, 5, 5), 6 * 5 * 5),
        "conv2_b": _uniform(ks[3], (16,), 6 * 5 * 5),
        "fc1_w": _uniform(ks[4], (120, 16 * 4 * 4), 16 * 4 * 4),
        "fc1_b": _uniform(ks[5], (120,), 16 * 4 * 4),
        "fc2_w": _uniform(ks[6], (84, 120), 120),
        "fc2_b": _uniform(ks[7], (84,), 120),
        "fc3_w": _uniform(ks[8], (10, 84), 84),
        "fc3_b": _uniform(ks[9], (10,), 84),
    }


def prepare_params(p):
    B1 = _pooled_conv_matrix(p["conv1_w"], 28, 28, H1_COLS)            # (4, 784, 896)
    B2 = _pooled_conv_matrix(p["conv2_w"], 12, 12, H2_COLS)            # (4, 864, 256)
    B2 = np.pad(B2, ((0, 0), (0, H1_COLS - B2.shape[1]), (0, 0)))      # rows -> 896
    b1 = _padb(np.tile(np.asarray(p["conv1_b"], np.float32), 12 * 12), H1_COLS)
    b2 = _padb(np.tile(np.asarray(p["conv2_b"], np.float32), 4 * 4), H2_COLS)
    # fc1 consumes the (h, w, c) flatten produced by the pooled conv2 layout; permute
    # columns from torch's (c, h, w) flatten once here.
    f1 = (np.asarray(p["fc1_w"], np.float32)
          .reshape(120, 16, 4, 4).transpose(0, 2, 3, 1).reshape(120, 256).T)
    f2 = np.asarray(p["fc2_w"], np.float32).T
    f3 = np.asarray(p["fc3_w"], np.float32).T
    return [
        jnp.asarray(B1, dtype=jnp.bfloat16), b1,
        jnp.asarray(B2, dtype=jnp.bfloat16), b2,
        _pad2(f1, H2_COLS, LANES), _padb(p["fc1_b"], LANES),
        _pad2(f2, LANES, LANES), _padb(p["fc2_b"], LANES),
        _pad2(f3, LANES, LANES), _padb(p["fc3_b"], LANES),
    ]


# ---------------------------------------------------------------------------
# Pure-XLA float reference (matches the PyTorch Net.forward) for verification
# ---------------------------------------------------------------------------
@jax.jit
def reference_forward(p, x):
    dn = ("NCHW", "OIHW", "NCHW")
    h = jax.lax.conv_general_dilated(x, p["conv1_w"], (1, 1), "VALID",
                                     dimension_numbers=dn)
    h = jnp.maximum(h + p["conv1_b"][None, :, None, None], 0.0)
    h = jax.lax.reduce_window(h, -jnp.inf, jax.lax.max, (1, 1, 2, 2), (1, 1, 2, 2), "VALID")
    h = jax.lax.conv_general_dilated(h, p["conv2_w"], (1, 1), "VALID",
                                     dimension_numbers=dn)
    h = jnp.maximum(h + p["conv2_b"][None, :, None, None], 0.0)
    h = jax.lax.reduce_window(h, -jnp.inf, jax.lax.max, (1, 1, 2, 2), (1, 1, 2, 2), "VALID")
    h = h.reshape(x.shape[0], 16 * 4 * 4)                     # torch (c, h, w) flatten
    h = jnp.maximum(h @ p["fc1_w"].T + p["fc1_b"], 0.0)
    h = jnp.maximum(h @ p["fc2_w"].T + p["fc2_b"], 0.0)
    return h @ p["fc3_w"].T + p["fc3_b"]


if __name__ == "__main__":
    key = jax.random.PRNGKey(0)
    pkey, xkey = jax.random.split(key)
    raw_params = init_params(pkey)
    prepared = prepare_params(raw_params)
    # Net's fc1 (16*4*4) implies 28x28 single-channel inputs (MNIST/FashionMNIST).
    x = jax.random.normal(xkey, (2, 1, 28, 28), jnp.float32)

    out = jax.block_until_ready(net_forward(prepared, x))
    assert out.shape == (2, 10)
    assert bool(jnp.all(jnp.isfinite(out)))

    ref = jax.block_until_ready(reference_forward(raw_params, x))
    err = float(jnp.max(jnp.abs(out - ref)))
    assert err < 3e-2, f"mismatch vs float reference: {err}"
    print("KERNEL_OK")
</pallas_src>

<mosaic_0001>
module attributes {stable_mosaic.version = 11 : i64} {
  func.func @_lenet_kernel(%arg0: i32, %arg1: memref<8x784xf32, #tpu.memory_space<vmem>>, %arg2: memref<4x784x896xbf16, #tpu.memory_space<vmem>>, %arg3: memref<1x896xf32, #tpu.memory_space<vmem>>, %arg4: memref<4x896x256xbf16, #tpu.memory_space<vmem>>, %arg5: memref<1x256xf32, #tpu.memory_space<vmem>>, %arg6: memref<256x128xbf16, #tpu.memory_space<vmem>>, %arg7: memref<1x128xf32, #tpu.memory_space<vmem>>, %arg8: memref<128x128xbf16, #tpu.memory_space<vmem>>, %arg9: memref<1x128xf32, #tpu.memory_space<vmem>>, %arg10: memref<128x128xbf16, #tpu.memory_space<vmem>>, %arg11: memref<1x128xf32, #tpu.memory_space<vmem>>, %arg12: memref<8x128xf32, #tpu.memory_space<vmem>>) attributes {dimension_semantics = [#tpu.dimension_semantics<parallel>], iteration_bounds = array<i64: 1>, scalar_prefetch = 0 : i64, scratch_operands = 0 : i64, tpu.core_type = #tpu.core_type<tc>, window_params = [{transform_indices = @transform_0, window_bounds = array<i64: 8, 784>}, {pipeline_mode = #tpu.pipeline_mode<synchronous>, transform_indices = @transform_1, window_bounds = array<i64: 4, 784, 896>}, {pipeline_mode = #tpu.pipeline_mode<synchronous>, transform_indices = @transform_2, window_bounds = array<i64: 1, 896>}, {pipeline_mode = #tpu.pipeline_mode<synchronous>, transform_indices = @transform_3, window_bounds = array<i64: 4, 896, 256>}, {pipeline_mode = #tpu.pipeline_mode<synchronous>, transform_indices = @transform_4, window_bounds = array<i64: 1, 256>}, {pipeline_mode = #tpu.pipeline_mode<synchronous>, transform_indices = @transform_5, window_bounds = array<i64: 256, 128>}, {pipeline_mode = #tpu.pipeline_mode<synchronous>, transform_indices = @transform_6, window_bounds = array<i64: 1, 128>}, {pipeline_mode = #tpu.pipeline_mode<synchronous>, transform_indices = @transform_7, window_bounds = array<i64: 128, 128>}, {pipeline_mode = #tpu.pipeline_mode<synchronous>, transform_indices = @transform_8, window_bounds = array<i64: 1, 128>}, {pipeline_mode = #tpu.pipeline_mode<synchronous>, transform_indices = @transform_9, window_bounds = array<i64: 128, 128>}, {pipeline_mode = #tpu.pipeline_mode<synchronous>, transform_indices = @transform_10, window_bounds = array<i64: 1, 128>}, {transform_indices = @transform_11, window_bounds = array<i64: 8, 128>}]} {
    %c0 = arith.constant 0 : index
    %c0_0 = arith.constant 0 : index
    %0 = vector.load %arg1[%c0, %c0_0] : memref<8x784xf32, #tpu.memory_space<vmem>>, vector<8x784xf32>
    %1 = arith.truncf %0 : vector<8x784xf32> to vector<8x784xbf16>
    %c0_1 = arith.constant 0 : index
    %c0_2 = arith.constant 0 : index
    %c0_3 = arith.constant 0 : index
    %2 = vector.load %arg2[%c0_1, %c0_2, %c0_3] : memref<4x784x896xbf16, #tpu.memory_space<vmem>>, vector<1x784x896xbf16>
    %3 = vector.shape_cast %2 : vector<1x784x896xbf16> to vector<784x896xbf16>
    %cst = arith.constant dense<0.000000e+00> : vector<8x896xf32>
    %4 = tpu.matmul %1, %3, %cst {dimension_numbers = #tpu.dot_dimension_numbers<[1], [0], [0], [1], [0, 0, 1, 1], [], []>} : vector<8x784xbf16>, vector<784x896xbf16>, vector<8x896xf32> -> vector<8x896xf32>
    %c1 = arith.constant 1 : index
    %c0_4 = arith.constant 0 : index
    %c0_5 = arith.constant 0 : index
    %5 = vector.load %arg2[%c1, %c0_4, %c0_5] : memref<4x784x896xbf16, #tpu.memory_space<vmem>>, vector<1x784x896xbf16>
    %6 = vector.shape_cast %5 : vector<1x784x896xbf16> to vector<784x896xbf16>
    %cst_6 = arith.constant dense<0.000000e+00> : vector<8x896xf32>
    %7 = tpu.matmul %1, %6, %cst_6 {dimension_numbers = #tpu.dot_dimension_numbers<[1], [0], [0], [1], [0, 0, 1, 1], [], []>} : vector<8x784xbf16>, vector<784x896xbf16>, vector<8x896xf32> -> vector<8x896xf32>
    %8 = arith.maximumf %4, %7 : vector<8x896xf32>
    %c2 = arith.constant 2 : index
    %c0_7 = arith.constant 0 : index
    %c0_8 = arith.constant 0 : index
    %9 = vector.load %arg2[%c2, %c0_7, %c0_8] : memref<4x784x896xbf16, #tpu.memory_space<vmem>>, vector<1x784x896xbf16>
    %10 = vector.shape_cast %9 : vector<1x784x896xbf16> to vector<784x896xbf16>
    %cst_9 = arith.constant dense<0.000000e+00> : vector<8x896xf32>
    %11 = tpu.matmul %1, %10, %cst_9 {dimension_numbers = #tpu.dot_dimension_numbers<[1], [0], [0], [1], [0, 0, 1, 1], [], []>} : vector<8x784xbf16>, vector<784x896xbf16>, vector<8x896xf32> -> vector<8x896xf32>
    %12 = arith.maximumf %8, %11 : vector<8x896xf32>
    %c3 = arith.constant 3 : index
    %c0_10 = arith.constant 0 : index
    %c0_11 = arith.constant 0 : index
    %13 = vector.load %arg2[%c3, %c0_10, %c0_11] : memref<4x784x896xbf16, #tpu.memory_space<vmem>>, vector<1x784x896xbf16>
    %14 = vector.shape_cast %13 : vector<1x784x896xbf16> to vector<784x896xbf16>
    %cst_12 = arith.constant dense<0.000000e+00> : vector<8x896xf32>
    %15 = tpu.matmul %1, %14, %cst_12 {dimension_numbers = #tpu.dot_dimension_numbers<[1], [0], [0], [1], [0, 0, 1, 1], [], []>} : vector<8x784xbf16>, vector<784x896xbf16>, vector<8x896xf32> -> vector<8x896xf32>
    %16 = arith.maximumf %12, %15 : vector<8x896xf32>
    %c0_13 = arith.constant 0 : index
    %c0_14 = arith.constant 0 : index
    %17 = vector.load %arg3[%c0_13, %c0_14] : memref<1x896xf32, #tpu.memory_space<vmem>>, vector<1x896xf32>
    %18 = vector.broadcast %17 : vector<1x896xf32> to vector<8x896xf32>
    %19 = arith.addf %16, %18 : vector<8x896xf32>
    %cst_15 = arith.constant 0.000000e+00 : f32
    %20 = vector.broadcast %cst_15 : f32 to vector<8x896xf32>
    %21 = arith.maximumf %19, %20 : vector<8x896xf32>
    %22 = arith.truncf %21 : vector<8x896xf32> to vector<8x896xbf16>
    %c0_16 = arith.constant 0 : index
    %c0_17 = arith.constant 0 : index
    %c0_18 = arith.constant 0 : index
    %23 = vector.load %arg4[%c0_16, %c0_17, %c0_18] : memref<4x896x256xbf16, #tpu.memory_space<vmem>>, vector<1x896x256xbf16>
    %24 = vector.shape_cast %23 : vector<1x896x256xbf16> to vector<896x256xbf16>
    %cst_19 = arith.constant dense<0.000000e+00> : vector<8x256xf32>
    %25 = tpu.matmul %22, %24, %cst_19 {dimension_numbers = #tpu.dot_dimension_numbers<[1], [0], [0], [1], [0, 0, 1, 1], [], []>} : vector<8x896xbf16>, vector<896x256xbf16>, vector<8x256xf32> -> vector<8x256xf32>
    %c1_20 = arith.constant 1 : index
    %c0_21 = arith.constant 0 : index
    %c0_22 = arith.constant 0 : index
    %26 = vector.load %arg4[%c1_20, %c0_21, %c0_22] : memref<4x896x256xbf16, #tpu.memory_space<vmem>>, vector<1x896x256xbf16>
    %27 = vector.shape_cast %26 : vector<1x896x256xbf16> to vector<896x256xbf16>
    %cst_23 = arith.constant dense<0.000000e+00> : vector<8x256xf32>
    %28 = tpu.matmul %22, %27, %cst_23 {dimension_numbers = #tpu.dot_dimension_numbers<[1], [0], [0], [1], [0, 0, 1, 1], [], []>} : vector<8x896xbf16>, vector<896x256xbf16>, vector<8x256xf32> -> vector<8x256xf32>
    %29 = arith.maximumf %25, %28 : vector<8x256xf32>
    %c2_24 = arith.constant 2 : index
    %c0_25 = arith.constant 0 : index
    %c0_26 = arith.constant 0 : index
    %30 = vector.load %arg4[%c2_24, %c0_25, %c0_26] : memref<4x896x256xbf16, #tpu.memory_space<vmem>>, vector<1x896x256xbf16>
    %31 = vector.shape_cast %30 : vector<1x896x256xbf16> to vector<896x256xbf16>
    %cst_27 = arith.constant dense<0.000000e+00> : vector<8x256xf32>
    %32 = tpu.matmul %22, %31, %cst_27 {dimension_numbers = #tpu.dot_dimension_numbers<[1], [0], [0], [1], [0, 0, 1, 1], [], []>} : vector<8x896xbf16>, vector<896x256xbf16>, vector<8x256xf32> -> vector<8x256xf32>
    %33 = arith.maximumf %29, %32 : vector<8x256xf32>
    %c3_28 = arith.constant 3 : index
    %c0_29 = arith.constant 0 : index
    %c0_30 = arith.constant 0 : index
    %34 = vector.load %arg4[%c3_28, %c0_29, %c0_30] : memref<4x896x256xbf16, #tpu.memory_space<vmem>>, vector<1x896x256xbf16>
    %35 = vector.shape_cast %34 : vector<1x896x256xbf16> to vector<896x256xbf16>
    %cst_31 = arith.constant dense<0.000000e+00> : vector<8x256xf32>
    %36 = tpu.matmul %22, %35, %cst_31 {dimension_numbers = #tpu.dot_dimension_numbers<[1], [0], [0], [1], [0, 0, 1, 1], [], []>} : vector<8x896xbf16>, vector<896x256xbf16>, vector<8x256xf32> -> vector<8x256xf32>
    %37 = arith.maximumf %33, %36 : vector<8x256xf32>
    %c0_32 = arith.constant 0 : index
    %c0_33 = arith.constant 0 : index
    %38 = vector.load %arg5[%c0_32, %c0_33] : memref<1x256xf32, #tpu.memory_space<vmem>>, vector<1x256xf32>
    %39 = vector.broadcast %38 : vector<1x256xf32> to vector<8x256xf32>
    %40 = arith.addf %37, %39 : vector<8x256xf32>
    %cst_34 = arith.constant 0.000000e+00 : f32
    %41 = vector.broadcast %cst_34 : f32 to vector<8x256xf32>
    %42 = arith.maximumf %40, %41 : vector<8x256xf32>
    %43 = arith.truncf %42 : vector<8x256xf32> to vector<8x256xbf16>
    %c0_35 = arith.constant 0 : index
    %c0_36 = arith.constant 0 : index
    %44 = vector.load %arg6[%c0_35, %c0_36] : memref<256x128xbf16, #tpu.memory_space<vmem>>, vector<256x128xbf16>
    %cst_37 = arith.constant dense<0.000000e+00> : vector<8x128xf32>
    %45 = tpu.matmul %43, %44, %cst_37 {dimension_numbers = #tpu.dot_dimension_numbers<[1], [0], [0], [1], [0, 0, 1, 1], [], []>} : vector<8x256xbf16>, vector<256x128xbf16>, vector<8x128xf32> -> vector<8x128xf32>
    %c0_38 = arith.constant 0 : index
    %c0_39 = arith.constant 0 : index
    %46 = vector.load %arg7[%c0_38, %c0_39] : memref<1x128xf32, #tpu.memory_space<vmem>>, vector<1x128xf32>
    %47 = vector.broadcast %46 : vector<1x128xf32> to vector<8x128xf32>
    %48 = arith.addf %45, %47 : vector<8x128xf32>
    %cst_40 = arith.constant 0.000000e+00 : f32
    %49 = vector.broadcast %cst_40 : f32 to vector<8x128xf32>
    %50 = arith.maximumf %48, %49 : vector<8x128xf32>
    %51 = arith.truncf %50 : vector<8x128xf32> to vector<8x128xbf16>
    %c0_41 = arith.constant 0 : index
    %c0_42 = arith.constant 0 : index
    %52 = vector.load %arg8[%c0_41, %c0_42] : memref<128x128xbf16, #tpu.memory_space<vmem>>, vector<128x128xbf16>
    %cst_43 = arith.constant dense<0.000000e+00> : vector<8x128xf32>
    %53 = tpu.matmul %51, %52, %cst_43 {dimension_numbers = #tpu.dot_dimension_numbers<[1], [0], [0], [1], [0, 0, 1, 1], [], []>} : vector<8x128xbf16>, vector<128x128xbf16>, vector<8x128xf32> -> vector<8x128xf32>
    %c0_44 = arith.constant 0 : index
    %c0_45 = arith.constant 0 : index
    %54 = vector.load %arg9[%c0_44, %c0_45] : memref<1x128xf32, #tpu.memory_space<vmem>>, vector<1x128xf32>
    %55 = vector.broadcast %54 : vector<1x128xf32> to vector<8x128xf32>
    %56 = arith.addf %53, %55 : vector<8x128xf32>
    %cst_46 = arith.constant 0.000000e+00 : f32
    %57 = vector.broadcast %cst_46 : f32 to vector<8x128xf32>
    %58 = arith.maximumf %56, %57 : vector<8x128xf32>
    %59 = arith.truncf %58 : vector<8x128xf32> to vector<8x128xbf16>
    %c0_47 = arith.constant 0 : index
    %c0_48 = arith.constant 0 : index
    %60 = vector.load %arg10[%c0_47, %c0_48] : memref<128x128xbf16, #tpu.memory_space<vmem>>, vector<128x128xbf16>
    %cst_49 = arith.constant dense<0.000000e+00> : vector<8x128xf32>
    %61 = tpu.matmul %59, %60, %cst_49 {dimension_numbers = #tpu.dot_dimension_numbers<[1], [0], [0], [1], [0, 0, 1, 1], [], []>} : vector<8x128xbf16>, vector<128x128xbf16>, vector<8x128xf32> -> vector<8x128xf32>
    %c0_50 = arith.constant 0 : index
    %c0_51 = arith.constant 0 : index
    %62 = vector.load %arg11[%c0_50, %c0_51] : memref<1x128xf32, #tpu.memory_space<vmem>>, vector<1x128xf32>
    %63 = vector.broadcast %62 : vector<1x128xf32> to vector<8x128xf32>
    %64 = arith.addf %61, %63 : vector<8x128xf32>
    %c0_52 = arith.constant 0 : index
    %c0_53 = arith.constant 0 : index
    %65 = vector.load %arg12[%c0_52, %c0_53] : memref<8x128xf32, #tpu.memory_space<vmem>>, vector<8x128xf32>
    tpu.vector_store %arg12[%c0_52, %c0_53], %64 {strides = array<i32>} : memref<8x128xf32, #tpu.memory_space<vmem>>, vector<8x128xf32>,
    return
  }
  func.func @transform_0(%arg0: i32) -> (i32, i32) {
    %c0_i32 = arith.constant 0 : i32
    %c0_i32_0 = arith.constant 0 : i32
    return %arg0, %c0_i32 : i32, i32
  }
  func.func @transform_1(%arg0: i32) -> (i32, i32, i32) {
    %c0_i32 = arith.constant 0 : i32
    %c0_i32_0 = arith.constant 0 : i32
    %c0_i32_1 = arith.constant 0 : i32
    %c0_i32_2 = arith.constant 0 : i32
    return %c0_i32, %c0_i32_0, %c0_i32_1 : i32, i32, i32
  }
  func.func @transform_2(%arg0: i32) -> (i32, i32) {
    %c0_i32 = arith.constant 0 : i32
    %c0_i32_0 = arith.constant 0 : i32
    %c0_i32_1 = arith.constant 0 : i32
    return %c0_i32, %c0_i32_0 : i32, i32
  }
  func.func @transform_3(%arg0: i32) -> (i32, i32, i32) {
    %c0_i32 = arith.constant 0 : i32
    %c0_i32_0 = arith.constant 0 : i32
    %c0_i32_1 = arith.constant 0 : i32
    %c0_i32_2 = arith.constant 0 : i32
    return %c0_i32, %c0_i32_0, %c0_i32_1 : i32, i32, i32
  }
  func.func @transform_4(%arg0: i32) -> (i32, i32) {
    %c0_i32 = arith.constant 0 : i32
    %c0_i32_0 = arith.constant 0 : i32
    %c0_i32_1 = arith.constant 0 : i32
    return %c0_i32, %c0_i32_0 : i32, i32
  }
  func.func @transform_5(%arg0: i32) -> (i32, i32) {
    %c0_i32 = arith.constant 0 : i32
    %c0_i32_0 = arith.constant 0 : i32
    %c0_i32_1 = arith.constant 0 : i32
    return %c0_i32, %c0_i32_0 : i32, i32
  }
  func.func @transform_6(%arg0: i32) -> (i32, i32) {
    %c0_i32 = arith.constant 0 : i32
    %c0_i32_0 = arith.constant 0 : i32
    %c0_i32_1 = arith.constant 0 : i32
    return %c0_i32, %c0_i32_0 : i32, i32
  }
  func.func @transform_7(%arg0: i32) -> (i32, i32) {
    %c0_i32 = arith.constant 0 : i32
    %c0_i32_0 = arith.constant 0 : i32
    %c0_i32_1 = arith.constant 0 : i32
    return %c0_i32, %c0_i32_0 : i32, i32
  }
  func.func @transform_8(%arg0: i32) -> (i32, i32) {
    %c0_i32 = arith.constant 0 : i32
    %c0_i32_0 = arith.constant 0 : i32
    %c0_i32_1 = arith.constant 0 : i32
    return %c0_i32, %c0_i32_0 : i32, i32
  }
  func.func @transform_9(%arg0: i32) -> (i32, i32) {
    %c0_i32 = arith.constant 0 : i32
    %c0_i32_0 = arith.constant 0 : i32
    %c0_i32_1 = arith.constant 0 : i32
    return %c0_i32, %c0_i32_0 : i32, i32
  }
  func.func @transform_10(%arg0: i32) -> (i32, i32) {
    %c0_i32 = arith.constant 0 : i32
    %c0_i32_0 = arith.constant 0 : i32
    %c0_i32_1 = arith.constant 0 : i32
    return %c0_i32, %c0_i32_0 : i32, i32
  }
  func.func @transform_11(%arg0: i32) -> (i32, i32) {
    %c0_i32 = arith.constant 0 : i32
    %c0_i32_0 = arith.constant 0 : i32
    return %arg0, %c0_i32 : i32, i32
  }
}

</mosaic_0001>

<bundles_post_ra>
// kernel: net_forward.1
= control target key start
LH: loop header
LB: loop body
LE: loop exit
PB: predicated region body
PF: predicated region fallthrough
CT: control target
= control target key end

     0   :  { %16 = vsyncpa [#allocation3], 0  ;;  %s21101_s0 = inlined_call_operand.vmem [shape: f32[8,784], index: 0, kind: input, shape index: {}]   ;;  %s21102_s1 = inlined_call_operand.hbm [shape: bf16[4,784,896], index: 1, kind: input, shape index: {}]   ;;  %s21103_s2 = inlined_call_operand.hbm [shape: f32[1,896], index: 2, kind: input, shape index: {}]   ;;  %s21104_s3 = inlined_call_operand.hbm [shape: bf16[4,896,256], index: 3, kind: input, shape index: {}]   ;;  %s21105_s4 = inlined_call_operand.hbm [shape: f32[1,256], index: 4, kind: input, shape index: {}]   ;;  %s21106_s5 = inlined_call_operand.hbm [shape: bf16[256,128], index: 5, kind: input, shape index: {}]   ;;  %s21107_s6 = inlined_call_operand.hbm [shape: f32[1,128], index: 6, kind: input, shape index: {}]   ;;  %s21108_s7 = inlined_call_operand.hbm [shape: bf16[128,128], index: 7, kind: input, shape index: {}]   ;;  %s21109_s8 = inlined_call_operand.hbm [shape: f32[1,128], index: 8, kind: input, shape index: {}]   ;;  %s21110_s9 = inlined_call_operand.hbm [shape: bf16[128,128], index: 9, kind: input, shape index: {}]   ;;  %s21111_s10 = inlined_call_operand.hbm [shape: f32[1,128], index: 10, kind: input, shape index: {}]   ;;  %s21112_s11 = inlined_call_operand.vmem [shape: f32[8,128], index: 11, kind: output, shape index: {}]  }
   0x1   :  { %17 = vsyncpa [#allocation5], 0 }
   0x2   :  { %18 = vsyncpa [#allocation8], 0 }
   0x3   :  { %19 = vsyncpa [#allocation11], 0 }
   0x4   :  { %20 = vsyncpa [#allocation14], 0 }
   0x5   :  { %21 = vsyncpa [#allocation17], 0  ;;  %s20422_s17 = smov [#allocation4]   ;;  %s20423_s19 = smov [#allocation7]  }
   0x6   :  { %s42_s18 = sshll.u32 %s20422_s17, 4  ;;  %s64_s20 = sshll.u32 %s20423_s19, 4  ;;  %s43_s18 = int_to_ptr.vmem [resolvable:$true] %s42_s18  ;;  %s65_s20 = int_to_ptr.vmem [resolvable:$true] %s64_s20 }
   0x7   :  { %s20218_s21 = scalar_lea.vmem %s43_s18, 112  ;;  %s20222_s22 = scalar_lea.vmem %s43_s18, 128 }
   0x8   :  { %p20219_p0 = scmp.ne.s32.totalorder %s43_s18, %s20218_s21  ;;  %p20223_p1 = scmp.lt.s32.totalorder %s43_s18, %s43_s18 }
   0x9   :  { %p20224_p2 = scmp.lt.s32.totalorder %s20222_s22, %s20218_s21 }
   0xb   :  { %p20225_p3 = por %p20224_p2, %p20223_p1 }
   0xd   :  { %p20226_p4 = pnand %p20225_p3, %p20219_p0 }
   0xf   :  { %20229 = shalt.err (!%p20226_p4)
}
  0x10   :  { %45 = dma.hbm_to_vmem [thread:$0]  %s21103_s2, 112, %s43_s18, [#allocation5]  }
  0x11   :  { %s20238_s25 = scalar_lea.vmem %s65_s20, 32  ;;  %p20243_p6 = scmp.lt.s32.totalorder %s65_s20, %s65_s20 }
  0x12   :  { %p20239_p5 = scmp.ne.s32.totalorder %s65_s20, %s20238_s25  ;;  %p20244_p7 = scmp.lt.s32.totalorder %s20238_s25, %s20238_s25 }
  0x14   :  { %p20245_p8 = por %p20244_p7, %p20243_p6 }
  0x16   :  { %p20246_p9 = pnand %p20245_p8, %p20239_p5 }
  0x18   :  { %20249 = shalt.err (!%p20246_p9)
}
  0x19   :  { %67 = dma.hbm_to_vmem [thread:$0]  %s21105_s4, 32, %s65_s20, [#allocation8]  }
  0x1a   :  { %s20424_s28 = smov [#allocation10]   ;;  %s20425_s30 = smov [#allocation13]  }
  0x1b   :  { %s86_s29 = sshll.u32 %s20424_s28, 4  ;;  %s108_s12 = sshll.u32 %s20425_s30, 4  ;;  %s87_s29 = int_to_ptr.vmem [resolvable:$true] %s86_s29  ;;  %s109_s12 = int_to_ptr.vmem [resolvable:$true] %s108_s12 }
  0x1c   :  { %s20258_s13 = scalar_lea.vmem %s87_s29, 16  ;;  %s20262_s2 = scalar_lea.vmem %s87_s29, 32 }
  0x1d   :  { %p20259_p10 = scmp.ne.s32.totalorder %s87_s29, %s20258_s13  ;;  %p20263_p11 = scmp.lt.s32.totalorder %s87_s29, %s87_s29 }
  0x1e   :  { %p20264_p12 = scmp.lt.s32.totalorder %s20262_s2, %s20258_s13 }
  0x20   :  { %p20265_p13 = por %p20264_p12, %p20263_p11 }
  0x22   :  { %p20266_p0 = pnand %p20265_p13, %p20259_p10 }
  0x24   :  { %20269 = shalt.err (!%p20266_p0)
}
  0x25   :  { %89 = dma.hbm_to_vmem [thread:$0]  %s21107_s6, 16, %s87_s29, [#allocation11]  }
  0x26   :  { %s20278_s16 = scalar_lea.vmem %s109_s12, 16  ;;  %s20282_s4 = scalar_lea.vmem %s109_s12, 32 }
  0x27   :  { %p20279_p1 = scmp.ne.s32.totalorder %s109_s12, %s20278_s16  ;;  %p20283_p2 = scmp.lt.s32.totalorder %s109_s12, %s109_s12 }
  0x28   :  { %p20284_p3 = scmp.lt.s32.totalorder %s20282_s4, %s20278_s16 }
  0x2a   :  { %p20285_p4 = por %p20284_p3, %p20283_p2 }
  0x2c   :  { %p20286_p5 = pnand %p20285_p4, %p20279_p1 }
  0x2e   :  { %20289 = shalt.err (!%p20286_p5)
}
  0x2f   :  { %111 = dma.hbm_to_vmem [thread:$0]  %s21109_s8, 16, %s109_s12, [#allocation14]  }
  0x30   :  { %s20426_s19 = smov [#allocation2]  }
  0x31   :  { %s29_s20 = sshll.u32 %s20426_s19, 4  ;;  %s30_s20 = int_to_ptr.vmem [resolvable:$true] %s29_s20 }
  0x32   :  { %s20298_s21 = scalar_lea.vmem %s30_s20, 175616  ;;  %p20303_p7 = scmp.lt.s32.totalorder %s30_s20, %s30_s20 }
  0x33   :  { %p20299_p6 = scmp.ne.s32.totalorder %s30_s20, %s20298_s21  ;;  %p20304_p8 = scmp.lt.s32.totalorder %s20298_s21, %s20298_s21 }
  0x35   :  { %p20305_p9 = por %p20304_p8, %p20303_p7 }
  0x37   :  { %p20306_p10 = pnand %p20305_p9, %p20299_p6 }
  0x39   :  { %20309 = shalt.err (!%p20306_p10)
}
  0x3a   :  { %s20427_s6 = smov 448   ;;  %s20428_s22 = smov 28  }
  0x3b   :  { %35 = dma.hbm_to_vmem [thread:$0]  %s21102_s1, 175616, %s30_s20, [#allocation3], %s20427_s6, %s20427_s6, %s20428_s22  }
  0x3c   :  { %s20429_s25 = smov [#allocation6]  }
  0x3d   :  { %s51_s26 = sshll.u32 %s20429_s25, 4  ;;  %s52_s26 = int_to_ptr.vmem [resolvable:$true] %s51_s26 }
  0x3e   :  { %s20318_s8 = scalar_lea.vmem %s52_s26, 57344  ;;  %p20323_p12 = scmp.lt.s32.totalorder %s52_s26, %s52_s26 }
  0x3f   :  { %p20319_p11 = scmp.ne.s32.totalorder %s52_s26, %s20318_s8  ;;  %p20324_p13 = scmp.lt.s32.totalorder %s20318_s8, %s20318_s8 }
  0x41   :  { %p20325_p0 = por %p20324_p13, %p20323_p12 }
  0x43   :  { %p20326_p1 = pnand %p20325_p0, %p20319_p11 }
  0x45   :  { %20329 = shalt.err (!%p20326_p1)
}
  0x46   :  { %s20430_s27 = smov 128   ;;  %s20431_s28 = smov 8  }
  0x47   :  { %57 = dma.hbm_to_vmem [thread:$0]  %s21104_s3, 57344, %s52_s26, [#allocation5], %s20430_s27, %s20430_s27, %s20431_s28  }
  0x48   :  { %s20432_s12 = smov [#allocation9]  }
  0x49   :  { %s73_s13 = sshll.u32 %s20432_s12, 4  ;;  %s74_s13 = int_to_ptr.vmem [resolvable:$true] %s73_s13 }
  0x4a   :  { %s20338_s1 = scalar_lea.vmem %s74_s13, 2048  ;;  %p20343_p3 = scmp.lt.s32.totalorder %s74_s13, %s74_s13 }
  0x4b   :  { %p20339_p2 = scmp.ne.s32.totalorder %s74_s13, %s20338_s1  ;;  %p20344_p4 = scmp.lt.s32.totalorder %s20338_s1, %s20338_s1 }
  0x4d   :  { %p20345_p5 = por %p20344_p4, %p20343_p3 }
  0x4f   :  { %p20346_p6 = pnand %p20345_p5, %p20339_p2 }
  0x51   :  { %20349 = shalt.err (!%p20346_p6)
}
  0x52   :  { %s20433_s2 = smov 64   ;;  %s20434_s14 = smov 4  }
  0x53   :  { %79 = dma.hbm_to_vmem [thread:$0]  %s21106_s5, 2048, %s74_s13, [#allocation8], %s20433_s2, %s20433_s2, %s20434_s14  }
  0x54   :  { %s20435_s4 = smov [#allocation12]   ;;  %s20436_s3 = smov [#allocation15]  }
  0x55   :  { %s95_s17 = sshll.u32 %s20435_s4, 4  ;;  %s117_s18 = sshll.u32 %s20436_s3, 4  ;;  %s96_s17 = int_to_ptr.vmem [resolvable:$true] %s95_s17  ;;  %s118_s18 = int_to_ptr.vmem [resolvable:$true] %s117_s18 }
  0x56   :  { %s20358_s19 = scalar_lea.vmem %s96_s17, 1024  ;;  %p20363_p8 = scmp.lt.s32.totalorder %s96_s17, %s96_s17 }
  0x57   :  { %p20359_p7 = scmp.ne.s32.totalorder %s96_s17, %s20358_s19  ;;  %p20364_p9 = scmp.lt.s32.totalorder %s20358_s19, %s20358_s19 }
  0x59   :  { %p20365_p10 = por %p20364_p9, %p20363_p8 }
  0x5b   :  { %p20366_p11 = pnand %p20365_p10, %p20359_p7 }
  0x5d   :  { %20369 = shalt.err (!%p20366_p11)
}
  0x5e   :  { %101 = dma.hbm_to_vmem [thread:$0]  %s21108_s7, 1024, %s96_s17, [#allocation11], %s20433_s2, %s20433_s2, %s20434_s14  }
  0x5f   :  { %s20378_s6 = scalar_lea.vmem %s118_s18, 1024  ;;  %p20383_p13 = scmp.lt.s32.totalorder %s118_s18, %s118_s18 }
  0x60   :  { %p20379_p12 = scmp.ne.s32.totalorder %s118_s18, %s20378_s6  ;;  %p20384_p0 = scmp.lt.s32.totalorder %s20378_s6, %s20378_s6 }
  0x62   :  { %p20385_p1 = por %p20384_p0, %p20383_p13 }
  0x64   :  { %p20386_p2 = pnand %p20385_p1, %p20379_p12 }
  0x66   :  { %20389 = shalt.err (!%p20386_p2)
}
  0x67   :  { %123 = dma.hbm_to_vmem [thread:$0]  %s21110_s9, 1024, %s118_s18, [#allocation14], %s20433_s2, %s20433_s2, %s20434_s14  }
  0x68   :  { %s20437_s23 = smov [#allocation16]  }
  0x69   :  { %s130_s24 = sshll.u32 %s20437_s23, 4  ;;  %s131_s24 = int_to_ptr.vmem [resolvable:$true] %s130_s24 }
  0x6a   :  { %s20398_s25 = scalar_lea.vmem %s131_s24, 16  ;;  %s20402_s26 = scalar_lea.vmem %s131_s24, 32 }
  0x6b   :  { %p20399_p3 = scmp.ne.s32.totalorder %s131_s24, %s20398_s25  ;;  %p20403_p4 = scmp.lt.s32.totalorder %s131_s24, %s131_s24 }
  0x6c   :  { %p20404_p5 = scmp.lt.s32.totalorder %s20402_s26, %s20398_s25 }
  0x6e   :  { %p20405_p6 = por %p20404_p5, %p20403_p4 }
  0x70   :  { %p20406_p7 = pnand %p20405_p6, %p20399_p3 }
  0x72   :  { %20409 = shalt.err (!%p20406_p7)
}
  0x73   :  { %133 = dma.hbm_to_vmem [thread:$0]  %s21111_s10, 16, %s131_s24, [#allocation17]  }
  0x74   :  { %20410 = dma.done.wait [#allocation3], 175616  }
  0x75   :  { %20411 = vsyncadd [#allocation3], 4294791680 }
  0x76   :  { %20412 = dma.done.wait [#allocation5], 57456  }
  0x77   :  { %20413 = vsyncadd [#allocation5], 4294909840 }
  0x78   :  { %20414 = dma.done.wait [#allocation8], 2080  }
  0x79   :  { %20415 = vsyncadd [#allocation8], 4294965216 }
  0x7a   :  { %20416 = dma.done.wait [#allocation11], 1040  }
  0x7b   :  { %20417 = vsyncadd [#allocation11], 4294966256 }
  0x7c   :  { %20418 = dma.done.wait [#allocation14], 1040  }
  0x7d   :  { %20419 = vsyncadd [#allocation14], 4294966256 }
  0x7e   :  { %20420 = dma.done.wait [#allocation17], 16  }
  0x7f   :  { %20421 = vsyncadd [#allocation17], 4294967280  ;;  %v17546_v0 = vld [vmem:[#allocation2 + $0x18c] ss:$28 sps:$4 sm:$0xff]   ;;  %v17552_v4 = vld [vmem:[#allocation2 + $0x154] ss:$28 sps:$4 sm:$0xff]  }
  0x80   :  { %v17548_v1 = vld [vmem:[#allocation2 + $0x50c] ss:$28 sps:$4 sm:$0xff]   ;;  %2339 = vmatprep.subr.bf16.mxu0 %v17546_v0  ;;  %v17554_v5 = vld [vmem:[#allocation2 + $0x4d4] ss:$28 sps:$4 sm:$0xff]   ;;  %v17558_v8 = vld [vmem:[#allocation2 + $0x11c] ss:$28 sps:$4 sm:$0xff]  }
  0x81   :  { %v17550_v2 = vld [vmem:[#allocation2 + $0x188] ss:$28 sps:$4 sm:$0xff]   ;;  %2380 = vmatprep.subr.bf16.mxu1 %v17548_v1  ;;  %v17556_v6 = vld [vmem:[#allocation2 + $0x150] ss:$28 sps:$4 sm:$0xff]   ;;  %v17560_v9 = vld [vmem:[#allocation2 + $0x49c] ss:$28 sps:$4 sm:$0xff]  }
  0x82   :  { %v17551_v3 = vld [vmem:[#allocation2 + $0x508] ss:$28 sps:$4 sm:$0xff]   ;;  %2340 = vmatpush1.bf16.msra.mxu0 %v17550_v2  ;;  %v17557_v7 = vld [vmem:[#allocation2 + $0x4d0] ss:$28 sps:$4 sm:$0xff]   ;;  %v17562_v10 = vld [vmem:[#allocation2 + $0x118] ss:$28 sps:$4 sm:$0xff]  }
  0x83   :  { %2381 = vmatpush1.bf16.msra.mxu1 %v17551_v3  ;;  %2341 = vmatprep.subr.bf16.mxu0 %v17552_v4  ;;  %v17563_v11 = vld [vmem:[#allocation2 + $0x498] ss:$28 sps:$4 sm:$0xff]   ;;  %v17564_v12 = vld [vmem:[#allocation2 + $0xe4] ss:$28 sps:$4 sm:$0xff]   ;;  %v17570_v16 = vld [vmem:[#allocation2 + $0xac] ss:$28 sps:$4 sm:$0xff]  }
  0x84   :  { %2382 = vmatprep.subr.bf16.mxu1 %v17554_v5  ;;  %v17566_v13 = vld [vmem:[#allocation2 + $0x464] ss:$28 sps:$4 sm:$0xff]   ;;  %v17572_v17 = vld [vmem:[#allocation2 + $0x42c] ss:$28 sps:$4 sm:$0xff]   ;;  %v17576_v20 = vld [vmem:[#allocation2 + $0x74] ss:$28 sps:$4 sm:$0xff]  }
  0x85   :  { %v17568_v14 = vld [vmem:[#allocation2 + $0xe0] ss:$28 sps:$4 sm:$0xff]   ;;  %v17574_v18 = vld [vmem:[#allocation2 + $0xa8] ss:$28 sps:$4 sm:$0xff]   ;;  %v17578_v21 = vld [vmem:[#allocation2 + $0x3f4] ss:$28 sps:$4 sm:$0xff]  }
  0x86   :  { %2342 = vmatpush1.bf16.msra.mxu0 %v17556_v6  ;;  %v17569_v15 = vld [vmem:[#allocation2 + $0x460] ss:$28 sps:$4 sm:$0xff]   ;;  %v17575_v19 = vld [vmem:[#allocation2 + $0x428] ss:$28 sps:$4 sm:$0xff]   ;;  %v17580_v22 = vld [vmem:[#allocation2 + $0x70] ss:$28 sps:$4 sm:$0xff]  }
  0x87   :  { %2383 = vmatpush1.bf16.msra.mxu1 %v17557_v7  ;;  %2343 = vmatprep.subr.bf16.mxu0 %v17558_v8  ;;  %v17581_v23 = vld [vmem:[#allocation2 + $0x3f0] ss:$28 sps:$4 sm:$0xff]   ;;  %v17582_v24 = vld [vmem:[#allocation2 + $0x3c] ss:$28 sps:$4 sm:$0xff]   ;;  %v17588_v28 = vld [vmem:[#allocation2 + $0x4] ss:$28 sps:$4 sm:$0xff]  }
  0x88   :  { %2384 = vmatprep.subr.bf16.mxu1 %v17560_v9  ;;  %v17584_v25 = vld [vmem:[#allocation2 + $0x3bc] ss:$28 sps:$4 sm:$0xff]   ;;  %v17590_v29 = vld [vmem:[#allocation2 + $0x384] ss:$28 sps:$4 sm:$0xff]   ;;  %v17594_v32 = vld [vmem:[#allocation2 + $0x34c] ss:$28 sps:$4 sm:$0xff]  }
  0x89   :  { %v17586_v26 = vld [vmem:[#allocation2 + $0x38] ss:$28 sps:$4 sm:$0xff]   ;;  %v17592_v30 = vld [vmem:[#allocation2] ss:$28 sps:$4 sm:$0xff]   ;;  %v17596_v33 = vld [vmem:[#allocation2 + $0x6cc] ss:$28 sps:$4 sm:$0xff]  }
  0x8a   :  { %2344 = vmatpush1.bf16.msra.mxu0 %v17562_v10  ;;  %v17587_v27 = vld [vmem:[#allocation2 + $0x3b8] ss:$28 sps:$4 sm:$0xff]   ;;  %v17593_v31 = vld [vmem:[#allocation2 + $0x380] ss:$28 sps:$4 sm:$0xff]   ;;  %v17598_v34 = vld [vmem:[#allocation2 + $0x348] ss:$28 sps:$4 sm:$0xff]  }
  0x8b   :  { %2385 = vmatpush1.bf16.msra.mxu1 %v17563_v11  ;;  %2345 = vmatprep.subr.bf16.mxu0 %v17564_v12  ;;  %v17599_v35 = vld [vmem:[#allocation2 + $0x6c8] ss:$28 sps:$4 sm:$0xff]   ;;  %v17600_v36 = vld [vmem:[#allocation2 + $0x314] ss:$28 sps:$4 sm:$0xff]   ;;  %v17606_v40 = vld [vmem:[#allocation2 + $0x2dc] ss:$28 sps:$4 sm:$0xff]  }
  0x8c   :  { %2386 = vmatprep.subr.bf16.mxu1 %v17566_v13  ;;  %v17602_v37 = vld [vmem:[#allocation2 + $0x694] ss:$28 sps:$4 sm:$0xff]   ;;  %v17608_v41 = vld [vmem:[#allocation2 + $0x65c] ss:$28 sps:$4 sm:$0xff]   ;;  %v17612_v44 = vld [vmem:[#allocation2 + $0x2a4] ss:$28 sps:$4 sm:$0xff]  }
  0x8d   :  { %v17604_v38 = vld [vmem:[#allocation2 + $0x310] ss:$28 sps:$4 sm:$0xff]   ;;  %v17610_v42 = vld [vmem:[#allocation2 + $0x2d8] ss:$28 sps:$4 sm:$0xff]   ;;  %v17614_v45 = vld [vmem:[#allocation2 + $0x624] ss:$28 sps:$4 sm:$0xff]  }
  0x8e   :  { %2346 = vmatpush1.bf16.msra.mxu0 %v17568_v14  ;;  %v17605_v39 = vld [vmem:[#allocation2 + $0x690] ss:$28 sps:$4 sm:$0xff]   ;;  %v17611_v43 = vld [vmem:[#allocation2 + $0x658] ss:$28 sps:$4 sm:$0xff]   ;;  %v17616_v47 = vld [vmem:[#allocation2 + $0x2a0] ss:$28 sps:$4 sm:$0xff]  }
  0x8f   :  { %2387 = vmatpush1.bf16.msra.mxu1 %v17569_v15  ;;  %2347 = vmatprep.subr.bf16.mxu0 %v17570_v16  ;;  %v166_v46 = vld [vmem:[%s21101_s0 + $0x8] sm:$0xff]  ;;  %v17617_v48 = vld [vmem:[#allocation2 + $0x620] ss:$28 sps:$4 sm:$0xff]   ;;  %v17624_v56 = vld [vmem:[#allocation2 + $0x234] ss:$28 sps:$4 sm:$0xff]   ;;  %v20438_v16 = vmov 0  }
  0x90   :  { %2388 = vmatprep.subr.bf16.mxu1 %v17572_v17  ;;  %v20534_v49 = vpack.c.bf16 %v166_v46, %v166_v46  ;;  %v168_v50 = vld [vmem:[%s21101_s0 + $0x18] sm:$0xff]  ;;  %v17618_v51 = vld [vmem:[#allocation2 + $0x26c] ss:$28 sps:$4 sm:$0xff]   ;;  %v17626_v57 = vld [vmem:[#allocation2 + $0x5b4] ss:$28 sps:$4 sm:$0xff]   ;;  %vm2335_vm0 = vcmask 130048  }
  0x91   :  { %v20539_v52 = vpack.c.bf16 %v168_v50, %v168_v50  ;;  %v17620_v53 = vld [vmem:[#allocation2 + $0x5ec] ss:$28 sps:$4 sm:$0xff]   ;;  %v17630_v60 = vld [vmem:[#allocation2 + $0x1fc] ss:$28 sps:$4 sm:$0xff]   ;;  %v17636_v0 = vld [vmem:[#allocation2 + $0x1c4] ss:$28 sps:$4 sm:$0xff]  }
  0x92   :  { %2348 = vmatpush1.bf16.msra.mxu0 %v17574_v18  ;;  %2371 = vmatprep.mubr.bf16.mxu0 %v20534_v49  ;;  %v17622_v54 = vld [vmem:[#allocation2 + $0x268] ss:$28 sps:$4 sm:$0xff]   ;;  %v17628_v58 = vld [vmem:[#allocation2 + $0x230] ss:$28 sps:$4 sm:$0xff]   ;;  %v17632_v61 = vld [vmem:[#allocation2 + $0x57c] ss:$28 sps:$4 sm:$0xff]  }
  0x93   :  { %2389 = vmatpush1.bf16.msra.mxu1 %v17575_v19  ;;  %2349 = vmatprep.subr.bf16.mxu0 %v17576_v20  ;;  %v17623_v55 = vld [vmem:[#allocation2 + $0x5e8] ss:$28 sps:$4 sm:$0xff]   ;;  %v17629_v59 = vld [vmem:[#allocation2 + $0x5b0] ss:$28 sps:$4 sm:$0xff]   ;;  %v17634_v62 = vld [vmem:[#allocation2 + $0x1f8] ss:$28 sps:$4 sm:$0xff]  }
  0x94   :  { %2390 = vmatprep.subr.bf16.mxu1 %v17578_v21  ;;  %2412 = vmatprep.mubr.bf16.mxu1 %v20539_v52  ;;  %v17635_v63 = vld [vmem:[#allocation2 + $0x578] ss:$28 sps:$4 sm:$0xff]   ;;  %v17638_v1 = vld [vmem:[#allocation2 + $0x544] ss:$28 sps:$4 sm:$0xff]   ;;  %v17644_v6 = vld [vmem:[#allocation2 + $0x88c] ss:$28 sps:$4 sm:$0xff]  }
  0x95   :  { %v17640_v2 = vld [vmem:[#allocation2 + $0x1c0] ss:$28 sps:$4 sm:$0xff]   ;;  %v167_v5 = vld [vmem:[%s21101_s0 + $0x10] sm:$0xff]  ;;  %v17642_v10 = vld [vmem:[#allocation2 + $0x888] ss:$28 sps:$4 sm:$0xff]   ;;  %vm20440_vm1 = vmmov 0  }
  0x96   :  { %2350 = vmatpush1.bf16.msra.mxu0 %v17580_v22  ;;  %v17641_v3 = vld [vmem:[#allocation2 + $0x540] ss:$28 sps:$4 sm:$0xff]   ;;  %v20551_v9 = vpack.c.bf16 %v167_v5, %v167_v5  ;;  %v17650_v12 = vld [vmem:[#allocation2 + $0x854] ss:$28 sps:$4 sm:$0xff]   ;;  %v17690_v46 = vld [vmem:[#allocation2 + $0xa48] ss:$28 sps:$4 sm:$0xff]  }
  0x97   :  { %2391 = vmatpush1.bf16.msra.mxu1 %v17581_v23  ;;  %2351 = vmatprep.subr.bf16.mxu0 %v17582_v24  ;;  %v165_v4 = vld [vmem:[%s21101_s0] sm:$0xff]  ;;  %v17653_v13 = vld [vmem:[#allocation2 + $0x194] ss:$28 sps:$4 sm:$0xff]   ;;  %v17656_v17 = vld [vmem:[#allocation2 + $0x81c] ss:$28 sps:$4 sm:$0xff]  }
  0x98   :  { %2392 = vmatprep.subr.bf16.mxu1 %v17584_v25  ;;  %v17647_v7 = vld [vmem:[#allocation2 + $0xa84] ss:$28 sps:$4 sm:$0xff]   ;;  %v20549_v8 = vpack.c.bf16 %v165_v4, %v165_v4  ;;  %v17648_v14 = vld [vmem:[#allocation2 + $0x850] ss:$28 sps:$4 sm:$0xff]   ;;  %v17654_v20 = vld [vmem:[#allocation2 + $0x818] ss:$28 sps:$4 sm:$0xff]  }
  0x99   :  { %v17645_v11 = vld [vmem:[#allocation2 + $0xa80] ss:$28 sps:$4 sm:$0xff]   ;;  %v171_v15 = vld [vmem:[%s21101_s0 + $0x30] sm:$0xff]  ;;  %v17693_v50 = vld [vmem:[#allocation2 + $0x8] ss:$28 sps:$4 sm:$0xff]  }
  0x9a   :  { %2352 = vmatpush1.bf16.msra.mxu0 %v17586_v26  ;;  %v17651_v18 = vld [vmem:[#allocation2 + $0x190] ss:$28 sps:$4 sm:$0xff]   ;;  %v20559_v19 = vpack.c.bf16 %v171_v15, %v171_v15  ;;  %v17659_v21 = vld [vmem:[#allocation2 + $0x15c] ss:$28 sps:$4 sm:$0xff]   ;;  %v17662_v22 = vld [vmem:[#allocation2 + $0x7e4] ss:$28 sps:$4 sm:$0xff]  }
  0x9b   :  { %2393 = vmatpush1.bf16.msra.mxu1 %v17587_v27  ;;  %2353 = vmatprep.subr.bf16.mxu0 %v17588_v28  ;;  %v17657_v23 = vld [vmem:[#allocation2 + $0x158] ss:$28 sps:$4 sm:$0xff]   ;;  %v17660_v24 = vld [vmem:[#allocation2 + $0x7e0] ss:$28 sps:$4 sm:$0xff]   ;;  %v17668_v26 = vld [vmem:[#allocation2 + $0x7ac] ss:$28 sps:$4 sm:$0xff]  }
  0x9c   :  { %2394 = vmatprep.subr.bf16.mxu1 %v17590_v29  ;;  %v17665_v25 = vld [vmem:[#allocation2 + $0x124] ss:$28 sps:$4 sm:$0xff]   ;;  %v17671_v29 = vld [vmem:[#allocation2 + $0xec] ss:$28 sps:$4 sm:$0xff]   ;;  %v17725_v5 = vld [vmem:[#allocation2 + $0x274] ss:$28 sps:$4 sm:$0xff]  }
  0x9d   :  { %v17663_v27 = vld [vmem:[#allocation2 + $0x120] ss:$28 sps:$4 sm:$0xff]   ;;  %v17666_v28 = vld [vmem:[#allocation2 + $0x7a8] ss:$28 sps:$4 sm:$0xff]   ;;  %v17720_v4 = vld [vmem:[#allocation2 + $0x930] ss:$28 sps:$4 sm:$0xff]  }
  0x9e   :  { %2354 = vmatpush1.bf16.msra.mxu0 %v17592_v30  ;;  %v17674_v30 = vld [vmem:[#allocation2 + $0x774] ss:$28 sps:$4 sm:$0xff]   ;;  %v17737_v15 = vld [vmem:[#allocation2 + $0x204] ss:$28 sps:$4 sm:$0xff]  }
  0x9f   :  { %2395 = vmatpush1.bf16.msra.mxu1 %v17593_v31  ;;  %2355 = vmatprep.subr.bf16.mxu0 %v17594_v32  ;;  %v17669_v31 = vld [vmem:[#allocation2 + $0xe8] ss:$28 sps:$4 sm:$0xff]   ;;  %v17672_v32 = vld [vmem:[#allocation2 + $0x770] ss:$28 sps:$4 sm:$0xff]  }
  0xa0   :  { %2396 = vmatprep.subr.bf16.mxu1 %v17596_v33  ;;  %v17677_v33 = vld [vmem:[#allocation2 + $0xb4] ss:$28 sps:$4 sm:$0xff]  }
  0xa2   :  { %2356 = vmatpush2.bf16.msra.mxu0 %v17598_v34  ;;  %v17680_v34 = vld [vmem:[#allocation2 + $0x73c] ss:$28 sps:$4 sm:$0xff]  }
  0xa3   :  { %2397 = vmatpush2.bf16.msra.mxu1 %v17599_v35  ;;  %2357 = vmatprep.subr.bf16.mxu0 %v17600_v36  ;;  %v170_v35 = vld [vmem:[%s21101_s0 + $0x28] sm:$0xff] }
  0xa4   :  { %2398 = vmatprep.subr.bf16.mxu1 %v17602_v37  ;;  %v20567_v36 = vpack.c.bf16 %v170_v35, %v170_v35  ;;  %v17675_v37 = vld [vmem:[#allocation2 + $0xb0] ss:$28 sps:$4 sm:$0xff]   ;;  %v17761_v35 = vld [vmem:[#allocation2 + $0x824] ss:$28 sps:$4 sm:$0xff]  }
  0xa6   :  { %2358 = vmatpush2.bf16.msra.mxu0 %v17604_v38  ;;  %v17678_v38 = vld [vmem:[#allocation2 + $0x738] ss:$28 sps:$4 sm:$0xff]  }
  0xa7   :  { %2399 = vmatpush2.bf16.msra.mxu1 %v17605_v39  ;;  %2359 = vmatprep.subr.bf16.mxu0 %v17606_v40  ;;  %v17683_v39 = vld [vmem:[#allocation2 + $0x7c] ss:$28 sps:$4 sm:$0xff]   ;;  %v17686_v40 = vld [vmem:[#allocation2 + $0x704] ss:$28 sps:$4 sm:$0xff]  }
  0xa8   :  { %2400 = vmatprep.subr.bf16.mxu1 %v17608_v41  ;;  %v17681_v41 = vld [vmem:[#allocation2 + $0x78] ss:$28 sps:$4 sm:$0xff]  }
  0xaa   :  { %2360 = vmatpush2.bf16.msra.mxu0 %v17610_v42  ;;  %v17684_v42 = vld [vmem:[#allocation2 + $0x700] ss:$28 sps:$4 sm:$0xff]  }
  0xab   :  { %2401 = vmatpush2.bf16.msra.mxu1 %v17611_v43  ;;  %2361 = vmatprep.subr.bf16.mxu0 %v17612_v44  ;;  %v17689_v43 = vld [vmem:[#allocation2 + $0x44] ss:$28 sps:$4 sm:$0xff]   ;;  %v17692_v44 = vld [vmem:[#allocation2 + $0xa4c] ss:$28 sps:$4 sm:$0xff]  }
  0xac   :  { %2402 = vmatprep.subr.bf16.mxu1 %v17614_v45  ;;  %v17687_v45 = vld [vmem:[#allocation2 + $0x40] ss:$28 sps:$4 sm:$0xff]  }
  0xae   :  { %2362 = vmatpush2.bf16.msra.mxu0 %v17616_v47  ;;  %v17695_v47 = vld [vmem:[#allocation2 + $0xc] ss:$28 sps:$4 sm:$0xff]  }
  0xaf   :  { %2403 = vmatpush2.bf16.msra.mxu1 %v17617_v48  ;;  %2363 = vmatprep.subr.bf16.mxu0 %v17618_v51  ;;  %v17698_v48 = vld [vmem:[#allocation2 + $0xa14] ss:$28 sps:$4 sm:$0xff]  }
  0xb0   :  { %2404 = vmatprep.subr.bf16.mxu1 %v17620_v53  ;;  %v17696_v51 = vld [vmem:[#allocation2 + $0xa10] ss:$28 sps:$4 sm:$0xff]  }
  0xb1   :  { %v17701_v53 = vld [vmem:[#allocation2 + $0x354] ss:$28 sps:$4 sm:$0xff]  }
  0xb2   :  { %2364 = vmatpush2.bf16.msra.mxu0 %v17622_v54  ;;  %v17704_v54 = vld [vmem:[#allocation2 + $0x9dc] ss:$28 sps:$4 sm:$0xff]  }
  0xb3   :  { %2405 = vmatpush2.bf16.msra.mxu1 %v17623_v55  ;;  %2365 = vmatprep.subr.bf16.mxu0 %v17624_v56  ;;  %v17699_v55 = vld [vmem:[#allocation2 + $0x350] ss:$28 sps:$4 sm:$0xff]   ;;  %v17702_v56 = vld [vmem:[#allocation2 + $0x9d8] ss:$28 sps:$4 sm:$0xff]  }
  0xb4   :  { %2406 = vmatprep.subr.bf16.mxu1 %v17626_v57  ;;  %v17707_v57 = vld [vmem:[#allocation2 + $0x31c] ss:$28 sps:$4 sm:$0xff]  }
  0xb6   :  { %2366 = vmatpush2.bf16.msra.mxu0 %v17628_v58  ;;  %v17710_v58 = vld [vmem:[#allocation2 + $0x9a4] ss:$28 sps:$4 sm:$0xff]  }
  0xb7   :  { %2407 = vmatpush2.bf16.msra.mxu1 %v17629_v59  ;;  %2367 = vmatprep.subr.bf16.mxu0 %v17630_v60  ;;  %v17705_v59 = vld [vmem:[#allocation2 + $0x318] ss:$28 sps:$4 sm:$0xff]   ;;  %v17708_v60 = vld [vmem:[#allocation2 + $0x9a0] ss:$28 sps:$4 sm:$0xff]  }
  0xb8   :  { %2408 = vmatprep.subr.bf16.mxu1 %v17632_v61  ;;  %v17713_v61 = vld [vmem:[#allocation2 + $0x2e4] ss:$28 sps:$4 sm:$0xff]  }
  0xba   :  { %2368 = vmatpush2.bf16.msra.mxu0 %v17634_v62  ;;  %v17716_v62 = vld [vmem:[#allocation2 + $0x96c] ss:$28 sps:$4 sm:$0xff]  }
  0xbb   :  { %2409 = vmatpush2.bf16.msra.mxu1 %v17635_v63  ;;  %2369 = vmatprep.subr.bf16.mxu0 %v17636_v0  ;;  %v17711_v63 = vld [vmem:[#allocation2 + $0x2e0] ss:$28 sps:$4 sm:$0xff]   ;;  %v17714_v0 = vld [vmem:[#allocation2 + $0x968] ss:$28 sps:$4 sm:$0xff]  }
  0xbc   :  { %2410 = vmatprep.subr.bf16.mxu1 %v17638_v1  ;;  %v17719_v1 = vld [vmem:[#allocation2 + $0x2ac] ss:$28 sps:$4 sm:$0xff]  }
  0xbe   :  { %2370 = vmatpush2.bf16.msra.mxu0 %v17640_v2  ;;  %v17722_v2 = vld [vmem:[#allocation2 + $0x934] ss:$28 sps:$4 sm:$0xff]  }
  0xbf   :  { %2411 = vmatpush2.bf16.msra.mxu1 %v17641_v3  ;;  %2421 = vmatprep.subr.bf16.mxu0 %v17644_v6  ;;  %v17717_v3 = vld [vmem:[#allocation2 + $0x2a8] ss:$28 sps:$4 sm:$0xff]   ;;  %v17728_v6 = vld [vmem:[#allocation2 + $0x8fc] ss:$28 sps:$4 sm:$0xff]  }
  0xc0   :  { %2476 = vmatprep.subr.bf16.mxu1 %v17647_v7  ;;  %v17723_v7 = vld [vmem:[#allocation2 + $0x270] ss:$28 sps:$4 sm:$0xff]  }
  0xc1   :  { %2372 = vmatmul.mubr.bf16.vlgmr.msra.gmra.mxu0 %v20549_v8 }
  0xc2   :  { %2413 = vmatmul.mubr.bf16.vlgmr.msra.gmra.mxu1 %v20551_v9  ;;  %2422 = vmatpush1.bf16.msra.mxu0 %v17642_v10  ;;  %v17726_v10 = vld [vmem:[#allocation2 + $0x8f8] ss:$28 sps:$4 sm:$0xff]  }
  0xc3   :  { %2477 = vmatpush1.bf16.msra.mxu1 %v17645_v11  ;;  %2423 = vmatprep.subr.bf16.mxu0 %v17650_v12  ;;  %v17731_v11 = vld [vmem:[#allocation2 + $0x23c] ss:$28 sps:$4 sm:$0xff]   ;;  %v17734_v12 = vld [vmem:[#allocation2 + $0x8c4] ss:$28 sps:$4 sm:$0xff]  }
  0xc4   :  { %2494 = vmatprep.mubr.bf16.mxu1 %v20438_v16  ;;  %2503 = vmatprep.subr.bf16.mxu1 %v17653_v13  ;;  %v17729_v13 = vld [vmem:[#allocation2 + $0x238] ss:$28 sps:$4 sm:$0xff]  }
  0xc5   :  { %2453 = vmatprep.mubr.bf16.mxu0 %v20567_v36 }
  0xc6   :  { %2424 = vmatpush1.bf16.msra.mxu0 %v17648_v14  ;;  %v17732_v14 = vld [vmem:[#allocation2 + $0x8c0] ss:$28 sps:$4 sm:$0xff]  }
  0xc7   :  { %2425 = vmatprep.subr.bf16.mxu0 %v17656_v17  ;;  %v169_v17 = vld [vmem:[%s21101_s0 + $0x20] sm:$0xff] }
  0xca   :  { %15623 = vmatmul.mubr.msk.bf16.vlgmr.msra.gmra.mxu1 %vm2335_vm0, %v20559_v19  ;;  %2426 = vmatpush1.bf16.msra.mxu0 %v17654_v20  ;;  %v17735_v20 = vld [vmem:[#allocation2 + $0x200] ss:$28 sps:$4 sm:$0xff]  }
  0xcb   :  { %2504 = vmatpush1.bf16.msra.mxu1 %v17651_v18  ;;  %2427 = vmatprep.subr.bf16.mxu0 %v17662_v22  ;;  %v17740_v18 = vld [vmem:[#allocation2 + $0x514] ss:$28 sps:$4 sm:$0xff]  }
  0xcc   :  { %2505 = vmatprep.subr.bf16.mxu1 %v17659_v21  ;;  %2535 = vmatprep.mubr.bf16.mxu1 %v20534_v49  ;;  %v20573_v21 = vpack.c.bf16 %v169_v17, %v169_v17  ;;  %v17738_v22 = vld [vmem:[#allocation2 + $0x510] ss:$28 sps:$4 sm:$0xff]  }
  0xcd   :  { %v17821_v17 = vld [vmem:[#allocation2 + $0x974] ss:$28 sps:$4 sm:$0xff]  }
  0xce   :  { %2428 = vmatpush1.bf16.msra.mxu0 %v17660_v24  ;;  %v17746_v24 = vld [vmem:[#allocation2 + $0x4dc] ss:$28 sps:$4 sm:$0xff]  }
  0xcf   :  { %2506 = vmatpush1.bf16.msra.mxu1 %v17657_v23  ;;  %2429 = vmatprep.subr.bf16.mxu0 %v17668_v26  ;;  %v17743_v23 = vld [vmem:[#allocation2 + $0x1cc] ss:$28 sps:$4 sm:$0xff]   ;;  %v17744_v26 = vld [vmem:[#allocation2 + $0x4d8] ss:$28 sps:$4 sm:$0xff]  }
  0xd0   :  { %2507 = vmatprep.subr.bf16.mxu1 %v17665_v25  ;;  %v17741_v25 = vld [vmem:[#allocation2 + $0x1c8] ss:$28 sps:$4 sm:$0xff]  }
  0xd2   :  { %2430 = vmatpush1.bf16.msra.mxu0 %v17666_v28  ;;  %v17752_v28 = vld [vmem:[#allocation2 + $0x4a4] ss:$28 sps:$4 sm:$0xff]  }
  0xd3   :  { %2508 = vmatpush1.bf16.msra.mxu1 %v17663_v27  ;;  %2431 = vmatprep.subr.bf16.mxu0 %v17674_v30  ;;  %v17749_v27 = vld [vmem:[#allocation2 + $0x894] ss:$28 sps:$4 sm:$0xff]   ;;  %v17750_v30 = vld [vmem:[#allocation2 + $0x4a0] ss:$28 sps:$4 sm:$0xff]  }
  0xd4   :  { %2509 = vmatprep.subr.bf16.mxu1 %v17671_v29  ;;  %v17747_v29 = vld [vmem:[#allocation2 + $0x890] ss:$28 sps:$4 sm:$0xff]  }
  0xd6   :  { %2432 = vmatpush1.bf16.msra.mxu0 %v17672_v32  ;;  %v17758_v32 = vld [vmem:[#allocation2 + $0x46c] ss:$28 sps:$4 sm:$0xff]  }
  0xd7   :  { %2510 = vmatpush1.bf16.msra.mxu1 %v17669_v31  ;;  %2433 = vmatprep.subr.bf16.mxu0 %v17680_v34  ;;  %v17755_v31 = vld [vmem:[#allocation2 + $0x85c] ss:$28 sps:$4 sm:$0xff]   ;;  %v17756_v34 = vld [vmem:[#allocation2 + $0x468] ss:$28 sps:$4 sm:$0xff]  }
  0xd8   :  { %2511 = vmatprep.subr.bf16.mxu1 %v17677_v33  ;;  %v17753_v33 = vld [vmem:[#allocation2 + $0x858] ss:$28 sps:$4 sm:$0xff]  }
  0xda   :  { %2434 = vmatpush1.bf16.msra.mxu0 %v17678_v38  ;;  %v17759_v38 = vld [vmem:[#allocation2 + $0x820] ss:$28 sps:$4 sm:$0xff]  }
  0xdb   :  { %2512 = vmatpush1.bf16.msra.mxu1 %v17675_v37  ;;  %2435 = vmatprep.subr.bf16.mxu0 %v17686_v40  ;;  %v17764_v37 = vld [vmem:[#allocation2 + $0x434] ss:$28 sps:$4 sm:$0xff]   ;;  %v17767_v40 = vld [vmem:[#allocation2 + $0x7ec] ss:$28 sps:$4 sm:$0xff]  }
  0xdc   :  { %2513 = vmatprep.subr.bf16.mxu1 %v17683_v39  ;;  %v17762_v39 = vld [vmem:[#allocation2 + $0x430] ss:$28 sps:$4 sm:$0xff]  }
  0xde   :  { %2436 = vmatpush1.bf16.msra.mxu0 %v17684_v42  ;;  %v17765_v42 = vld [vmem:[#allocation2 + $0x7e8] ss:$28 sps:$4 sm:$0xff]  }
  0xdf   :  { %2514 = vmatpush1.bf16.msra.mxu1 %v17681_v41  ;;  %2437 = vmatprep.subr.bf16.mxu0 %v17692_v44  ;;  %v17770_v41 = vld [vmem:[#allocation2 + $0x3fc] ss:$28 sps:$4 sm:$0xff]   ;;  %v17773_v44 = vld [vmem:[#allocation2 + $0x7b4] ss:$28 sps:$4 sm:$0xff]  }
  0xe0   :  { %2515 = vmatprep.subr.bf16.mxu1 %v17689_v43  ;;  %v17768_v43 = vld [vmem:[#allocation2 + $0x3f8] ss:$28 sps:$4 sm:$0xff]  }
  0xe2   :  { %2438 = vmatpush2.bf16.msra.mxu0 %v17690_v46  ;;  %v17771_v46 = vld [vmem:[#allocation2 + $0x7b0] ss:$28 sps:$4 sm:$0xff]  }
  0xe3   :  { %2516 = vmatpush1.bf16.msra.mxu1 %v17687_v45  ;;  %2439 = vmatprep.subr.bf16.mxu0 %v17698_v48  ;;  %v17776_v45 = vld [vmem:[#allocation2 + $0x3c4] ss:$28 sps:$4 sm:$0xff]   ;;  %v17779_v48 = vld [vmem:[#allocation2 + $0x77c] ss:$28 sps:$4 sm:$0xff]  }
  0xe4   :  { %2517 = vmatprep.subr.bf16.mxu1 %v17695_v47  ;;  %v17774_v47 = vld [vmem:[#allocation2 + $0x3c0] ss:$28 sps:$4 sm:$0xff]  }
  0xe6   :  { %2440 = vmatpush2.bf16.msra.mxu0 %v17696_v51  ;;  %v17777_v51 = vld [vmem:[#allocation2 + $0x778] ss:$28 sps:$4 sm:$0xff]  }
  0xe7   :  { %2518 = vmatpush1.bf16.msra.mxu1 %v17693_v50  ;;  %2441 = vmatprep.subr.bf16.mxu0 %v17704_v54  ;;  %v17782_v50 = vld [vmem:[#allocation2 + $0x38c] ss:$28 sps:$4 sm:$0xff]   ;;  %v17785_v54 = vld [vmem:[#allocation2 + $0x744] ss:$28 sps:$4 sm:$0xff]  }
  0xe8   :  { %2519 = vmatprep.subr.bf16.mxu1 %v17701_v53  ;;  %v17780_v53 = vld [vmem:[#allocation2 + $0x388] ss:$28 sps:$4 sm:$0xff]  }
  0xea   :  { %2442 = vmatpush2.bf16.msra.mxu0 %v17702_v56  ;;  %v17783_v56 = vld [vmem:[#allocation2 + $0x740] ss:$28 sps:$4 sm:$0xff]  }
  0xeb   :  { %2520 = vmatpush2.bf16.msra.mxu1 %v17699_v55  ;;  %2443 = vmatprep.subr.bf16.mxu0 %v17710_v58  ;;  %v17788_v55 = vld [vmem:[#allocation2 + $0x6d4] ss:$28 sps:$4 sm:$0xff]   ;;  %v17791_v58 = vld [vmem:[#allocation2 + $0x70c] ss:$28 sps:$4 sm:$0xff]  }
  0xec   :  { %2521 = vmatprep.subr.bf16.mxu1 %v17707_v57  ;;  %v17786_v57 = vld [vmem:[#allocation2 + $0x6d0] ss:$28 sps:$4 sm:$0xff]  }
  0xee   :  { %2444 = vmatpush2.bf16.msra.mxu0 %v17708_v60  ;;  %v17789_v60 = vld [vmem:[#allocation2 + $0x708] ss:$28 sps:$4 sm:$0xff]  }
  0xef   :  { %2522 = vmatpush2.bf16.msra.mxu1 %v17705_v59  ;;  %2445 = vmatprep.subr.bf16.mxu0 %v17716_v62  ;;  %v17794_v59 = vld [vmem:[#allocation2 + $0x69c] ss:$28 sps:$4 sm:$0xff]   ;;  %v17797_v62 = vld [vmem:[#allocation2 + $0xa54] ss:$28 sps:$4 sm:$0xff]  }
  0xf0   :  { %2523 = vmatprep.subr.bf16.mxu1 %v17713_v61  ;;  %v17792_v61 = vld [vmem:[#allocation2 + $0x698] ss:$28 sps:$4 sm:$0xff]  }
  0xf2   :  { %2446 = vmatpush2.bf16.msra.mxu0 %v17714_v0  ;;  %v17795_v0 = vld [vmem:[#allocation2 + $0xa50] ss:$28 sps:$4 sm:$0xff]  }
  0xf3   :  { %2524 = vmatpush2.bf16.msra.mxu1 %v17711_v63  ;;  %2447 = vmatprep.subr.bf16.mxu0 %v17722_v2  ;;  %v17800_v63 = vld [vmem:[#allocation2 + $0x664] ss:$28 sps:$4 sm:$0xff]   ;;  %v17803_v2 = vld [vmem:[#allocation2 + $0xa1c] ss:$28 sps:$4 sm:$0xff]  }
  0xf4   :  { %2525 = vmatprep.subr.bf16.mxu1 %v17719_v1  ;;  %v17798_v1 = vld [vmem:[#allocation2 + $0x660] ss:$28 sps:$4 sm:$0xff]  }
  0xf6   :  { %2448 = vmatpush2.bf16.msra.mxu0 %v17720_v4  ;;  %v17801_v4 = vld [vmem:[#allocation2 + $0xa18] ss:$28 sps:$4 sm:$0xff]  }
  0xf7   :  { %2526 = vmatpush2.bf16.msra.mxu1 %v17717_v3  ;;  %2449 = vmatprep.subr.bf16.mxu0 %v17728_v6  ;;  %v17806_v3 = vld [vmem:[#allocation2 + $0x62c] ss:$28 sps:$4 sm:$0xff]   ;;  %v17809_v6 = vld [vmem:[#allocation2 + $0x9e4] ss:$28 sps:$4 sm:$0xff]  }
  0xf8   :  { %2527 = vmatprep.subr.bf16.mxu1 %v17725_v5  ;;  %v17804_v5 = vld [vmem:[#allocation2 + $0x628] ss:$28 sps:$4 sm:$0xff]  }
  0xfa   :  { %2450 = vmatpush2.bf16.msra.mxu0 %v17726_v10  ;;  %v17807_v10 = vld [vmem:[#allocation2 + $0x9e0] ss:$28 sps:$4 sm:$0xff]  }
  0xfb   :  { %2528 = vmatpush2.bf16.msra.mxu1 %v17723_v7  ;;  %2451 = vmatprep.subr.bf16.mxu0 %v17734_v12  ;;  %v17812_v7 = vld [vmem:[#allocation2 + $0x5f4] ss:$28 sps:$4 sm:$0xff]   ;;  %v17815_v12 = vld [vmem:[#allocation2 + $0x9ac] ss:$28 sps:$4 sm:$0xff]  }
  0xfc   :  { %2529 = vmatprep.subr.bf16.mxu1 %v17731_v11  ;;  %v17810_v11 = vld [vmem:[#allocation2 + $0x5f0] ss:$28 sps:$4 sm:$0xff]  }
  0xfe   :  { %2452 = vmatpush2.bf16.msra.mxu0 %v17732_v14  ;;  %v17813_v14 = vld [vmem:[#allocation2 + $0x9a8] ss:$28 sps:$4 sm:$0xff]  }
  0xff   :  { %2530 = vmatpush2.bf16.msra.mxu1 %v17729_v13  ;;  %2544 = vmatprep.subr.bf16.mxu0 %v17740_v18  ;;  %v17818_v13 = vld [vmem:[#allocation2 + $0x5bc] ss:$28 sps:$4 sm:$0xff]   ;;  %v17824_v18 = vld [vmem:[#allocation2 + $0x584] ss:$28 sps:$4 sm:$0xff]  }
 0x100   :  { %2531 = vmatprep.subr.bf16.mxu1 %v17737_v15  ;;  %v17816_v15 = vld [vmem:[#allocation2 + $0x5b8] ss:$28 sps:$4 sm:$0xff]  }
 0x101   :  { %2454 = vmatmul.mubr.bf16.vlgmr.msra.gmra.mxu0 %v20573_v21 }
 0x102   :  { %2545 = vmatpush1.bf16.msra.mxu0 %v17738_v22  ;;  %2576 = vmatprep.mubr.bf16.mxu0 %v20539_v52  ;;  %v17822_v22 = vld [vmem:[#allocation2 + $0x580] ss:$28 sps:$4 sm:$0xff]  }
 0x103   :  { %2532 = vmatpush2.bf16.msra.mxu1 %v17735_v20  ;;  %2546 = vmatprep.subr.bf16.mxu0 %v17746_v24  ;;  %v17819_v20 = vld [vmem:[#allocation2 + $0x970] ss:$28 sps:$4 sm:$0xff]  }
 0x104   :  { %2533 = vmatprep.subr.bf16.mxu1 %v17743_v23  ;;  %v17827_v23 = vld [vmem:[#allocation2 + $0x93c] ss:$28 sps:$4 sm:$0xff]   ;;  %v17830_v24 = vld [vmem:[#allocation2 + $0x54c] ss:$28 sps:$4 sm:$0xff]  }
 0x106   :  { %2547 = vmatpush1.bf16.msra.mxu0 %v17744_v26  ;;  %v17828_v26 = vld [vmem:[#allocation2 + $0x548] ss:$28 sps:$4 sm:$0xff]  }
 0x107   :  { %2534 = vmatpush2.bf16.msra.mxu1 %v17741_v25  ;;  %2548 = vmatprep.subr.bf16.mxu0 %v17752_v28  ;;  %v17825_v25 = vld [vmem:[#allocation2 + $0x938] ss:$28 sps:$4 sm:$0xff]  }
 0x108   :  { %2585 = vmatprep.subr.bf16.mxu1 %v17749_v27  ;;  %v17833_v27 = vld [vmem:[#allocation2 + $0x904] ss:$28 sps:$4 sm:$0xff]   ;;  %v17836_v28 = vld [vmem:[#allocation2 + $0x19c] ss:$28 sps:$4 sm:$0xff]  }
 0x10a   :  { %2536 = vmatmul.mubr.bf16.vlgmr.msra.gmra.mxu1 %v20549_v8  ;;  %2549 = vmatpush1.bf16.msra.mxu0 %v17750_v30  ;;  %v17834_v30 = vld [vmem:[#allocation2 + $0x198] ss:$28 sps:$4 sm:$0xff]  }
 0x10b   :  { %2586 = vmatpush1.bf16.msra.mxu1 %v17747_v29  ;;  %2550 = vmatprep.subr.bf16.mxu0 %v17758_v32  ;;  %v17831_v29 = vld [vmem:[#allocation2 + $0x900] ss:$28 sps:$4 sm:$0xff]  }
 0x10c   :  { %2587 = vmatprep.subr.bf16.mxu1 %v17755_v31  ;;  %2617 = vmatprep.mubr.bf16.mxu1 %v20567_v36  ;;  %v17839_v31 = vld [vmem:[#allocation2 + $0x8cc] ss:$28 sps:$4 sm:$0xff]   ;;  %v17842_v32 = vld [vmem:[#allocation2 + $0x164] ss:$28 sps:$4 sm:$0xff]  }
 0x10e   :  { %2551 = vmatpush1.bf16.msra.mxu0 %v17756_v34  ;;  %v17840_v34 = vld [vmem:[#allocation2 + $0x160] ss:$28 sps:$4 sm:$0xff]  }
 0x10f   :  { %2588 = vmatpush1.bf16.msra.mxu1 %v17753_v33  ;;  %2552 = vmatprep.subr.bf16.mxu0 %v17764_v37  ;;  %v17837_v33 = vld [vmem:[#allocation2 + $0x8c8] ss:$28 sps:$4 sm:$0xff]  }
 0x110   :  { %2589 = vmatprep.subr.bf16.mxu1 %v17761_v35  ;;  %v17845_v35 = vld [vmem:[#allocation2 + $0xa8c] ss:$28 sps:$4 sm:$0xff]  }
 0x111   :  { %v17848_v37 = vld [vmem:[#allocation2 + $0x12c] ss:$28 sps:$4 sm:$0xff]  }
 0x112   :  { %2553 = vmatpush1.bf16.msra.mxu0 %v17762_v39  ;;  %v17846_v39 = vld [vmem:[#allocation2 + $0x128] ss:$28 sps:$4 sm:$0xff]  }
 0x113   :  { %2590 = vmatpush1.bf16.msra.mxu1 %v17759_v38  ;;  %2554 = vmatprep.subr.bf16.mxu0 %v17770_v41  ;;  %v17843_v38 = vld [vmem:[#allocation2 + $0xa88] ss:$28 sps:$4 sm:$0xff]   ;;  %v17854_v41 = vld [vmem:[#allocation2 + $0x51c] ss:$28 sps:$4 sm:$0xff]  }
 0x114   :  { %2591 = vmatprep.subr.bf16.mxu1 %v17767_v40  ;;  %v17851_v40 = vld [vmem:[#allocation2 + $0xf4] ss:$28 sps:$4 sm:$0xff]  }
 0x116   :  { %2555 = vmatpush1.bf16.msra.mxu0 %v17768_v43  ;;  %v17857_v43 = vld [vmem:[#allocation2 + $0xbc] ss:$28 sps:$4 sm:$0xff]  }
 0x117   :  { %2592 = vmatpush1.bf16.msra.mxu1 %v17765_v42  ;;  %2556 = vmatprep.subr.bf16.mxu0 %v17776_v45  ;;  %v17849_v42 = vld [vmem:[#allocation2 + $0xf0] ss:$28 sps:$4 sm:$0xff]   ;;  %v17855_v45 = vld [vmem:[#allocation2 + $0xb8] ss:$28 sps:$4 sm:$0xff]  }
 0x118   :  { %2593 = vmatprep.subr.bf16.mxu1 %v17773_v44  ;;  %v17852_v44 = vld [vmem:[#allocation2 + $0x518] ss:$28 sps:$4 sm:$0xff]  }
 0x11a   :  { %2557 = vmatpush1.bf16.msra.mxu0 %v17774_v47  ;;  %v17863_v47 = vld [vmem:[#allocation2 + $0x84] ss:$28 sps:$4 sm:$0xff]  }
 0x11b   :  { %2594 = vmatpush1.bf16.msra.mxu1 %v17771_v46  ;;  %2558 = vmatprep.subr.bf16.mxu0 %v17782_v50  ;;  %v17860_v46 = vld [vmem:[#allocation2 + $0x4e4] ss:$28 sps:$4 sm:$0xff]  }
 0x11c   :  { %2595 = vmatprep.subr.bf16.mxu1 %v17779_v48  ;;  %v17858_v48 = vld [vmem:[#allocation2 + $0x4e0] ss:$28 sps:$4 sm:$0xff]  }
 0x11d   :  { %v17861_v50 = vld [vmem:[#allocation2 + $0x80] ss:$28 sps:$4 sm:$0xff]  }
 0x11e   :  { %2559 = vmatpush1.bf16.msra.mxu0 %v17780_v53  ;;  %v17869_v53 = vld [vmem:[#allocation2 + $0x4c] ss:$28 sps:$4 sm:$0xff]  }
 0x11f   :  { %2596 = vmatpush1.bf16.msra.mxu1 %v17777_v51  ;;  %2560 = vmatprep.subr.bf16.mxu0 %v17788_v55  ;;  %v17866_v51 = vld [vmem:[#allocation2 + $0x4ac] ss:$28 sps:$4 sm:$0xff]  }
 0x120   :  { %2597 = vmatprep.subr.bf16.mxu1 %v17785_v54  ;;  %v17864_v54 = vld [vmem:[#allocation2 + $0x4a8] ss:$28 sps:$4 sm:$0xff]  }
 0x121   :  { %v17867_v55 = vld [vmem:[#allocation2 + $0x48] ss:$28 sps:$4 sm:$0xff]  }
 0x122   :  { %2561 = vmatpush2.bf16.msra.mxu0 %v17786_v57  ;;  %v17875_v57 = vld [vmem:[#allocation2 + $0x14] ss:$28 sps:$4 sm:$0xff]  }
 0x123   :  { %2598 = vmatpush1.bf16.msra.mxu1 %v17783_v56  ;;  %2562 = vmatprep.subr.bf16.mxu0 %v17794_v59  ;;  %v17872_v56 = vld [vmem:[#allocation2 + $0x474] ss:$28 sps:$4 sm:$0xff]  }
 0x124   :  { %2599 = vmatprep.subr.bf16.mxu1 %v17791_v58  ;;  %v17870_v58 = vld [vmem:[#allocation2 + $0x470] ss:$28 sps:$4 sm:$0xff]  }
 0x125   :  { %v17873_v59 = vld [vmem:[#allocation2 + $0x10] ss:$28 sps:$4 sm:$0xff]  }
 0x126   :  { %2563 = vmatpush2.bf16.msra.mxu0 %v17792_v61  ;;  %v17881_v61 = vld [vmem:[#allocation2 + $0x35c] ss:$28 sps:$4 sm:$0xff]  }
 0x127   :  { %2600 = vmatpush1.bf16.msra.mxu1 %v17789_v60  ;;  %2564 = vmatprep.subr.bf16.mxu0 %v17800_v63  ;;  %v17878_v60 = vld [vmem:[#allocation2 + $0x43c] ss:$28 sps:$4 sm:$0xff]  }
 0x128   :  { %2601 = vmatprep.subr.bf16.mxu1 %v17797_v62  ;;  %v17876_v62 = vld [vmem:[#allocation2 + $0x438] ss:$28 sps:$4 sm:$0xff]  }
 0x129   :  { %v17879_v63 = vld [vmem:[#allocation2 + $0x358] ss:$28 sps:$4 sm:$0xff]  }
 0x12a   :  { %2565 = vmatpush2.bf16.msra.mxu0 %v17798_v1  ;;  %v17887_v1 = vld [vmem:[#allocation2 + $0x324] ss:$28 sps:$4 sm:$0xff]  }
 0x12b   :  { %2602 = vmatpush2.bf16.msra.mxu1 %v17795_v0  ;;  %2566 = vmatprep.subr.bf16.mxu0 %v17806_v3  ;;  %v17884_v0 = vld [vmem:[#allocation2 + $0x404] ss:$28 sps:$4 sm:$0xff]  }
 0x12c   :  { %2603 = vmatprep.subr.bf16.mxu1 %v17803_v2  ;;  %v17882_v2 = vld [vmem:[#allocation2 + $0x400] ss:$28 sps:$4 sm:$0xff]  }
 0x12d   :  { %v17885_v3 = vld [vmem:[#allocation2 + $0x320] ss:$28 sps:$4 sm:$0xff]  }
 0x12e   :  { %2567 = vmatpush2.bf16.msra.mxu0 %v17804_v5  ;;  %v17893_v5 = vld [vmem:[#allocation2 + $0x2ec] ss:$28 sps:$4 sm:$0xff]  }
 0x12f   :  { %2604 = vmatpush2.bf16.msra.mxu1 %v17801_v4  ;;  %2568 = vmatprep.subr.bf16.mxu0 %v17812_v7  ;;  %v17890_v4 = vld [vmem:[#allocation2 + $0x3cc] ss:$28 sps:$4 sm:$0xff]  }
 0x130   :  { %2605 = vmatprep.subr.bf16.mxu1 %v17809_v6  ;;  %v17888_v6 = vld [vmem:[#allocation2 + $0x3c8] ss:$28 sps:$4 sm:$0xff]  }
 0x131   :  { %v17891_v7 = vld [vmem:[#allocation2 + $0x2e8] ss:$28 sps:$4 sm:$0xff]  }
 0x132   :  { %2569 = vmatpush2.bf16.msra.mxu0 %v17810_v11  ;;  %v17899_v11 = vld [vmem:[#allocation2 + $0x2b4] ss:$28 sps:$4 sm:$0xff]  }
 0x133   :  { %2606 = vmatpush2.bf16.msra.mxu1 %v17807_v10  ;;  %2570 = vmatprep.subr.bf16.mxu0 %v17818_v13  ;;  %v17896_v10 = vld [vmem:[#allocation2 + $0x394] ss:$28 sps:$4 sm:$0xff]  }
 0x134   :  { %2607 = vmatprep.subr.bf16.mxu1 %v17815_v12  ;;  %v17894_v12 = vld [vmem:[#allocation2 + $0x390] ss:$28 sps:$4 sm:$0xff]  }
 0x135   :  { %v17897_v13 = vld [vmem:[#allocation2 + $0x2b0] ss:$28 sps:$4 sm:$0xff]  }
 0x136   :  { %2571 = vmatpush2.bf16.msra.mxu0 %v17816_v15  ;;  %v17905_v15 = vld [vmem:[#allocation2 + $0x27c] ss:$28 sps:$4 sm:$0xff]  }
 0x137   :  { %2608 = vmatpush2.bf16.msra.mxu1 %v17813_v14  ;;  %2572 = vmatprep.subr.bf16.mxu0 %v17824_v18  ;;  %v17902_v14 = vld [vmem:[#allocation2 + $0x6dc] ss:$28 sps:$4 sm:$0xff]  }
 0x138   :  { %2609 = vmatprep.subr.bf16.mxu1 %v17821_v17  ;;  %v17900_v17 = vld [vmem:[#allocation2 + $0x6d8] ss:$28 sps:$4 sm:$0xff]  }
 0x139   :  { %v17903_v18 = vld [vmem:[#allocation2 + $0x278] ss:$28 sps:$4 sm:$0xff]  }
 0x13a   :  { %2573 = vmatpush2.bf16.msra.mxu0 %v17822_v22  ;;  %v17911_v22 = vld [vmem:[#allocation2 + $0x244] ss:$28 sps:$4 sm:$0xff]  }
 0x13b   :  { %2610 = vmatpush2.bf16.msra.mxu1 %v17819_v20  ;;  %2574 = vmatprep.subr.bf16.mxu0 %v17830_v24  ;;  %v17908_v20 = vld [vmem:[#allocation2 + $0x6a4] ss:$28 sps:$4 sm:$0xff]  }
 0x13c   :  { %2611 = vmatprep.subr.bf16.mxu1 %v17827_v23  ;;  %v17906_v23 = vld [vmem:[#allocation2 + $0x6a0] ss:$28 sps:$4 sm:$0xff]  }
 0x13d   :  { %v17909_v24 = vld [vmem:[#allocation2 + $0x240] ss:$28 sps:$4 sm:$0xff]  }
 0x13e   :  { %2575 = vmatpush2.bf16.msra.mxu0 %v17828_v26  ;;  %v17917_v26 = vld [vmem:[#allocation2 + $0x20c] ss:$28 sps:$4 sm:$0xff]  }
 0x13f   :  { %2612 = vmatpush2.bf16.msra.mxu1 %v17825_v25  ;;  %2667 = vmatprep.subr.bf16.mxu0 %v17836_v28  ;;  %v17914_v25 = vld [vmem:[#allocation2 + $0x66c] ss:$28 sps:$4 sm:$0xff]  }
 0x140   :  { %2613 = vmatprep.subr.bf16.mxu1 %v17833_v27  ;;  %v17912_v27 = vld [vmem:[#allocation2 + $0x668] ss:$28 sps:$4 sm:$0xff]  }
 0x141   :  { %2577 = vmatmul.mubr.bf16.vlgmr.msra.gmra.mxu0 %v20551_v9  ;;  %v17915_v28 = vld [vmem:[#allocation2 + $0x208] ss:$28 sps:$4 sm:$0xff]  }
 0x142   :  { %2668 = vmatpush1.bf16.msra.mxu0 %v17834_v30  ;;  %2699 = vmatprep.mubr.bf16.mxu0 %v20534_v49  ;;  %v17923_v30 = vld [vmem:[#allocation2 + $0x1d4] ss:$28 sps:$4 sm:$0xff]  }
 0x143   :  { %2614 = vmatpush2.bf16.msra.mxu1 %v17831_v29  ;;  %2669 = vmatprep.subr.bf16.mxu0 %v17842_v32  ;;  %v17920_v29 = vld [vmem:[#allocation2 + $0x634] ss:$28 sps:$4 sm:$0xff]  }
 0x144   :  { %2615 = vmatprep.subr.bf16.mxu1 %v17839_v31  ;;  %v17918_v31 = vld [vmem:[#allocation2 + $0x630] ss:$28 sps:$4 sm:$0xff]  }
 0x145   :  { %v17921_v32 = vld [vmem:[#allocation2 + $0x1d0] ss:$28 sps:$4 sm:$0xff]  }
 0x146   :  { %2670 = vmatpush1.bf16.msra.mxu0 %v17840_v34  ;;  %v17929_v34 = vld [vmem:[#allocation2 + $0x89c] ss:$28 sps:$4 sm:$0xff]  }
 0x147   :  { %2616 = vmatpush2.bf16.msra.mxu1 %v17837_v33  ;;  %2671 = vmatprep.subr.bf16.mxu0 %v17848_v37  ;;  %v17926_v33 = vld [vmem:[#allocation2 + $0x5fc] ss:$28 sps:$4 sm:$0xff]  }
 0x148   :  { %2640 = vmatprep.subr.bf16.mxu1 %v17845_v35  ;;  %v17924_v35 = vld [vmem:[#allocation2 + $0x5f8] ss:$28 sps:$4 sm:$0xff]  }
 0x149   :  { %v17927_v37 = vld [vmem:[#allocation2 + $0x898] ss:$28 sps:$4 sm:$0xff]  }
 0x14a   :  { %2618 = vmatmul.mubr.bf16.vlgmr.msra.gmra.mxu1 %v20573_v21  ;;  %2672 = vmatpush1.bf16.msra.mxu0 %v17846_v39  ;;  %v17935_v39 = vld [vmem:[#allocation2 + $0x864] ss:$28 sps:$4 sm:$0xff]  }
 0x14b   :  { %2641 = vmatpush1.bf16.msra.mxu1 %v17843_v38  ;;  %2673 = vmatprep.subr.bf16.mxu0 %v17851_v40  ;;  %v17932_v38 = vld [vmem:[#allocation2 + $0x5c4] ss:$28 sps:$4 sm:$0xff]  }
 0x14c   :  { %2658 = vmatprep.mubr.bf16.mxu1 %v20438_v16  ;;  %2708 = vmatprep.subr.bf16.mxu1 %v17854_v41 }
 0x14e   :  { %2674 = vmatpush1.bf16.msra.mxu0 %v17849_v42  ;;  %v17930_v42 = vld [vmem:[#allocation2 + $0x5c0] ss:$28 sps:$4 sm:$0xff]  }
 0x14f   :  { %2675 = vmatprep.subr.bf16.mxu0 %v17857_v43 }
 0x152   :  { %15624 = vmatmul.mubr.msk.bf16.vlgmr.msra.gmra.mxu1 %vm2335_vm0, %v20559_v19  ;;  %2676 = vmatpush1.bf16.msra.mxu0 %v17855_v45  ;;  %v17938_v45 = vld [vmem:[#allocation2 + $0x58c] ss:$28 sps:$4 sm:$0xff]  }
 0x153   :  { %2709 = vmatpush1.bf16.msra.mxu1 %v17852_v44  ;;  %2677 = vmatprep.subr.bf16.mxu0 %v17863_v47  ;;  %v17933_v44 = vld [vmem:[#allocation2 + $0x860] ss:$28 sps:$4 sm:$0xff]  }
 0x154   :  { %2710 = vmatprep.subr.bf16.mxu1 %v17860_v46  ;;  %2740 = vmatprep.mubr.bf16.mxu1 %v20539_v52 }
 0x156   :  { %2678 = vmatpush1.bf16.msra.mxu0 %v17861_v50 }
 0x157   :  { %2711 = vmatpush1.bf16.msra.mxu1 %v17858_v48  ;;  %2679 = vmatprep.subr.bf16.mxu0 %v17869_v53  ;;  %v17941_v48 = vld [vmem:[#allocation2 + $0x82c] ss:$28 sps:$4 sm:$0xff]  }
 0x158   :  { %2712 = vmatprep.subr.bf16.mxu1 %v17866_v51  ;;  %v17936_v53 = vld [vmem:[#allocation2 + $0x588] ss:$28 sps:$4 sm:$0xff]  }
 0x15a   :  { %2680 = vmatpush1.bf16.msra.mxu0 %v17867_v55  ;;  %v17939_v55 = vld [vmem:[#allocation2 + $0x828] ss:$28 sps:$4 sm:$0xff]  }
 0x15b   :  { %2713 = vmatpush1.bf16.msra.mxu1 %v17864_v54  ;;  %2681 = vmatprep.subr.bf16.mxu0 %v17875_v57 }
 0x15c   :  { %2714 = vmatprep.subr.bf16.mxu1 %v17872_v56  ;;  %v17944_v56 = vld [vmem:[#allocation2 + $0x554] ss:$28 sps:$4 sm:$0xff]  }
 0x15e   :  { %2682 = vmatpush1.bf16.msra.mxu0 %v17873_v59 }
 0x15f   :  { %2715 = vmatpush1.bf16.msra.mxu1 %v17870_v58  ;;  %2683 = vmatprep.subr.bf16.mxu0 %v17881_v61  ;;  %v17947_v58 = vld [vmem:[#allocation2 + $0x7f4] ss:$28 sps:$4 sm:$0xff]  }
 0x160   :  { %2716 = vmatprep.subr.bf16.mxu1 %v17878_v60  ;;  %v17942_v61 = vld [vmem:[#allocation2 + $0x550] ss:$28 sps:$4 sm:$0xff]  }
 0x162   :  { %2684 = vmatpush2.bf16.msra.mxu0 %v17879_v63  ;;  %v17950_v63 = vld [vmem:[#allocation2 + $0xa94] ss:$28 sps:$4 sm:$0xff]  }
 0x163   :  { %2717 = vmatpush1.bf16.msra.mxu1 %v17876_v62  ;;  %2685 = vmatprep.subr.bf16.mxu0 %v17887_v1  ;;  %v17945_v62 = vld [vmem:[#allocation2 + $0x7f0] ss:$28 sps:$4 sm:$0xff]   ;;  %v17953_v1 = vld [vmem:[#allocation2 + $0x7bc] ss:$28 sps:$4 sm:$0xff]  }
 0x164   :  { %2718 = vmatprep.subr.bf16.mxu1 %v17884_v0 }
 0x166   :  { %2686 = vmatpush2.bf16.msra.mxu0 %v17885_v3  ;;  %v17948_v3 = vld [vmem:[#allocation2 + $0xa90] ss:$28 sps:$4 sm:$0xff]  }
 0x167   :  { %2719 = vmatpush1.bf16.msra.mxu1 %v17882_v2  ;;  %2687 = vmatprep.subr.bf16.mxu0 %v17893_v5 }
 0x168   :  { %2720 = vmatprep.subr.bf16.mxu1 %v17890_v4  ;;  %v17951_v4 = vld [vmem:[#allocation2 + $0x7b8] ss:$28 sps:$4 sm:$0xff]  }
 0x16a   :  { %2688 = vmatpush2.bf16.msra.mxu0 %v17891_v7  ;;  %v17957_v7 = vld [vmem:[#allocation2 + $0x360] ss:$28 sps:$4 sm:$0xff]  }
 0x16b   :  { %2721 = vmatpush1.bf16.msra.mxu1 %v17888_v6  ;;  %2689 = vmatprep.subr.bf16.mxu0 %v17899_v11  ;;  %v17956_v6 = vld [vmem:[#allocation2 + $0x784] ss:$28 sps:$4 sm:$0xff]   ;;  %v17961_v11 = vld [vmem:[#allocation2 + $0x74c] ss:$28 sps:$4 sm:$0xff]  }
 0x16c   :  { %2722 = vmatprep.subr.bf16.mxu1 %v17896_v10  ;;  %v17954_v10 = vld [vmem:[#allocation2 + $0x780] ss:$28 sps:$4 sm:$0xff]  }
 0x16e   :  { %2690 = vmatpush2.bf16.msra.mxu0 %v17897_v13  ;;  %v17959_v13 = vld [vmem:[#allocation2 + $0x748] ss:$28 sps:$4 sm:$0xff]  }
 0x16f   :  { %2723 = vmatpush1.bf16.msra.mxu1 %v17894_v12  ;;  %2691 = vmatprep.subr.bf16.mxu0 %v17905_v15  ;;  %v17958_v12 = vld [vmem:[#allocation2 + $0x1a0] ss:$28 sps:$4 sm:$0xff]   ;;  %v17966_v15 = vld [vmem:[#allocation2 + $0x714] ss:$28 sps:$4 sm:$0xff]  }
 0x170   :  { %2724 = vmatprep.subr.bf16.mxu1 %v17902_v14  ;;  %v17962_v14 = vld [vmem:[#allocation2 + $0x328] ss:$28 sps:$4 sm:$0xff]  }
 0x172   :  { %2692 = vmatpush2.bf16.msra.mxu0 %v17903_v18  ;;  %v17964_v18 = vld [vmem:[#allocation2 + $0x710] ss:$28 sps:$4 sm:$0xff]  }
 0x173   :  { %2725 = vmatpush2.bf16.msra.mxu1 %v17900_v17  ;;  %2693 = vmatprep.subr.bf16.mxu0 %v17911_v22  ;;  %v17963_v17 = vld [vmem:[#allocation2 + $0x168] ss:$28 sps:$4 sm:$0xff]   ;;  %v17971_v22 = vld [vmem:[#allocation2 + $0xa5c] ss:$28 sps:$4 sm:$0xff]  }
 0x174   :  { %2726 = vmatprep.subr.bf16.mxu1 %v17908_v20  ;;  %v17967_v20 = vld [vmem:[#allocation2 + $0x2f0] ss:$28 sps:$4 sm:$0xff]  }
 0x176   :  { %2694 = vmatpush2.bf16.msra.mxu0 %v17909_v24  ;;  %v17969_v24 = vld [vmem:[#allocation2 + $0xa58] ss:$28 sps:$4 sm:$0xff]  }
 0x177   :  { %2727 = vmatpush2.bf16.msra.mxu1 %v17906_v23  ;;  %2695 = vmatprep.subr.bf16.mxu0 %v17917_v26  ;;  %v17968_v23 = vld [vmem:[#allocation2 + $0x130] ss:$28 sps:$4 sm:$0xff]   ;;  %v17976_v26 = vld [vmem:[#allocation2 + $0xa24] ss:$28 sps:$4 sm:$0xff]  }
 0x178   :  { %2728 = vmatprep.subr.bf16.mxu1 %v17914_v25  ;;  %v17972_v25 = vld [vmem:[#allocation2 + $0x2b8] ss:$28 sps:$4 sm:$0xff]  }
 0x17a   :  { %2696 = vmatpush2.bf16.msra.mxu0 %v17915_v28  ;;  %v17974_v28 = vld [vmem:[#allocation2 + $0xa20] ss:$28 sps:$4 sm:$0xff]  }
 0x17b   :  { %2729 = vmatpush2.bf16.msra.mxu1 %v17912_v27  ;;  %2697 = vmatprep.subr.bf16.mxu0 %v17923_v30  ;;  %v17973_v27 = vld [vmem:[#allocation2 + $0xf8] ss:$28 sps:$4 sm:$0xff]   ;;  %v17981_v30 = vld [vmem:[#allocation2 + $0x9ec] ss:$28 sps:$4 sm:$0xff]  }
 0x17c   :  { %2730 = vmatprep.subr.bf16.mxu1 %v17920_v29  ;;  %v17977_v29 = vld [vmem:[#allocation2 + $0x280] ss:$28 sps:$4 sm:$0xff]  }
 0x17e   :  { %2698 = vmatpush2.bf16.msra.mxu0 %v17921_v32  ;;  %v17979_v32 = vld [vmem:[#allocation2 + $0x9e8] ss:$28 sps:$4 sm:$0xff]  }
 0x17f   :  { %2731 = vmatpush2.bf16.msra.mxu1 %v17918_v31  ;;  %2749 = vmatprep.subr.bf16.mxu0 %v17929_v34  ;;  %v17978_v31 = vld [vmem:[#allocation2 + $0xc0] ss:$28 sps:$4 sm:$0xff]   ;;  %v17986_v34 = vld [vmem:[#allocation2 + $0x9b4] ss:$28 sps:$4 sm:$0xff]  }
 0x180   :  { %2732 = vmatprep.subr.bf16.mxu1 %v17926_v33  ;;  %v17982_v33 = vld [vmem:[#allocation2 + $0x248] ss:$28 sps:$4 sm:$0xff]  }
 0x181   :  { %v2373_v40 = vpop.f32.mrf.mxu0  ;;  %2700 = vmatmul.mubr.bf16.vlgmr.msra.gmra.mxu0 %v20549_v8 }
 0x182   :  { %v2414_v41 = vpop.f32.mrf.mxu1  ;;  %2750 = vmatpush1.bf16.msra.mxu0 %v17927_v37  ;;  %2781 = vmatprep.mubr.bf16.mxu0 %v20567_v36  ;;  %v17984_v37 = vld [vmem:[#allocation2 + $0x9b0] ss:$28 sps:$4 sm:$0xff]  }
 0x183   :  { %2733 = vmatpush2.bf16.msra.mxu1 %v17924_v35  ;;  %v20587_v43 = vadd.f32 %v2414_v41, %v2373_v40  ;;  %v2375_v46 = vpop.f32.mrf.mxu0  ;;  %2751 = vmatprep.subr.bf16.mxu0 %v17935_v39  ;;  %v17983_v35 = vld [vmem:[#allocation2 + $0x88] ss:$28 sps:$4 sm:$0xff]   ;;  %v17991_v39 = vld [vmem:[#allocation2 + $0x97c] ss:$28 sps:$4 sm:$0xff]   ;;  %v17988_v40 = vld [vmem:[#allocation2 + $0x50] ss:$28 sps:$4 sm:$0xff]  }
 0x184   :  { %v2416_v47 = vpop.f32.mrf.mxu1  ;;  %2734 = vmatprep.subr.bf16.mxu1 %v17932_v38  ;;  %v17987_v38 = vld [vmem:[#allocation2 + $0x210] ss:$28 sps:$4 sm:$0xff]   ;;  %v17989_v41 = vld [vmem:[#allocation2 + $0x978] ss:$28 sps:$4 sm:$0xff]  }
 0x185   :  { %v20589_v50 = vadd.f32 %v2416_v47, %v2375_v46  ;;  %v2377_v54 = vpop.f32.mrf.mxu0  ;;  %v17994_v46 = vld [vmem:[#allocation2 + $0x940] ss:$28 sps:$4 sm:$0xff]  }
 0x186   :  { %v2418_v51 = vpop.f32.mrf.mxu1  ;;  %2752 = vmatpush1.bf16.msra.mxu0 %v17933_v44  ;;  %v17996_v44 = vld [vmem:[#allocation2 + $0x944] ss:$28 sps:$4 sm:$0xff]  }
 0x187   :  { %2735 = vmatpush2.bf16.msra.mxu1 %v17930_v42  ;;  %2753 = vmatprep.subr.bf16.mxu0 %v17941_v48  ;;  %v2378_v59 = vpop.f32.mrf.mxu0  ;;  %v17992_v42 = vld [vmem:[#allocation2 + $0x1d8] ss:$28 sps:$4 sm:$0xff]   ;;  %v17997_v47 = vld [vmem:[#allocation2 + $0x6e0] ss:$28 sps:$4 sm:$0xff]   ;;  %v18001_v48 = vld [vmem:[#allocation2 + $0x90c] ss:$28 sps:$4 sm:$0xff]  }
 0x188   :  { %v2419_v57 = vpop.f32.mrf.mxu1  ;;  %2736 = vmatprep.subr.bf16.mxu1 %v17938_v45  ;;  %v17993_v45 = vld [vmem:[#allocation2 + $0x18] ss:$28 sps:$4 sm:$0xff]   ;;  %v17998_v51 = vld [vmem:[#allocation2 + $0x520] ss:$28 sps:$4 sm:$0xff]   ;;  %v18002_v54 = vld [vmem:[#allocation2 + $0x6a8] ss:$28 sps:$4 sm:$0xff]  }
 0x189   :  { %v18004_v57 = vld [vmem:[#allocation2 + $0x8d0] ss:$28 sps:$4 sm:$0xff]   ;;  %v18009_v59 = vld [vmem:[#allocation2 + $0xa60] ss:$28 sps:$4 sm:$0xff]  }
 0x18a   :  { %v20592_v60 = vpop.f32.mrf.mxu1  ;;  %2754 = vmatpush1.bf16.msra.mxu0 %v17939_v55  ;;  %v18006_v55 = vld [vmem:[#allocation2 + $0x8d4] ss:$28 sps:$4 sm:$0xff]  }
 0x18b   :  { %2737 = vmatpush2.bf16.msra.mxu1 %v17936_v53  ;;  %2755 = vmatprep.subr.bf16.mxu0 %v17947_v58  ;;  %v17999_v53 = vld [vmem:[#allocation2 + $0x908] ss:$28 sps:$4 sm:$0xff]   ;;  %v18007_v58 = vld [vmem:[#allocation2 + $0x670] ss:$28 sps:$4 sm:$0xff]  }
 0x18c   :  { %v20594_v0 = vpop.f32.mrf.mxu1  ;;  %2738 = vmatprep.subr.bf16.mxu1 %v17944_v56  ;;  %v18003_v56 = vld [vmem:[#allocation2 + $0x4e8] ss:$28 sps:$4 sm:$0xff]  }
 0x18e   :  { %v2500_v2 = vpop.f32.mrf.mxu1  ;;  %2756 = vmatpush1.bf16.msra.mxu0 %v17945_v62  ;;  %v18011_v62 = vld [vmem:[#allocation2 + $0x8a0] ss:$28 sps:$4 sm:$0xff]  }
 0x18f   :  { %2739 = vmatpush2.bf16.msra.mxu1 %v17942_v61  ;;  %2757 = vmatprep.subr.bf16.mxu0 %v17953_v1  ;;  %v18008_v61 = vld [vmem:[#allocation2 + $0x4b0] ss:$28 sps:$4 sm:$0xff]   ;;  %v18013_v1 = vld [vmem:[#allocation2 + $0xa28] ss:$28 sps:$4 sm:$0xff]  }
 0x190   :  { %v2501_v5 = vpop.f32.mrf.mxu1  ;;  %2804 = vmatprep.subr.bf16.mxu1 %v17950_v63  ;;  %v18010_v63 = vld [vmem:[#allocation2 + $0x638] ss:$28 sps:$4 sm:$0xff]  }
 0x191   :  { %v18015_v5 = vld [vmem:[#allocation2 + $0x868] ss:$28 sps:$4 sm:$0xff]  }
 0x192   :  { %2741 = vmatmul.mubr.bf16.vlgmr.msra.gmra.mxu1 %v20551_v9  ;;  %2758 = vmatpush1.bf16.msra.mxu0 %v17951_v4  ;;  %v18012_v4 = vld [vmem:[#allocation2 + $0x478] ss:$28 sps:$4 sm:$0xff]  }
 0x193   :  { %2805 = vmatpush1.bf16.msra.mxu1 %v17948_v3  ;;  %2759 = vmatprep.subr.bf16.mxu0 %v17956_v6 }
 0x194   :  { %2822 = vmatprep.mubr.bf16.mxu1 %v20438_v16  ;;  %17151 = vmatprep.subr.bf16.mxu1 %v17957_v7  ;;  %v18014_v7 = vld [vmem:[#allocation2 + $0x600] ss:$28 sps:$4 sm:$0xff]  }
 0x196   :  { %2760 = vmatpush1.bf16.msra.mxu0 %v17954_v10  ;;  %v18017_v10 = vld [vmem:[#allocation2 + $0x9f0] ss:$28 sps:$4 sm:$0xff]  }
 0x197   :  { %2761 = vmatprep.subr.bf16.mxu0 %v17961_v11 }
 0x19a   :  { %15625 = vmatmul.mubr.msk.bf16.vlgmr.msra.gmra.mxu1 %vm2335_vm0, %v20559_v19  ;;  %2762 = vmatpush1.bf16.msra.mxu0 %v17959_v13 }
 0x19b   :  { %17152 = vmatpush3.bf16.msra.mxu1 %v17958_v12  ;;  %2763 = vmatprep.subr.bf16.mxu0 %v17966_v15  ;;  %v18019_v15 = vld [vmem:[#allocation2 + $0x830] ss:$28 sps:$4 sm:$0xff]  }
 0x19c   :  { %17153 = vmatprep.subr.bf16.mxu1 %v17962_v14  ;;  %2863 = vmatprep.mubr.bf16.mxu1 %v20534_v49 }
 0x19e   :  { %2764 = vmatpush1.bf16.msra.mxu0 %v17964_v18  ;;  %v18021_v18 = vld [vmem:[#allocation2 + $0x9b8] ss:$28 sps:$4 sm:$0xff]  }
 0x19f   :  { %17154 = vmatpush3.bf16.msra.mxu1 %v17963_v17  ;;  %2765 = vmatprep.subr.bf16.mxu0 %v17971_v22  ;;  %v18018_v17 = vld [vmem:[#allocation2 + $0x5c8] ss:$28 sps:$4 sm:$0xff]  }
 0x1a0   :  { %17155 = vmatprep.subr.bf16.mxu1 %v17967_v20 }
 0x1a2   :  { %2766 = vmatpush2.bf16.msra.mxu0 %v17969_v24  ;;  %v18025_v24 = vld [vmem:[#allocation2 + $0x980] ss:$28 sps:$4 sm:$0xff]  }
 0x1a3   :  { %17156 = vmatpush3.bf16.msra.mxu1 %v17968_v23  ;;  %2767 = vmatprep.subr.bf16.mxu0 %v17976_v26  ;;  %v18024_v26 = vld [vmem:[#allocation2 + $0x3d0] ss:$28 sps:$4 sm:$0xff]  }
 0x1a4   :  { %17157 = vmatprep.subr.bf16.mxu1 %v17972_v25 }
 0x1a6   :  { %2768 = vmatpush2.bf16.msra.mxu0 %v17974_v28 }
 0x1a7   :  { %17158 = vmatpush3.bf16.msra.mxu1 %v17973_v27  ;;  %2769 = vmatprep.subr.bf16.mxu0 %v17981_v30  ;;  %v18027_v27 = vld [vmem:[#allocation2 + $0x7c0] ss:$28 sps:$4 sm:$0xff]   ;;  %v18029_v30 = vld [vmem:[#allocation2 + $0x948] ss:$28 sps:$4 sm:$0xff]  }
 0x1a8   :  { %17159 = vmatprep.subr.bf16.mxu1 %v17977_v29  ;;  %v18026_v29 = vld [vmem:[#allocation2 + $0x558] ss:$28 sps:$4 sm:$0xff]  }
 0x1aa   :  { %2770 = vmatpush2.bf16.msra.mxu0 %v17979_v32  ;;  %v18030_v32 = vld [vmem:[#allocation2 + $0x788] ss:$28 sps:$4 sm:$0xff]  }
 0x1ab   :  { %17160 = vmatpush3.bf16.msra.mxu1 %v17978_v31  ;;  %2771 = vmatprep.subr.bf16.mxu0 %v17986_v34  ;;  %v18028_v31 = vld [vmem:[#allocation2 + $0x398] ss:$28 sps:$4 sm:$0xff]  }
 0x1ac   :  { %17161 = vmatprep.subr.bf16.mxu1 %v17982_v33  ;;  %v18032_v33 = vld [vmem:[#allocation2 + $0x910] ss:$28 sps:$4 sm:$0xff]   ;;  %v18031_v34 = vld [vmem:[#allocation2 + $0xa98] ss:$28 sps:$4 sm:$0xff]  }
 0x1ae   :  { %2772 = vmatpush2.bf16.msra.mxu0 %v17984_v37  ;;  %v20439_v37 = vmov 0.0  }
 0x1af   :  { %17162 = vmatpush3.bf16.msra.mxu1 %v17983_v35  ;;  %2773 = vmatprep.subr.bf16.mxu0 %v17991_v39  ;;  %v18033_v35 = vld [vmem:[#allocation2 + $0x750] ss:$28 sps:$4 sm:$0xff]   ;;  %v18037_v39 = vld [vmem:[#allocation2 + $0xc44] ss:$28 sps:$4 sm:$0xff]  }
 0x1b0   :  { %17163 = vmatprep.subr.bf16.mxu1 %v17987_v38  ;;  %v18034_v38 = vld [vmem:[#allocation2 + $0x8d8] ss:$28 sps:$4 sm:$0xff]  }
 0x1b2   :  { %2774 = vmatpush2.bf16.msra.mxu0 %v17989_v41  ;;  %v18044_v41 = vld [vmem:[#allocation2 + $0xfc4] ss:$28 sps:$4 sm:$0xff]  }
 0x1b3   :  { %17164 = vmatpush3.bf16.msra.mxu1 %v17988_v40  ;;  %2775 = vmatprep.subr.bf16.mxu0 %v17996_v44  ;;  %v18038_v40 = vld [vmem:[#allocation2 + $0x718] ss:$28 sps:$4 sm:$0xff]   ;;  %v18042_v44 = vld [vmem:[#allocation2 + $0xfc0] ss:$28 sps:$4 sm:$0xff]  }
 0x1b4   :  { %17165 = vmatprep.subr.bf16.mxu1 %v17992_v42  ;;  %v18035_v42 = vld [vmem:[#allocation2 + $0xc40] ss:$28 sps:$4 sm:$0xff]  }
 0x1b6   :  { %2776 = vmatpush2.bf16.msra.mxu0 %v17994_v46  ;;  %v18050_v46 = vld [vmem:[#allocation2 + $0xf8c] ss:$28 sps:$4 sm:$0xff]  }
 0x1b7   :  { %17166 = vmatpush3.bf16.msra.mxu1 %v17993_v45  ;;  %2777 = vmatprep.subr.bf16.mxu0 %v18001_v48  ;;  %v18041_v45 = vld [vmem:[#allocation2 + $0xc0c] ss:$28 sps:$4 sm:$0xff]  }
 0x1b8   :  { %17173 = vmatprep.subr.bf16.mxu1 %v17997_v47  ;;  %v18039_v47 = vld [vmem:[#allocation2 + $0xc08] ss:$28 sps:$4 sm:$0xff]  }
 0x1b9   :  { %v18048_v48 = vld [vmem:[#allocation2 + $0xf88] ss:$28 sps:$4 sm:$0xff]  }
 0x1ba   :  { %2864 = vmatmul.mubr.bf16.vlgmr.msra.gmra.mxu1 %v20549_v8  ;;  %2778 = vmatpush2.bf16.msra.mxu0 %v17999_v53  ;;  %v18056_v53 = vld [vmem:[#allocation2 + $0xf54] ss:$28 sps:$4 sm:$0xff]  }
 0x1bb   :  { %17174 = vmatpush3.bf16.msra.mxu1 %v17998_v51  ;;  %2779 = vmatprep.subr.bf16.mxu0 %v18006_v55  ;;  %v18047_v51 = vld [vmem:[#allocation2 + $0xbd4] ss:$28 sps:$4 sm:$0xff]  }
 0x1bc   :  { %17175 = vmatprep.subr.bf16.mxu1 %v18002_v54  ;;  %2903 = vmatprep.mubr.bf16.mxu1 %v20539_v52  ;;  %v18045_v54 = vld [vmem:[#allocation2 + $0xbd0] ss:$28 sps:$4 sm:$0xff]  }
 0x1bd   :  { %v18054_v55 = vld [vmem:[#allocation2 + $0xf50] ss:$28 sps:$4 sm:$0xff]  }
 0x1be   :  { %2780 = vmatpush2.bf16.msra.mxu0 %v18004_v57  ;;  %v18062_v57 = vld [vmem:[#allocation2 + $0xf1c] ss:$28 sps:$4 sm:$0xff]  }
 0x1bf   :  { %17176 = vmatpush3.bf16.msra.mxu1 %v18003_v56  ;;  %17195 = vmatprep.subr.bf16.mxu0 %v18009_v59  ;;  %v18053_v56 = vld [vmem:[#allocation2 + $0xb9c] ss:$28 sps:$4 sm:$0xff]   ;;  %v18059_v59 = vld [vmem:[#allocation2 + $0xb64] ss:$28 sps:$4 sm:$0xff]  }
 0x1c0   :  { %17177 = vmatprep.subr.bf16.mxu1 %v18007_v58  ;;  %v18051_v58 = vld [vmem:[#allocation2 + $0xb98] ss:$28 sps:$4 sm:$0xff]  }
 0x1c1   :  { %v2455_v2 = vpop.f32.mrf.mxu0  ;;  %2782 = vmatmul.mubr.bf16.vlgmr.msra.gmra.mxu0 %v20573_v21 }
 0x1c2   :  { %v2456_v3 = vadd.f32 %v2455_v2, %v20587_v43  ;;  %17196 = vmatpush3.bf16.msra.mxu0 %v18011_v62  ;;  %2943 = vmatprep.mubr.bf16.mxu0 %v20567_v36  ;;  %v18016_v43 = vld [vmem:[#allocation2 + $0x440] ss:$28 sps:$4 sm:$0xff]  }
 0x1c3   :  { %17178 = vmatpush3.bf16.msra.mxu1 %v18008_v61  ;;  %v2457_v6 = vpop.f32.mrf.mxu0  ;;  %17197 = vmatprep.subr.bf16.mxu0 %v18013_v1  ;;  %v18060_v61 = vld [vmem:[#allocation2 + $0xf18] ss:$28 sps:$4 sm:$0xff]   ;;  %v18068_v62 = vld [vmem:[#allocation2 + $0xee4] ss:$28 sps:$4 sm:$0xff]   ;;  %v18065_v1 = vld [vmem:[#allocation2 + $0xb2c] ss:$28 sps:$4 sm:$0xff]  }
 0x1c4   :  { %17179 = vmatprep.subr.bf16.mxu1 %v18010_v63  ;;  %v20606_v11 = vadd.f32 %v20592_v60, %v2456_v3  ;;  %v2458_v12 = vadd.f32 %v2457_v6, %v20589_v50  ;;  %v18020_v50 = vld [vmem:[#allocation2 + $0x408] ss:$28 sps:$4 sm:$0xff]   ;;  %v18023_v60 = vld [vmem:[#allocation2 + $0x7f8] ss:$28 sps:$4 sm:$0xff]   ;;  %v18057_v63 = vld [vmem:[#allocation2 + $0xb60] ss:$28 sps:$4 sm:$0xff]  }
 0x1c5   :  { %v2459_v13 = vpop.f32.mrf.mxu0  ;;  %v18066_v2 = vld [vmem:[#allocation2 + $0xee0] ss:$28 sps:$4 sm:$0xff]   ;;  %v18074_v3 = vld [vmem:[#allocation2 + $0xeac] ss:$28 sps:$4 sm:$0xff]  }
 0x1c6   :  { %v20611_v14 = vadd.f32 %v20594_v0, %v2458_v12  ;;  %17198 = vmatpush3.bf16.msra.mxu0 %v18015_v5  ;;  %v18022_v0 = vld [vmem:[#allocation2 + $0x590] ss:$28 sps:$4 sm:$0xff]   ;;  %v18072_v6 = vld [vmem:[#allocation2 + $0xea8] ss:$28 sps:$4 sm:$0xff]   ;;  %v18077_v12 = vld [vmem:[#allocation2 + $0xabc] ss:$28 sps:$4 sm:$0xff]  }
 0x1c7   :  { %17180 = vmatpush3.bf16.msra.mxu1 %v18012_v4  ;;  %17199 = vmatprep.subr.bf16.mxu0 %v18017_v10  ;;  %v2460_v20 = vpop.f32.mrf.mxu0  ;;  %v18063_v4 = vld [vmem:[#allocation2 + $0xb28] ss:$28 sps:$4 sm:$0xff]   ;;  %v18071_v5 = vld [vmem:[#allocation2 + $0xaf4] ss:$28 sps:$4 sm:$0xff]  }
 0x1c8   :  { %17181 = vmatprep.subr.bf16.mxu1 %v18014_v7  ;;  %v18080_v7 = vld [vmem:[#allocation2 + $0xe74] ss:$28 sps:$4 sm:$0xff]   ;;  %v18092_v20 = vld [vmem:[#allocation2 + $0x1184] ss:$28 sps:$4 sm:$0xff]  }
 0x1c9   :  { %v18069_v10 = vld [vmem:[#allocation2 + $0xaf0] ss:$28 sps:$4 sm:$0xff]  }
 0x1ca   :  { %v20613_v22 = vpop.f32.mrf.mxu1  ;;  %17200 = vmatpush3.bf16.msra.mxu0 %v18019_v15  ;;  %v18078_v13 = vld [vmem:[#allocation2 + $0xe70] ss:$28 sps:$4 sm:$0xff]   ;;  %v18075_v15 = vld [vmem:[#allocation2 + $0xab8] ss:$28 sps:$4 sm:$0xff]  }
 0x1cb   :  { %17182 = vmatpush3.bf16.msra.mxu1 %v18016_v43  ;;  %17201 = vmatprep.subr.bf16.mxu0 %v18021_v18  ;;  %v18086_v43 = vld [vmem:[#allocation2 + $0xe3c] ss:$28 sps:$4 sm:$0xff]  }
 0x1cc   :  { %v20615_v23 = vpop.f32.mrf.mxu1  ;;  %17183 = vmatprep.subr.bf16.mxu1 %v18018_v17  ;;  %v18083_v17 = vld [vmem:[#allocation2 + $0xe04] ss:$28 sps:$4 sm:$0xff]   ;;  %v18084_v18 = vld [vmem:[#allocation2 + $0xe38] ss:$28 sps:$4 sm:$0xff]  }
 0x1ce   :  { %v2541_v25 = vpop.f32.mrf.mxu1  ;;  %17202 = vmatpush3.bf16.msra.mxu0 %v18023_v60  ;;  %v18090_v60 = vld [vmem:[#allocation2 + $0x1180] ss:$28 sps:$4 sm:$0xff]  }
 0x1cf   :  { %17184 = vmatpush3.bf16.msra.mxu1 %v18020_v50  ;;  %17203 = vmatprep.subr.bf16.mxu0 %v18025_v24  ;;  %v18081_v50 = vld [vmem:[#allocation2 + $0xe00] ss:$28 sps:$4 sm:$0xff]   ;;  %v18098_v24 = vld [vmem:[#allocation2 + $0x114c] ss:$28 sps:$4 sm:$0xff]  }
 0x1d0   :  { %v2542_v28 = vpop.f32.mrf.mxu1  ;;  %17185 = vmatprep.subr.bf16.mxu1 %v18022_v0  ;;  %v18089_v0 = vld [vmem:[#allocation2 + $0xdcc] ss:$28 sps:$4 sm:$0xff]  }
 0x1d1   :  { %v18087_v25 = vld [vmem:[#allocation2 + $0xdc8] ss:$28 sps:$4 sm:$0xff]  }
 0x1d2   :  { %17204 = vmatpush3.bf16.msra.mxu0 %v18027_v27  ;;  %v18095_v27 = vld [vmem:[#allocation2 + $0xd94] ss:$28 sps:$4 sm:$0xff]  }
 0x1d3   :  { %17186 = vmatpush3.bf16.msra.mxu1 %v18024_v26  ;;  %17205 = vmatprep.subr.bf16.mxu0 %v18029_v30  ;;  %v18104_v30 = vld [vmem:[#allocation2 + $0x1114] ss:$28 sps:$4 sm:$0xff]  }
 0x1d4   :  { %17187 = vmatprep.subr.bf16.mxu1 %v18026_v29  ;;  %v18096_v29 = vld [vmem:[#allocation2 + $0x1148] ss:$28 sps:$4 sm:$0xff]  }
 0x1d6   :  { %17206 = vmatpush3.bf16.msra.mxu0 %v18030_v32 }
 0x1d7   :  { %17188 = vmatpush3.bf16.msra.mxu1 %v18028_v31  ;;  %17207 = vmatprep.subr.bf16.mxu0 %v18032_v33  ;;  %v18093_v33 = vld [vmem:[#allocation2 + $0xd90] ss:$28 sps:$4 sm:$0xff]  }
 0x1d8   :  { %17463 = vmatprep.subr.bf16.mxu1 %v20439_v37 }
 0x1da   :  { %2904 = vmatmul.mubr.bf16.vlgmr.msra.gmra.mxu1 %v20551_v9  ;;  %17208 = vmatpush3.bf16.msra.mxu0 %v18033_v35 }
 0x1db   :  { %17464 = vmatpush3.bf16.msra.mxu1 %v18031_v34  ;;  %17209 = vmatprep.subr.bf16.mxu0 %v18034_v38  ;;  %v18101_v34 = vld [vmem:[#allocation2 + $0xd5c] ss:$28 sps:$4 sm:$0xff]   ;;  %v18102_v38 = vld [vmem:[#allocation2 + $0x1110] ss:$28 sps:$4 sm:$0xff]  }
 0x1dc   :  { %17465 = vmatprep.mubr.msk.bf16.mxu1 %vm20440_vm1, %v20439_v37  ;;  %5148 = vmatprep.subr.bf16.mxu1 %v18037_v39  ;;  %v18110_v39 = vld [vmem:[#allocation2 + $0x10dc] ss:$28 sps:$4 sm:$0xff]  }
 0x1de   :  { %17210 = vmatpush3.bf16.msra.mxu0 %v18038_v40 }
 0x1df   :  { %5189 = vmatprep.subr.bf16.mxu0 %v18044_v41  ;;  %v18099_v41 = vld [vmem:[#allocation2 + $0xd58] ss:$28 sps:$4 sm:$0xff]  }
 0x1e1   :  { %2944 = vmatmul.mubr.bf16.vlgmr.msra.gmra.mxu0 %v20573_v21 }
 0x1e2   :  { %17466 = vmatmul.mubr.msk.bf16.vlgmr.msra.gmra.mxu1 %vm2335_vm0, %v20559_v19  ;;  %5190 = vmatpush1.bf16.msra.mxu0 %v18042_v44 }
 0x1e3   :  { %5149 = vmatpush1.bf16.msra.mxu1 %v18035_v42  ;;  %5191 = vmatprep.subr.bf16.mxu0 %v18050_v46  ;;  %v18107_v42 = vld [vmem:[#allocation2 + $0xd24] ss:$28 sps:$4 sm:$0xff]  }
 0x1e4   :  { %5150 = vmatprep.subr.bf16.mxu1 %v18041_v45  ;;  %5180 = vmatprep.mubr.bf16.mxu1 %v20534_v49  ;;  %v18108_v45 = vld [vmem:[#allocation2 + $0x10d8] ss:$28 sps:$4 sm:$0xff]   ;;  %v18116_v46 = vld [vmem:[#allocation2 + $0x10a4] ss:$28 sps:$4 sm:$0xff]  }
 0x1e5   :  { %5221 = vmatprep.mubr.bf16.mxu0 %v20539_v52 }
 0x1e6   :  { %5192 = vmatpush1.bf16.msra.mxu0 %v18048_v48  ;;  %v18105_v48 = vld [vmem:[#allocation2 + $0xd20] ss:$28 sps:$4 sm:$0xff]  }
 0x1e7   :  { %5151 = vmatpush1.bf16.msra.mxu1 %v18039_v47  ;;  %5193 = vmatprep.subr.bf16.mxu0 %v18056_v53  ;;  %v18113_v53 = vld [vmem:[#allocation2 + $0xcec] ss:$28 sps:$4 sm:$0xff]  }
 0x1e8   :  { %5152 = vmatprep.subr.bf16.mxu1 %v18047_v51 }
 0x1ea   :  { %5194 = vmatpush1.bf16.msra.mxu0 %v18054_v55  ;;  %v18122_v55 = vld [vmem:[#allocation2 + $0x106c] ss:$28 sps:$4 sm:$0xff]  }
 0x1eb   :  { %5153 = vmatpush1.bf16.msra.mxu1 %v18045_v54  ;;  %5195 = vmatprep.subr.bf16.mxu0 %v18062_v57  ;;  %v18114_v54 = vld [vmem:[#allocation2 + $0x10a0] ss:$28 sps:$4 sm:$0xff]   ;;  %v18111_v57 = vld [vmem:[#allocation2 + $0xce8] ss:$28 sps:$4 sm:$0xff]  }
 0x1ec   :  { %5154 = vmatprep.subr.bf16.mxu1 %v18053_v56 }
 0x1ee   :  { %5196 = vmatpush1.bf16.msra.mxu0 %v18060_v61 }
 0x1ef   :  { %5155 = vmatpush1.bf16.msra.mxu1 %v18051_v58  ;;  %5197 = vmatprep.subr.bf16.mxu0 %v18068_v62  ;;  %v18120_v62 = vld [vmem:[#allocation2 + $0x1068] ss:$28 sps:$4 sm:$0xff]  }
 0x1f0   :  { %5156 = vmatprep.subr.bf16.mxu1 %v18059_v59  ;;  %v18119_v59 = vld [vmem:[#allocation2 + $0xcb4] ss:$28 sps:$4 sm:$0xff]  }
 0x1f2   :  { %5198 = vmatpush1.bf16.msra.mxu0 %v18066_v2 }
 0x1f3   :  { %5157 = vmatpush1.bf16.msra.mxu1 %v18057_v63  ;;  %5199 = vmatprep.subr.bf16.mxu0 %v18074_v3  ;;  %v18128_v63 = vld [vmem:[#allocation2 + $0x1034] ss:$28 sps:$4 sm:$0xff]  }
 0x1f4   :  { %5158 = vmatprep.subr.bf16.mxu1 %v18065_v1  ;;  %v18117_v3 = vld [vmem:[#allocation2 + $0xcb0] ss:$28 sps:$4 sm:$0xff]  }
 0x1f6   :  { %5200 = vmatpush1.bf16.msra.mxu0 %v18072_v6  ;;  %v18126_v6 = vld [vmem:[#allocation2 + $0x1030] ss:$28 sps:$4 sm:$0xff]  }
 0x1f7   :  { %5159 = vmatpush1.bf16.msra.mxu1 %v18063_v4  ;;  %5201 = vmatprep.subr.bf16.mxu0 %v18080_v7  ;;  %v18131_v7 = vld [vmem:[#allocation2 + $0xffc] ss:$28 sps:$4 sm:$0xff]  }
 0x1f8   :  { %5160 = vmatprep.subr.bf16.mxu1 %v18071_v5  ;;  %v18125_v5 = vld [vmem:[#allocation2 + $0xc7c] ss:$28 sps:$4 sm:$0xff]  }
 0x1fa   :  { %5202 = vmatpush1.bf16.msra.mxu0 %v18078_v13  ;;  %v18129_v13 = vld [vmem:[#allocation2 + $0xff8] ss:$28 sps:$4 sm:$0xff]  }
 0x1fb   :  { %5161 = vmatpush1.bf16.msra.mxu1 %v18069_v10  ;;  %5203 = vmatprep.subr.bf16.mxu0 %v18086_v43  ;;  %v18134_v43 = vld [vmem:[#allocation2 + $0x1344] ss:$28 sps:$4 sm:$0xff]  }
 0x1fc   :  { %5162 = vmatprep.subr.bf16.mxu1 %v18077_v12  ;;  %v18123_v12 = vld [vmem:[#allocation2 + $0xc78] ss:$28 sps:$4 sm:$0xff]  }
 0x1fe   :  { %5204 = vmatpush1.bf16.msra.mxu0 %v18084_v18  ;;  %v18138_v18 = vld [vmem:[#allocation2 + $0xc48] ss:$28 sps:$4 sm:$0xff]  }
 0x1ff   :  { %5163 = vmatpush1.bf16.msra.mxu1 %v18075_v15  ;;  %5205 = vmatprep.subr.bf16.mxu0 %v18092_v20  ;;  %v18140_v15 = vld [vmem:[#allocation2 + $0xc4c] ss:$28 sps:$4 sm:$0xff]  }
 0x200   :  { %5164 = vmatprep.subr.bf16.mxu1 %v18083_v17  ;;  %v18132_v17 = vld [vmem:[#allocation2 + $0x1340] ss:$28 sps:$4 sm:$0xff]   ;;  %v18137_v20 = vld [vmem:[#allocation2 + $0x130c] ss:$28 sps:$4 sm:$0xff]  }
 0x201   :  { %v2578_v26 = vpop.f32.mrf.mxu0 }
 0x202   :  { %v2579_v28 = vadd.f32 %v2578_v26, %v20613_v22  ;;  %5206 = vmatpush2.bf16.msra.mxu0 %v18090_v60  ;;  %v18135_v60 = vld [vmem:[#allocation2 + $0x1308] ss:$28 sps:$4 sm:$0xff]   ;;  %v18141_v26 = vld [vmem:[#allocation2 + $0x12d0] ss:$28 sps:$4 sm:$0xff]  }
 0x203   :  { %5165 = vmatpush2.bf16.msra.mxu1 %v18081_v50  ;;  %v2580_v31 = vpop.f32.mrf.mxu0  ;;  %5207 = vmatprep.subr.bf16.mxu0 %v18098_v24  ;;  %v18146_v50 = vld [vmem:[#allocation2 + $0xc14] ss:$28 sps:$4 sm:$0xff]  }
 0x204   :  { %5166 = vmatprep.subr.bf16.mxu1 %v18089_v0  ;;  %v2581_v32 = vadd.f32 %v2580_v31, %v20615_v23  ;;  %v18144_v0 = vld [vmem:[#allocation2 + $0xc10] ss:$28 sps:$4 sm:$0xff]   ;;  %v18156_v31 = vld [vmem:[#allocation2 + $0xba0] ss:$28 sps:$4 sm:$0xff]  }
 0x205   :  { %v2582_v35 = vpop.f32.mrf.mxu0  ;;  %v18143_v24 = vld [vmem:[#allocation2 + $0x12d4] ss:$28 sps:$4 sm:$0xff]  }
 0x206   :  { %5208 = vmatpush2.bf16.msra.mxu0 %v18096_v29  ;;  %v18158_v29 = vld [vmem:[#allocation2 + $0xba4] ss:$28 sps:$4 sm:$0xff]  }
 0x207   :  { %5167 = vmatpush2.bf16.msra.mxu1 %v18087_v25  ;;  %5209 = vmatprep.subr.bf16.mxu0 %v18104_v30  ;;  %v2583_v40 = vpop.f32.mrf.mxu0  ;;  %v18152_v25 = vld [vmem:[#allocation2 + $0xbdc] ss:$28 sps:$4 sm:$0xff]   ;;  %v18162_v35 = vld [vmem:[#allocation2 + $0xb68] ss:$28 sps:$4 sm:$0xff]  }
 0x208   :  { %5168 = vmatprep.subr.bf16.mxu1 %v18095_v27  ;;  %v18150_v27 = vld [vmem:[#allocation2 + $0xbd8] ss:$28 sps:$4 sm:$0xff]   ;;  %v18159_v40 = vld [vmem:[#allocation2 + $0x1228] ss:$28 sps:$4 sm:$0xff]  }
 0x209   :  { %v18147_v30 = vld [vmem:[#allocation2 + $0x1298] ss:$28 sps:$4 sm:$0xff]  }
 0x20a   :  { %v2619_v22 = vpop.f32.mrf.mxu1  ;;  %5210 = vmatpush2.bf16.msra.mxu0 %v18102_v38  ;;  %v18161_v38 = vld [vmem:[#allocation2 + $0x122c] ss:$28 sps:$4 sm:$0xff]  }
 0x20b   :  { %5169 = vmatpush2.bf16.msra.mxu1 %v18093_v33  ;;  %v2620_v44 = vadd.f32 %v2619_v22, %v2579_v28  ;;  %5211 = vmatprep.subr.bf16.mxu0 %v18110_v39  ;;  %v18149_v28 = vld [vmem:[#allocation2 + $0x129c] ss:$28 sps:$4 sm:$0xff]   ;;  %v18164_v33 = vld [vmem:[#allocation2 + $0xb6c] ss:$28 sps:$4 sm:$0xff]   ;;  %v18170_v39 = vld [vmem:[#allocation2 + $0xb34] ss:$28 sps:$4 sm:$0xff]  }
 0x20c   :  { %5170 = vmatprep.subr.bf16.mxu1 %v18101_v34  ;;  %v2621_v23 = vpop.f32.mrf.mxu1  ;;  %v18153_v34 = vld [vmem:[#allocation2 + $0x1260] ss:$28 sps:$4 sm:$0xff]   ;;  %v18168_v22 = vld [vmem:[#allocation2 + $0xb30] ss:$28 sps:$4 sm:$0xff]  }
 0x20d   :  { %v2622_v47 = vadd.f32 %v2621_v23, %v2581_v32  ;;  %v18155_v32 = vld [vmem:[#allocation2 + $0x1264] ss:$28 sps:$4 sm:$0xff]  }
 0x20e   :  { %v2623_v51 = vpop.f32.mrf.mxu1  ;;  %5212 = vmatpush2.bf16.msra.mxu0 %v18108_v45  ;;  %v18173_v45 = vld [vmem:[#allocation2 + $0x11bc] ss:$28 sps:$4 sm:$0xff]   ;;  %v18182_v23 = vld [vmem:[#allocation2 + $0xac4] ss:$28 sps:$4 sm:$0xff]  }
 0x20f   :  { %5171 = vmatpush2.bf16.msra.mxu1 %v18099_v41  ;;  %5213 = vmatprep.subr.bf16.mxu0 %v18116_v46  ;;  %v18167_v41 = vld [vmem:[#allocation2 + $0x11f4] ss:$28 sps:$4 sm:$0xff]   ;;  %v18180_v51 = vld [vmem:[#allocation2 + $0xac0] ss:$28 sps:$4 sm:$0xff]  }
 0x210   :  { %5172 = vmatprep.subr.bf16.mxu1 %v18107_v42  ;;  %v2624_v56 = vpop.f32.mrf.mxu1  ;;  %v18176_v42 = vld [vmem:[#allocation2 + $0xafc] ss:$28 sps:$4 sm:$0xff]  }
 0x211   :  { %v18174_v46 = vld [vmem:[#allocation2 + $0xaf8] ss:$28 sps:$4 sm:$0xff]   ;;  %v18186_v56 = vld [vmem:[#allocation2 + $0xe08] ss:$28 sps:$4 sm:$0xff]  }
 0x212   :  { %v2660_v58 = vpop.f32.mrf.mxu1  ;;  %5214 = vmatpush2.bf16.msra.mxu0 %v18114_v54  ;;  %v18177_v54 = vld [vmem:[#allocation2 + $0x1500] ss:$28 sps:$4 sm:$0xff]  }
 0x213   :  { %5173 = vmatpush2.bf16.msra.mxu1 %v18105_v48  ;;  %v20628_v61 = vadd.f32 %v2660_v58, %v2620_v44  ;;  %5215 = vmatprep.subr.bf16.mxu0 %v18122_v55  ;;  %v18165_v44 = vld [vmem:[#allocation2 + $0x11f0] ss:$28 sps:$4 sm:$0xff]   ;;  %v18179_v48 = vld [vmem:[#allocation2 + $0x1504] ss:$28 sps:$4 sm:$0xff]  }
 0x214   :  { %5174 = vmatprep.subr.bf16.mxu1 %v18113_v53  ;;  %v2662_v1 = vpop.f32.mrf.mxu1  ;;  %v18188_v53 = vld [vmem:[#allocation2 + $0xe0c] ss:$28 sps:$4 sm:$0xff]  }
 0x215   :  { %v20630_v2 = vadd.f32 %v2662_v1, %v2622_v47  ;;  %v18171_v47 = vld [vmem:[#allocation2 + $0x11b8] ss:$28 sps:$4 sm:$0xff]   ;;  %v18185_v55 = vld [vmem:[#allocation2 + $0x14cc] ss:$28 sps:$4 sm:$0xff]  }
 0x216   :  { %v2664_v4 = vpop.f32.mrf.mxu1  ;;  %5216 = vmatpush2.bf16.msra.mxu0 %v18120_v62  ;;  %v18183_v58 = vld [vmem:[#allocation2 + $0x14c8] ss:$28 sps:$4 sm:$0xff]   ;;  %v18191_v62 = vld [vmem:[#allocation2 + $0x1494] ss:$28 sps:$4 sm:$0xff]   ;;  %v18200_v1 = vld [vmem:[#allocation2 + $0xd9c] ss:$28 sps:$4 sm:$0xff]  }
 0x217   :  { %5175 = vmatpush2.bf16.msra.mxu1 %v18111_v57  ;;  %5217 = vmatprep.subr.bf16.mxu0 %v18128_v63  ;;  %v18194_v57 = vld [vmem:[#allocation2 + $0xdd4] ss:$28 sps:$4 sm:$0xff]  }
 0x218   :  { %5176 = vmatprep.subr.bf16.mxu1 %v18119_v59  ;;  %v2665_v10 = vpop.f32.mrf.mxu1  ;;  %v18192_v63 = vld [vmem:[#allocation2 + $0xdd0] ss:$28 sps:$4 sm:$0xff]  }
 0x219   :  { %v18189_v4 = vld [vmem:[#allocation2 + $0x1490] ss:$28 sps:$4 sm:$0xff]   ;;  %v18206_v10 = vld [vmem:[#allocation2 + $0xd64] ss:$28 sps:$4 sm:$0xff]  }
 0x21a   :  { %5218 = vmatpush2.bf16.msra.mxu0 %v18126_v6  ;;  %v18197_v6 = vld [vmem:[#allocation2 + $0x145c] ss:$28 sps:$4 sm:$0xff]  }
 0x21b   :  { %5177 = vmatpush2.bf16.msra.mxu1 %v18117_v3  ;;  %5219 = vmatprep.subr.bf16.mxu0 %v18131_v7  ;;  %v18198_v7 = vld [vmem:[#allocation2 + $0xd98] ss:$28 sps:$4 sm:$0xff]  }
 0x21c   :  { %5178 = vmatprep.subr.bf16.mxu1 %v18125_v5 }
 0x21e   :  { %5220 = vmatpush2.bf16.msra.mxu0 %v18129_v13  ;;  %v18195_v13 = vld [vmem:[#allocation2 + $0x1458] ss:$28 sps:$4 sm:$0xff]  }
 0x21f   :  { %5179 = vmatpush2.bf16.msra.mxu1 %v18123_v12  ;;  %5312 = vmatprep.subr.bf16.mxu0 %v18140_v15  ;;  %v18204_v15 = vld [vmem:[#allocation2 + $0xd60] ss:$28 sps:$4 sm:$0xff]  }
 0x220   :  { %5230 = vmatprep.subr.bf16.mxu1 %v18134_v43  ;;  %v18203_v43 = vld [vmem:[#allocation2 + $0x1424] ss:$28 sps:$4 sm:$0xff]  }
 0x221   :  { %5222 = vmatmul.mubr.bf16.vlgmr.msra.gmra.mxu0 %v20551_v9 }
 0x222   :  { %5181 = vmatmul.mubr.bf16.vlgmr.msra.gmra.mxu1 %v20549_v8  ;;  %5313 = vmatpush1.bf16.msra.mxu0 %v18138_v18  ;;  %v18201_v18 = vld [vmem:[#allocation2 + $0x1420] ss:$28 sps:$4 sm:$0xff]  }
 0x223   :  { %5231 = vmatpush1.bf16.msra.mxu1 %v18132_v17  ;;  %5314 = vmatprep.subr.bf16.mxu0 %v18146_v50  ;;  %v18212_v17 = vld [vmem:[#allocation2 + $0xd2c] ss:$28 sps:$4 sm:$0xff]  }
 0x224   :  { %5232 = vmatprep.subr.bf16.mxu1 %v18137_v20  ;;  %5262 = vmatprep.mubr.bf16.mxu1 %v20567_v36  ;;  %v18209_v20 = vld [vmem:[#allocation2 + $0x13ec] ss:$28 sps:$4 sm:$0xff]  }
 0x225   :  { %5344 = vmatprep.mubr.bf16.mxu0 %v20534_v49  ;;  %v18210_v50 = vld [vmem:[#allocation2 + $0xd28] ss:$28 sps:$4 sm:$0xff]  }
 0x226   :  { %5315 = vmatpush1.bf16.msra.mxu0 %v18144_v0 }
 0x227   :  { %5233 = vmatpush1.bf16.msra.mxu1 %v18135_v60  ;;  %5316 = vmatprep.subr.bf16.mxu0 %v18152_v25  ;;  %v18218_v60 = vld [vmem:[#allocation2 + $0xcf4] ss:$28 sps:$4 sm:$0xff]  }
 0x228   :  { %5234 = vmatprep.subr.bf16.mxu1 %v18143_v24  ;;  %v18207_v24 = vld [vmem:[#allocation2 + $0x13e8] ss:$28 sps:$4 sm:$0xff]  }
 0x22a   :  { %5317 = vmatpush1.bf16.msra.mxu0 %v18150_v27  ;;  %v18216_v27 = vld [vmem:[#allocation2 + $0xcf0] ss:$28 sps:$4 sm:$0xff]  }
 0x22b   :  { %5235 = vmatpush1.bf16.msra.mxu1 %v18141_v26  ;;  %5318 = vmatprep.subr.bf16.mxu0 %v18158_v29  ;;  %v18215_v26 = vld [vmem:[#allocation2 + $0x13b4] ss:$28 sps:$4 sm:$0xff]  }
 0x22c   :  { %5236 = vmatprep.subr.bf16.mxu1 %v18149_v28  ;;  %v18224_v28 = vld [vmem:[#allocation2 + $0xcbc] ss:$28 sps:$4 sm:$0xff]  }
 0x22e   :  { %5319 = vmatpush1.bf16.msra.mxu0 %v18156_v31 }
 0x22f   :  { %5237 = vmatpush1.bf16.msra.mxu1 %v18147_v30  ;;  %5320 = vmatprep.subr.bf16.mxu0 %v18164_v33  ;;  %v18221_v33 = vld [vmem:[#allocation2 + $0x137c] ss:$28 sps:$4 sm:$0xff]  }
 0x230   :  { %5238 = vmatprep.subr.bf16.mxu1 %v18155_v32  ;;  %v18213_v32 = vld [vmem:[#allocation2 + $0x13b0] ss:$28 sps:$4 sm:$0xff]  }
 0x232   :  { %5321 = vmatpush1.bf16.msra.mxu0 %v18162_v35  ;;  %v18230_v35 = vld [vmem:[#allocation2 + $0xc84] ss:$28 sps:$4 sm:$0xff]  }
 0x233   :  { %5239 = vmatpush1.bf16.msra.mxu1 %v18153_v34  ;;  %5322 = vmatprep.subr.bf16.mxu0 %v18170_v39  ;;  %v18222_v34 = vld [vmem:[#allocation2 + $0xcb8] ss:$28 sps:$4 sm:$0xff]  }
 0x234   :  { %5240 = vmatprep.subr.bf16.mxu1 %v18161_v38 }
 0x236   :  { %5323 = vmatpush1.bf16.msra.mxu0 %v18168_v22  ;;  %v18228_v22 = vld [vmem:[#allocation2 + $0xc80] ss:$28 sps:$4 sm:$0xff]  }
 0x237   :  { %5241 = vmatpush1.bf16.msra.mxu1 %v18159_v40  ;;  %5324 = vmatprep.subr.bf16.mxu0 %v18176_v42  ;;  %v18219_v40 = vld [vmem:[#allocation2 + $0x1378] ss:$28 sps:$4 sm:$0xff]   ;;  %v18233_v42 = vld [vmem:[#allocation2 + $0x134c] ss:$28 sps:$4 sm:$0xff]  }
 0x238   :  { %5242 = vmatprep.subr.bf16.mxu1 %v18167_v41  ;;  %v18227_v41 = vld [vmem:[#allocation2 + $0x153c] ss:$28 sps:$4 sm:$0xff]  }
 0x23a   :  { %5325 = vmatpush1.bf16.msra.mxu0 %v18174_v46  ;;  %v18225_v46 = vld [vmem:[#allocation2 + $0x1538] ss:$28 sps:$4 sm:$0xff]  }
 0x23b   :  { %5243 = vmatpush1.bf16.msra.mxu1 %v18165_v44  ;;  %5326 = vmatprep.subr.bf16.mxu0 %v18182_v23  ;;  %v18231_v23 = vld [vmem:[#allocation2 + $0x1348] ss:$28 sps:$4 sm:$0xff]  }
 0x23c   :  { %5244 = vmatprep.subr.bf16.mxu1 %v18173_v45 }
 0x23e   :  { %5327 = vmatpush1.bf16.msra.mxu0 %v18180_v51 }
 0x23f   :  { %5245 = vmatpush1.bf16.msra.mxu1 %v18171_v47  ;;  %5328 = vmatprep.subr.bf16.mxu0 %v18188_v53  ;;  %v18236_v47 = vld [vmem:[#allocation2 + $0xfcc] ss:$28 sps:$4 sm:$0xff]  }
 0x240   :  { %5246 = vmatprep.subr.bf16.mxu1 %v18179_v48  ;;  %v18239_v48 = vld [vmem:[#allocation2 + $0x1314] ss:$28 sps:$4 sm:$0xff]  }
 0x241   :  { %v2701_v59 = vpop.f32.mrf.mxu0  ;;  %v18237_v53 = vld [vmem:[#allocation2 + $0x1310] ss:$28 sps:$4 sm:$0xff]  }
 0x242   :  { %5329 = vmatpush2.bf16.msra.mxu0 %v18186_v56  ;;  %v18243_v56 = vld [vmem:[#allocation2 + $0x12d8] ss:$28 sps:$4 sm:$0xff]  }
 0x243   :  { %5247 = vmatpush2.bf16.msra.mxu1 %v18177_v54  ;;  %5330 = vmatprep.subr.bf16.mxu0 %v18194_v57  ;;  %v2703_v3 = vpop.f32.mrf.mxu0  ;;  %v18245_v54 = vld [vmem:[#allocation2 + $0x12dc] ss:$28 sps:$4 sm:$0xff]   ;;  %v18242_v57 = vld [vmem:[#allocation2 + $0xf94] ss:$28 sps:$4 sm:$0xff]  }
 0x244   :  { %5248 = vmatprep.subr.bf16.mxu1 %v18185_v55  ;;  %v18234_v55 = vld [vmem:[#allocation2 + $0xfc8] ss:$28 sps:$4 sm:$0xff]  }
 0x245   :  { %v2705_v5 = vpop.f32.mrf.mxu0 }
 0x246   :  { %5331 = vmatpush2.bf16.msra.mxu0 %v18192_v63  ;;  %v18249_v63 = vld [vmem:[#allocation2 + $0x12a0] ss:$28 sps:$4 sm:$0xff]   ;;  %v18255_v5 = vld [vmem:[#allocation2 + $0x1268] ss:$28 sps:$4 sm:$0xff]  }
 0x247   :  { %5249 = vmatpush2.bf16.msra.mxu1 %v18183_v58  ;;  %5332 = vmatprep.subr.bf16.mxu0 %v18200_v1  ;;  %v2706_v12 = vpop.f32.mrf.mxu0  ;;  %v18251_v58 = vld [vmem:[#allocation2 + $0x12a4] ss:$28 sps:$4 sm:$0xff]   ;;  %v18257_v1 = vld [vmem:[#allocation2 + $0x126c] ss:$28 sps:$4 sm:$0xff]  }
 0x248   :  { %5250 = vmatprep.subr.bf16.mxu1 %v18191_v62  ;;  %v18248_v62 = vld [vmem:[#allocation2 + $0xf5c] ss:$28 sps:$4 sm:$0xff]   ;;  %v18261_v12 = vld [vmem:[#allocation2 + $0x1230] ss:$28 sps:$4 sm:$0xff]  }
 0x24a   :  { %5333 = vmatpush2.bf16.msra.mxu0 %v18198_v7  ;;  %v18252_v7 = vld [vmem:[#allocation2 + $0xf20] ss:$28 sps:$4 sm:$0xff]  }
 0x24b   :  { %5251 = vmatpush2.bf16.msra.mxu1 %v18189_v4  ;;  %5334 = vmatprep.subr.bf16.mxu0 %v18206_v10  ;;  %v18254_v4 = vld [vmem:[#allocation2 + $0xf24] ss:$28 sps:$4 sm:$0xff]   ;;  %v18260_v10 = vld [vmem:[#allocation2 + $0xeec] ss:$28 sps:$4 sm:$0xff]  }
 0x24c   :  { %5252 = vmatprep.subr.bf16.mxu1 %v18197_v6  ;;  %v18263_v6 = vld [vmem:[#allocation2 + $0x1234] ss:$28 sps:$4 sm:$0xff]  }
 0x24e   :  { %5335 = vmatpush2.bf16.msra.mxu0 %v18204_v15  ;;  %v18266_v15 = vld [vmem:[#allocation2 + $0xeb4] ss:$28 sps:$4 sm:$0xff]  }
 0x24f   :  { %5253 = vmatpush2.bf16.msra.mxu1 %v18195_v13  ;;  %5336 = vmatprep.subr.bf16.mxu0 %v18212_v17  ;;  %v18269_v13 = vld [vmem:[#allocation2 + $0x11fc] ss:$28 sps:$4 sm:$0xff]  }
 0x250   :  { %5254 = vmatprep.subr.bf16.mxu1 %v18203_v43  ;;  %v18258_v43 = vld [vmem:[#allocation2 + $0xee8] ss:$28 sps:$4 sm:$0xff]   ;;  %v18267_v17 = vld [vmem:[#allocation2 + $0x11f8] ss:$28 sps:$4 sm:$0xff]  }
 0x252   :  { %v2742_v0 = vpop.f32.mrf.mxu1  ;;  %5337 = vmatpush2.bf16.msra.mxu0 %v18210_v50 }
 0x253   :  { %5255 = vmatpush2.bf16.msra.mxu1 %v18201_v18  ;;  %v20636_v25 = vadd.f32 %v2742_v0, %v2701_v59  ;;  %5338 = vmatprep.subr.bf16.mxu0 %v18218_v60  ;;  %v18240_v59 = vld [vmem:[#allocation2 + $0xf90] ss:$28 sps:$4 sm:$0xff]   ;;  %v18275_v18 = vld [vmem:[#allocation2 + $0x11c4] ss:$28 sps:$4 sm:$0xff]   ;;  %v18272_v60 = vld [vmem:[#allocation2 + $0xe7c] ss:$28 sps:$4 sm:$0xff]  }
 0x254   :  { %v2744_v29 = vpop.f32.mrf.mxu1  ;;  %5256 = vmatprep.subr.bf16.mxu1 %v18209_v20  ;;  %v18264_v20 = vld [vmem:[#allocation2 + $0xeb0] ss:$28 sps:$4 sm:$0xff]   ;;  %v18273_v0 = vld [vmem:[#allocation2 + $0x11c0] ss:$28 sps:$4 sm:$0xff]  }
 0x255   :  { %v20638_v30 = vadd.f32 %v2744_v29, %v2703_v3  ;;  %v18246_v3 = vld [vmem:[#allocation2 + $0xf58] ss:$28 sps:$4 sm:$0xff]  }
 0x256   :  { %v2746_v31 = vpop.f32.mrf.mxu1  ;;  %5339 = vmatpush2.bf16.msra.mxu0 %v18216_v27 }
 0x257   :  { %5257 = vmatpush2.bf16.msra.mxu1 %v18207_v24  ;;  %5340 = vmatprep.subr.bf16.mxu0 %v18224_v28  ;;  %v18281_v24 = vld [vmem:[#allocation2 + $0x150c] ss:$28 sps:$4 sm:$0xff]   ;;  %v18270_v28 = vld [vmem:[#allocation2 + $0xe78] ss:$28 sps:$4 sm:$0xff]   ;;  %v18278_v31 = vld [vmem:[#allocation2 + $0xe44] ss:$28 sps:$4 sm:$0xff]  }
 0x258   :  { %v2747_v38 = vpop.f32.mrf.mxu1  ;;  %5258 = vmatprep.subr.bf16.mxu1 %v18215_v26 }
 0x25a   :  { %v20640_v39 = vpop.f32.mrf.mxu1  ;;  %5341 = vmatpush2.bf16.msra.mxu0 %v18222_v34 }
 0x25b   :  { %5259 = vmatpush2.bf16.msra.mxu1 %v18213_v32  ;;  %5342 = vmatprep.subr.bf16.mxu0 %v18230_v35  ;;  %v18279_v32 = vld [vmem:[#allocation2 + $0x1508] ss:$28 sps:$4 sm:$0xff]   ;;  %v18276_v35 = vld [vmem:[#allocation2 + $0xe40] ss:$28 sps:$4 sm:$0xff]  }
 0x25c   :  { %v20642_v44 = vpop.f32.mrf.mxu1  ;;  %5260 = vmatprep.subr.bf16.mxu1 %v18221_v33  ;;  %v18287_v33 = vld [vmem:[#allocation2 + $0x14d4] ss:$28 sps:$4 sm:$0xff]  }
 0x25e   :  { %v2828_v45 = vpop.f32.mrf.mxu1  ;;  %5343 = vmatpush2.bf16.msra.mxu0 %v18228_v22  ;;  %v18285_v22 = vld [vmem:[#allocation2 + $0x14d0] ss:$28 sps:$4 sm:$0xff]  }
 0x25f   :  { %5261 = vmatpush2.bf16.msra.mxu1 %v18219_v40  ;;  %5394 = vmatprep.subr.bf16.mxu0 %v18233_v42  ;;  %v18284_v40 = vld [vmem:[#allocation2 + $0x118c] ss:$28 sps:$4 sm:$0xff]   ;;  %v18293_v42 = vld [vmem:[#allocation2 + $0x149c] ss:$28 sps:$4 sm:$0xff]  }
 0x260   :  { %v2829_v51 = vpop.f32.mrf.mxu1  ;;  %5285 = vmatprep.subr.bf16.mxu1 %v18227_v41 }
 0x261   :  { %5345 = vmatmul.mubr.bf16.vlgmr.msra.gmra.mxu0 %v20549_v8 }
 0x262   :  { %5263 = vmatmul.mubr.bf16.vlgmr.msra.gmra.mxu1 %v20573_v21  ;;  %5395 = vmatpush1.bf16.msra.mxu0 %v18231_v23 }
 0x263   :  { %5286 = vmatpush1.bf16.msra.mxu1 %v18225_v46  ;;  %5303 = vmatprep.mubr.bf16.mxu1 %v20438_v16 }
 0x264   :  { %5353 = vmatprep.subr.bf16.mxu1 %v18236_v47  ;;  %5396 = vmatprep.subr.bf16.mxu0 %v18239_v48  ;;  %v18282_v47 = vld [vmem:[#allocation2 + $0x1188] ss:$28 sps:$4 sm:$0xff]   ;;  %v18290_v48 = vld [vmem:[#allocation2 + $0x1154] ss:$28 sps:$4 sm:$0xff]  }
 0x265   :  { %5426 = vmatprep.mubr.bf16.mxu0 %v20567_v36 }
 0x266   :  { %5397 = vmatpush1.bf16.msra.mxu0 %v18237_v53 }
 0x267   :  { %5398 = vmatprep.subr.bf16.mxu0 %v18245_v54  ;;  %v18299_v54 = vld [vmem:[#allocation2 + $0x1464] ss:$28 sps:$4 sm:$0xff]  }
 0x26a   :  { %15970 = vmatmul.mubr.msk.bf16.vlgmr.msra.gmra.mxu1 %vm2335_vm0, %v20559_v19  ;;  %5399 = vmatpush1.bf16.msra.mxu0 %v18243_v56  ;;  %v18288_v56 = vld [vmem:[#allocation2 + $0x1150] ss:$28 sps:$4 sm:$0xff]  }
 0x26b   :  { %5354 = vmatpush1.bf16.msra.mxu1 %v18234_v55  ;;  %5400 = vmatprep.subr.bf16.mxu0 %v18251_v58  ;;  %v18305_v58 = vld [vmem:[#allocation2 + $0x142c] ss:$28 sps:$4 sm:$0xff]  }
 0x26c   :  { %5355 = vmatprep.subr.bf16.mxu1 %v18242_v57  ;;  %5385 = vmatprep.mubr.bf16.mxu1 %v20539_v52  ;;  %v18296_v57 = vld [vmem:[#allocation2 + $0x111c] ss:$28 sps:$4 sm:$0xff]  }
 0x26e   :  { %5401 = vmatpush1.bf16.msra.mxu0 %v18249_v63  ;;  %v18300_v63 = vld [vmem:[#allocation2 + $0x10e0] ss:$28 sps:$4 sm:$0xff]  }
 0x26f   :  { %5356 = vmatpush1.bf16.msra.mxu1 %v18240_v59  ;;  %5402 = vmatprep.subr.bf16.mxu0 %v18257_v1  ;;  %v18302_v59 = vld [vmem:[#allocation2 + $0x10e4] ss:$28 sps:$4 sm:$0xff]   ;;  %v18308_v1 = vld [vmem:[#allocation2 + $0x10ac] ss:$28 sps:$4 sm:$0xff]  }
 0x270   :  { %5357 = vmatprep.subr.bf16.mxu1 %v18248_v62  ;;  %v18311_v62 = vld [vmem:[#allocation2 + $0x13f4] ss:$28 sps:$4 sm:$0xff]  }
 0x272   :  { %5403 = vmatpush1.bf16.msra.mxu0 %v18255_v5  ;;  %v18306_v5 = vld [vmem:[#allocation2 + $0x10a8] ss:$28 sps:$4 sm:$0xff]  }
 0x273   :  { %5358 = vmatpush1.bf16.msra.mxu1 %v18246_v3  ;;  %5404 = vmatprep.subr.bf16.mxu0 %v18263_v6  ;;  %v18309_v3 = vld [vmem:[#allocation2 + $0x13f0] ss:$28 sps:$4 sm:$0xff]  }
 0x274   :  { %5359 = vmatprep.subr.bf16.mxu1 %v18254_v4  ;;  %v18317_v4 = vld [vmem:[#allocation2 + $0x13bc] ss:$28 sps:$4 sm:$0xff]   ;;  %v18314_v6 = vld [vmem:[#allocation2 + $0x1074] ss:$28 sps:$4 sm:$0xff]  }
 0x276   :  { %5405 = vmatpush1.bf16.msra.mxu0 %v18261_v12  ;;  %v18312_v12 = vld [vmem:[#allocation2 + $0x1070] ss:$28 sps:$4 sm:$0xff]  }
 0x277   :  { %5360 = vmatpush1.bf16.msra.mxu1 %v18252_v7  ;;  %5406 = vmatprep.subr.bf16.mxu0 %v18269_v13  ;;  %v18315_v7 = vld [vmem:[#allocation2 + $0x13b8] ss:$28 sps:$4 sm:$0xff]  }
 0x278   :  { %5361 = vmatprep.subr.bf16.mxu1 %v18260_v10  ;;  %v18323_v10 = vld [vmem:[#allocation2 + $0x1384] ss:$28 sps:$4 sm:$0xff]  }
 0x27a   :  { %v17167_v50 = vpop.f32.mrf.mxu1  ;;  %5407 = vmatpush1.bf16.msra.mxu0 %v18267_v17  ;;  %v18329_v17 = vld [vmem:[#allocation2 + $0xfd4] ss:$28 sps:$4 sm:$0xff]  }
 0x27b   :  { %5362 = vmatpush1.bf16.msra.mxu1 %v18258_v43  ;;  %5408 = vmatprep.subr.bf16.mxu0 %v18275_v18  ;;  %v18320_v43 = vld [vmem:[#allocation2 + $0x103c] ss:$28 sps:$4 sm:$0xff]  }
 0x27c   :  { %v17168_v26 = vpop.f32.mrf.mxu1  ;;  %5363 = vmatprep.subr.bf16.mxu1 %v18266_v15  ;;  %v18321_v15 = vld [vmem:[#allocation2 + $0x1380] ss:$28 sps:$4 sm:$0xff]  }
 0x27d   :  { %v20651_v27 = vadd.f32 %v17168_v26, %v17167_v50  ;;  %v18318_v50 = vld [vmem:[#allocation2 + $0x1038] ss:$28 sps:$4 sm:$0xff]   ;;  %v18327_v26 = vld [vmem:[#allocation2 + $0xfd0] ss:$28 sps:$4 sm:$0xff]  }
 0x27e   :  { %v17170_v29 = vpop.f32.mrf.mxu1  ;;  %5409 = vmatpush1.bf16.msra.mxu0 %v18273_v0  ;;  %v18326_v0 = vld [vmem:[#allocation2 + $0x1004] ss:$28 sps:$4 sm:$0xff]  }
 0x27f   :  { %5364 = vmatpush1.bf16.msra.mxu1 %v18264_v20  ;;  %5410 = vmatprep.subr.bf16.mxu0 %v18281_v24 }
 0x280   :  { %v17171_v34 = vpop.f32.mrf.mxu1  ;;  %5365 = vmatprep.subr.bf16.mxu1 %v18272_v60 }
 0x281   :  { %v2783_v38 = vpop.f32.mrf.mxu0  ;;  %v18332_v34 = vld [vmem:[#allocation2 + $0x1544] ss:$28 sps:$4 sm:$0xff]  }
 0x282   :  { %v2784_v41 = vadd.f32 %v2783_v38, %v20636_v25  ;;  %5411 = vmatpush2.bf16.msra.mxu0 %v18279_v32  ;;  %v18291_v25 = vld [vmem:[#allocation2 + $0x1498] ss:$28 sps:$4 sm:$0xff]  }
 0x283   :  { %5366 = vmatpush1.bf16.msra.mxu1 %v18270_v28  ;;  %v2785_v45 = vpop.f32.mrf.mxu0  ;;  %5412 = vmatprep.subr.bf16.mxu0 %v18287_v33  ;;  %v18335_v28 = vld [vmem:[#allocation2 + $0xf9c] ss:$28 sps:$4 sm:$0xff]  }
 0x284   :  { %5367 = vmatprep.subr.bf16.mxu1 %v18278_v31  ;;  %v20655_v46 = vadd.f32 %v20640_v39, %v2784_v41  ;;  %v2786_v23 = vadd.f32 %v2785_v45, %v20638_v30  ;;  %v18297_v39 = vld [vmem:[#allocation2 + $0x1460] ss:$28 sps:$4 sm:$0xff]   ;;  %v18294_v30 = vld [vmem:[#allocation2 + $0x1118] ss:$28 sps:$4 sm:$0xff]  }
 0x285   :  { %v2787_v51 = vpop.f32.mrf.mxu0  ;;  %v18324_v31 = vld [vmem:[#allocation2 + $0x1000] ss:$28 sps:$4 sm:$0xff]  }
 0x286   :  { %v20659_v53 = vadd.f32 %v20642_v44, %v2786_v23  ;;  %5413 = vmatpush2.bf16.msra.mxu0 %v18285_v22  ;;  %v18303_v44 = vld [vmem:[#allocation2 + $0x1428] ss:$28 sps:$4 sm:$0xff]   ;;  %v18330_v22 = vld [vmem:[#allocation2 + $0x1540] ss:$28 sps:$4 sm:$0xff]   ;;  %v18341_v51 = vld [vmem:[#allocation2 + $0xc54] ss:$28 sps:$4 sm:$0xff]  }
 0x287   :  { %5368 = vmatpush1.bf16.msra.mxu1 %v18276_v35  ;;  %5414 = vmatprep.subr.bf16.mxu0 %v18293_v42  ;;  %v2788_v55 = vpop.f32.mrf.mxu0  ;;  %v18333_v35 = vld [vmem:[#allocation2 + $0xf98] ss:$28 sps:$4 sm:$0xff]   ;;  %v18336_v45 = vld [vmem:[#allocation2 + $0xf60] ss:$28 sps:$4 sm:$0xff]  }
 0x288   :  { %5369 = vmatprep.subr.bf16.mxu1 %v18284_v40  ;;  %v18344_v55 = vld [vmem:[#allocation2 + $0xf2c] ss:$28 sps:$4 sm:$0xff]  }
 0x28a   :  { %5415 = vmatpush2.bf16.msra.mxu0 %v18291_v25 }
 0x28b   :  { %5370 = vmatpush2.bf16.msra.mxu1 %v18282_v47  ;;  %5416 = vmatprep.subr.bf16.mxu0 %v18299_v54 }
 0x28c   :  { %5371 = vmatprep.subr.bf16.mxu1 %v18290_v48 }
 0x28e   :  { %5417 = vmatpush2.bf16.msra.mxu0 %v18297_v39  ;;  %v18339_v39 = vld [vmem:[#allocation2 + $0xc50] ss:$28 sps:$4 sm:$0xff]  }
 0x28f   :  { %5372 = vmatpush2.bf16.msra.mxu1 %v18288_v56  ;;  %5418 = vmatprep.subr.bf16.mxu0 %v18305_v58  ;;  %v18342_v56 = vld [vmem:[#allocation2 + $0xf28] ss:$28 sps:$4 sm:$0xff]   ;;  %v18348_v58 = vld [vmem:[#allocation2 + $0xef0] ss:$28 sps:$4 sm:$0xff]  }
 0x290   :  { %5373 = vmatprep.subr.bf16.mxu1 %v18296_v57  ;;  %v18350_v57 = vld [vmem:[#allocation2 + $0xef4] ss:$28 sps:$4 sm:$0xff]  }
 0x292   :  { %5419 = vmatpush2.bf16.msra.mxu0 %v18303_v44  ;;  %v18345_v44 = vld [vmem:[#allocation2 + $0xc18] ss:$28 sps:$4 sm:$0xff]  }
 0x293   :  { %5374 = vmatpush2.bf16.msra.mxu1 %v18294_v30  ;;  %5420 = vmatprep.subr.bf16.mxu0 %v18311_v62  ;;  %v18347_v30 = vld [vmem:[#allocation2 + $0xc1c] ss:$28 sps:$4 sm:$0xff]  }
 0x294   :  { %5375 = vmatprep.subr.bf16.mxu1 %v18302_v59  ;;  %v18356_v59 = vld [vmem:[#allocation2 + $0xebc] ss:$28 sps:$4 sm:$0xff]  }
 0x295   :  { %v18354_v62 = vld [vmem:[#allocation2 + $0xeb8] ss:$28 sps:$4 sm:$0xff]  }
 0x296   :  { %5421 = vmatpush2.bf16.msra.mxu0 %v18309_v3  ;;  %v18351_v3 = vld [vmem:[#allocation2 + $0xbe0] ss:$28 sps:$4 sm:$0xff]  }
 0x297   :  { %5376 = vmatpush2.bf16.msra.mxu1 %v18300_v63  ;;  %5422 = vmatprep.subr.bf16.mxu0 %v18317_v4  ;;  %v18353_v63 = vld [vmem:[#allocation2 + $0xbe4] ss:$28 sps:$4 sm:$0xff]  }
 0x298   :  { %5377 = vmatprep.subr.bf16.mxu1 %v18308_v1  ;;  %v18362_v1 = vld [vmem:[#allocation2 + $0xe84] ss:$28 sps:$4 sm:$0xff]  }
 0x299   :  { %v18360_v4 = vld [vmem:[#allocation2 + $0xe80] ss:$28 sps:$4 sm:$0xff]  }
 0x29a   :  { %v17189_v13 = vpop.f32.mrf.mxu1  ;;  %5423 = vmatpush2.bf16.msra.mxu0 %v18315_v7  ;;  %v18357_v7 = vld [vmem:[#allocation2 + $0xba8] ss:$28 sps:$4 sm:$0xff]  }
 0x29b   :  { %5378 = vmatpush2.bf16.msra.mxu1 %v18306_v5  ;;  %5424 = vmatprep.subr.bf16.mxu0 %v18323_v10  ;;  %v18359_v5 = vld [vmem:[#allocation2 + $0xbac] ss:$28 sps:$4 sm:$0xff]  }
 0x29c   :  { %v17190_v18 = vpop.f32.mrf.mxu1  ;;  %5379 = vmatprep.subr.bf16.mxu1 %v18314_v6  ;;  %v18368_v6 = vld [vmem:[#allocation2 + $0xe4c] ss:$28 sps:$4 sm:$0xff]  }
 0x29d   :  { %v17191_v20 = vadd.f32 %v17190_v18, %v17189_v13  ;;  %v18366_v10 = vld [vmem:[#allocation2 + $0xe48] ss:$28 sps:$4 sm:$0xff]   ;;  %v18374_v13 = vld [vmem:[#allocation2 + $0x1194] ss:$28 sps:$4 sm:$0xff]   ;;  %v18380_v18 = vld [vmem:[#allocation2 + $0x115c] ss:$28 sps:$4 sm:$0xff]  }
 0x29e   :  { %v17192_v60 = vpop.f32.mrf.mxu1  ;;  %5425 = vmatpush2.bf16.msra.mxu0 %v18321_v15  ;;  %v18372_v15 = vld [vmem:[#allocation2 + $0x1190] ss:$28 sps:$4 sm:$0xff]  }
 0x29f   :  { %v2906_v24 = vadd.f32 %v17191_v20, %v20651_v27  ;;  %5380 = vmatpush2.bf16.msra.mxu1 %v18312_v12  ;;  %5517 = vmatprep.subr.bf16.mxu0 %v18329_v17  ;;  %v18338_v27 = vld [vmem:[#allocation2 + $0xf64] ss:$28 sps:$4 sm:$0xff]   ;;  %v18365_v12 = vld [vmem:[#allocation2 + $0xb74] ss:$28 sps:$4 sm:$0xff]   ;;  %v18371_v17 = vld [vmem:[#allocation2 + $0xb3c] ss:$28 sps:$4 sm:$0xff]  }
 0x2a0   :  { %v17193_v29 = vpop.f32.mrf.mxu1  ;;  %5381 = vmatprep.subr.bf16.mxu1 %v18320_v43  ;;  %v18363_v43 = vld [vmem:[#allocation2 + $0xb70] ss:$28 sps:$4 sm:$0xff]   ;;  %v18369_v20 = vld [vmem:[#allocation2 + $0xb38] ss:$28 sps:$4 sm:$0xff]   ;;  %v18377_v60 = vld [vmem:[#allocation2 + $0xb04] ss:$28 sps:$4 sm:$0xff]  }
 0x2a1   :  { %v17211_v33 = vpop.f32.mrf.mxu0  ;;  %5427 = vmatmul.mubr.bf16.vlgmr.msra.gmra.mxu0 %v20573_v21  ;;  %v18392_v29 = vld [vmem:[#allocation2 + $0x10ec] ss:$28 sps:$4 sm:$0xff]  }
 0x2a2   :  { %v2985_v32 = vpop.f32.mrf.mxu1  ;;  %5518 = vmatpush1.bf16.msra.mxu0 %v18327_v26  ;;  %5549 = vmatprep.mubr.bf16.mxu0 %v20539_v52  ;;  %v18384_v26 = vld [vmem:[#allocation2 + $0x1120] ss:$28 sps:$4 sm:$0xff]  }
 0x2a3   :  { %5382 = vmatpush2.bf16.msra.mxu1 %v18318_v50  ;;  %v17212_v40 = vpop.f32.mrf.mxu0  ;;  %5519 = vmatprep.subr.bf16.mxu0 %v18335_v28  ;;  %v18378_v50 = vld [vmem:[#allocation2 + $0x1158] ss:$28 sps:$4 sm:$0xff]   ;;  %v18383_v28 = vld [vmem:[#allocation2 + $0xacc] ss:$28 sps:$4 sm:$0xff]  }
 0x2a4   :  { %v17467_v38 = vpop.f32.mrf.mxu1  ;;  %5383 = vmatprep.subr.bf16.mxu1 %v18326_v0  ;;  %v17213_v41 = vadd.f32 %v17212_v40, %v17211_v33  ;;  %v18386_v0 = vld [vmem:[#allocation2 + $0x1124] ss:$28 sps:$4 sm:$0xff]   ;;  %v18389_v33 = vld [vmem:[#allocation2 + $0xe14] ss:$28 sps:$4 sm:$0xff]   ;;  %v18395_v40 = vld [vmem:[#allocation2 + $0xddc] ss:$28 sps:$4 sm:$0xff]  }
 0x2a5   :  { %v17214_v23 = vpop.f32.mrf.mxu0  ;;  %v18396_v38 = vld [vmem:[#allocation2 + $0x10b0] ss:$28 sps:$4 sm:$0xff]  }
 0x2a6   :  { %v2988_v42 = vpop.f32.mrf.mxu1  ;;  %v2946_v47 = vadd.f32 %v17213_v41, %v2906_v24  ;;  %5520 = vmatpush1.bf16.msra.mxu0 %v18333_v35  ;;  %v18375_v24 = vld [vmem:[#allocation2 + $0xb00] ss:$28 sps:$4 sm:$0xff]   ;;  %v18387_v35 = vld [vmem:[#allocation2 + $0xe10] ss:$28 sps:$4 sm:$0xff]   ;;  %v18393_v41 = vld [vmem:[#allocation2 + $0xdd8] ss:$28 sps:$4 sm:$0xff]  }
 0x2a7   :  { %5384 = vmatpush2.bf16.msra.mxu1 %v18324_v31  ;;  %5521 = vmatprep.subr.bf16.mxu0 %v18338_v27  ;;  %v17215_v25 = vpop.f32.mrf.mxu0  ;;  %v18381_v31 = vld [vmem:[#allocation2 + $0xac8] ss:$28 sps:$4 sm:$0xff]   ;;  %v18404_v27 = vld [vmem:[#allocation2 + $0x107c] ss:$28 sps:$4 sm:$0xff]  }
 0x2a8   :  { %v17468_v48 = vpop.f32.mrf.mxu1  ;;  %5449 = vmatprep.subr.bf16.mxu1 %v18332_v34  ;;  %v20664_v54 = vadd.f32 %v2985_v32, %v2946_v47  ;;  %v18390_v32 = vld [vmem:[#allocation2 + $0x10e8] ss:$28 sps:$4 sm:$0xff]   ;;  %v18398_v34 = vld [vmem:[#allocation2 + $0x10b4] ss:$28 sps:$4 sm:$0xff]   ;;  %v18399_v23 = vld [vmem:[#allocation2 + $0xda0] ss:$28 sps:$4 sm:$0xff]  }
 0x2a9   :  { %v18402_v42 = vld [vmem:[#allocation2 + $0x1078] ss:$28 sps:$4 sm:$0xff]   ;;  %v18407_v47 = vld [vmem:[#allocation2 + $0xd6c] ss:$28 sps:$4 sm:$0xff]   ;;  %v18408_v48 = vld [vmem:[#allocation2 + $0x1040] ss:$28 sps:$4 sm:$0xff]  }
 0x2aa   :  { %5386 = vmatmul.mubr.bf16.vlgmr.msra.gmra.mxu1 %v20551_v9  ;;  %5522 = vmatpush1.bf16.msra.mxu0 %v18336_v45  ;;  %v18410_v45 = vld [vmem:[#allocation2 + $0x1044] ss:$28 sps:$4 sm:$0xff]  }
 0x2ab   :  { %5450 = vmatpush1.bf16.msra.mxu1 %v18330_v22  ;;  %5467 = vmatprep.mubr.bf16.mxu1 %v20438_v16  ;;  %v18401_v22 = vld [vmem:[#allocation2 + $0xda4] ss:$28 sps:$4 sm:$0xff]  }
 0x2ac   :  { %5476 = vmatprep.subr.bf16.mxu1 %v18341_v51  ;;  %5523 = vmatprep.subr.bf16.mxu0 %v18344_v55  ;;  %v18416_v51 = vld [vmem:[#allocation2 + $0x100c] ss:$28 sps:$4 sm:$0xff]   ;;  %v18413_v55 = vld [vmem:[#allocation2 + $0xd34] ss:$28 sps:$4 sm:$0xff]  }
 0x2ad   :  { %v18405_v25 = vld [vmem:[#allocation2 + $0xd68] ss:$28 sps:$4 sm:$0xff]  }
 0x2ae   :  { %5524 = vmatpush1.bf16.msra.mxu0 %v18342_v56  ;;  %v18414_v56 = vld [vmem:[#allocation2 + $0x1008] ss:$28 sps:$4 sm:$0xff]  }
 0x2af   :  { %5525 = vmatprep.subr.bf16.mxu0 %v18350_v57  ;;  %v18425_v57 = vld [vmem:[#allocation2 + $0x154c] ss:$28 sps:$4 sm:$0xff]  }
 0x2b2   :  { %15971 = vmatmul.mubr.msk.bf16.vlgmr.msra.gmra.mxu1 %vm2335_vm0, %v20559_v19  ;;  %5526 = vmatpush1.bf16.msra.mxu0 %v18348_v58  ;;  %v18419_v58 = vld [vmem:[#allocation2 + $0xcfc] ss:$28 sps:$4 sm:$0xff]  }
 0x2b3   :  { %5477 = vmatpush1.bf16.msra.mxu1 %v18339_v39  ;;  %5527 = vmatprep.subr.bf16.mxu0 %v18356_v59  ;;  %v18411_v39 = vld [vmem:[#allocation2 + $0xd30] ss:$28 sps:$4 sm:$0xff]   ;;  %v18429_v59 = vld [vmem:[#allocation2 + $0xe18] ss:$28 sps:$4 sm:$0xff]  }
 0x2b4   :  { %5478 = vmatprep.subr.bf16.mxu1 %v18347_v30  ;;  %5508 = vmatprep.mubr.bf16.mxu1 %v20534_v49  ;;  %v18423_v30 = vld [vmem:[#allocation2 + $0x1548] ss:$28 sps:$4 sm:$0xff]  }
 0x2b6   :  { %5528 = vmatpush1.bf16.msra.mxu0 %v18354_v62 }
 0x2b7   :  { %5479 = vmatpush1.bf16.msra.mxu1 %v18345_v44  ;;  %5529 = vmatprep.subr.bf16.mxu0 %v18362_v1 }
 0x2b8   :  { %5480 = vmatprep.subr.bf16.mxu1 %v18353_v63  ;;  %v18417_v63 = vld [vmem:[#allocation2 + $0xcf8] ss:$28 sps:$4 sm:$0xff]  }
 0x2ba   :  { %5530 = vmatpush1.bf16.msra.mxu0 %v18360_v4 }
 0x2bb   :  { %5481 = vmatpush1.bf16.msra.mxu1 %v18351_v3  ;;  %5531 = vmatprep.subr.bf16.mxu0 %v18368_v6 }
 0x2bc   :  { %5482 = vmatprep.subr.bf16.mxu1 %v18359_v5  ;;  %v18422_v5 = vld [vmem:[#allocation2 + $0xcc4] ss:$28 sps:$4 sm:$0xff]  }
 0x2be   :  { %5532 = vmatpush1.bf16.msra.mxu0 %v18366_v10 }
 0x2bf   :  { %5483 = vmatpush1.bf16.msra.mxu1 %v18357_v7  ;;  %5533 = vmatprep.subr.bf16.mxu0 %v18374_v13  ;;  %v18428_v13 = vld [vmem:[#allocation2 + $0xc8c] ss:$28 sps:$4 sm:$0xff]  }
 0x2c0   :  { %5484 = vmatprep.subr.bf16.mxu1 %v18365_v12  ;;  %v18420_v12 = vld [vmem:[#allocation2 + $0xcc0] ss:$28 sps:$4 sm:$0xff]  }
 0x2c2   :  { %5534 = vmatpush2.bf16.msra.mxu0 %v18372_v15 }
 0x2c3   :  { %5485 = vmatpush1.bf16.msra.mxu1 %v18363_v43  ;;  %5535 = vmatprep.subr.bf16.mxu0 %v18380_v18  ;;  %v18430_v43 = vld [vmem:[#allocation2 + $0xc58] ss:$28 sps:$4 sm:$0xff]  }
 0x2c4   :  { %5486 = vmatprep.subr.bf16.mxu1 %v18371_v17  ;;  %v18434_v17 = vld [vmem:[#allocation2 + $0xde0] ss:$28 sps:$4 sm:$0xff]  }
 0x2c6   :  { %5536 = vmatpush2.bf16.msra.mxu0 %v18378_v50  ;;  %v18435_v50 = vld [vmem:[#allocation2 + $0xc20] ss:$28 sps:$4 sm:$0xff]  }
 0x2c7   :  { %5487 = vmatpush1.bf16.msra.mxu1 %v18369_v20  ;;  %5537 = vmatprep.subr.bf16.mxu0 %v18386_v0  ;;  %v18426_v20 = vld [vmem:[#allocation2 + $0xc88] ss:$28 sps:$4 sm:$0xff]  }
 0x2c8   :  { %5488 = vmatprep.subr.bf16.mxu1 %v18377_v60  ;;  %v18433_v60 = vld [vmem:[#allocation2 + $0x1354] ss:$28 sps:$4 sm:$0xff]   ;;  %v18439_v0 = vld [vmem:[#allocation2 + $0xda8] ss:$28 sps:$4 sm:$0xff]  }
 0x2ca   :  { %5538 = vmatpush2.bf16.msra.mxu0 %v18384_v26  ;;  %v18440_v26 = vld [vmem:[#allocation2 + $0xbe8] ss:$28 sps:$4 sm:$0xff]  }
 0x2cb   :  { %5489 = vmatpush1.bf16.msra.mxu1 %v18375_v24  ;;  %5539 = vmatprep.subr.bf16.mxu0 %v18392_v29  ;;  %v18431_v24 = vld [vmem:[#allocation2 + $0x1350] ss:$28 sps:$4 sm:$0xff]  }
 0x2cc   :  { %5490 = vmatprep.subr.bf16.mxu1 %v18383_v28  ;;  %v18438_v28 = vld [vmem:[#allocation2 + $0x131c] ss:$28 sps:$4 sm:$0xff]   ;;  %v18444_v29 = vld [vmem:[#allocation2 + $0xd70] ss:$28 sps:$4 sm:$0xff]  }
 0x2ce   :  { %5540 = vmatpush2.bf16.msra.mxu0 %v18390_v32  ;;  %v18445_v32 = vld [vmem:[#allocation2 + $0xbb0] ss:$28 sps:$4 sm:$0xff]  }
 0x2cf   :  { %5491 = vmatpush1.bf16.msra.mxu1 %v18381_v31  ;;  %5541 = vmatprep.subr.bf16.mxu0 %v18398_v34  ;;  %v18436_v31 = vld [vmem:[#allocation2 + $0x1318] ss:$28 sps:$4 sm:$0xff]  }
 0x2d0   :  { %5492 = vmatprep.subr.bf16.mxu1 %v18389_v33  ;;  %v18443_v33 = vld [vmem:[#allocation2 + $0x12e4] ss:$28 sps:$4 sm:$0xff]   ;;  %v18449_v34 = vld [vmem:[#allocation2 + $0xd38] ss:$28 sps:$4 sm:$0xff]  }
 0x2d2   :  { %5542 = vmatpush2.bf16.msra.mxu0 %v18396_v38  ;;  %v18450_v38 = vld [vmem:[#allocation2 + $0xb78] ss:$28 sps:$4 sm:$0xff]  }
 0x2d3   :  { %5493 = vmatpush2.bf16.msra.mxu1 %v18387_v35  ;;  %5543 = vmatprep.subr.bf16.mxu0 %v18404_v27  ;;  %v18441_v35 = vld [vmem:[#allocation2 + $0x12e0] ss:$28 sps:$4 sm:$0xff]  }
 0x2d4   :  { %5494 = vmatprep.subr.bf16.mxu1 %v18395_v40  ;;  %v18448_v40 = vld [vmem:[#allocation2 + $0x12ac] ss:$28 sps:$4 sm:$0xff]   ;;  %v18454_v27 = vld [vmem:[#allocation2 + $0xd00] ss:$28 sps:$4 sm:$0xff]  }
 0x2d6   :  { %5544 = vmatpush2.bf16.msra.mxu0 %v18402_v42  ;;  %v18453_v42 = vld [vmem:[#allocation2 + $0x1274] ss:$28 sps:$4 sm:$0xff]  }
 0x2d7   :  { %5495 = vmatpush2.bf16.msra.mxu1 %v18393_v41  ;;  %5545 = vmatprep.subr.bf16.mxu0 %v18410_v45  ;;  %v18446_v41 = vld [vmem:[#allocation2 + $0x12a8] ss:$28 sps:$4 sm:$0xff]  }
 0x2d8   :  { %5496 = vmatprep.subr.bf16.mxu1 %v18401_v22  ;;  %v18455_v22 = vld [vmem:[#allocation2 + $0xb40] ss:$28 sps:$4 sm:$0xff]   ;;  %v18459_v45 = vld [vmem:[#allocation2 + $0xcc8] ss:$28 sps:$4 sm:$0xff]  }
 0x2da   :  { %5546 = vmatpush2.bf16.msra.mxu0 %v18408_v48  ;;  %v18458_v48 = vld [vmem:[#allocation2 + $0x123c] ss:$28 sps:$4 sm:$0xff]  }
 0x2db   :  { %5497 = vmatpush2.bf16.msra.mxu1 %v18399_v23  ;;  %5547 = vmatprep.subr.bf16.mxu0 %v18416_v51  ;;  %v18451_v23 = vld [vmem:[#allocation2 + $0x1270] ss:$28 sps:$4 sm:$0xff]  }
 0x2dc   :  { %5498 = vmatprep.subr.bf16.mxu1 %v18407_v47  ;;  %v18460_v47 = vld [vmem:[#allocation2 + $0xb08] ss:$28 sps:$4 sm:$0xff]   ;;  %v18464_v51 = vld [vmem:[#allocation2 + $0xc90] ss:$28 sps:$4 sm:$0xff]  }
 0x2de   :  { %5548 = vmatpush2.bf16.msra.mxu0 %v18414_v56  ;;  %v18463_v56 = vld [vmem:[#allocation2 + $0x1204] ss:$28 sps:$4 sm:$0xff]  }
 0x2df   :  { %5499 = vmatpush2.bf16.msra.mxu1 %v18405_v25  ;;  %5613 = vmatprep.subr.bf16.mxu0 %v18425_v57  ;;  %v18456_v25 = vld [vmem:[#allocation2 + $0x1238] ss:$28 sps:$4 sm:$0xff]  }
 0x2e0   :  { %5500 = vmatprep.subr.bf16.mxu1 %v18413_v55  ;;  %v18465_v55 = vld [vmem:[#allocation2 + $0xad0] ss:$28 sps:$4 sm:$0xff]   ;;  %v18469_v57 = vld [vmem:[#allocation2 + $0x1198] ss:$28 sps:$4 sm:$0xff]  }
 0x2e1   :  { %v5223_v62 = vpop.f32.mrf.mxu0  ;;  %5550 = vmatmul.mubr.bf16.vlgmr.msra.gmra.mxu0 %v20551_v9 }
 0x2e2   :  { %v5182_v44 = vpop.f32.mrf.mxu1  ;;  %5614 = vmatpush1.bf16.msra.mxu0 %v18423_v30  ;;  %5631 = vmatprep.mubr.bf16.mxu0 %v20438_v16  ;;  %v18468_v30 = vld [vmem:[#allocation2 + $0x11cc] ss:$28 sps:$4 sm:$0xff]  }
 0x2e3   :  { %5501 = vmatpush2.bf16.msra.mxu1 %v18411_v39  ;;  %v20672_v1 = vadd.f32 %v5223_v62, %v5182_v44  ;;  %v5225_v4 = vpop.f32.mrf.mxu0  ;;  %17219 = vmatprep.subr.bf16.mxu0 %v18429_v59  ;;  %v18461_v39 = vld [vmem:[#allocation2 + $0x1200] ss:$28 sps:$4 sm:$0xff]   ;;  %v18466_v44 = vld [vmem:[#allocation2 + $0x11c8] ss:$28 sps:$4 sm:$0xff]  }
 0x2e4   :  { %v5184_v3 = vpop.f32.mrf.mxu1  ;;  %5502 = vmatprep.subr.bf16.mxu1 %v18419_v58  ;;  %v18470_v58 = vld [vmem:[#allocation2 + $0xfd8] ss:$28 sps:$4 sm:$0xff]   ;;  %v18474_v59 = vld [vmem:[#allocation2 + $0x1160] ss:$28 sps:$4 sm:$0xff]  }
 0x2e5   :  { %v20675_v6 = vadd.f32 %v5225_v4, %v5184_v3  ;;  %v5227_v10 = vpop.f32.mrf.mxu0  ;;  %v18475_v62 = vld [vmem:[#allocation2 + $0xfa0] ss:$28 sps:$4 sm:$0xff]   ;;  %v18479_v3 = vld [vmem:[#allocation2 + $0x1128] ss:$28 sps:$4 sm:$0xff]   ;;  %v18471_v4 = vld [vmem:[#allocation2 + $0x1510] ss:$28 sps:$4 sm:$0xff]  }
 0x2e6   :  { %v5186_v7 = vpop.f32.mrf.mxu1  ;;  %v18484_v10 = vld [vmem:[#allocation2 + $0x10f0] ss:$28 sps:$4 sm:$0xff]  }
 0x2e7   :  { %5503 = vmatpush2.bf16.msra.mxu1 %v18417_v63  ;;  %v5228_v18 = vpop.f32.mrf.mxu0  ;;  %v18473_v63 = vld [vmem:[#allocation2 + $0x1514] ss:$28 sps:$4 sm:$0xff]   ;;  %v18478_v7 = vld [vmem:[#allocation2 + $0x14dc] ss:$28 sps:$4 sm:$0xff]  }
 0x2e8   :  { %v5187_v15 = vpop.f32.mrf.mxu1  ;;  %5504 = vmatprep.subr.bf16.mxu1 %v18422_v5  ;;  %v18480_v5 = vld [vmem:[#allocation2 + $0xf68] ss:$28 sps:$4 sm:$0xff]   ;;  %v18490_v18 = vld [vmem:[#allocation2 + $0xef8] ss:$28 sps:$4 sm:$0xff]  }
 0x2e9   :  { %15972 = vmatmul.mubr.msk.bf16.vlgmr.msra.gmra.mxu0 %vm2335_vm0, %v20559_v19  ;;  %v18489_v15 = vld [vmem:[#allocation2 + $0x10b8] ss:$28 sps:$4 sm:$0xff]  }
 0x2ea   :  { %17220 = vmatpush3.bf16.msra.mxu0 %v18430_v43  ;;  %5672 = vmatprep.mubr.bf16.mxu0 %v20534_v49  ;;  %v18483_v43 = vld [vmem:[#allocation2 + $0x14a4] ss:$28 sps:$4 sm:$0xff]  }
 0x2eb   :  { %5505 = vmatpush2.bf16.msra.mxu1 %v18420_v12  ;;  %17221 = vmatprep.subr.bf16.mxu0 %v18434_v17  ;;  %v18476_v12 = vld [vmem:[#allocation2 + $0x14d8] ss:$28 sps:$4 sm:$0xff]   ;;  %v18481_v17 = vld [vmem:[#allocation2 + $0x14a0] ss:$28 sps:$4 sm:$0xff]  }
 0x2ec   :  { %5506 = vmatprep.subr.bf16.mxu1 %v18428_v13  ;;  %v18485_v13 = vld [vmem:[#allocation2 + $0xf30] ss:$28 sps:$4 sm:$0xff]  }
 0x2ee   :  { %17222 = vmatpush3.bf16.msra.mxu0 %v18435_v50  ;;  %v18494_v50 = vld [vmem:[#allocation2 + $0x1080] ss:$28 sps:$4 sm:$0xff]  }
 0x2ef   :  { %5507 = vmatpush2.bf16.msra.mxu1 %v18426_v20  ;;  %17223 = vmatprep.subr.bf16.mxu0 %v18439_v0  ;;  %v18488_v20 = vld [vmem:[#allocation2 + $0x146c] ss:$28 sps:$4 sm:$0xff]   ;;  %v18495_v0 = vld [vmem:[#allocation2 + $0xec0] ss:$28 sps:$4 sm:$0xff]  }
 0x2f0   :  { %5558 = vmatprep.subr.bf16.mxu1 %v18433_v60  ;;  %v18486_v60 = vld [vmem:[#allocation2 + $0x1468] ss:$28 sps:$4 sm:$0xff]  }
 0x2f2   :  { %5509 = vmatmul.mubr.bf16.vlgmr.msra.gmra.mxu1 %v20549_v8  ;;  %17224 = vmatpush3.bf16.msra.mxu0 %v18440_v26  ;;  %v18499_v26 = vld [vmem:[#allocation2 + $0x1048] ss:$28 sps:$4 sm:$0xff]  }
 0x2f3   :  { %5559 = vmatpush1.bf16.msra.mxu1 %v18431_v24  ;;  %17225 = vmatprep.subr.bf16.mxu0 %v18444_v29  ;;  %v18493_v24 = vld [vmem:[#allocation2 + $0x1434] ss:$28 sps:$4 sm:$0xff]   ;;  %v18500_v29 = vld [vmem:[#allocation2 + $0xe88] ss:$28 sps:$4 sm:$0xff]  }
 0x2f4   :  { %5560 = vmatprep.subr.bf16.mxu1 %v18438_v28  ;;  %5590 = vmatprep.mubr.bf16.mxu1 %v20567_v36  ;;  %v18491_v28 = vld [vmem:[#allocation2 + $0x1430] ss:$28 sps:$4 sm:$0xff]  }
 0x2f6   :  { %17226 = vmatpush3.bf16.msra.mxu0 %v18445_v32  ;;  %v18504_v32 = vld [vmem:[#allocation2 + $0x1010] ss:$28 sps:$4 sm:$0xff]  }
 0x2f7   :  { %5561 = vmatpush1.bf16.msra.mxu1 %v18436_v31  ;;  %17227 = vmatprep.subr.bf16.mxu0 %v18449_v34  ;;  %v18498_v31 = vld [vmem:[#allocation2 + $0x13fc] ss:$28 sps:$4 sm:$0xff]  }
 0x2f8   :  { %5562 = vmatprep.subr.bf16.mxu1 %v18443_v33 }
 0x2fa   :  { %17228 = vmatpush3.bf16.msra.mxu0 %v18450_v38  ;;  %v18496_v38 = vld [vmem:[#allocation2 + $0x13f8] ss:$28 sps:$4 sm:$0xff]  }
 0x2fb   :  { %5563 = vmatpush1.bf16.msra.mxu1 %v18441_v35  ;;  %17229 = vmatprep.subr.bf16.mxu0 %v18454_v27 }
 0x2fc   :  { %5564 = vmatprep.subr.bf16.mxu1 %v18448_v40  ;;  %v18505_v40 = vld [vmem:[#allocation2 + $0xe50] ss:$28 sps:$4 sm:$0xff]  }
 0x2fe   :  { %17230 = vmatpush3.bf16.msra.mxu0 %v18455_v22 }
 0x2ff   :  { %5565 = vmatpush1.bf16.msra.mxu1 %v18446_v41  ;;  %17231 = vmatprep.subr.bf16.mxu0 %v18459_v45  ;;  %v18503_v41 = vld [vmem:[#allocation2 + $0x13c4] ss:$28 sps:$4 sm:$0xff]  }
 0x300   :  { %5566 = vmatprep.subr.bf16.mxu1 %v18453_v42 }
 0x302   :  { %17232 = vmatpush3.bf16.msra.mxu0 %v18460_v47  ;;  %v18501_v47 = vld [vmem:[#allocation2 + $0x13c0] ss:$28 sps:$4 sm:$0xff]  }
 0x303   :  { %5567 = vmatpush1.bf16.msra.mxu1 %v18451_v23  ;;  %17233 = vmatprep.subr.bf16.mxu0 %v18464_v51 }
 0x304   :  { %5568 = vmatprep.subr.bf16.mxu1 %v18458_v48  ;;  %v18511_v48 = vld [vmem:[#allocation2 + $0x1550] ss:$28 sps:$4 sm:$0xff]  }
 0x306   :  { %17234 = vmatpush3.bf16.msra.mxu0 %v18465_v55 }
 0x307   :  { %5569 = vmatpush1.bf16.msra.mxu1 %v18456_v25  ;;  %17241 = vmatprep.subr.bf16.mxu0 %v18469_v57  ;;  %v18515_v25 = vld [vmem:[#allocation2 + $0x16fc] ss:$28 sps:$4 sm:$0xff]  }
 0x308   :  { %5570 = vmatprep.subr.bf16.mxu1 %v18463_v56 }
 0x309   :  { %5673 = vmatmul.mubr.bf16.vlgmr.msra.gmra.mxu0 %v20549_v8 }
 0x30a   :  { %17242 = vmatpush3.bf16.msra.mxu0 %v18470_v58  ;;  %5712 = vmatprep.mubr.bf16.mxu0 %v20539_v52  ;;  %v18509_v58 = vld [vmem:[#allocation2 + $0x1518] ss:$28 sps:$4 sm:$0xff]  }
 0x30b   :  { %5571 = vmatpush1.bf16.msra.mxu1 %v18461_v39  ;;  %17243 = vmatprep.subr.bf16.mxu0 %v18474_v59 }
 0x30c   :  { %5572 = vmatprep.subr.bf16.mxu1 %v18468_v30 }
 0x30e   :  { %17244 = vmatpush3.bf16.msra.mxu0 %v18475_v62 }
 0x30f   :  { %5573 = vmatpush1.bf16.msra.mxu1 %v18466_v44  ;;  %17245 = vmatprep.subr.bf16.mxu0 %v18479_v3  ;;  %v18510_v44 = vld [vmem:[#allocation2 + $0x1358] ss:$28 sps:$4 sm:$0xff]  }
 0x310   :  { %5574 = vmatprep.subr.bf16.mxu1 %v18473_v63  ;;  %v18512_v63 = vld [vmem:[#allocation2 + $0x14e0] ss:$28 sps:$4 sm:$0xff]  }
 0x312   :  { %17246 = vmatpush3.bf16.msra.mxu0 %v18480_v5  ;;  %v18520_v5 = vld [vmem:[#allocation2 + $0x16c4] ss:$28 sps:$4 sm:$0xff]  }
 0x313   :  { %5575 = vmatpush2.bf16.msra.mxu1 %v18471_v4  ;;  %17247 = vmatprep.subr.bf16.mxu0 %v18484_v10  ;;  %v18513_v4 = vld [vmem:[#allocation2 + $0x16f8] ss:$28 sps:$4 sm:$0xff]   ;;  %v18516_v10 = vld [vmem:[#allocation2 + $0x1320] ss:$28 sps:$4 sm:$0xff]  }
 0x314   :  { %5576 = vmatprep.subr.bf16.mxu1 %v18478_v7 }
 0x316   :  { %17248 = vmatpush3.bf16.msra.mxu0 %v18485_v13  ;;  %v18518_v13 = vld [vmem:[#allocation2 + $0x16c0] ss:$28 sps:$4 sm:$0xff]  }
 0x317   :  { %5577 = vmatpush2.bf16.msra.mxu1 %v18476_v12  ;;  %17249 = vmatprep.subr.bf16.mxu0 %v18489_v15  ;;  %v18517_v12 = vld [vmem:[#allocation2 + $0x14a8] ss:$28 sps:$4 sm:$0xff]  }
 0x318   :  { %5578 = vmatprep.subr.bf16.mxu1 %v18483_v43  ;;  %v18525_v43 = vld [vmem:[#allocation2 + $0x168c] ss:$28 sps:$4 sm:$0xff]  }
 0x319   :  { %v18521_v15 = vld [vmem:[#allocation2 + $0x12e8] ss:$28 sps:$4 sm:$0xff]  }
 0x31a   :  { %17250 = vmatpush3.bf16.msra.mxu0 %v18490_v18  ;;  %v18522_v18 = vld [vmem:[#allocation2 + $0x1470] ss:$28 sps:$4 sm:$0xff]  }
 0x31b   :  { %5579 = vmatpush2.bf16.msra.mxu1 %v18481_v17  ;;  %17251 = vmatprep.subr.bf16.mxu0 %v18494_v50  ;;  %v18523_v17 = vld [vmem:[#allocation2 + $0x1688] ss:$28 sps:$4 sm:$0xff]   ;;  %v18526_v50 = vld [vmem:[#allocation2 + $0x12b0] ss:$28 sps:$4 sm:$0xff]  }
 0x31c   :  { %5580 = vmatprep.subr.bf16.mxu1 %v18488_v20  ;;  %v18530_v20 = vld [vmem:[#allocation2 + $0x1654] ss:$28 sps:$4 sm:$0xff]  }
 0x31e   :  { %17252 = vmatpush3.bf16.msra.mxu0 %v18495_v0  ;;  %v18528_v0 = vld [vmem:[#allocation2 + $0x1650] ss:$28 sps:$4 sm:$0xff]  }
 0x31f   :  { %5581 = vmatpush2.bf16.msra.mxu1 %v18486_v60  ;;  %17253 = vmatprep.subr.bf16.mxu0 %v18499_v26  ;;  %v18527_v60 = vld [vmem:[#allocation2 + $0x1438] ss:$28 sps:$4 sm:$0xff]  }
 0x320   :  { %5582 = vmatprep.subr.bf16.mxu1 %v18493_v24  ;;  %v18535_v24 = vld [vmem:[#allocation2 + $0x161c] ss:$28 sps:$4 sm:$0xff]  }
 0x321   :  { %v20684_v34 = vpop.f32.mrf.mxu0  ;;  %v18531_v26 = vld [vmem:[#allocation2 + $0x1278] ss:$28 sps:$4 sm:$0xff]  }
 0x322   :  { %v5264_v33 = vpop.f32.mrf.mxu1  ;;  %17254 = vmatpush3.bf16.msra.mxu0 %v18500_v29  ;;  %v18533_v29 = vld [vmem:[#allocation2 + $0x1618] ss:$28 sps:$4 sm:$0xff]  }
 0x323   :  { %5583 = vmatpush2.bf16.msra.mxu1 %v18491_v28  ;;  %v5265_v35 = vadd.f32 %v5264_v33, %v20672_v1  ;;  %17255 = vmatprep.subr.bf16.mxu0 %v18504_v32  ;;  %v20687_v22 = vpop.f32.mrf.mxu0  ;;  %v18508_v1 = vld [vmem:[#allocation2 + $0x138c] ss:$28 sps:$4 sm:$0xff]   ;;  %v18532_v28 = vld [vmem:[#allocation2 + $0x1400] ss:$28 sps:$4 sm:$0xff]  }
 0x324   :  { %v5266_v27 = vpop.f32.mrf.mxu1  ;;  %5584 = vmatprep.subr.bf16.mxu1 %v18498_v31  ;;  %v18540_v31 = vld [vmem:[#allocation2 + $0x15e4] ss:$28 sps:$4 sm:$0xff]  }
 0x325   :  { %v5267_v42 = vadd.f32 %v5266_v27, %v20675_v6  ;;  %v5350_v23 = vpop.f32.mrf.mxu0  ;;  %v18506_v6 = vld [vmem:[#allocation2 + $0x1388] ss:$28 sps:$4 sm:$0xff]   ;;  %v18536_v32 = vld [vmem:[#allocation2 + $0x1240] ss:$28 sps:$4 sm:$0xff]   ;;  %v18542_v27 = vld [vmem:[#allocation2 + $0x1390] ss:$28 sps:$4 sm:$0xff]  }
 0x326   :  { %v5268_v45 = vpop.f32.mrf.mxu1  ;;  %17256 = vmatpush3.bf16.msra.mxu0 %v18505_v40  ;;  %v18537_v33 = vld [vmem:[#allocation2 + $0x13c8] ss:$28 sps:$4 sm:$0xff]   ;;  %v18552_v23 = vld [vmem:[#allocation2 + $0x1a7c] ss:$28 sps:$4 sm:$0xff]  }
 0x327   :  { %5585 = vmatpush2.bf16.msra.mxu1 %v18496_v38  ;;  %17469 = vmatprep.subr.bf16.mxu0 %v20439_v37  ;;  %v5351_v55 = vpop.f32.mrf.mxu0  ;;  %v18545_v38 = vld [vmem:[#allocation2 + $0x15ac] ss:$28 sps:$4 sm:$0xff]  }
 0x328   :  { %v5269_v51 = vpop.f32.mrf.mxu1  ;;  %5586 = vmatprep.subr.bf16.mxu1 %v18503_v41  ;;  %v18541_v40 = vld [vmem:[#allocation2 + $0x1208] ss:$28 sps:$4 sm:$0xff]   ;;  %v18546_v45 = vld [vmem:[#allocation2 + $0x11d0] ss:$28 sps:$4 sm:$0xff]  }
 0x329   :  { %5713 = vmatmul.mubr.bf16.vlgmr.msra.gmra.mxu0 %v20551_v9  ;;  %v18543_v41 = vld [vmem:[#allocation2 + $0x15a8] ss:$28 sps:$4 sm:$0xff]   ;;  %v18550_v51 = vld [vmem:[#allocation2 + $0x1a78] ss:$28 sps:$4 sm:$0xff]  }
 0x32a   :  { %v5305_v56 = vpop.f32.mrf.mxu1  ;;  %17470 = vmatpush3.bf16.msra.mxu0 %v18511_v48  ;;  %17471 = vmatprep.mubr.msk.bf16.mxu0 %vm20440_vm1, %v20439_v37  ;;  %v18555_v48 = vld [vmem:[#allocation2 + $0x18bc] ss:$28 sps:$4 sm:$0xff]   ;;  %v18561_v55 = vld [vmem:[#allocation2 + $0x1884] ss:$28 sps:$4 sm:$0xff]  }
 0x32b   :  { %5587 = vmatpush2.bf16.msra.mxu1 %v18501_v47  ;;  %v20692_v57 = vadd.f32 %v5305_v56, %v5265_v35  ;;  %7964 = vmatprep.subr.bf16.mxu0 %v18515_v25  ;;  %v18538_v35 = vld [vmem:[#allocation2 + $0x15e0] ss:$28 sps:$4 sm:$0xff]   ;;  %v18547_v47 = vld [vmem:[#allocation2 + $0x1570] ss:$28 sps:$4 sm:$0xff]  }
 0x32c   :  { %v5307_v39 = vpop.f32.mrf.mxu1  ;;  %5588 = vmatprep.subr.bf16.mxu1 %v18508_v1  ;;  %v18553_v1 = vld [vmem:[#allocation2 + $0x18b8] ss:$28 sps:$4 sm:$0xff]   ;;  %v18558_v25 = vld [vmem:[#allocation2 + $0x1a44] ss:$28 sps:$4 sm:$0xff]  }
 0x32d   :  { %v5800_v30 = vmax.f32 %v20606_v11, %v20692_v57  ;;  %v20698_v59 = vadd.f32 %v5307_v39, %v5267_v42  ;;  %v18549_v42 = vld [vmem:[#allocation2 + $0x1574] ss:$28 sps:$4 sm:$0xff]   ;;  %v18556_v56 = vld [vmem:[#allocation2 + $0x1a40] ss:$28 sps:$4 sm:$0xff]   ;;  %v18564_v39 = vld [vmem:[#allocation2 + $0x1a0c] ss:$28 sps:$4 sm:$0xff]  }
 0x32e   :  { %v5309_v62 = vpop.f32.mrf.mxu1  ;;  %v18988_v11 = vld [vmem:[#allocation2 + $0x1dd8] ss:$28 sps:$4 sm:$0xff]   ;;  %v18991_v57 = vld [vmem:[#allocation2 + $0x1f60] ss:$28 sps:$4 sm:$0xff]  }
 0x32f   :  { %v5801_v3 = vmax.f32 %v20611_v14, %v20698_v59  ;;  %5589 = vmatpush2.bf16.msra.mxu1 %v18506_v6  ;;  %v18559_v6 = vld [vmem:[#allocation2 + $0x1880] ss:$28 sps:$4 sm:$0xff]   ;;  %v18565_v62 = vld [vmem:[#allocation2 + $0x1848] ss:$28 sps:$4 sm:$0xff]   ;;  %v18990_v59 = vld [vmem:[#allocation2 + $0x1a58] ss:$28 sps:$4 sm:$0xff]  }
 0x330   :  { %v5310_v7 = vpop.f32.mrf.mxu1  ;;  %17263 = vmatprep.subr.bf16.mxu1 %v18509_v58  ;;  %v18567_v58 = vld [vmem:[#allocation2 + $0x184c] ss:$28 sps:$4 sm:$0xff]  }
 0x331   :  { %17472 = vmatmul.mubr.msk.bf16.vlgmr.msra.gmra.mxu0 %vm2335_vm0, %v20559_v19  ;;  %v18571_v7 = vld [vmem:[#allocation2 + $0x1810] ss:$28 sps:$4 sm:$0xff]   ;;  %v18995_v14 = vld [vmem:[#allocation2 + $0x1f28] ss:$28 sps:$4 sm:$0xff]  }
 0x332   :  { %5591 = vmatmul.mubr.bf16.vlgmr.msra.gmra.mxu1 %v20573_v21  ;;  %7965 = vmatpush1.bf16.msra.mxu0 %v18513_v4  ;;  %v18573_v4 = vld [vmem:[#allocation2 + $0x1814] ss:$28 sps:$4 sm:$0xff]  }
 0x333   :  { %17264 = vmatpush3.bf16.msra.mxu1 %v18510_v44  ;;  %7966 = vmatprep.subr.bf16.mxu0 %v18520_v5  ;;  %v18562_v44 = vld [vmem:[#allocation2 + $0x1a08] ss:$28 sps:$4 sm:$0xff]   ;;  %v18568_v5 = vld [vmem:[#allocation2 + $0x19d0] ss:$28 sps:$4 sm:$0xff]  }
 0x334   :  { %17265 = vmatprep.subr.bf16.mxu1 %v18512_v63  ;;  %5752 = vmatprep.mubr.bf16.mxu1 %v20567_v36  ;;  %v18570_v63 = vld [vmem:[#allocation2 + $0x19d4] ss:$28 sps:$4 sm:$0xff]  }
 0x335   :  { %7996 = vmatprep.mubr.bf16.mxu0 %v20534_v49 }
 0x336   :  { %7967 = vmatpush1.bf16.msra.mxu0 %v18518_v13  ;;  %v18574_v13 = vld [vmem:[#allocation2 + $0x1998] ss:$28 sps:$4 sm:$0xff]  }
 0x337   :  { %17266 = vmatpush3.bf16.msra.mxu1 %v18516_v10  ;;  %7968 = vmatprep.subr.bf16.mxu0 %v18525_v43  ;;  %v18576_v10 = vld [vmem:[#allocation2 + $0x199c] ss:$28 sps:$4 sm:$0xff]  }
 0x338   :  { %17267 = vmatprep.subr.bf16.mxu1 %v18517_v12  ;;  %v18579_v12 = vld [vmem:[#allocation2 + $0x17dc] ss:$28 sps:$4 sm:$0xff]  }
 0x339   :  { %v18577_v43 = vld [vmem:[#allocation2 + $0x17d8] ss:$28 sps:$4 sm:$0xff]  }
 0x33a   :  { %7969 = vmatpush1.bf16.msra.mxu0 %v18523_v17  ;;  %v18585_v17 = vld [vmem:[#allocation2 + $0x17a4] ss:$28 sps:$4 sm:$0xff]  }
 0x33b   :  { %17268 = vmatpush3.bf16.msra.mxu1 %v18521_v15  ;;  %7970 = vmatprep.subr.bf16.mxu0 %v18530_v20  ;;  %v18582_v15 = vld [vmem:[#allocation2 + $0x1964] ss:$28 sps:$4 sm:$0xff]  }
 0x33c   :  { %17269 = vmatprep.subr.bf16.mxu1 %v18522_v18  ;;  %v18580_v20 = vld [vmem:[#allocation2 + $0x1960] ss:$28 sps:$4 sm:$0xff]  }
 0x33e   :  { %7971 = vmatpush1.bf16.msra.mxu0 %v18528_v0  ;;  %v18591_v0 = vld [vmem:[#allocation2 + $0x176c] ss:$28 sps:$4 sm:$0xff]  }
 0x33f   :  { %17270 = vmatpush3.bf16.msra.mxu1 %v18526_v50  ;;  %7972 = vmatprep.subr.bf16.mxu0 %v18535_v24  ;;  %v18583_v50 = vld [vmem:[#allocation2 + $0x17a0] ss:$28 sps:$4 sm:$0xff]  }
 0x340   :  { %17271 = vmatprep.subr.bf16.mxu1 %v18527_v60  ;;  %v18588_v60 = vld [vmem:[#allocation2 + $0x192c] ss:$28 sps:$4 sm:$0xff]  }
 0x342   :  { %7973 = vmatpush1.bf16.msra.mxu0 %v18533_v29  ;;  %v18589_v29 = vld [vmem:[#allocation2 + $0x1768] ss:$28 sps:$4 sm:$0xff]  }
 0x343   :  { %17272 = vmatpush3.bf16.msra.mxu1 %v18531_v26  ;;  %7974 = vmatprep.subr.bf16.mxu0 %v18540_v31  ;;  %v18594_v31 = vld [vmem:[#allocation2 + $0x18f4] ss:$28 sps:$4 sm:$0xff]  }
 0x344   :  { %17273 = vmatprep.subr.bf16.mxu1 %v18532_v28  ;;  %v18586_v28 = vld [vmem:[#allocation2 + $0x1928] ss:$28 sps:$4 sm:$0xff]  }
 0x346   :  { %7975 = vmatpush1.bf16.msra.mxu0 %v18538_v35 }
 0x347   :  { %17274 = vmatpush3.bf16.msra.mxu1 %v18536_v32  ;;  %7976 = vmatprep.subr.bf16.mxu0 %v18545_v38  ;;  %v18597_v32 = vld [vmem:[#allocation2 + $0x1734] ss:$28 sps:$4 sm:$0xff]  }
 0x348   :  { %17275 = vmatprep.subr.bf16.mxu1 %v18537_v33 }
 0x34a   :  { %7977 = vmatpush1.bf16.msra.mxu0 %v18543_v41 }
 0x34b   :  { %17276 = vmatpush3.bf16.msra.mxu1 %v18541_v40  ;;  %7978 = vmatprep.subr.bf16.mxu0 %v18549_v42  ;;  %v18592_v40 = vld [vmem:[#allocation2 + $0x18f0] ss:$28 sps:$4 sm:$0xff]   ;;  %v18600_v42 = vld [vmem:[#allocation2 + $0x1c3c] ss:$28 sps:$4 sm:$0xff]  }
 0x34c   :  { %17277 = vmatprep.subr.bf16.mxu1 %v18542_v27  ;;  %v18595_v27 = vld [vmem:[#allocation2 + $0x1730] ss:$28 sps:$4 sm:$0xff]  }
 0x34e   :  { %7979 = vmatpush1.bf16.msra.mxu0 %v18547_v47 }
 0x34f   :  { %17278 = vmatpush3.bf16.msra.mxu1 %v18546_v45  ;;  %7980 = vmatprep.subr.bf16.mxu0 %v18555_v48  ;;  %v18606_v45 = vld [vmem:[#allocation2 + $0x1dfc] ss:$28 sps:$4 sm:$0xff]  }
 0x350   :  { %8005 = vmatprep.subr.bf16.mxu1 %v18552_v23  ;;  %v18598_v48 = vld [vmem:[#allocation2 + $0x1c38] ss:$28 sps:$4 sm:$0xff]  }
 0x352   :  { %5753 = vmatmul.mubr.bf16.vlgmr.msra.gmra.mxu1 %v20573_v21  ;;  %7981 = vmatpush2.bf16.msra.mxu0 %v18553_v1  ;;  %v18603_v1 = vld [vmem:[#allocation2 + $0x1c04] ss:$28 sps:$4 sm:$0xff]  }
 0x353   :  { %8006 = vmatpush1.bf16.msra.mxu1 %v18550_v51  ;;  %7982 = vmatprep.subr.bf16.mxu0 %v18561_v55  ;;  %v18604_v55 = vld [vmem:[#allocation2 + $0x1df8] ss:$28 sps:$4 sm:$0xff]  }
 0x354   :  { %8007 = vmatprep.subr.bf16.mxu1 %v18558_v25  ;;  %8037 = vmatprep.mubr.bf16.mxu1 %v20539_v52 }
 0x356   :  { %7983 = vmatpush2.bf16.msra.mxu0 %v18559_v6  ;;  %v18601_v6 = vld [vmem:[#allocation2 + $0x1c00] ss:$28 sps:$4 sm:$0xff]  }
 0x357   :  { %8008 = vmatpush1.bf16.msra.mxu1 %v18556_v56  ;;  %7984 = vmatprep.subr.bf16.mxu0 %v18567_v58  ;;  %v18609_v58 = vld [vmem:[#allocation2 + $0x1bcc] ss:$28 sps:$4 sm:$0xff]  }
 0x358   :  { %8009 = vmatprep.subr.bf16.mxu1 %v18564_v39 }
 0x35a   :  { %7985 = vmatpush2.bf16.msra.mxu0 %v18565_v62 }
 0x35b   :  { %8010 = vmatpush1.bf16.msra.mxu1 %v18562_v44  ;;  %7986 = vmatprep.subr.bf16.mxu0 %v18573_v4  ;;  %v18610_v44 = vld [vmem:[#allocation2 + $0x1dc0] ss:$28 sps:$4 sm:$0xff]  }
 0x35c   :  { %8011 = vmatprep.subr.bf16.mxu1 %v18570_v63  ;;  %v18618_v63 = vld [vmem:[#allocation2 + $0x1d8c] ss:$28 sps:$4 sm:$0xff]  }
 0x35e   :  { %7987 = vmatpush2.bf16.msra.mxu0 %v18571_v7  ;;  %v18607_v7 = vld [vmem:[#allocation2 + $0x1bc8] ss:$28 sps:$4 sm:$0xff]  }
 0x35f   :  { %8012 = vmatpush1.bf16.msra.mxu1 %v18568_v5  ;;  %7988 = vmatprep.subr.bf16.mxu0 %v18579_v12 }
 0x360   :  { %8013 = vmatprep.subr.bf16.mxu1 %v18576_v10  ;;  %v18616_v10 = vld [vmem:[#allocation2 + $0x1d88] ss:$28 sps:$4 sm:$0xff]  }
 0x361   :  { %v5428_v18 = vpop.f32.mrf.mxu0 }
 0x362   :  { %7989 = vmatpush2.bf16.msra.mxu0 %v18577_v43 }
 0x363   :  { %8014 = vmatpush1.bf16.msra.mxu1 %v18574_v13  ;;  %7990 = vmatprep.subr.bf16.mxu0 %v18585_v17  ;;  %v5430_v24 = vpop.f32.mrf.mxu0  ;;  %v18624_v17 = vld [vmem:[#allocation2 + $0x1d54] ss:$28 sps:$4 sm:$0xff]  }
 0x364   :  { %8015 = vmatprep.subr.bf16.mxu1 %v18582_v15  ;;  %v18615_v15 = vld [vmem:[#allocation2 + $0x1b94] ss:$28 sps:$4 sm:$0xff]  }
 0x365   :  { %v5432_v26 = vpop.f32.mrf.mxu0 }
 0x366   :  { %7991 = vmatpush2.bf16.msra.mxu0 %v18583_v50  ;;  %v18621_v50 = vld [vmem:[#allocation2 + $0x1b5c] ss:$28 sps:$4 sm:$0xff]   ;;  %v18627_v26 = vld [vmem:[#allocation2 + $0x1b24] ss:$28 sps:$4 sm:$0xff]  }
 0x367   :  { %8016 = vmatpush1.bf16.msra.mxu1 %v18580_v20  ;;  %7992 = vmatprep.subr.bf16.mxu0 %v18591_v0  ;;  %v5433_v33 = vpop.f32.mrf.mxu0  ;;  %v18622_v20 = vld [vmem:[#allocation2 + $0x1d50] ss:$28 sps:$4 sm:$0xff]   ;;  %v18619_v0 = vld [vmem:[#allocation2 + $0x1b58] ss:$28 sps:$4 sm:$0xff]  }
 0x368   :  { %8017 = vmatprep.subr.bf16.mxu1 %v18588_v60  ;;  %v18630_v60 = vld [vmem:[#allocation2 + $0x1d1c] ss:$28 sps:$4 sm:$0xff]   ;;  %v18642_v33 = vld [vmem:[#allocation2 + $0x1cac] ss:$28 sps:$4 sm:$0xff]  }
 0x36a   :  { %v5387_v35 = vpop.f32.mrf.mxu1  ;;  %7993 = vmatpush2.bf16.msra.mxu0 %v18589_v29  ;;  %v18625_v29 = vld [vmem:[#allocation2 + $0x1b20] ss:$28 sps:$4 sm:$0xff]  }
 0x36b   :  { %v5388_v38 = vadd.f32 %v5387_v35, %v20684_v34  ;;  %8018 = vmatpush1.bf16.msra.mxu1 %v18586_v28  ;;  %7994 = vmatprep.subr.bf16.mxu0 %v18597_v32  ;;  %v18612_v34 = vld [vmem:[#allocation2 + $0x1dc4] ss:$28 sps:$4 sm:$0xff]   ;;  %v18633_v32 = vld [vmem:[#allocation2 + $0x1aec] ss:$28 sps:$4 sm:$0xff]  }
 0x36c   :  { %v5389_v41 = vpop.f32.mrf.mxu1  ;;  %8019 = vmatprep.subr.bf16.mxu1 %v18594_v31  ;;  %v18636_v28 = vld [vmem:[#allocation2 + $0x1ce4] ss:$28 sps:$4 sm:$0xff]  }
 0x36d   :  { %v5390_v23 = vadd.f32 %v5389_v41, %v20687_v22  ;;  %v5429_v47 = vadd.f32 %v5428_v18, %v5388_v38  ;;  %v18613_v18 = vld [vmem:[#allocation2 + $0x1b90] ss:$28 sps:$4 sm:$0xff]   ;;  %v18634_v31 = vld [vmem:[#allocation2 + $0x1ce0] ss:$28 sps:$4 sm:$0xff]   ;;  %v18631_v35 = vld [vmem:[#allocation2 + $0x1ae8] ss:$28 sps:$4 sm:$0xff]  }
 0x36e   :  { %v5391_v51 = vpop.f32.mrf.mxu1  ;;  %7995 = vmatpush2.bf16.msra.mxu0 %v18595_v27  ;;  %v18640_v38 = vld [vmem:[#allocation2 + $0x1ca8] ss:$28 sps:$4 sm:$0xff]   ;;  %v18645_v27 = vld [vmem:[#allocation2 + $0x1c74] ss:$28 sps:$4 sm:$0xff]  }
 0x36f   :  { %v5431_v25 = vadd.f32 %v5430_v24, %v5390_v23  ;;  %8020 = vmatpush1.bf16.msra.mxu1 %v18592_v40  ;;  %8046 = vmatprep.subr.bf16.mxu0 %v18606_v45  ;;  %v18628_v24 = vld [vmem:[#allocation2 + $0x1d18] ss:$28 sps:$4 sm:$0xff]   ;;  %v18637_v41 = vld [vmem:[#allocation2 + $0x1ab0] ss:$28 sps:$4 sm:$0xff]   ;;  %v18654_v51 = vld [vmem:[#allocation2 + $0x1704] ss:$28 sps:$4 sm:$0xff]  }
 0x370   :  { %v5392_v56 = vpop.f32.mrf.mxu1  ;;  %8021 = vmatprep.subr.bf16.mxu1 %v18600_v42  ;;  %v18639_v40 = vld [vmem:[#allocation2 + $0x1ab4] ss:$28 sps:$4 sm:$0xff]   ;;  %v18651_v23 = vld [vmem:[#allocation2 + $0x1fbc] ss:$28 sps:$4 sm:$0xff]  }
 0x371   :  { %7997 = vmatmul.mubr.bf16.vlgmr.msra.gmra.mxu0 %v20549_v8  ;;  %v18643_v42 = vld [vmem:[#allocation2 + $0x1c70] ss:$28 sps:$4 sm:$0xff]   ;;  %v18661_v56 = vld [vmem:[#allocation2 + $0x1f48] ss:$28 sps:$4 sm:$0xff]  }
 0x372   :  { %v5469_v39 = vpop.f32.mrf.mxu1  ;;  %8047 = vmatpush1.bf16.msra.mxu0 %v18604_v55  ;;  %8078 = vmatprep.mubr.bf16.mxu0 %v20567_v36  ;;  %v18648_v45 = vld [vmem:[#allocation2 + $0x1ff4] ss:$28 sps:$4 sm:$0xff]   ;;  %v18663_v55 = vld [vmem:[#allocation2 + $0x1f4c] ss:$28 sps:$4 sm:$0xff]  }
 0x373   :  { %v20712_v62 = vadd.f32 %v5469_v39, %v5429_v47  ;;  %8022 = vmatpush2.bf16.msra.mxu1 %v18598_v48  ;;  %8048 = vmatprep.subr.bf16.mxu0 %v18612_v34  ;;  %v18646_v47 = vld [vmem:[#allocation2 + $0x1ff0] ss:$28 sps:$4 sm:$0xff]   ;;  %v18649_v48 = vld [vmem:[#allocation2 + $0x1fb8] ss:$28 sps:$4 sm:$0xff]   ;;  %v18652_v34 = vld [vmem:[#allocation2 + $0x1700] ss:$28 sps:$4 sm:$0xff]  }
 0x374   :  { %v5471_v22 = vpop.f32.mrf.mxu1  ;;  %8023 = vmatprep.subr.bf16.mxu1 %v18603_v1  ;;  %v18657_v1 = vld [vmem:[#allocation2 + $0x1f84] ss:$28 sps:$4 sm:$0xff]   ;;  %v18669_v39 = vld [vmem:[#allocation2 + $0x1f14] ss:$28 sps:$4 sm:$0xff]  }
 0x375   :  { %v5802_v4 = vmax.f32 %v20628_v61, %v20712_v62  ;;  %v20716_v5 = vadd.f32 %v5471_v22, %v5431_v25  ;;  %v18655_v25 = vld [vmem:[#allocation2 + $0x1f80] ss:$28 sps:$4 sm:$0xff]   ;;  %v18667_v22 = vld [vmem:[#allocation2 + $0x1f10] ss:$28 sps:$4 sm:$0xff]   ;;  %v19112_v61 = vld [vmem:[#allocation2 + $0x21e8] ss:$28 sps:$4 sm:$0xff]  }
 0x376   :  { %v5473_v12 = vpop.f32.mrf.mxu1  ;;  %8049 = vmatpush1.bf16.msra.mxu0 %v18610_v44  ;;  %v18666_v44 = vld [vmem:[#allocation2 + $0x1694] ss:$28 sps:$4 sm:$0xff]   ;;  %v19121_v62 = vld [vmem:[#allocation2 + $0x2180] ss:$28 sps:$4 sm:$0xff]  }
 0x377   :  { %v5803_v13 = vmax.f32 %v20630_v2, %v20716_v5  ;;  %8024 = vmatpush2.bf16.msra.mxu1 %v18601_v6  ;;  %8050 = vmatprep.subr.bf16.mxu0 %v18618_v63  ;;  %v18660_v6 = vld [vmem:[#allocation2 + $0x16cc] ss:$28 sps:$4 sm:$0xff]   ;;  %v18675_v63 = vld [vmem:[#allocation2 + $0x1edc] ss:$28 sps:$4 sm:$0xff]   ;;  %v19135_v5 = vld [vmem:[#allocation2 + $0x2114] ss:$28 sps:$4 sm:$0xff]  }
 0x378   :  { %v5474_v43 = vpop.f32.mrf.mxu1  ;;  %8025 = vmatprep.subr.bf16.mxu1 %v18609_v58  ;;  %v18658_v58 = vld [vmem:[#allocation2 + $0x16c8] ss:$28 sps:$4 sm:$0xff]   ;;  %v18673_v12 = vld [vmem:[#allocation2 + $0x1ed8] ss:$28 sps:$4 sm:$0xff]  }
 0x379   :  { %v18681_v43 = vld [vmem:[#allocation2 + $0x1ea4] ss:$28 sps:$4 sm:$0xff]   ;;  %v19126_v2 = vld [vmem:[#allocation2 + $0x287c] ss:$28 sps:$4 sm:$0xff]  }
 0x37a   :  { %8051 = vmatpush1.bf16.msra.mxu0 %v18616_v10  ;;  %v18672_v10 = vld [vmem:[#allocation2 + $0x165c] ss:$28 sps:$4 sm:$0xff]  }
 0x37b   :  { %8026 = vmatpush2.bf16.msra.mxu1 %v18607_v7  ;;  %8052 = vmatprep.subr.bf16.mxu0 %v18624_v17  ;;  %v18664_v7 = vld [vmem:[#allocation2 + $0x1690] ss:$28 sps:$4 sm:$0xff]   ;;  %v18670_v17 = vld [vmem:[#allocation2 + $0x1658] ss:$28 sps:$4 sm:$0xff]  }
 0x37c   :  { %8027 = vmatprep.subr.bf16.mxu1 %v18615_v15 }
 0x37e   :  { %8053 = vmatpush1.bf16.msra.mxu0 %v18622_v20  ;;  %v18679_v20 = vld [vmem:[#allocation2 + $0x1ea0] ss:$28 sps:$4 sm:$0xff]  }
 0x37f   :  { %8028 = vmatpush2.bf16.msra.mxu1 %v18613_v18  ;;  %8054 = vmatprep.subr.bf16.mxu0 %v18630_v60  ;;  %v18678_v18 = vld [vmem:[#allocation2 + $0x1624] ss:$28 sps:$4 sm:$0xff]  }
 0x380   :  { %8029 = vmatprep.subr.bf16.mxu1 %v18621_v50  ;;  %v18687_v50 = vld [vmem:[#allocation2 + $0x1e6c] ss:$28 sps:$4 sm:$0xff]  }
 0x382   :  { %8055 = vmatpush1.bf16.msra.mxu0 %v18628_v24  ;;  %v18676_v24 = vld [vmem:[#allocation2 + $0x1620] ss:$28 sps:$4 sm:$0xff]  }
 0x383   :  { %8030 = vmatpush2.bf16.msra.mxu1 %v18619_v0  ;;  %8056 = vmatprep.subr.bf16.mxu0 %v18636_v28  ;;  %v18685_v28 = vld [vmem:[#allocation2 + $0x1e68] ss:$28 sps:$4 sm:$0xff]  }
 0x384   :  { %8031 = vmatprep.subr.bf16.mxu1 %v18627_v26  ;;  %v18684_v26 = vld [vmem:[#allocation2 + $0x15ec] ss:$28 sps:$4 sm:$0xff]  }
 0x386   :  { %8057 = vmatpush1.bf16.msra.mxu0 %v18634_v31 }
 0x387   :  { %8032 = vmatpush2.bf16.msra.mxu1 %v18625_v29  ;;  %8058 = vmatprep.subr.bf16.mxu0 %v18642_v33  ;;  %v18693_v29 = vld [vmem:[#allocation2 + $0x1e34] ss:$28 sps:$4 sm:$0xff]   ;;  %v18682_v33 = vld [vmem:[#allocation2 + $0x15e8] ss:$28 sps:$4 sm:$0xff]  }
 0x388   :  { %8033 = vmatprep.subr.bf16.mxu1 %v18633_v32 }
 0x38a   :  { %8059 = vmatpush1.bf16.msra.mxu0 %v18640_v38  ;;  %v18691_v38 = vld [vmem:[#allocation2 + $0x1e30] ss:$28 sps:$4 sm:$0xff]  }
 0x38b   :  { %8034 = vmatpush2.bf16.msra.mxu1 %v18631_v35  ;;  %8060 = vmatprep.subr.bf16.mxu0 %v18645_v27  ;;  %v18690_v35 = vld [vmem:[#allocation2 + $0x15b4] ss:$28 sps:$4 sm:$0xff]  }
 0x38c   :  { %8035 = vmatprep.subr.bf16.mxu1 %v18639_v40  ;;  %v18699_v40 = vld [vmem:[#allocation2 + $0x1a84] ss:$28 sps:$4 sm:$0xff]  }
 0x38e   :  { %8061 = vmatpush1.bf16.msra.mxu0 %v18643_v42  ;;  %v18688_v42 = vld [vmem:[#allocation2 + $0x15b0] ss:$28 sps:$4 sm:$0xff]  }
 0x38f   :  { %8036 = vmatpush2.bf16.msra.mxu1 %v18637_v41  ;;  %8062 = vmatprep.subr.bf16.mxu0 %v18651_v23  ;;  %v18697_v23 = vld [vmem:[#allocation2 + $0x1a80] ss:$28 sps:$4 sm:$0xff]  }
 0x390   :  { %8101 = vmatprep.subr.bf16.mxu1 %v18648_v45  ;;  %v18696_v45 = vld [vmem:[#allocation2 + $0x157c] ss:$28 sps:$4 sm:$0xff]  }
 0x392   :  { %8038 = vmatmul.mubr.bf16.vlgmr.msra.gmra.mxu1 %v20551_v9  ;;  %8063 = vmatpush2.bf16.msra.mxu0 %v18649_v48 }
 0x393   :  { %8102 = vmatpush1.bf16.msra.mxu1 %v18646_v47  ;;  %8119 = vmatprep.mubr.bf16.mxu1 %v20438_v16  ;;  %v18705_v47 = vld [vmem:[#allocation2 + $0x1a4c] ss:$28 sps:$4 sm:$0xff]  }
 0x394   :  { %8128 = vmatprep.subr.bf16.mxu1 %v18654_v51  ;;  %8064 = vmatprep.subr.bf16.mxu0 %v18657_v1 }
 0x396   :  { %8065 = vmatpush2.bf16.msra.mxu0 %v18655_v25  ;;  %v18694_v25 = vld [vmem:[#allocation2 + $0x1578] ss:$28 sps:$4 sm:$0xff]  }
 0x397   :  { %8066 = vmatprep.subr.bf16.mxu0 %v18663_v55  ;;  %v18702_v55 = vld [vmem:[#allocation2 + $0x18c4] ss:$28 sps:$4 sm:$0xff]  }
 0x39a   :  { %16317 = vmatmul.mubr.msk.bf16.vlgmr.msra.gmra.mxu1 %vm2335_vm0, %v20559_v19  ;;  %8067 = vmatpush2.bf16.msra.mxu0 %v18661_v56 }
 0x39b   :  { %8129 = vmatpush1.bf16.msra.mxu1 %v18652_v34  ;;  %8068 = vmatprep.subr.bf16.mxu0 %v18669_v39  ;;  %v18703_v34 = vld [vmem:[#allocation2 + $0x1a48] ss:$28 sps:$4 sm:$0xff]  }
 0x39c   :  { %8130 = vmatprep.subr.bf16.mxu1 %v18660_v6  ;;  %8160 = vmatprep.mubr.bf16.mxu1 %v20534_v49  ;;  %v18711_v6 = vld [vmem:[#allocation2 + $0x1a14] ss:$28 sps:$4 sm:$0xff]  }
 0x39e   :  { %8069 = vmatpush2.bf16.msra.mxu0 %v18667_v22  ;;  %v18708_v22 = vld [vmem:[#allocation2 + $0x188c] ss:$28 sps:$4 sm:$0xff]  }
 0x39f   :  { %8131 = vmatpush1.bf16.msra.mxu1 %v18658_v58  ;;  %8070 = vmatprep.subr.bf16.mxu0 %v18675_v63  ;;  %v18709_v63 = vld [vmem:[#allocation2 + $0x1a10] ss:$28 sps:$4 sm:$0xff]  }
 0x3a0   :  { %8132 = vmatprep.subr.bf16.mxu1 %v18666_v44  ;;  %v18700_v44 = vld [vmem:[#allocation2 + $0x18c0] ss:$28 sps:$4 sm:$0xff]  }
 0x3a1   :  { %v5551_v15 = vpop.f32.mrf.mxu0 }
 0x3a2   :  { %8071 = vmatpush2.bf16.msra.mxu0 %v18673_v12  ;;  %v18706_v12 = vld [vmem:[#allocation2 + $0x1888] ss:$28 sps:$4 sm:$0xff]  }
 0x3a3   :  { %8133 = vmatpush1.bf16.msra.mxu1 %v18664_v7  ;;  %8072 = vmatprep.subr.bf16.mxu0 %v18681_v43  ;;  %v5553_v60 = vpop.f32.mrf.mxu0  ;;  %v18715_v43 = vld [vmem:[#allocation2 + $0x19d8] ss:$28 sps:$4 sm:$0xff]  }
 0x3a4   :  { %8134 = vmatprep.subr.bf16.mxu1 %v18672_v10  ;;  %v18717_v10 = vld [vmem:[#allocation2 + $0x19dc] ss:$28 sps:$4 sm:$0xff]  }
 0x3a5   :  { %v5555_v0 = vpop.f32.mrf.mxu0 }
 0x3a6   :  { %8073 = vmatpush2.bf16.msra.mxu0 %v18679_v20  ;;  %v18721_v20 = vld [vmem:[#allocation2 + $0x19a0] ss:$28 sps:$4 sm:$0xff]   ;;  %v18718_v0 = vld [vmem:[#allocation2 + $0x1818] ss:$28 sps:$4 sm:$0xff]  }
 0x3a7   :  { %8135 = vmatpush1.bf16.msra.mxu1 %v18670_v17  ;;  %8074 = vmatprep.subr.bf16.mxu0 %v18687_v50  ;;  %v5556_v31 = vpop.f32.mrf.mxu0  ;;  %v18723_v17 = vld [vmem:[#allocation2 + $0x19a4] ss:$28 sps:$4 sm:$0xff]   ;;  %v18720_v50 = vld [vmem:[#allocation2 + $0x181c] ss:$28 sps:$4 sm:$0xff]  }
 0x3a8   :  { %8136 = vmatprep.subr.bf16.mxu1 %v18678_v18  ;;  %v18712_v18 = vld [vmem:[#allocation2 + $0x1850] ss:$28 sps:$4 sm:$0xff]  }
 0x3a9   :  { %v20726_v32 = vpop.f32.mrf.mxu0  ;;  %v18733_v31 = vld [vmem:[#allocation2 + $0x1930] ss:$28 sps:$4 sm:$0xff]  }
 0x3aa   :  { %8075 = vmatpush2.bf16.msra.mxu0 %v18685_v28  ;;  %v18735_v28 = vld [vmem:[#allocation2 + $0x1934] ss:$28 sps:$4 sm:$0xff]  }
 0x3ab   :  { %8137 = vmatpush1.bf16.msra.mxu1 %v18676_v24  ;;  %8076 = vmatprep.subr.bf16.mxu0 %v18693_v29  ;;  %v20728_v27 = vpop.f32.mrf.mxu0  ;;  %v18727_v24 = vld [vmem:[#allocation2 + $0x1968] ss:$28 sps:$4 sm:$0xff]   ;;  %v18724_v29 = vld [vmem:[#allocation2 + $0x17e0] ss:$28 sps:$4 sm:$0xff]  }
 0x3ac   :  { %8138 = vmatprep.subr.bf16.mxu1 %v18684_v26  ;;  %v18726_v26 = vld [vmem:[#allocation2 + $0x17e4] ss:$28 sps:$4 sm:$0xff]  }
 0x3ad   :  { %v5637_v41 = vpop.f32.mrf.mxu0 }
 0x3ae   :  { %8077 = vmatpush2.bf16.msra.mxu0 %v18691_v38  ;;  %v18739_v41 = vld [vmem:[#allocation2 + $0x18f8] ss:$28 sps:$4 sm:$0xff]  }
 0x3af   :  { %8139 = vmatpush1.bf16.msra.mxu1 %v18682_v33  ;;  %8169 = vmatprep.subr.bf16.mxu0 %v18699_v40  ;;  %v5638_v48 = vpop.f32.mrf.mxu0  ;;  %v18732_v33 = vld [vmem:[#allocation2 + $0x17ac] ss:$28 sps:$4 sm:$0xff]  }
 0x3b0   :  { %8140 = vmatprep.subr.bf16.mxu1 %v18690_v35  ;;  %v18741_v35 = vld [vmem:[#allocation2 + $0x18fc] ss:$28 sps:$4 sm:$0xff]   ;;  %v18730_v40 = vld [vmem:[#allocation2 + $0x17a8] ss:$28 sps:$4 sm:$0xff]  }
 0x3b1   :  { %8079 = vmatmul.mubr.bf16.vlgmr.msra.gmra.mxu0 %v20573_v21 }
 0x3b2   :  { %v5510_v51 = vpop.f32.mrf.mxu1  ;;  %8170 = vmatpush1.bf16.msra.mxu0 %v18697_v23  ;;  %8201 = vmatprep.mubr.bf16.mxu0 %v20539_v52 }
 0x3b3   :  { %v20731_v1 = vadd.f32 %v5551_v15, %v5510_v51  ;;  %8141 = vmatpush1.bf16.msra.mxu1 %v18688_v42  ;;  %8171 = vmatprep.subr.bf16.mxu0 %v18705_v47  ;;  %v18714_v15 = vld [vmem:[#allocation2 + $0x1854] ss:$28 sps:$4 sm:$0xff]  }
 0x3b4   :  { %v5512_v56 = vpop.f32.mrf.mxu1  ;;  %8142 = vmatprep.subr.bf16.mxu1 %v18696_v45  ;;  %v18738_v42 = vld [vmem:[#allocation2 + $0x1774] ss:$28 sps:$4 sm:$0xff]   ;;  %v18747_v45 = vld [vmem:[#allocation2 + $0x1c44] ss:$28 sps:$4 sm:$0xff]  }
 0x3b5   :  { %v20733_v39 = vadd.f32 %v5553_v60, %v5512_v56  ;;  %v18729_v60 = vld [vmem:[#allocation2 + $0x196c] ss:$28 sps:$4 sm:$0xff]  }
 0x3b6   :  { %v5514_v58 = vpop.f32.mrf.mxu1  ;;  %8172 = vmatpush1.bf16.msra.mxu0 %v18703_v34  ;;  %v18736_v51 = vld [vmem:[#allocation2 + $0x1770] ss:$28 sps:$4 sm:$0xff]  }
 0x3b7   :  { %8143 = vmatpush1.bf16.msra.mxu1 %v18694_v25  ;;  %8173 = vmatprep.subr.bf16.mxu0 %v18711_v6  ;;  %v18745_v25 = vld [vmem:[#allocation2 + $0x1c40] ss:$28 sps:$4 sm:$0xff]   ;;  %v18753_v34 = vld [vmem:[#allocation2 + $0x1c0c] ss:$28 sps:$4 sm:$0xff]   ;;  %v18742_v6 = vld [vmem:[#allocation2 + $0x1738] ss:$28 sps:$4 sm:$0xff]  }
 0x3b8   :  { %v5515_v7 = vpop.f32.mrf.mxu1  ;;  %8144 = vmatprep.subr.bf16.mxu1 %v18702_v55  ;;  %v18744_v55 = vld [vmem:[#allocation2 + $0x173c] ss:$28 sps:$4 sm:$0xff]   ;;  %v18751_v58 = vld [vmem:[#allocation2 + $0x1c08] ss:$28 sps:$4 sm:$0xff]  }
 0x3b9   :  { %v18757_v7 = vld [vmem:[#allocation2 + $0x1bd0] ss:$28 sps:$4 sm:$0xff]  }
 0x3ba   :  { %8174 = vmatpush1.bf16.msra.mxu0 %v18709_v63  ;;  %v18748_v63 = vld [vmem:[#allocation2 + $0x1e00] ss:$28 sps:$4 sm:$0xff]  }
 0x3bb   :  { %8145 = vmatpush2.bf16.msra.mxu1 %v18700_v44  ;;  %8175 = vmatprep.subr.bf16.mxu0 %v18717_v10  ;;  %v18750_v44 = vld [vmem:[#allocation2 + $0x1e04] ss:$28 sps:$4 sm:$0xff]   ;;  %v18756_v10 = vld [vmem:[#allocation2 + $0x1dcc] ss:$28 sps:$4 sm:$0xff]  }
 0x3bc   :  { %8146 = vmatprep.subr.bf16.mxu1 %v18708_v22  ;;  %v18759_v22 = vld [vmem:[#allocation2 + $0x1bd4] ss:$28 sps:$4 sm:$0xff]  }
 0x3be   :  { %8176 = vmatpush1.bf16.msra.mxu0 %v18715_v43  ;;  %v18754_v43 = vld [vmem:[#allocation2 + $0x1dc8] ss:$28 sps:$4 sm:$0xff]  }
 0x3bf   :  { %8147 = vmatpush2.bf16.msra.mxu1 %v18706_v12  ;;  %8177 = vmatprep.subr.bf16.mxu0 %v18723_v17  ;;  %v18765_v12 = vld [vmem:[#allocation2 + $0x1b9c] ss:$28 sps:$4 sm:$0xff]   ;;  %v18762_v17 = vld [vmem:[#allocation2 + $0x1d94] ss:$28 sps:$4 sm:$0xff]  }
 0x3c0   :  { %8148 = vmatprep.subr.bf16.mxu1 %v18714_v15  ;;  %v18763_v15 = vld [vmem:[#allocation2 + $0x1b98] ss:$28 sps:$4 sm:$0xff]  }
 0x3c2   :  { %8178 = vmatpush1.bf16.msra.mxu0 %v18721_v20  ;;  %v18760_v20 = vld [vmem:[#allocation2 + $0x1d90] ss:$28 sps:$4 sm:$0xff]  }
 0x3c3   :  { %8149 = vmatpush2.bf16.msra.mxu1 %v18712_v18  ;;  %8179 = vmatprep.subr.bf16.mxu0 %v18729_v60  ;;  %v18771_v18 = vld [vmem:[#allocation2 + $0x1b64] ss:$28 sps:$4 sm:$0xff]   ;;  %v18768_v60 = vld [vmem:[#allocation2 + $0x1d5c] ss:$28 sps:$4 sm:$0xff]  }
 0x3c4   :  { %8150 = vmatprep.subr.bf16.mxu1 %v18720_v50  ;;  %v18769_v50 = vld [vmem:[#allocation2 + $0x1b60] ss:$28 sps:$4 sm:$0xff]  }
 0x3c6   :  { %8180 = vmatpush1.bf16.msra.mxu0 %v18727_v24  ;;  %v18766_v24 = vld [vmem:[#allocation2 + $0x1d58] ss:$28 sps:$4 sm:$0xff]  }
 0x3c7   :  { %8151 = vmatpush2.bf16.msra.mxu1 %v18718_v0  ;;  %8181 = vmatprep.subr.bf16.mxu0 %v18735_v28  ;;  %v18777_v0 = vld [vmem:[#allocation2 + $0x1b2c] ss:$28 sps:$4 sm:$0xff]   ;;  %v18774_v28 = vld [vmem:[#allocation2 + $0x1d24] ss:$28 sps:$4 sm:$0xff]  }
 0x3c8   :  { %8152 = vmatprep.subr.bf16.mxu1 %v18726_v26  ;;  %v18775_v26 = vld [vmem:[#allocation2 + $0x1b28] ss:$28 sps:$4 sm:$0xff]  }
 0x3c9   :  { %v17235_v38 = vpop.f32.mrf.mxu0 }
 0x3ca   :  { %8182 = vmatpush1.bf16.msra.mxu0 %v18733_v31  ;;  %v18772_v31 = vld [vmem:[#allocation2 + $0x1d20] ss:$28 sps:$4 sm:$0xff]  }
 0x3cb   :  { %8153 = vmatpush2.bf16.msra.mxu1 %v18724_v29  ;;  %8183 = vmatprep.subr.bf16.mxu0 %v18741_v35  ;;  %v17236_v23 = vpop.f32.mrf.mxu0  ;;  %v18783_v29 = vld [vmem:[#allocation2 + $0x1af4] ss:$28 sps:$4 sm:$0xff]   ;;  %v18780_v35 = vld [vmem:[#allocation2 + $0x1cec] ss:$28 sps:$4 sm:$0xff]  }
 0x3cc   :  { %8154 = vmatprep.subr.bf16.mxu1 %v18732_v33  ;;  %v20736_v47 = vadd.f32 %v17236_v23, %v17235_v38  ;;  %v18781_v33 = vld [vmem:[#allocation2 + $0x1af0] ss:$28 sps:$4 sm:$0xff]   ;;  %v18789_v38 = vld [vmem:[#allocation2 + $0x1abc] ss:$28 sps:$4 sm:$0xff]  }
 0x3cd   :  { %v17238_v48 = vpop.f32.mrf.mxu0  ;;  %v18786_v23 = vld [vmem:[#allocation2 + $0x1cb4] ss:$28 sps:$4 sm:$0xff]  }
 0x3ce   :  { %8184 = vmatpush1.bf16.msra.mxu0 %v18739_v41  ;;  %v18798_v48 = vld [vmem:[#allocation2 + $0x1ffc] ss:$28 sps:$4 sm:$0xff]  }
 0x3cf   :  { %8155 = vmatpush2.bf16.msra.mxu1 %v18730_v40  ;;  %8185 = vmatprep.subr.bf16.mxu0 %v18747_v45  ;;  %v17239_v56 = vpop.f32.mrf.mxu0  ;;  %v18778_v40 = vld [vmem:[#allocation2 + $0x1ce8] ss:$28 sps:$4 sm:$0xff]  }
 0x3d0   :  { %8156 = vmatprep.subr.bf16.mxu1 %v18738_v42  ;;  %v18787_v42 = vld [vmem:[#allocation2 + $0x1ab8] ss:$28 sps:$4 sm:$0xff]  }
 0x3d1   :  { %v18796_v56 = vld [vmem:[#allocation2 + $0x1ff8] ss:$28 sps:$4 sm:$0xff]  }
 0x3d2   :  { %8186 = vmatpush2.bf16.msra.mxu0 %v18745_v25  ;;  %v18784_v25 = vld [vmem:[#allocation2 + $0x1cb0] ss:$28 sps:$4 sm:$0xff]  }
 0x3d3   :  { %8157 = vmatpush2.bf16.msra.mxu1 %v18736_v51  ;;  %8187 = vmatprep.subr.bf16.mxu0 %v18753_v34 }
 0x3d4   :  { %8158 = vmatprep.subr.bf16.mxu1 %v18744_v55 }
 0x3d6   :  { %8188 = vmatpush2.bf16.msra.mxu0 %v18751_v58  ;;  %v18804_v58 = vld [vmem:[#allocation2 + $0x170c] ss:$28 sps:$4 sm:$0xff]  }
 0x3d7   :  { %8159 = vmatpush2.bf16.msra.mxu1 %v18742_v6  ;;  %8189 = vmatprep.subr.bf16.mxu0 %v18759_v22  ;;  %v18792_v6 = vld [vmem:[#allocation2 + $0x1c7c] ss:$28 sps:$4 sm:$0xff]  }
 0x3d8   :  { %8210 = vmatprep.subr.bf16.mxu1 %v18750_v44 }
 0x3da   :  { %8161 = vmatmul.mubr.bf16.vlgmr.msra.gmra.mxu1 %v20549_v8  ;;  %8190 = vmatpush2.bf16.msra.mxu0 %v18757_v7 }
 0x3db   :  { %8211 = vmatpush1.bf16.msra.mxu1 %v18748_v63  ;;  %8191 = vmatprep.subr.bf16.mxu0 %v18765_v12 }
 0x3dc   :  { %8212 = vmatprep.subr.bf16.mxu1 %v18756_v10  ;;  %8242 = vmatprep.mubr.bf16.mxu1 %v20567_v36  ;;  %v18790_v10 = vld [vmem:[#allocation2 + $0x1c78] ss:$28 sps:$4 sm:$0xff]  }
 0x3de   :  { %8192 = vmatpush2.bf16.msra.mxu0 %v18763_v15 }
 0x3df   :  { %8213 = vmatpush1.bf16.msra.mxu1 %v18754_v43  ;;  %8193 = vmatprep.subr.bf16.mxu0 %v18771_v18  ;;  %v18793_v18 = vld [vmem:[#allocation2 + $0x1fc0] ss:$28 sps:$4 sm:$0xff]  }
 0x3e0   :  { %8214 = vmatprep.subr.bf16.mxu1 %v18762_v17 }
 0x3e2   :  { %8194 = vmatpush2.bf16.msra.mxu0 %v18769_v50 }
 0x3e3   :  { %8215 = vmatpush1.bf16.msra.mxu1 %v18760_v20  ;;  %8195 = vmatprep.subr.bf16.mxu0 %v18777_v0  ;;  %v18802_v20 = vld [vmem:[#allocation2 + $0x1708] ss:$28 sps:$4 sm:$0xff]  }
 0x3e4   :  { %8216 = vmatprep.subr.bf16.mxu1 %v18768_v60  ;;  %v18801_v60 = vld [vmem:[#allocation2 + $0x1f8c] ss:$28 sps:$4 sm:$0xff]  }
 0x3e6   :  { %8196 = vmatpush2.bf16.msra.mxu0 %v18775_v26 }
 0x3e7   :  { %8217 = vmatpush1.bf16.msra.mxu1 %v18766_v24  ;;  %8197 = vmatprep.subr.bf16.mxu0 %v18783_v29  ;;  %v18799_v29 = vld [vmem:[#allocation2 + $0x1f88] ss:$28 sps:$4 sm:$0xff]  }
 0x3e8   :  { %8218 = vmatprep.subr.bf16.mxu1 %v18774_v28  ;;  %v18810_v28 = vld [vmem:[#allocation2 + $0x16d4] ss:$28 sps:$4 sm:$0xff]  }
 0x3e9   :  { %v17257_v41 = vpop.f32.mrf.mxu0 }
 0x3ea   :  { %8198 = vmatpush2.bf16.msra.mxu0 %v18781_v33  ;;  %v18808_v33 = vld [vmem:[#allocation2 + $0x16d0] ss:$28 sps:$4 sm:$0xff]  }
 0x3eb   :  { %8219 = vmatpush1.bf16.msra.mxu1 %v18772_v31  ;;  %v17258_v45 = vpop.f32.mrf.mxu0  ;;  %8199 = vmatprep.subr.bf16.mxu0 %v18789_v38  ;;  %v18807_v31 = vld [vmem:[#allocation2 + $0x1f54] ss:$28 sps:$4 sm:$0xff]   ;;  %v18813_v38 = vld [vmem:[#allocation2 + $0x1f1c] ss:$28 sps:$4 sm:$0xff]  }
 0x3ec   :  { %8220 = vmatprep.subr.bf16.mxu1 %v18780_v35  ;;  %v17259_v51 = vadd.f32 %v17258_v45, %v17257_v41  ;;  %v18805_v35 = vld [vmem:[#allocation2 + $0x1f50] ss:$28 sps:$4 sm:$0xff]   ;;  %v18822_v41 = vld [vmem:[#allocation2 + $0x1664] ss:$28 sps:$4 sm:$0xff]  }
 0x3ed   :  { %v17260_v55 = vpop.f32.mrf.mxu0  ;;  %v18819_v45 = vld [vmem:[#allocation2 + $0x1ee4] ss:$28 sps:$4 sm:$0xff]  }
 0x3ee   :  { %v20741_v34 = vadd.f32 %v17259_v51, %v20736_v47  ;;  %8200 = vmatpush2.bf16.msra.mxu0 %v18787_v42  ;;  %v18795_v47 = vld [vmem:[#allocation2 + $0x1fc4] ss:$28 sps:$4 sm:$0xff]   ;;  %v18811_v42 = vld [vmem:[#allocation2 + $0x1f18] ss:$28 sps:$4 sm:$0xff]  }
 0x3ef   :  { %8221 = vmatpush1.bf16.msra.mxu1 %v18778_v40  ;;  %8265 = vmatprep.subr.bf16.mxu0 %v18798_v48  ;;  %v17261_v44 = vpop.f32.mrf.mxu0  ;;  %v18814_v40 = vld [vmem:[#allocation2 + $0x1698] ss:$28 sps:$4 sm:$0xff]   ;;  %v18828_v48 = vld [vmem:[#allocation2 + $0x162c] ss:$28 sps:$4 sm:$0xff]   ;;  %v18817_v51 = vld [vmem:[#allocation2 + $0x1ee0] ss:$28 sps:$4 sm:$0xff]  }
 0x3f0   :  { %8222 = vmatprep.subr.bf16.mxu1 %v18786_v23  ;;  %v18820_v23 = vld [vmem:[#allocation2 + $0x1660] ss:$28 sps:$4 sm:$0xff]   ;;  %v18826_v55 = vld [vmem:[#allocation2 + $0x1628] ss:$28 sps:$4 sm:$0xff]   ;;  %v18832_v44 = vld [vmem:[#allocation2 + $0x15f0] ss:$28 sps:$4 sm:$0xff]  }
 0x3f1   :  { %8202 = vmatmul.mubr.bf16.vlgmr.msra.gmra.mxu0 %v20551_v9  ;;  %v20744_v63 = vpop.f32.mrf.mxu0 }
 0x3f2   :  { %v5592_v22 = vpop.f32.mrf.mxu1  ;;  %8266 = vmatpush1.bf16.msra.mxu0 %v18796_v56  ;;  %8283 = vmatprep.mubr.bf16.mxu0 %v20438_v16  ;;  %v18834_v56 = vld [vmem:[#allocation2 + $0x15f4] ss:$28 sps:$4 sm:$0xff]  }
 0x3f3   :  { %v5593_v7 = vadd.f32 %v5592_v22, %v20731_v1  ;;  %8223 = vmatpush1.bf16.msra.mxu1 %v18784_v25  ;;  %v17473_v43 = vpop.f32.mrf.mxu0  ;;  %8292 = vmatprep.subr.bf16.mxu0 %v18804_v58  ;;  %v18825_v25 = vld [vmem:[#allocation2 + $0x1eac] ss:$28 sps:$4 sm:$0xff]   ;;  %v18831_v58 = vld [vmem:[#allocation2 + $0x1e74] ss:$28 sps:$4 sm:$0xff]   ;;  %v18840_v22 = vld [vmem:[#allocation2 + $0x15bc] ss:$28 sps:$4 sm:$0xff]  }
 0x3f4   :  { %v5594_v12 = vpop.f32.mrf.mxu1  ;;  %8224 = vmatprep.subr.bf16.mxu1 %v18792_v6  ;;  %v18823_v6 = vld [vmem:[#allocation2 + $0x1ea8] ss:$28 sps:$4 sm:$0xff]   ;;  %v18835_v43 = vld [vmem:[#allocation2 + $0x1e38] ss:$28 sps:$4 sm:$0xff]  }
 0x3f5   :  { %v20749_v15 = vadd.f32 %v20726_v32, %v5593_v7  ;;  %v5595_v17 = vadd.f32 %v5594_v12, %v20733_v39  ;;  %v5797_v1 = vpop.f32.mrf.mxu0  ;;  %v18829_v7 = vld [vmem:[#allocation2 + $0x1e70] ss:$28 sps:$4 sm:$0xff]   ;;  %v18838_v12 = vld [vmem:[#allocation2 + $0x15b8] ss:$28 sps:$4 sm:$0xff]  }
 0x3f6   :  { %v5596_v50 = vpop.f32.mrf.mxu1 }
 0x3f7   :  { %v5804_v0 = vmax.f32 %v20655_v46, %v20749_v15  ;;  %v20755_v24 = vadd.f32 %v20728_v27, %v5595_v17  ;;  %8225 = vmatpush1.bf16.msra.mxu1 %v18790_v10  ;;  %v17474_v32 = vpop.f32.mrf.mxu0  ;;  %v18816_v27 = vld [vmem:[#allocation2 + $0x169c] ss:$28 sps:$4 sm:$0xff]   ;;  %v19256_v46 = vld [vmem:[#allocation2 + $0x23b0] ss:$28 sps:$4 sm:$0xff]  }
 0x3f8   :  { %v5597_v26 = vpop.f32.mrf.mxu1  ;;  %8226 = vmatprep.subr.bf16.mxu1 %v18795_v47  ;;  %v18837_v10 = vld [vmem:[#allocation2 + $0x1e3c] ss:$28 sps:$4 sm:$0xff]   ;;  %v18843_v47 = vld [vmem:[#allocation2 + $0x1584] ss:$28 sps:$4 sm:$0xff]  }
 0x3f9   :  { %v5805_v39 = vmax.f32 %v20659_v53, %v20755_v24  ;;  %16318 = vmatmul.mubr.msk.bf16.vlgmr.msra.gmra.mxu0 %vm2335_vm0, %v20559_v19  ;;  %v18844_v26 = vld [vmem:[#allocation2 + $0x1a88] ss:$28 sps:$4 sm:$0xff]   ;;  %v19265_v15 = vld [vmem:[#allocation2 + $0x2a40] ss:$28 sps:$4 sm:$0xff]  }
 0x3fa   :  { %8293 = vmatpush1.bf16.msra.mxu0 %v18802_v20  ;;  %8324 = vmatprep.mubr.bf16.mxu0 %v20534_v49  ;;  %v18841_v20 = vld [vmem:[#allocation2 + $0x1580] ss:$28 sps:$4 sm:$0xff]  }
 0x3fb   :  { %8227 = vmatpush2.bf16.msra.mxu1 %v18793_v18  ;;  %8294 = vmatprep.subr.bf16.mxu0 %v18810_v28  ;;  %v18846_v18 = vld [vmem:[#allocation2 + $0x1a8c] ss:$28 sps:$4 sm:$0xff]   ;;  %v19270_v24 = vld [vmem:[#allocation2 + $0x26c4] ss:$28 sps:$4 sm:$0xff]  }
 0x3fc   :  { %8228 = vmatprep.subr.bf16.mxu1 %v18801_v60  ;;  %v18849_v60 = vld [vmem:[#allocation2 + $0x18cc] ss:$28 sps:$4 sm:$0xff]  }
 0x3fd   :  { %v18847_v28 = vld [vmem:[#allocation2 + $0x18c8] ss:$28 sps:$4 sm:$0xff]  }
 0x3fe   :  { %8295 = vmatpush1.bf16.msra.mxu0 %v18808_v33  ;;  %v18855_v33 = vld [vmem:[#allocation2 + $0x1894] ss:$28 sps:$4 sm:$0xff]  }
 0x3ff   :  { %8229 = vmatpush2.bf16.msra.mxu1 %v18799_v29  ;;  %8296 = vmatprep.subr.bf16.mxu0 %v18816_v27  ;;  %v18852_v29 = vld [vmem:[#allocation2 + $0x1a54] ss:$28 sps:$4 sm:$0xff]  }
 0x400   :  { %8230 = vmatprep.subr.bf16.mxu1 %v18807_v31 }
 0x402   :  { %8297 = vmatpush1.bf16.msra.mxu0 %v18814_v40  ;;  %v18853_v40 = vld [vmem:[#allocation2 + $0x1890] ss:$28 sps:$4 sm:$0xff]  }
 0x403   :  { %8231 = vmatpush2.bf16.msra.mxu1 %v18805_v35  ;;  %8298 = vmatprep.subr.bf16.mxu0 %v18822_v41  ;;  %v18858_v41 = vld [vmem:[#allocation2 + $0x1a1c] ss:$28 sps:$4 sm:$0xff]  }
 0x404   :  { %8232 = vmatprep.subr.bf16.mxu1 %v18813_v38  ;;  %v18850_v38 = vld [vmem:[#allocation2 + $0x1a50] ss:$28 sps:$4 sm:$0xff]  }
 0x406   :  { %8299 = vmatpush1.bf16.msra.mxu0 %v18820_v23  ;;  %v18859_v23 = vld [vmem:[#allocation2 + $0x1858] ss:$28 sps:$4 sm:$0xff]  }
 0x407   :  { %8233 = vmatpush2.bf16.msra.mxu1 %v18811_v42  ;;  %8300 = vmatprep.subr.bf16.mxu0 %v18828_v48  ;;  %v18864_v48 = vld [vmem:[#allocation2 + $0x19e4] ss:$28 sps:$4 sm:$0xff]  }
 0x408   :  { %8234 = vmatprep.subr.bf16.mxu1 %v18819_v45  ;;  %v18856_v45 = vld [vmem:[#allocation2 + $0x1a18] ss:$28 sps:$4 sm:$0xff]  }
 0x40a   :  { %8301 = vmatpush1.bf16.msra.mxu0 %v18826_v55  ;;  %v18870_v55 = vld [vmem:[#allocation2 + $0x19ac] ss:$28 sps:$4 sm:$0xff]  }
 0x40b   :  { %8235 = vmatpush2.bf16.msra.mxu1 %v18817_v51  ;;  %8302 = vmatprep.subr.bf16.mxu0 %v18834_v56  ;;  %v18862_v51 = vld [vmem:[#allocation2 + $0x19e0] ss:$28 sps:$4 sm:$0xff]   ;;  %v18873_v56 = vld [vmem:[#allocation2 + $0x17ec] ss:$28 sps:$4 sm:$0xff]  }
 0x40c   :  { %8236 = vmatprep.subr.bf16.mxu1 %v18825_v25  ;;  %v18865_v25 = vld [vmem:[#allocation2 + $0x1820] ss:$28 sps:$4 sm:$0xff]  }
 0x40e   :  { %8303 = vmatpush1.bf16.msra.mxu0 %v18832_v44  ;;  %v18876_v44 = vld [vmem:[#allocation2 + $0x1974] ss:$28 sps:$4 sm:$0xff]  }
 0x40f   :  { %8237 = vmatpush2.bf16.msra.mxu1 %v18823_v6  ;;  %8304 = vmatprep.subr.bf16.mxu0 %v18840_v22  ;;  %v18868_v6 = vld [vmem:[#allocation2 + $0x19a8] ss:$28 sps:$4 sm:$0xff]   ;;  %v18879_v22 = vld [vmem:[#allocation2 + $0x17b4] ss:$28 sps:$4 sm:$0xff]  }
 0x410   :  { %8238 = vmatprep.subr.bf16.mxu1 %v18831_v58  ;;  %v18871_v58 = vld [vmem:[#allocation2 + $0x17e8] ss:$28 sps:$4 sm:$0xff]  }
 0x412   :  { %v17279_v17 = vpop.f32.mrf.mxu1  ;;  %8305 = vmatpush1.bf16.msra.mxu0 %v18838_v12  ;;  %v18882_v12 = vld [vmem:[#allocation2 + $0x193c] ss:$28 sps:$4 sm:$0xff]  }
 0x413   :  { %8239 = vmatpush2.bf16.msra.mxu1 %v18829_v7  ;;  %8306 = vmatprep.subr.bf16.mxu0 %v18843_v47  ;;  %v18874_v7 = vld [vmem:[#allocation2 + $0x1970] ss:$28 sps:$4 sm:$0xff]   ;;  %v18885_v47 = vld [vmem:[#allocation2 + $0x177c] ss:$28 sps:$4 sm:$0xff]  }
 0x414   :  { %v17280_v50 = vpop.f32.mrf.mxu1  ;;  %8240 = vmatprep.subr.bf16.mxu1 %v18837_v10  ;;  %v18877_v10 = vld [vmem:[#allocation2 + $0x17b0] ss:$28 sps:$4 sm:$0xff]  }
 0x415   :  { %v17281_v1 = vadd.f32 %v17280_v50, %v17279_v17  ;;  %v18883_v17 = vld [vmem:[#allocation2 + $0x1778] ss:$28 sps:$4 sm:$0xff]   ;;  %v18886_v50 = vld [vmem:[#allocation2 + $0x1900] ss:$28 sps:$4 sm:$0xff]  }
 0x416   :  { %v17282_v32 = vpop.f32.mrf.mxu1  ;;  %8307 = vmatpush1.bf16.msra.mxu0 %v18841_v20  ;;  %v18891_v20 = vld [vmem:[#allocation2 + $0x1744] ss:$28 sps:$4 sm:$0xff]  }
 0x417   :  { %v5755_v31 = vadd.f32 %v17281_v1, %v20741_v34  ;;  %8241 = vmatpush2.bf16.msra.mxu1 %v18835_v43  ;;  %8308 = vmatprep.subr.bf16.mxu0 %v18849_v60  ;;  %v18861_v34 = vld [vmem:[#allocation2 + $0x185c] ss:$28 sps:$4 sm:$0xff]  }
 0x418   :  { %v17283_v27 = vpop.f32.mrf.mxu1  ;;  %8333 = vmatprep.subr.bf16.mxu1 %v18846_v18  ;;  %v18880_v43 = vld [vmem:[#allocation2 + $0x1938] ss:$28 sps:$4 sm:$0xff]   ;;  %v18888_v18 = vld [vmem:[#allocation2 + $0x1904] ss:$28 sps:$4 sm:$0xff]  }
 0x419   :  { %v20764_v35 = vadd.f32 %v20744_v63, %v5755_v31  ;;  %v18867_v63 = vld [vmem:[#allocation2 + $0x1824] ss:$28 sps:$4 sm:$0xff]  }
 0x41a   :  { %8243 = vmatmul.mubr.bf16.vlgmr.msra.gmra.mxu1 %v20573_v21  ;;  %8309 = vmatpush2.bf16.msra.mxu0 %v18847_v28  ;;  %v18889_v1 = vld [vmem:[#allocation2 + $0x1740] ss:$28 sps:$4 sm:$0xff]   ;;  %v18900_v28 = vld [vmem:[#allocation2 + $0x1e0c] ss:$28 sps:$4 sm:$0xff]  }
 0x41b   :  { %8334 = vmatpush1.bf16.msra.mxu1 %v18844_v26  ;;  %v5806_v42 = vmax.f32 %v20664_v54, %v20764_v35  ;;  %8310 = vmatprep.subr.bf16.mxu0 %v18855_v33  ;;  %v18894_v26 = vld [vmem:[#allocation2 + $0x1c4c] ss:$28 sps:$4 sm:$0xff]   ;;  %v18897_v33 = vld [vmem:[#allocation2 + $0x1c14] ss:$28 sps:$4 sm:$0xff]  }
 0x41c   :  { %8335 = vmatprep.subr.bf16.mxu1 %v18852_v29  ;;  %8365 = vmatprep.mubr.bf16.mxu1 %v20539_v52  ;;  %v18892_v29 = vld [vmem:[#allocation2 + $0x1c48] ss:$28 sps:$4 sm:$0xff]   ;;  %v19333_v54 = vld [vmem:[#allocation2 + $0x2154] ss:$28 sps:$4 sm:$0xff]  }
 0x41d   :  { %v18898_v27 = vld [vmem:[#allocation2 + $0x1e08] ss:$28 sps:$4 sm:$0xff]   ;;  %v19342_v35 = vld [vmem:[#allocation2 + $0x23f4] ss:$28 sps:$4 sm:$0xff]  }
 0x41e   :  { %8311 = vmatpush2.bf16.msra.mxu0 %v18853_v40 }
 0x41f   :  { %8336 = vmatpush1.bf16.msra.mxu1 %v18850_v38  ;;  %8312 = vmatprep.subr.bf16.mxu0 %v18861_v34  ;;  %v18906_v38 = vld [vmem:[#allocation2 + $0x1dd4] ss:$28 sps:$4 sm:$0xff]   ;;  %v18903_v34 = vld [vmem:[#allocation2 + $0x1bdc] ss:$28 sps:$4 sm:$0xff]  }
 0x420   :  { %8337 = vmatprep.subr.bf16.mxu1 %v18858_v41  ;;  %v18895_v41 = vld [vmem:[#allocation2 + $0x1c10] ss:$28 sps:$4 sm:$0xff]  }
 0x422   :  { %8313 = vmatpush2.bf16.msra.mxu0 %v18859_v23  ;;  %v18912_v23 = vld [vmem:[#allocation2 + $0x1d9c] ss:$28 sps:$4 sm:$0xff]  }
 0x423   :  { %8338 = vmatpush1.bf16.msra.mxu1 %v18856_v45  ;;  %8314 = vmatprep.subr.bf16.mxu0 %v18867_v63  ;;  %v18904_v45 = vld [vmem:[#allocation2 + $0x1dd0] ss:$28 sps:$4 sm:$0xff]   ;;  %v18909_v63 = vld [vmem:[#allocation2 + $0x1ba4] ss:$28 sps:$4 sm:$0xff]  }
 0x424   :  { %8339 = vmatprep.subr.bf16.mxu1 %v18864_v48  ;;  %v18901_v48 = vld [vmem:[#allocation2 + $0x1bd8] ss:$28 sps:$4 sm:$0xff]  }
 0x426   :  { %8315 = vmatpush2.bf16.msra.mxu0 %v18865_v25  ;;  %v18918_v25 = vld [vmem:[#allocation2 + $0x1d64] ss:$28 sps:$4 sm:$0xff]  }
 0x427   :  { %8340 = vmatpush1.bf16.msra.mxu1 %v18862_v51  ;;  %8316 = vmatprep.subr.bf16.mxu0 %v18873_v56  ;;  %v18910_v51 = vld [vmem:[#allocation2 + $0x1d98] ss:$28 sps:$4 sm:$0xff]   ;;  %v18915_v56 = vld [vmem:[#allocation2 + $0x1b6c] ss:$28 sps:$4 sm:$0xff]  }
 0x428   :  { %8341 = vmatprep.subr.bf16.mxu1 %v18870_v55  ;;  %v18907_v55 = vld [vmem:[#allocation2 + $0x1ba0] ss:$28 sps:$4 sm:$0xff]  }
 0x42a   :  { %8317 = vmatpush2.bf16.msra.mxu0 %v18871_v58  ;;  %v18924_v58 = vld [vmem:[#allocation2 + $0x1d2c] ss:$28 sps:$4 sm:$0xff]  }
 0x42b   :  { %8342 = vmatpush1.bf16.msra.mxu1 %v18868_v6  ;;  %8318 = vmatprep.subr.bf16.mxu0 %v18879_v22  ;;  %v18916_v6 = vld [vmem:[#allocation2 + $0x1d60] ss:$28 sps:$4 sm:$0xff]   ;;  %v18921_v22 = vld [vmem:[#allocation2 + $0x1b34] ss:$28 sps:$4 sm:$0xff]  }
 0x42c   :  { %8343 = vmatprep.subr.bf16.mxu1 %v18876_v44  ;;  %v18913_v44 = vld [vmem:[#allocation2 + $0x1b68] ss:$28 sps:$4 sm:$0xff]  }
 0x42e   :  { %8319 = vmatpush2.bf16.msra.mxu0 %v18877_v10  ;;  %v18930_v10 = vld [vmem:[#allocation2 + $0x1cf4] ss:$28 sps:$4 sm:$0xff]  }
 0x42f   :  { %8344 = vmatpush1.bf16.msra.mxu1 %v18874_v7  ;;  %8320 = vmatprep.subr.bf16.mxu0 %v18885_v47  ;;  %v18922_v7 = vld [vmem:[#allocation2 + $0x1d28] ss:$28 sps:$4 sm:$0xff]   ;;  %v18927_v47 = vld [vmem:[#allocation2 + $0x1afc] ss:$28 sps:$4 sm:$0xff]  }
 0x430   :  { %8345 = vmatprep.subr.bf16.mxu1 %v18882_v12  ;;  %v18919_v12 = vld [vmem:[#allocation2 + $0x1b30] ss:$28 sps:$4 sm:$0xff]  }
 0x431   :  { %v20770_v60 = vpop.f32.mrf.mxu0 }
 0x432   :  { %8321 = vmatpush2.bf16.msra.mxu0 %v18883_v17  ;;  %v18936_v17 = vld [vmem:[#allocation2 + $0x1cbc] ss:$28 sps:$4 sm:$0xff]  }
 0x433   :  { %8346 = vmatpush1.bf16.msra.mxu1 %v18880_v43  ;;  %8322 = vmatprep.subr.bf16.mxu0 %v18891_v20  ;;  %v20772_v32 = vpop.f32.mrf.mxu0  ;;  %v18928_v43 = vld [vmem:[#allocation2 + $0x1cf0] ss:$28 sps:$4 sm:$0xff]   ;;  %v18933_v20 = vld [vmem:[#allocation2 + $0x1ac4] ss:$28 sps:$4 sm:$0xff]  }
 0x434   :  { %8347 = vmatprep.subr.bf16.mxu1 %v18888_v18  ;;  %v18925_v18 = vld [vmem:[#allocation2 + $0x1af8] ss:$28 sps:$4 sm:$0xff]  }
 0x435   :  { %v8002_v31 = vpop.f32.mrf.mxu0 }
 0x436   :  { %8323 = vmatpush2.bf16.msra.mxu0 %v18889_v1  ;;  %v18939_v1 = vld [vmem:[#allocation2 + $0x1c84] ss:$28 sps:$4 sm:$0xff]  }
 0x437   :  { %8348 = vmatpush1.bf16.msra.mxu1 %v18886_v50  ;;  %8374 = vmatprep.subr.bf16.mxu0 %v18900_v28  ;;  %v8003_v40 = vpop.f32.mrf.mxu0  ;;  %v18934_v50 = vld [vmem:[#allocation2 + $0x1cb8] ss:$28 sps:$4 sm:$0xff]   ;;  %v18931_v28 = vld [vmem:[#allocation2 + $0x1ac0] ss:$28 sps:$4 sm:$0xff]  }
 0x438   :  { %8349 = vmatprep.subr.bf16.mxu1 %v18894_v26  ;;  %v18937_v31 = vld [vmem:[#allocation2 + $0x1c80] ss:$28 sps:$4 sm:$0xff]  }
 0x439   :  { %8325 = vmatmul.mubr.bf16.vlgmr.msra.gmra.mxu0 %v20549_v8 }
 0x43a   :  { %8375 = vmatpush1.bf16.msra.mxu0 %v18898_v27  ;;  %8406 = vmatprep.mubr.bf16.mxu0 %v20567_v36  ;;  %v18945_v27 = vld [vmem:[#allocation2 + $0x1fcc] ss:$28 sps:$4 sm:$0xff]  }
 0x43b   :  { %8350 = vmatpush2.bf16.msra.mxu1 %v18892_v29  ;;  %8376 = vmatprep.subr.bf16.mxu0 %v18906_v38 }
 0x43c   :  { %8351 = vmatprep.subr.bf16.mxu1 %v18897_v33  ;;  %v18942_v33 = vld [vmem:[#allocation2 + $0x2004] ss:$28 sps:$4 sm:$0xff]  }
 0x43e   :  { %8377 = vmatpush1.bf16.msra.mxu0 %v18904_v45  ;;  %v18943_v45 = vld [vmem:[#allocation2 + $0x1fc8] ss:$28 sps:$4 sm:$0xff]  }
 0x43f   :  { %8352 = vmatpush2.bf16.msra.mxu1 %v18895_v41  ;;  %8378 = vmatprep.subr.bf16.mxu0 %v18912_v23  ;;  %v18946_v23 = vld [vmem:[#allocation2 + $0x18d0] ss:$28 sps:$4 sm:$0xff]  }
 0x440   :  { %8353 = vmatprep.subr.bf16.mxu1 %v18903_v34  ;;  %v18940_v34 = vld [vmem:[#allocation2 + $0x2000] ss:$28 sps:$4 sm:$0xff]  }
 0x442   :  { %8379 = vmatpush1.bf16.msra.mxu0 %v18910_v51  ;;  %v18947_v51 = vld [vmem:[#allocation2 + $0x1f90] ss:$28 sps:$4 sm:$0xff]  }
 0x443   :  { %8354 = vmatpush2.bf16.msra.mxu1 %v18901_v48  ;;  %8380 = vmatprep.subr.bf16.mxu0 %v18918_v25  ;;  %v18949_v48 = vld [vmem:[#allocation2 + $0x1f94] ss:$28 sps:$4 sm:$0xff]  }
 0x444   :  { %8355 = vmatprep.subr.bf16.mxu1 %v18909_v63 }
 0x446   :  { %8381 = vmatpush1.bf16.msra.mxu0 %v18916_v6 }
 0x447   :  { %8356 = vmatpush2.bf16.msra.mxu1 %v18907_v55  ;;  %8382 = vmatprep.subr.bf16.mxu0 %v18924_v58  ;;  %v18950_v55 = vld [vmem:[#allocation2 + $0x1710] ss:$28 sps:$4 sm:$0xff]   ;;  %v18951_v58 = vld [vmem:[#allocation2 + $0x1898] ss:$28 sps:$4 sm:$0xff]  }
 0x448   :  { %8357 = vmatprep.subr.bf16.mxu1 %v18915_v56  ;;  %v18952_v56 = vld [vmem:[#allocation2 + $0x1f58] ss:$28 sps:$4 sm:$0xff]  }
 0x44a   :  { %8383 = vmatpush1.bf16.msra.mxu0 %v18922_v7  ;;  %v18955_v7 = vld [vmem:[#allocation2 + $0x16d8] ss:$28 sps:$4 sm:$0xff]  }
 0x44b   :  { %8358 = vmatpush2.bf16.msra.mxu1 %v18913_v44  ;;  %8384 = vmatprep.subr.bf16.mxu0 %v18930_v10  ;;  %v18956_v10 = vld [vmem:[#allocation2 + $0x1860] ss:$28 sps:$4 sm:$0xff]  }
 0x44c   :  { %8359 = vmatprep.subr.bf16.mxu1 %v18921_v22  ;;  %v18959_v22 = vld [vmem:[#allocation2 + $0x1f24] ss:$28 sps:$4 sm:$0xff]  }
 0x44e   :  { %8385 = vmatpush1.bf16.msra.mxu0 %v18928_v43  ;;  %v18960_v43 = vld [vmem:[#allocation2 + $0x16a0] ss:$28 sps:$4 sm:$0xff]  }
 0x44f   :  { %8360 = vmatpush2.bf16.msra.mxu1 %v18919_v12  ;;  %8386 = vmatprep.subr.bf16.mxu0 %v18936_v17  ;;  %v18957_v12 = vld [vmem:[#allocation2 + $0x1f20] ss:$28 sps:$4 sm:$0xff]   ;;  %v18961_v17 = vld [vmem:[#allocation2 + $0x1828] ss:$28 sps:$4 sm:$0xff]  }
 0x450   :  { %8361 = vmatprep.subr.bf16.mxu1 %v18927_v47  ;;  %v18964_v47 = vld [vmem:[#allocation2 + $0x1eec] ss:$28 sps:$4 sm:$0xff]  }
 0x452   :  { %v8039_v26 = vpop.f32.mrf.mxu1  ;;  %8387 = vmatpush1.bf16.msra.mxu0 %v18934_v50  ;;  %v18965_v50 = vld [vmem:[#allocation2 + $0x1668] ss:$28 sps:$4 sm:$0xff]  }
 0x453   :  { %v20777_v29 = vadd.f32 %v8039_v26, %v20770_v60  ;;  %8362 = vmatpush2.bf16.msra.mxu1 %v18925_v18  ;;  %8388 = vmatprep.subr.bf16.mxu0 %v18939_v1  ;;  %v18962_v18 = vld [vmem:[#allocation2 + $0x1ee8] ss:$28 sps:$4 sm:$0xff]   ;;  %v18966_v1 = vld [vmem:[#allocation2 + $0x17f0] ss:$28 sps:$4 sm:$0xff]  }
 0x454   :  { %v8041_v38 = vpop.f32.mrf.mxu1  ;;  %8363 = vmatprep.subr.bf16.mxu1 %v18933_v20  ;;  %v18969_v20 = vld [vmem:[#allocation2 + $0x1eb4] ss:$28 sps:$4 sm:$0xff]  }
 0x455   :  { %v20780_v40 = vadd.f32 %v8041_v38, %v20772_v32  ;;  %v18954_v32 = vld [vmem:[#allocation2 + $0x1f5c] ss:$28 sps:$4 sm:$0xff]   ;;  %v18967_v26 = vld [vmem:[#allocation2 + $0x1eb0] ss:$28 sps:$4 sm:$0xff]   ;;  %v18979_v38 = vld [vmem:[#allocation2 + $0x1e44] ss:$28 sps:$4 sm:$0xff]  }
 0x456   :  { %v8043_v41 = vpop.f32.mrf.mxu1  ;;  %8389 = vmatpush1.bf16.msra.mxu0 %v18937_v31  ;;  %v18970_v31 = vld [vmem:[#allocation2 + $0x1630] ss:$28 sps:$4 sm:$0xff]  }
 0x457   :  { %8364 = vmatpush2.bf16.msra.mxu1 %v18931_v28  ;;  %8390 = vmatprep.subr.bf16.mxu0 %v18945_v27  ;;  %v18974_v28 = vld [vmem:[#allocation2 + $0x1e7c] ss:$28 sps:$4 sm:$0xff]  }
 0x458   :  { %v8044_v60 = vpop.f32.mrf.mxu1  ;;  %8429 = vmatprep.subr.bf16.mxu1 %v18942_v33  ;;  %v18971_v33 = vld [vmem:[#allocation2 + $0x17b8] ss:$28 sps:$4 sm:$0xff]  }
 0x459   :  { %v18972_v27 = vld [vmem:[#allocation2 + $0x1e78] ss:$28 sps:$4 sm:$0xff]   ;;  %v18983_v60 = vld [vmem:[#allocation2 + $0x1fd0] ss:$28 sps:$4 sm:$0xff]  }
 0x45a   :  { %8366 = vmatmul.mubr.bf16.vlgmr.msra.gmra.mxu1 %v20551_v9  ;;  %v8121_v63 = vpop.f32.mrf.mxu1  ;;  %8391 = vmatpush2.bf16.msra.mxu0 %v18943_v45  ;;  %v18975_v41 = vld [vmem:[#allocation2 + $0x15f8] ss:$28 sps:$4 sm:$0xff]   ;;  %v18976_v45 = vld [vmem:[#allocation2 + $0x1780] ss:$28 sps:$4 sm:$0xff]  }
 0x45b   :  { %8430 = vmatpush1.bf16.msra.mxu1 %v18940_v34  ;;  %8447 = vmatprep.mubr.bf16.mxu1 %v20438_v16 }
 0x45c   :  { %v20783_v25 = vpop.f32.mrf.mxu1  ;;  %17287 = vmatprep.subr.bf16.mxu1 %v18946_v23  ;;  %8392 = vmatprep.subr.bf16.mxu0 %v18949_v48  ;;  %v18977_v48 = vld [vmem:[#allocation2 + $0x1e40] ss:$28 sps:$4 sm:$0xff]  }
 0x45e   :  { %v8125_v6 = vpop.f32.mrf.mxu1  ;;  %8393 = vmatpush2.bf16.msra.mxu0 %v18947_v51 }
 0x45f   :  { %8394 = vmatprep.subr.bf16.mxu0 %v18954_v32  ;;  %v18981_v6 = vld [vmem:[#allocation2 + $0x1748] ss:$28 sps:$4 sm:$0xff]  }
 0x460   :  { %v8126_v44 = vpop.f32.mrf.mxu1 }
 0x462   :  { %16319 = vmatmul.mubr.msk.bf16.vlgmr.msra.gmra.mxu1 %vm2335_vm0, %v20559_v19  ;;  %8395 = vmatpush2.bf16.msra.mxu0 %v18952_v56  ;;  %v18980_v56 = vld [vmem:[#allocation2 + $0x15c0] ss:$28 sps:$4 sm:$0xff]  }
 0x463   :  { %17288 = vmatpush3.bf16.msra.mxu1 %v18950_v55  ;;  %8396 = vmatprep.subr.bf16.mxu0 %v18959_v22  ;;  %v18984_v22 = vld [vmem:[#allocation2 + $0x1e10] ss:$28 sps:$4 sm:$0xff]  }
 0x464   :  { %17289 = vmatprep.subr.bf16.mxu1 %v18951_v58  ;;  %8488 = vmatprep.mubr.bf16.mxu1 %v20534_v49 }
 0x466   :  { %8397 = vmatpush2.bf16.msra.mxu0 %v18957_v12  ;;  %v18985_v12 = vld [vmem:[#allocation2 + $0x1c50] ss:$28 sps:$4 sm:$0xff]  }
 0x467   :  { %17290 = vmatpush3.bf16.msra.mxu1 %v18955_v7  ;;  %8398 = vmatprep.subr.bf16.mxu0 %v18964_v47  ;;  %v18987_v7 = vld [vmem:[#allocation2 + $0x1f98] ss:$28 sps:$4 sm:$0xff]   ;;  %v18992_v47 = vld [vmem:[#allocation2 + $0x1da0] ss:$28 sps:$4 sm:$0xff]  }
 0x468   :  { %17291 = vmatprep.subr.bf16.mxu1 %v18956_v10 }
 0x46a   :  { %8399 = vmatpush2.bf16.msra.mxu0 %v18962_v18  ;;  %v18994_v18 = vld [vmem:[#allocation2 + $0x1a20] ss:$28 sps:$4 sm:$0xff]  }
 0x46b   :  { %17292 = vmatpush3.bf16.msra.mxu1 %v18960_v43  ;;  %8400 = vmatprep.subr.bf16.mxu0 %v18969_v20  ;;  %v18996_v43 = vld [vmem:[#allocation2 + $0x1d68] ss:$28 sps:$4 sm:$0xff]  }
 0x46c   :  { %17293 = vmatprep.subr.bf16.mxu1 %v18961_v17  ;;  %v18999_v17 = vld [vmem:[#allocation2 + $0x1ef0] ss:$28 sps:$4 sm:$0xff]   ;;  %v18997_v20 = vld [vmem:[#allocation2 + $0x1ba8] ss:$28 sps:$4 sm:$0xff]  }
 0x46e   :  { %8401 = vmatpush2.bf16.msra.mxu0 %v18967_v26  ;;  %v18998_v26 = vld [vmem:[#allocation2 + $0x19e8] ss:$28 sps:$4 sm:$0xff]  }
 0x46f   :  { %17294 = vmatpush3.bf16.msra.mxu1 %v18965_v50  ;;  %8402 = vmatprep.subr.bf16.mxu0 %v18974_v28  ;;  %v19000_v50 = vld [vmem:[#allocation2 + $0x1d30] ss:$28 sps:$4 sm:$0xff]  }
 0x470   :  { %17295 = vmatprep.subr.bf16.mxu1 %v18966_v1  ;;  %v19003_v1 = vld [vmem:[#allocation2 + $0x1eb8] ss:$28 sps:$4 sm:$0xff]   ;;  %v19001_v28 = vld [vmem:[#allocation2 + $0x1b70] ss:$28 sps:$4 sm:$0xff]  }
 0x471   :  { %v8080_v34 = vpop.f32.mrf.mxu0 }
 0x472   :  { %v8081_v23 = vadd.f32 %v8080_v34, %v20777_v29  ;;  %8403 = vmatpush2.bf16.msra.mxu0 %v18972_v27  ;;  %v19002_v27 = vld [vmem:[#allocation2 + $0x19b0] ss:$28 sps:$4 sm:$0xff]   ;;  %v19011_v34 = vld [vmem:[#allocation2 + $0x1e48] ss:$28 sps:$4 sm:$0xff]  }
 0x473   :  { %17296 = vmatpush3.bf16.msra.mxu1 %v18970_v31  ;;  %v8082_v51 = vpop.f32.mrf.mxu0  ;;  %8404 = vmatprep.subr.bf16.mxu0 %v18979_v38  ;;  %v19004_v31 = vld [vmem:[#allocation2 + $0x1cf8] ss:$28 sps:$4 sm:$0xff]  }
 0x474   :  { %17297 = vmatprep.subr.bf16.mxu1 %v18971_v33  ;;  %v8122_v32 = vadd.f32 %v8121_v63, %v8081_v23  ;;  %v8083_v55 = vadd.f32 %v8082_v51, %v20780_v40  ;;  %v18982_v63 = vld [vmem:[#allocation2 + $0x1588] ss:$28 sps:$4 sm:$0xff]   ;;  %v19007_v33 = vld [vmem:[#allocation2 + $0x1e80] ss:$28 sps:$4 sm:$0xff]   ;;  %v19005_v38 = vld [vmem:[#allocation2 + $0x1b38] ss:$28 sps:$4 sm:$0xff]  }
 0x475   :  { %v8084_v58 = vpop.f32.mrf.mxu0  ;;  %v19009_v23 = vld [vmem:[#allocation2 + $0x1b00] ss:$28 sps:$4 sm:$0xff]  }
 0x476   :  { %v20794_v44 = vmax.f32 %v5800_v30, %v8122_v32  ;;  %v8124_v29 = vadd.f32 %v20783_v25, %v8083_v55  ;;  %8405 = vmatpush2.bf16.msra.mxu0 %v18977_v48  ;;  %v18986_v30 = vld [vmem:[#allocation2 + $0x1a90] ss:$28 sps:$4 sm:$0xff]   ;;  %v18989_v25 = vld [vmem:[#allocation2 + $0x1c18] ss:$28 sps:$4 sm:$0xff]   ;;  %v19012_v48 = vld [vmem:[#allocation2 + $0x1c88] ss:$28 sps:$4 sm:$0xff]  }
 0x477   :  { %17298 = vmatpush3.bf16.msra.mxu1 %v18975_v41  ;;  %17331 = vmatprep.subr.bf16.mxu0 %v18983_v60  ;;  %v8085_v10 = vpop.f32.mrf.mxu0  ;;  %v19008_v41 = vld [vmem:[#allocation2 + $0x1cc0] ss:$28 sps:$4 sm:$0xff]   ;;  %v19017_v60 = vld [vmem:[#allocation2 + $0x2534] ss:$28 sps:$4 sm:$0xff]   ;;  %v19013_v32 = vld [vmem:[#allocation2 + $0x1ac8] ss:$28 sps:$4 sm:$0xff]  }
 0x478   :  { %17299 = vmatprep.subr.bf16.mxu1 %v18976_v45  ;;  %v20800_v40 = vmax.f32 %v5801_v3, %v8124_v29  ;;  %v18993_v3 = vld [vmem:[#allocation2 + $0x1be0] ss:$28 sps:$4 sm:$0xff]   ;;  %v19006_v45 = vld [vmem:[#allocation2 + $0x1978] ss:$28 sps:$4 sm:$0xff]   ;;  %v19015_v55 = vld [vmem:[#allocation2 + $0x2530] ss:$28 sps:$4 sm:$0xff]  }
 0x479   :  { %8407 = vmatmul.mubr.bf16.vlgmr.msra.gmra.mxu0 %v20573_v21  ;;  %v19010_v51 = vld [vmem:[#allocation2 + $0x1940] ss:$28 sps:$4 sm:$0xff]   ;;  %v19019_v29 = vld [vmem:[#allocation2 + $0x24f8] ss:$28 sps:$4 sm:$0xff]   ;;  %v19018_v10 = vld [vmem:[#allocation2 + $0x2008] ss:$28 sps:$4 sm:$0xff]  }
 0x47a   :  { %17332 = vmatpush3.bf16.msra.mxu0 %v18984_v22  ;;  %8568 = vmatprep.mubr.bf16.mxu0 %v20567_v36 }
 0x47b   :  { %17300 = vmatpush3.bf16.msra.mxu1 %v18980_v56  ;;  %17333 = vmatprep.subr.bf16.mxu0 %v18987_v7  ;;  %v19021_v56 = vld [vmem:[#allocation2 + $0x24fc] ss:$28 sps:$4 sm:$0xff]   ;;  %v19024_v7 = vld [vmem:[#allocation2 + $0x24c4] ss:$28 sps:$4 sm:$0xff]  }
 0x47c   :  { %17301 = vmatprep.subr.bf16.mxu1 %v18981_v6  ;;  %v19014_v6 = vld [vmem:[#allocation2 + $0x1908] ss:$28 sps:$4 sm:$0xff]  }
 0x47e   :  { %17334 = vmatpush3.bf16.msra.mxu0 %v18988_v11 }
 0x47f   :  { %17302 = vmatpush3.bf16.msra.mxu1 %v18982_v63  ;;  %17335 = vmatprep.subr.bf16.mxu0 %v18991_v57  ;;  %v19027_v57 = vld [vmem:[#allocation2 + $0x21b4] ss:$28 sps:$4 sm:$0xff]  }
 0x480   :  { %17309 = vmatprep.subr.bf16.mxu1 %v18985_v12  ;;  %v19022_v12 = vld [vmem:[#allocation2 + $0x24c0] ss:$28 sps:$4 sm:$0xff]  }
 0x482   :  { %8489 = vmatmul.mubr.bf16.vlgmr.msra.gmra.mxu1 %v20549_v8  ;;  %17336 = vmatpush3.bf16.msra.mxu0 %v18992_v47  ;;  %v19036_v47 = vld [vmem:[#allocation2 + $0x2454] ss:$28 sps:$4 sm:$0xff]  }
 0x483   :  { %17310 = vmatpush3.bf16.msra.mxu1 %v18986_v30  ;;  %17337 = vmatprep.subr.bf16.mxu0 %v18995_v14  ;;  %v19030_v30 = vld [vmem:[#allocation2 + $0x248c] ss:$28 sps:$4 sm:$0xff]  }
 0x484   :  { %17311 = vmatprep.subr.bf16.mxu1 %v18989_v25  ;;  %8528 = vmatprep.mubr.bf16.mxu1 %v20539_v52  ;;  %v19028_v25 = vld [vmem:[#allocation2 + $0x2488] ss:$28 sps:$4 sm:$0xff]   ;;  %v19025_v14 = vld [vmem:[#allocation2 + $0x21b0] ss:$28 sps:$4 sm:$0xff]  }
 0x486   :  { %17338 = vmatpush3.bf16.msra.mxu0 %v18996_v43  ;;  %v19042_v43 = vld [vmem:[#allocation2 + $0x241c] ss:$28 sps:$4 sm:$0xff]  }
 0x487   :  { %17312 = vmatpush3.bf16.msra.mxu1 %v18990_v59  ;;  %17339 = vmatprep.subr.bf16.mxu0 %v18999_v17  ;;  %v19033_v59 = vld [vmem:[#allocation2 + $0x217c] ss:$28 sps:$4 sm:$0xff]  }
 0x488   :  { %17313 = vmatprep.subr.bf16.mxu1 %v18993_v3  ;;  %v19034_v3 = vld [vmem:[#allocation2 + $0x2450] ss:$28 sps:$4 sm:$0xff]   ;;  %v19031_v17 = vld [vmem:[#allocation2 + $0x2178] ss:$28 sps:$4 sm:$0xff]  }
 0x48a   :  { %17340 = vmatpush3.bf16.msra.mxu0 %v19000_v50  ;;  %v19048_v50 = vld [vmem:[#allocation2 + $0x23e4] ss:$28 sps:$4 sm:$0xff]  }
 0x48b   :  { %17314 = vmatpush3.bf16.msra.mxu1 %v18994_v18  ;;  %17341 = vmatprep.subr.bf16.mxu0 %v19003_v1  ;;  %v19039_v18 = vld [vmem:[#allocation2 + $0x2144] ss:$28 sps:$4 sm:$0xff]  }
 0x48c   :  { %17315 = vmatprep.subr.bf16.mxu1 %v18997_v20  ;;  %v19040_v20 = vld [vmem:[#allocation2 + $0x2418] ss:$28 sps:$4 sm:$0xff]   ;;  %v19037_v1 = vld [vmem:[#allocation2 + $0x2140] ss:$28 sps:$4 sm:$0xff]  }
 0x48e   :  { %17342 = vmatpush3.bf16.msra.mxu0 %v19004_v31  ;;  %v19054_v31 = vld [vmem:[#allocation2 + $0x23ac] ss:$28 sps:$4 sm:$0xff]  }
 0x48f   :  { %17316 = vmatpush3.bf16.msra.mxu1 %v18998_v26  ;;  %17343 = vmatprep.subr.bf16.mxu0 %v19007_v33  ;;  %v19045_v26 = vld [vmem:[#allocation2 + $0x210c] ss:$28 sps:$4 sm:$0xff]  }
 0x490   :  { %17317 = vmatprep.subr.bf16.mxu1 %v19001_v28  ;;  %v19046_v28 = vld [vmem:[#allocation2 + $0x23e0] ss:$28 sps:$4 sm:$0xff]   ;;  %v19043_v33 = vld [vmem:[#allocation2 + $0x2108] ss:$28 sps:$4 sm:$0xff]  }
 0x492   :  { %17344 = vmatpush3.bf16.msra.mxu0 %v19008_v41 }
 0x493   :  { %17318 = vmatpush3.bf16.msra.mxu1 %v19002_v27  ;;  %17345 = vmatprep.subr.bf16.mxu0 %v19011_v34  ;;  %v19052_v34 = vld [vmem:[#allocation2 + $0x23a8] ss:$28 sps:$4 sm:$0xff]  }
 0x494   :  { %17319 = vmatprep.subr.bf16.mxu1 %v19005_v38  ;;  %v19051_v38 = vld [vmem:[#allocation2 + $0x20d4] ss:$28 sps:$4 sm:$0xff]  }
 0x496   :  { %17346 = vmatpush3.bf16.msra.mxu0 %v19012_v48  ;;  %v19049_v48 = vld [vmem:[#allocation2 + $0x20d0] ss:$28 sps:$4 sm:$0xff]  }
 0x497   :  { %17320 = vmatpush3.bf16.msra.mxu1 %v19006_v45  ;;  %10821 = vmatprep.subr.bf16.mxu0 %v19017_v60  ;;  %v19060_v45 = vld [vmem:[#allocation2 + $0x26f4] ss:$28 sps:$4 sm:$0xff]  }
 0x498   :  { %17321 = vmatprep.subr.bf16.mxu1 %v19009_v23 }
 0x499   :  { %8569 = vmatmul.mubr.bf16.vlgmr.msra.gmra.mxu0 %v20573_v21 }
 0x49a   :  { %v8162_v58 = vpop.f32.mrf.mxu1  ;;  %10822 = vmatpush1.bf16.msra.mxu0 %v19015_v55  ;;  %10853 = vmatprep.mubr.bf16.mxu0 %v20539_v52  ;;  %v19058_v55 = vld [vmem:[#allocation2 + $0x26f0] ss:$28 sps:$4 sm:$0xff]  }
 0x49b   :  { %17322 = vmatpush3.bf16.msra.mxu1 %v19010_v51  ;;  %10823 = vmatprep.subr.bf16.mxu0 %v19021_v56  ;;  %v19057_v51 = vld [vmem:[#allocation2 + $0x209c] ss:$28 sps:$4 sm:$0xff]  }
 0x49c   :  { %v8164_v22 = vpop.f32.mrf.mxu1  ;;  %17323 = vmatprep.subr.bf16.mxu1 %v19013_v32  ;;  %v19066_v56 = vld [vmem:[#allocation2 + $0x26bc] ss:$28 sps:$4 sm:$0xff]  }
 0x49e   :  { %v8166_v63 = vpop.f32.mrf.mxu1  ;;  %10824 = vmatpush1.bf16.msra.mxu0 %v19019_v29  ;;  %v19063_v29 = vld [vmem:[#allocation2 + $0x2064] ss:$28 sps:$4 sm:$0xff]  }
 0x49f   :  { %17324 = vmatpush3.bf16.msra.mxu1 %v19014_v6  ;;  %10825 = vmatprep.subr.bf16.mxu0 %v19024_v7  ;;  %v19072_v63 = vld [vmem:[#allocation2 + $0x2684] ss:$28 sps:$4 sm:$0xff]  }
 0x4a0   :  { %v8167_v11 = vpop.f32.mrf.mxu1  ;;  %17475 = vmatprep.subr.bf16.mxu1 %v20439_v37 }
 0x4a1   :  { %v19069_v11 = vld [vmem:[#allocation2 + $0x202c] ss:$28 sps:$4 sm:$0xff]  }
 0x4a2   :  { %8529 = vmatmul.mubr.bf16.vlgmr.msra.gmra.mxu1 %v20551_v9  ;;  %10826 = vmatpush1.bf16.msra.mxu0 %v19022_v12  ;;  %v19061_v12 = vld [vmem:[#allocation2 + $0x2060] ss:$28 sps:$4 sm:$0xff]  }
 0x4a3   :  { %17476 = vmatpush3.bf16.msra.mxu1 %v19018_v10  ;;  %17477 = vmatprep.mubr.msk.bf16.mxu1 %vm20440_vm1, %v20439_v37  ;;  %v19064_v10 = vld [vmem:[#allocation2 + $0x26b8] ss:$28 sps:$4 sm:$0xff]  }
 0x4a4   :  { %10780 = vmatprep.subr.bf16.mxu1 %v19027_v57  ;;  %10827 = vmatprep.subr.bf16.mxu0 %v19030_v30  ;;  %v19070_v57 = vld [vmem:[#allocation2 + $0x2680] ss:$28 sps:$4 sm:$0xff]  }
 0x4a6   :  { %10828 = vmatpush1.bf16.msra.mxu0 %v19028_v25  ;;  %v19078_v25 = vld [vmem:[#allocation2 + $0x264c] ss:$28 sps:$4 sm:$0xff]  }
 0x4a7   :  { %10829 = vmatprep.subr.bf16.mxu0 %v19036_v47 }
 0x4aa   :  { %17478 = vmatmul.mubr.msk.bf16.vlgmr.msra.gmra.mxu1 %vm2335_vm0, %v20559_v19  ;;  %10830 = vmatpush1.bf16.msra.mxu0 %v19034_v3  ;;  %v19075_v3 = vld [vmem:[#allocation2 + $0x2374] ss:$28 sps:$4 sm:$0xff]  }
 0x4ab   :  { %10781 = vmatpush1.bf16.msra.mxu1 %v19025_v14  ;;  %10831 = vmatprep.subr.bf16.mxu0 %v19042_v43  ;;  %v19067_v14 = vld [vmem:[#allocation2 + $0x2028] ss:$28 sps:$4 sm:$0xff]   ;;  %v19084_v43 = vld [vmem:[#allocation2 + $0x2614] ss:$28 sps:$4 sm:$0xff]  }
 0x4ac   :  { %10782 = vmatprep.subr.bf16.mxu1 %v19033_v59  ;;  %10812 = vmatprep.mubr.bf16.mxu1 %v20534_v49  ;;  %v19076_v59 = vld [vmem:[#allocation2 + $0x2648] ss:$28 sps:$4 sm:$0xff]  }
 0x4ae   :  { %10832 = vmatpush1.bf16.msra.mxu0 %v19040_v20  ;;  %v19081_v20 = vld [vmem:[#allocation2 + $0x233c] ss:$28 sps:$4 sm:$0xff]  }
 0x4af   :  { %10783 = vmatpush1.bf16.msra.mxu1 %v19031_v17  ;;  %10833 = vmatprep.subr.bf16.mxu0 %v19048_v50  ;;  %v19073_v17 = vld [vmem:[#allocation2 + $0x2370] ss:$28 sps:$4 sm:$0xff]   ;;  %v19090_v50 = vld [vmem:[#allocation2 + $0x25dc] ss:$28 sps:$4 sm:$0xff]  }
 0x4b0   :  { %10784 = vmatprep.subr.bf16.mxu1 %v19039_v18  ;;  %v19082_v18 = vld [vmem:[#allocation2 + $0x2610] ss:$28 sps:$4 sm:$0xff]  }
 0x4b1   :  { %v8203_v27 = vpop.f32.mrf.mxu0 }
 0x4b2   :  { %v20815_v41 = vadd.f32 %v8203_v27, %v8162_v58  ;;  %10834 = vmatpush1.bf16.msra.mxu0 %v19046_v28  ;;  %v19055_v58 = vld [vmem:[#allocation2 + $0x2098] ss:$28 sps:$4 sm:$0xff]   ;;  %v19087_v28 = vld [vmem:[#allocation2 + $0x2304] ss:$28 sps:$4 sm:$0xff]  }
 0x4b3   :  { %10785 = vmatpush1.bf16.msra.mxu1 %v19037_v1  ;;  %v8205_v23 = vpop.f32.mrf.mxu0  ;;  %10835 = vmatprep.subr.bf16.mxu0 %v19054_v31  ;;  %v19079_v1 = vld [vmem:[#allocation2 + $0x2338] ss:$28 sps:$4 sm:$0xff]   ;;  %v19096_v31 = vld [vmem:[#allocation2 + $0x25a4] ss:$28 sps:$4 sm:$0xff]  }
 0x4b4   :  { %10786 = vmatprep.subr.bf16.mxu1 %v19045_v26  ;;  %v20817_v60 = vadd.f32 %v8205_v23, %v8164_v22  ;;  %v19088_v26 = vld [vmem:[#allocation2 + $0x25d8] ss:$28 sps:$4 sm:$0xff]   ;;  %v19094_v27 = vld [vmem:[#allocation2 + $0x25a0] ss:$28 sps:$4 sm:$0xff]   ;;  %v19100_v23 = vld [vmem:[#allocation2 + $0x2568] ss:$28 sps:$4 sm:$0xff]  }
 0x4b5   :  { %v8207_v32 = vpop.f32.mrf.mxu0 }
 0x4b6   :  { %10836 = vmatpush1.bf16.msra.mxu0 %v19052_v34  ;;  %v19102_v34 = vld [vmem:[#allocation2 + $0x256c] ss:$28 sps:$4 sm:$0xff]  }
 0x4b7   :  { %10787 = vmatpush1.bf16.msra.mxu1 %v19043_v33  ;;  %10837 = vmatprep.subr.bf16.mxu0 %v19060_v45  ;;  %v8208_v6 = vpop.f32.mrf.mxu0  ;;  %v19085_v33 = vld [vmem:[#allocation2 + $0x2300] ss:$28 sps:$4 sm:$0xff]   ;;  %v19091_v45 = vld [vmem:[#allocation2 + $0x22c8] ss:$28 sps:$4 sm:$0xff]   ;;  %v19097_v32 = vld [vmem:[#allocation2 + $0x2290] ss:$28 sps:$4 sm:$0xff]  }
 0x4b8   :  { %10788 = vmatprep.subr.bf16.mxu1 %v19051_v38  ;;  %v19093_v38 = vld [vmem:[#allocation2 + $0x22cc] ss:$28 sps:$4 sm:$0xff]   ;;  %v19117_v6 = vld [vmem:[#allocation2 + $0x21bc] ss:$28 sps:$4 sm:$0xff]  }
 0x4b9   :  { %v20819_v7 = vpop.f32.mrf.mxu0 }
 0x4ba   :  { %10838 = vmatpush2.bf16.msra.mxu0 %v19058_v55  ;;  %v19109_v55 = vld [vmem:[#allocation2 + $0x2aa8] ss:$28 sps:$4 sm:$0xff]  }
 0x4bb   :  { %10789 = vmatpush1.bf16.msra.mxu1 %v19049_v48  ;;  %10839 = vmatprep.subr.bf16.mxu0 %v19066_v56  ;;  %v20821_v22 = vpop.f32.mrf.mxu0  ;;  %v19099_v48 = vld [vmem:[#allocation2 + $0x2294] ss:$28 sps:$4 sm:$0xff]   ;;  %v19105_v56 = vld [vmem:[#allocation2 + $0x225c] ss:$28 sps:$4 sm:$0xff]  }
 0x4bc   :  { %10790 = vmatprep.subr.bf16.mxu1 %v19057_v51  ;;  %v19111_v51 = vld [vmem:[#allocation2 + $0x2aac] ss:$28 sps:$4 sm:$0xff]  }
 0x4bd   :  { %v8289_v30 = vpop.f32.mrf.mxu0 }
 0x4be   :  { %10840 = vmatpush2.bf16.msra.mxu0 %v19064_v10  ;;  %v19103_v10 = vld [vmem:[#allocation2 + $0x2258] ss:$28 sps:$4 sm:$0xff]  }
 0x4bf   :  { %10791 = vmatpush1.bf16.msra.mxu1 %v19055_v58  ;;  %10841 = vmatprep.subr.bf16.mxu0 %v19072_v63  ;;  %v8290_v47 = vpop.f32.mrf.mxu0 }
 0x4c0   :  { %10792 = vmatprep.subr.bf16.mxu1 %v19063_v29  ;;  %v19106_v47 = vld [vmem:[#allocation2 + $0x2220] ss:$28 sps:$4 sm:$0xff]  }
 0x4c2   :  { %10842 = vmatpush2.bf16.msra.mxu0 %v19070_v57 }
 0x4c3   :  { %10793 = vmatpush1.bf16.msra.mxu1 %v19061_v12  ;;  %10843 = vmatprep.subr.bf16.mxu0 %v19078_v25  ;;  %v19108_v12 = vld [vmem:[#allocation2 + $0x2224] ss:$28 sps:$4 sm:$0xff]  }
 0x4c4   :  { %10794 = vmatprep.subr.bf16.mxu1 %v19069_v11 }
 0x4c6   :  { %10844 = vmatpush2.bf16.msra.mxu0 %v19076_v59 }
 0x4c7   :  { %10795 = vmatpush1.bf16.msra.mxu1 %v19067_v14  ;;  %10845 = vmatprep.subr.bf16.mxu0 %v19084_v43  ;;  %v19115_v14 = vld [vmem:[#allocation2 + $0x21b8] ss:$28 sps:$4 sm:$0xff]   ;;  %v19123_v43 = vld [vmem:[#allocation2 + $0x2184] ss:$28 sps:$4 sm:$0xff]  }
 0x4c8   :  { %10796 = vmatprep.subr.bf16.mxu1 %v19075_v3  ;;  %v19114_v3 = vld [vmem:[#allocation2 + $0x21ec] ss:$28 sps:$4 sm:$0xff]  }
 0x4ca   :  { %10846 = vmatpush2.bf16.msra.mxu0 %v19082_v18  ;;  %v19133_v18 = vld [vmem:[#allocation2 + $0x2110] ss:$28 sps:$4 sm:$0xff]  }
 0x4cb   :  { %10797 = vmatpush2.bf16.msra.mxu1 %v19073_v17  ;;  %10847 = vmatprep.subr.bf16.mxu0 %v19090_v50  ;;  %v19127_v17 = vld [vmem:[#allocation2 + $0x2148] ss:$28 sps:$4 sm:$0xff]   ;;  %v19141_v50 = vld [vmem:[#allocation2 + $0x20dc] ss:$28 sps:$4 sm:$0xff]  }
 0x4cc   :  { %10798 = vmatprep.subr.bf16.mxu1 %v19081_v20  ;;  %v19132_v20 = vld [vmem:[#allocation2 + $0x2844] ss:$28 sps:$4 sm:$0xff]  }
 0x4ce   :  { %10848 = vmatpush2.bf16.msra.mxu0 %v19088_v26  ;;  %v19139_v26 = vld [vmem:[#allocation2 + $0x20d8] ss:$28 sps:$4 sm:$0xff]  }
 0x4cf   :  { %10799 = vmatpush2.bf16.msra.mxu1 %v19079_v1  ;;  %10849 = vmatprep.subr.bf16.mxu0 %v19096_v31  ;;  %v19130_v1 = vld [vmem:[#allocation2 + $0x2840] ss:$28 sps:$4 sm:$0xff]  }
 0x4d0   :  { %10800 = vmatprep.subr.bf16.mxu1 %v19087_v28  ;;  %v19138_v28 = vld [vmem:[#allocation2 + $0x280c] ss:$28 sps:$4 sm:$0xff]   ;;  %v19147_v31 = vld [vmem:[#allocation2 + $0x20a4] ss:$28 sps:$4 sm:$0xff]  }
 0x4d2   :  { %10850 = vmatpush2.bf16.msra.mxu0 %v19094_v27  ;;  %v19145_v27 = vld [vmem:[#allocation2 + $0x20a0] ss:$28 sps:$4 sm:$0xff]  }
 0x4d3   :  { %10801 = vmatpush2.bf16.msra.mxu1 %v19085_v33  ;;  %10851 = vmatprep.subr.bf16.mxu0 %v19102_v34  ;;  %v19136_v33 = vld [vmem:[#allocation2 + $0x2808] ss:$28 sps:$4 sm:$0xff]  }
 0x4d4   :  { %10802 = vmatprep.subr.bf16.mxu1 %v19093_v38  ;;  %v19144_v38 = vld [vmem:[#allocation2 + $0x27d4] ss:$28 sps:$4 sm:$0xff]   ;;  %v19153_v34 = vld [vmem:[#allocation2 + $0x206c] ss:$28 sps:$4 sm:$0xff]  }
 0x4d6   :  { %10852 = vmatpush2.bf16.msra.mxu0 %v19100_v23  ;;  %v19151_v23 = vld [vmem:[#allocation2 + $0x2068] ss:$28 sps:$4 sm:$0xff]  }
 0x4d7   :  { %10803 = vmatpush2.bf16.msra.mxu1 %v19091_v45  ;;  %10917 = vmatprep.subr.bf16.mxu0 %v19111_v51  ;;  %v19142_v45 = vld [vmem:[#allocation2 + $0x27d0] ss:$28 sps:$4 sm:$0xff]  }
 0x4d8   :  { %10804 = vmatprep.subr.bf16.mxu1 %v19099_v48  ;;  %v19150_v48 = vld [vmem:[#allocation2 + $0x279c] ss:$28 sps:$4 sm:$0xff]   ;;  %v19159_v51 = vld [vmem:[#allocation2 + $0x2034] ss:$28 sps:$4 sm:$0xff]  }
 0x4d9   :  { %10854 = vmatmul.mubr.bf16.vlgmr.msra.gmra.mxu0 %v20551_v9 }
 0x4da   :  { %v8244_v58 = vpop.f32.mrf.mxu1  ;;  %10918 = vmatpush1.bf16.msra.mxu0 %v19109_v55  ;;  %10935 = vmatprep.mubr.bf16.mxu0 %v20438_v16  ;;  %v19148_v55 = vld [vmem:[#allocation2 + $0x2798] ss:$28 sps:$4 sm:$0xff]  }
 0x4db   :  { %10805 = vmatpush2.bf16.msra.mxu1 %v19097_v32  ;;  %v8245_v29 = vadd.f32 %v8244_v58, %v20815_v41  ;;  %10944 = vmatprep.subr.bf16.mxu0 %v19117_v6  ;;  %v19156_v6 = vld [vmem:[#allocation2 + $0x2764] ss:$28 sps:$4 sm:$0xff]   ;;  %v19165_v58 = vld [vmem:[#allocation2 + $0x237c] ss:$28 sps:$4 sm:$0xff]  }
 0x4dc   :  { %v8246_v63 = vpop.f32.mrf.mxu1  ;;  %10806 = vmatprep.subr.bf16.mxu1 %v19105_v56  ;;  %v19157_v56 = vld [vmem:[#allocation2 + $0x2030] ss:$28 sps:$4 sm:$0xff]  }
 0x4dd   :  { %v8286_v11 = vadd.f32 %v20819_v7, %v8245_v29  ;;  %v8247_v57 = vadd.f32 %v8246_v63, %v20817_v60  ;;  %v19129_v7 = vld [vmem:[#allocation2 + $0x214c] ss:$28 sps:$4 sm:$0xff]   ;;  %v19154_v63 = vld [vmem:[#allocation2 + $0x2760] ss:$28 sps:$4 sm:$0xff]  }
 0x4de   :  { %v8248_v30 = vpop.f32.mrf.mxu1 }
 0x4df   :  { %v20831_v25 = vmax.f32 %v5802_v4, %v8286_v11  ;;  %v8288_v41 = vadd.f32 %v20821_v22, %v8247_v57  ;;  %10807 = vmatpush2.bf16.msra.mxu1 %v19103_v10  ;;  %v19120_v4 = vld [vmem:[#allocation2 + $0x28b4] ss:$28 sps:$4 sm:$0xff]   ;;  %v19162_v11 = vld [vmem:[#allocation2 + $0x272c] ss:$28 sps:$4 sm:$0xff]   ;;  %v19171_v57 = vld [vmem:[#allocation2 + $0x2344] ss:$28 sps:$4 sm:$0xff]  }
 0x4e0   :  { %v8249_v59 = vpop.f32.mrf.mxu1  ;;  %10808 = vmatprep.subr.bf16.mxu1 %v19108_v12  ;;  %v19118_v22 = vld [vmem:[#allocation2 + $0x28b0] ss:$28 sps:$4 sm:$0xff]   ;;  %v19163_v12 = vld [vmem:[#allocation2 + $0x2378] ss:$28 sps:$4 sm:$0xff]  }
 0x4e1   :  { %v20837_v60 = vmax.f32 %v5803_v13, %v8288_v41  ;;  %16664 = vmatmul.mubr.msk.bf16.vlgmr.msra.gmra.mxu0 %vm2335_vm0, %v20559_v19  ;;  %v19124_v13 = vld [vmem:[#allocation2 + $0x2878] ss:$28 sps:$4 sm:$0xff]   ;;  %v19160_v41 = vld [vmem:[#allocation2 + $0x2728] ss:$28 sps:$4 sm:$0xff]  }
 0x4e2   :  { %10945 = vmatpush1.bf16.msra.mxu0 %v19115_v14  ;;  %10976 = vmatprep.mubr.bf16.mxu0 %v20534_v49  ;;  %v19168_v14 = vld [vmem:[#allocation2 + $0x2a74] ss:$28 sps:$4 sm:$0xff]   ;;  %v19177_v59 = vld [vmem:[#allocation2 + $0x230c] ss:$28 sps:$4 sm:$0xff]  }
 0x4e3   :  { %10809 = vmatpush2.bf16.msra.mxu1 %v19106_v47  ;;  %10946 = vmatprep.subr.bf16.mxu0 %v19123_v43  ;;  %v19169_v47 = vld [vmem:[#allocation2 + $0x2340] ss:$28 sps:$4 sm:$0xff]   ;;  %v19175_v43 = vld [vmem:[#allocation2 + $0x2308] ss:$28 sps:$4 sm:$0xff]  }
 0x4e4   :  { %10810 = vmatprep.subr.bf16.mxu1 %v19114_v3  ;;  %v19166_v3 = vld [vmem:[#allocation2 + $0x2a70] ss:$28 sps:$4 sm:$0xff]  }
 0x4e6   :  { %10947 = vmatpush1.bf16.msra.mxu0 %v19121_v62  ;;  %v19183_v62 = vld [vmem:[#allocation2 + $0x22d4] ss:$28 sps:$4 sm:$0xff]  }
 0x4e7   :  { %10811 = vmatpush2.bf16.msra.mxu1 %v19112_v61  ;;  %10948 = vmatprep.subr.bf16.mxu0 %v19129_v7  ;;  %v19174_v61 = vld [vmem:[#allocation2 + $0x2a3c] ss:$28 sps:$4 sm:$0xff]   ;;  %v19181_v7 = vld [vmem:[#allocation2 + $0x22d0] ss:$28 sps:$4 sm:$0xff]  }
 0x4e8   :  { %10862 = vmatprep.subr.bf16.mxu1 %v19120_v4  ;;  %v19172_v4 = vld [vmem:[#allocation2 + $0x2a38] ss:$28 sps:$4 sm:$0xff]  }
 0x4ea   :  { %10813 = vmatmul.mubr.bf16.vlgmr.msra.gmra.mxu1 %v20549_v8  ;;  %10949 = vmatpush1.bf16.msra.mxu0 %v19127_v17  ;;  %v19189_v17 = vld [vmem:[#allocation2 + $0x229c] ss:$28 sps:$4 sm:$0xff]  }
 0x4eb   :  { %10863 = vmatpush1.bf16.msra.mxu1 %v19118_v22  ;;  %10950 = vmatprep.subr.bf16.mxu0 %v19135_v5  ;;  %v19180_v22 = vld [vmem:[#allocation2 + $0x2a04] ss:$28 sps:$4 sm:$0xff]   ;;  %v19187_v5 = vld [vmem:[#allocation2 + $0x2298] ss:$28 sps:$4 sm:$0xff]  }
 0x4ec   :  { %10864 = vmatprep.subr.bf16.mxu1 %v19126_v2  ;;  %10894 = vmatprep.mubr.bf16.mxu1 %v20567_v36  ;;  %v19178_v2 = vld [vmem:[#allocation2 + $0x2a00] ss:$28 sps:$4 sm:$0xff]  }
 0x4ee   :  { %10951 = vmatpush1.bf16.msra.mxu0 %v19133_v18  ;;  %v19195_v18 = vld [vmem:[#allocation2 + $0x2264] ss:$28 sps:$4 sm:$0xff]  }
 0x4ef   :  { %10865 = vmatpush1.bf16.msra.mxu1 %v19124_v13  ;;  %10952 = vmatprep.subr.bf16.mxu0 %v19141_v50  ;;  %v19186_v13 = vld [vmem:[#allocation2 + $0x29cc] ss:$28 sps:$4 sm:$0xff]   ;;  %v19193_v50 = vld [vmem:[#allocation2 + $0x2260] ss:$28 sps:$4 sm:$0xff]  }
 0x4f0   :  { %10866 = vmatprep.subr.bf16.mxu1 %v19132_v20  ;;  %v19184_v20 = vld [vmem:[#allocation2 + $0x29c8] ss:$28 sps:$4 sm:$0xff]  }
 0x4f2   :  { %10953 = vmatpush1.bf16.msra.mxu0 %v19139_v26  ;;  %v19201_v26 = vld [vmem:[#allocation2 + $0x222c] ss:$28 sps:$4 sm:$0xff]  }
 0x4f3   :  { %10867 = vmatpush1.bf16.msra.mxu1 %v19130_v1  ;;  %10954 = vmatprep.subr.bf16.mxu0 %v19147_v31  ;;  %v19192_v1 = vld [vmem:[#allocation2 + $0x2994] ss:$28 sps:$4 sm:$0xff]   ;;  %v19199_v31 = vld [vmem:[#allocation2 + $0x2228] ss:$28 sps:$4 sm:$0xff]  }
 0x4f4   :  { %10868 = vmatprep.subr.bf16.mxu1 %v19138_v28  ;;  %v19190_v28 = vld [vmem:[#allocation2 + $0x2990] ss:$28 sps:$4 sm:$0xff]  }
 0x4f6   :  { %10955 = vmatpush1.bf16.msra.mxu0 %v19145_v27  ;;  %v19207_v27 = vld [vmem:[#allocation2 + $0x21f4] ss:$28 sps:$4 sm:$0xff]  }
 0x4f7   :  { %10869 = vmatpush1.bf16.msra.mxu1 %v19136_v33  ;;  %10956 = vmatprep.subr.bf16.mxu0 %v19153_v34  ;;  %v19198_v33 = vld [vmem:[#allocation2 + $0x295c] ss:$28 sps:$4 sm:$0xff]  }
 0x4f8   :  { %10870 = vmatprep.subr.bf16.mxu1 %v19144_v38 }
 0x4f9   :  { %v20844_v32 = vpop.f32.mrf.mxu0 }
 0x4fa   :  { %10957 = vmatpush1.bf16.msra.mxu0 %v19151_v23  ;;  %v19205_v23 = vld [vmem:[#allocation2 + $0x21f0] ss:$28 sps:$4 sm:$0xff]  }
 0x4fb   :  { %10871 = vmatpush1.bf16.msra.mxu1 %v19142_v45  ;;  %10958 = vmatprep.subr.bf16.mxu0 %v19159_v51  ;;  %v20846_v29 = vpop.f32.mrf.mxu0  ;;  %v19196_v45 = vld [vmem:[#allocation2 + $0x2958] ss:$28 sps:$4 sm:$0xff]   ;;  %v19204_v51 = vld [vmem:[#allocation2 + $0x2924] ss:$28 sps:$4 sm:$0xff]  }
 0x4fc   :  { %10872 = vmatprep.subr.bf16.mxu1 %v19150_v48 }
 0x4fd   :  { %v8330_v10 = vpop.f32.mrf.mxu0 }
 0x4fe   :  { %10959 = vmatpush1.bf16.msra.mxu0 %v19157_v56  ;;  %v19211_v10 = vld [vmem:[#allocation2 + $0x28b8] ss:$28 sps:$4 sm:$0xff]  }
 0x4ff   :  { %10873 = vmatpush1.bf16.msra.mxu1 %v19148_v55  ;;  %10960 = vmatprep.subr.bf16.mxu0 %v19165_v58  ;;  %v8331_v30 = vpop.f32.mrf.mxu0  ;;  %v19213_v55 = vld [vmem:[#allocation2 + $0x28bc] ss:$28 sps:$4 sm:$0xff]  }
 0x500   :  { %10874 = vmatprep.subr.bf16.mxu1 %v19156_v6  ;;  %v19202_v58 = vld [vmem:[#allocation2 + $0x2920] ss:$28 sps:$4 sm:$0xff]  }
 0x501   :  { %v19217_v30 = vld [vmem:[#allocation2 + $0x2880] ss:$28 sps:$4 sm:$0xff]  }
 0x502   :  { %10961 = vmatpush2.bf16.msra.mxu0 %v19163_v12  ;;  %v19219_v12 = vld [vmem:[#allocation2 + $0x2884] ss:$28 sps:$4 sm:$0xff]  }
 0x503   :  { %10875 = vmatpush1.bf16.msra.mxu1 %v19154_v63  ;;  %10962 = vmatprep.subr.bf16.mxu0 %v19171_v57  ;;  %v19208_v57 = vld [vmem:[#allocation2 + $0x28e8] ss:$28 sps:$4 sm:$0xff]  }
 0x504   :  { %10876 = vmatprep.subr.bf16.mxu1 %v19162_v11 }
 0x506   :  { %10963 = vmatpush2.bf16.msra.mxu0 %v19169_v47  ;;  %v19225_v47 = vld [vmem:[#allocation2 + $0x284c] ss:$28 sps:$4 sm:$0xff]  }
 0x507   :  { %10877 = vmatpush1.bf16.msra.mxu1 %v19160_v41  ;;  %10964 = vmatprep.subr.bf16.mxu0 %v19177_v59  ;;  %v19216_v41 = vld [vmem:[#allocation2 + $0x253c] ss:$28 sps:$4 sm:$0xff]  }
 0x508   :  { %10878 = vmatprep.subr.bf16.mxu1 %v19168_v14  ;;  %v19214_v59 = vld [vmem:[#allocation2 + $0x2538] ss:$28 sps:$4 sm:$0xff]  }
 0x50a   :  { %10965 = vmatpush2.bf16.msra.mxu0 %v19175_v43 }
 0x50b   :  { %10879 = vmatpush2.bf16.msra.mxu1 %v19166_v3  ;;  %10966 = vmatprep.subr.bf16.mxu0 %v19183_v62  ;;  %v19223_v3 = vld [vmem:[#allocation2 + $0x2848] ss:$28 sps:$4 sm:$0xff]   ;;  %v19231_v62 = vld [vmem:[#allocation2 + $0x2814] ss:$28 sps:$4 sm:$0xff]  }
 0x50c   :  { %10880 = vmatprep.subr.bf16.mxu1 %v19174_v61  ;;  %v19222_v61 = vld [vmem:[#allocation2 + $0x2504] ss:$28 sps:$4 sm:$0xff]  }
 0x50e   :  { %10967 = vmatpush2.bf16.msra.mxu0 %v19181_v7  ;;  %v19229_v7 = vld [vmem:[#allocation2 + $0x2810] ss:$28 sps:$4 sm:$0xff]  }
 0x50f   :  { %10881 = vmatpush2.bf16.msra.mxu1 %v19172_v4  ;;  %10968 = vmatprep.subr.bf16.mxu0 %v19189_v17  ;;  %v19220_v4 = vld [vmem:[#allocation2 + $0x2500] ss:$28 sps:$4 sm:$0xff]  }
 0x510   :  { %10882 = vmatprep.subr.bf16.mxu1 %v19180_v22  ;;  %v19228_v22 = vld [vmem:[#allocation2 + $0x24cc] ss:$28 sps:$4 sm:$0xff]   ;;  %v19237_v17 = vld [vmem:[#allocation2 + $0x27dc] ss:$28 sps:$4 sm:$0xff]  }
 0x512   :  { %10969 = vmatpush2.bf16.msra.mxu0 %v19187_v5  ;;  %v19235_v5 = vld [vmem:[#allocation2 + $0x27d8] ss:$28 sps:$4 sm:$0xff]  }
 0x513   :  { %10883 = vmatpush2.bf16.msra.mxu1 %v19178_v2  ;;  %10970 = vmatprep.subr.bf16.mxu0 %v19195_v18  ;;  %v19226_v2 = vld [vmem:[#allocation2 + $0x24c8] ss:$28 sps:$4 sm:$0xff]  }
 0x514   :  { %10884 = vmatprep.subr.bf16.mxu1 %v19186_v13  ;;  %v19234_v13 = vld [vmem:[#allocation2 + $0x2494] ss:$28 sps:$4 sm:$0xff]   ;;  %v19243_v18 = vld [vmem:[#allocation2 + $0x27a4] ss:$28 sps:$4 sm:$0xff]  }
 0x516   :  { %10971 = vmatpush2.bf16.msra.mxu0 %v19193_v50  ;;  %v19241_v50 = vld [vmem:[#allocation2 + $0x27a0] ss:$28 sps:$4 sm:$0xff]  }
 0x517   :  { %10885 = vmatpush2.bf16.msra.mxu1 %v19184_v20  ;;  %10972 = vmatprep.subr.bf16.mxu0 %v19201_v26  ;;  %v19232_v20 = vld [vmem:[#allocation2 + $0x2490] ss:$28 sps:$4 sm:$0xff]  }
 0x518   :  { %10886 = vmatprep.subr.bf16.mxu1 %v19192_v1  ;;  %v19240_v1 = vld [vmem:[#allocation2 + $0x245c] ss:$28 sps:$4 sm:$0xff]   ;;  %v19249_v26 = vld [vmem:[#allocation2 + $0x276c] ss:$28 sps:$4 sm:$0xff]  }
 0x51a   :  { %v8367_v38 = vpop.f32.mrf.mxu1  ;;  %10973 = vmatpush2.bf16.msra.mxu0 %v19199_v31  ;;  %v19247_v31 = vld [vmem:[#allocation2 + $0x2768] ss:$28 sps:$4 sm:$0xff]  }
 0x51b   :  { %10887 = vmatpush2.bf16.msra.mxu1 %v19190_v28  ;;  %v20849_v34 = vadd.f32 %v8367_v38, %v20844_v32  ;;  %10974 = vmatprep.subr.bf16.mxu0 %v19207_v27  ;;  %v19210_v32 = vld [vmem:[#allocation2 + $0x28ec] ss:$28 sps:$4 sm:$0xff]   ;;  %v19238_v28 = vld [vmem:[#allocation2 + $0x2458] ss:$28 sps:$4 sm:$0xff]  }
 0x51c   :  { %v8369_v48 = vpop.f32.mrf.mxu1  ;;  %10888 = vmatprep.subr.bf16.mxu1 %v19198_v33  ;;  %v19246_v33 = vld [vmem:[#allocation2 + $0x2424] ss:$28 sps:$4 sm:$0xff]   ;;  %v19255_v27 = vld [vmem:[#allocation2 + $0x2734] ss:$28 sps:$4 sm:$0xff]  }
 0x51d   :  { %v20852_v56 = vadd.f32 %v8369_v48, %v20846_v29  ;;  %v19253_v48 = vld [vmem:[#allocation2 + $0x2730] ss:$28 sps:$4 sm:$0xff]  }
 0x51e   :  { %v8371_v6 = vpop.f32.mrf.mxu1  ;;  %10975 = vmatpush2.bf16.msra.mxu0 %v19205_v23 }
 0x51f   :  { %10889 = vmatpush2.bf16.msra.mxu1 %v19196_v45  ;;  %11026 = vmatprep.subr.bf16.mxu0 %v19213_v55  ;;  %v19244_v45 = vld [vmem:[#allocation2 + $0x2420] ss:$28 sps:$4 sm:$0xff]   ;;  %v19252_v55 = vld [vmem:[#allocation2 + $0x23ec] ss:$28 sps:$4 sm:$0xff]  }
 0x520   :  { %v8372_v63 = vpop.f32.mrf.mxu1  ;;  %10890 = vmatprep.subr.bf16.mxu1 %v19204_v51  ;;  %v19261_v6 = vld [vmem:[#allocation2 + $0x2a7c] ss:$28 sps:$4 sm:$0xff]  }
 0x521   :  { %10977 = vmatmul.mubr.bf16.vlgmr.msra.gmra.mxu0 %v20549_v8 }
 0x522   :  { %v20854_v11 = vpop.f32.mrf.mxu1  ;;  %11027 = vmatpush1.bf16.msra.mxu0 %v19211_v10  ;;  %11058 = vmatprep.mubr.bf16.mxu0 %v20567_v36 }
 0x523   :  { %10891 = vmatpush2.bf16.msra.mxu1 %v19202_v58  ;;  %11028 = vmatprep.subr.bf16.mxu0 %v19219_v12  ;;  %v19250_v12 = vld [vmem:[#allocation2 + $0x23e8] ss:$28 sps:$4 sm:$0xff]  }
 0x524   :  { %v20857_v29 = vpop.f32.mrf.mxu1  ;;  %10892 = vmatprep.subr.bf16.mxu1 %v19210_v32 }
 0x526   :  { %v8453_v14 = vpop.f32.mrf.mxu1  ;;  %11029 = vmatpush1.bf16.msra.mxu0 %v19217_v30  ;;  %v19258_v30 = vld [vmem:[#allocation2 + $0x23b4] ss:$28 sps:$4 sm:$0xff]  }
 0x527   :  { %10893 = vmatpush2.bf16.msra.mxu1 %v19208_v57  ;;  %11030 = vmatprep.subr.bf16.mxu0 %v19225_v47  ;;  %v19259_v57 = vld [vmem:[#allocation2 + $0x2a78] ss:$28 sps:$4 sm:$0xff]   ;;  %v19273_v14 = vld [vmem:[#allocation2 + $0x2a0c] ss:$28 sps:$4 sm:$0xff]  }
 0x528   :  { %v8454_v43 = vpop.f32.mrf.mxu1  ;;  %10985 = vmatprep.subr.bf16.mxu1 %v19216_v41  ;;  %v19267_v41 = vld [vmem:[#allocation2 + $0x2a44] ss:$28 sps:$4 sm:$0xff]  }
 0x529   :  { %v19262_v43 = vld [vmem:[#allocation2 + $0x26f8] ss:$28 sps:$4 sm:$0xff]  }
 0x52a   :  { %10895 = vmatmul.mubr.bf16.vlgmr.msra.gmra.mxu1 %v20573_v21  ;;  %11031 = vmatpush1.bf16.msra.mxu0 %v19223_v3 }
 0x52b   :  { %10986 = vmatpush1.bf16.msra.mxu1 %v19214_v59  ;;  %11032 = vmatprep.subr.bf16.mxu0 %v19231_v62  ;;  %v19268_v62 = vld [vmem:[#allocation2 + $0x26c0] ss:$28 sps:$4 sm:$0xff]  }
 0x52c   :  { %10987 = vmatprep.subr.bf16.mxu1 %v19222_v61  ;;  %11017 = vmatprep.mubr.bf16.mxu1 %v20539_v52  ;;  %v19271_v61 = vld [vmem:[#allocation2 + $0x2a08] ss:$28 sps:$4 sm:$0xff]  }
 0x52e   :  { %11033 = vmatpush1.bf16.msra.mxu0 %v19229_v7  ;;  %v19276_v7 = vld [vmem:[#allocation2 + $0x268c] ss:$28 sps:$4 sm:$0xff]  }
 0x52f   :  { %10988 = vmatpush1.bf16.msra.mxu1 %v19220_v4  ;;  %11034 = vmatprep.subr.bf16.mxu0 %v19237_v17  ;;  %v19277_v4 = vld [vmem:[#allocation2 + $0x29d0] ss:$28 sps:$4 sm:$0xff]   ;;  %v19274_v17 = vld [vmem:[#allocation2 + $0x2688] ss:$28 sps:$4 sm:$0xff]  }
 0x530   :  { %10989 = vmatprep.subr.bf16.mxu1 %v19228_v22  ;;  %v19285_v22 = vld [vmem:[#allocation2 + $0x299c] ss:$28 sps:$4 sm:$0xff]  }
 0x532   :  { %11035 = vmatpush1.bf16.msra.mxu0 %v19235_v5  ;;  %v19282_v5 = vld [vmem:[#allocation2 + $0x2654] ss:$28 sps:$4 sm:$0xff]  }
 0x533   :  { %10990 = vmatpush1.bf16.msra.mxu1 %v19226_v2  ;;  %11036 = vmatprep.subr.bf16.mxu0 %v19243_v18  ;;  %v19283_v2 = vld [vmem:[#allocation2 + $0x2998] ss:$28 sps:$4 sm:$0xff]   ;;  %v19280_v18 = vld [vmem:[#allocation2 + $0x2650] ss:$28 sps:$4 sm:$0xff]  }
 0x534   :  { %10991 = vmatprep.subr.bf16.mxu1 %v19234_v13  ;;  %v19291_v13 = vld [vmem:[#allocation2 + $0x2964] ss:$28 sps:$4 sm:$0xff]  }
 0x536   :  { %11037 = vmatpush1.bf16.msra.mxu0 %v19241_v50  ;;  %v19288_v50 = vld [vmem:[#allocation2 + $0x261c] ss:$28 sps:$4 sm:$0xff]  }
 0x537   :  { %10992 = vmatpush1.bf16.msra.mxu1 %v19232_v20  ;;  %11038 = vmatprep.subr.bf16.mxu0 %v19249_v26  ;;  %v19289_v20 = vld [vmem:[#allocation2 + $0x2960] ss:$28 sps:$4 sm:$0xff]   ;;  %v19286_v26 = vld [vmem:[#allocation2 + $0x2618] ss:$28 sps:$4 sm:$0xff]  }
 0x538   :  { %10993 = vmatprep.subr.bf16.mxu1 %v19240_v1  ;;  %v19297_v1 = vld [vmem:[#allocation2 + $0x292c] ss:$28 sps:$4 sm:$0xff]  }
 0x539   :  { %v8408_v38 = vpop.f32.mrf.mxu0 }
 0x53a   :  { %v8409_v23 = vadd.f32 %v8408_v38, %v20849_v34  ;;  %11039 = vmatpush1.bf16.msra.mxu0 %v19247_v31  ;;  %v19294_v31 = vld [vmem:[#allocation2 + $0x25e4] ss:$28 sps:$4 sm:$0xff]  }
 0x53b   :  { %10994 = vmatpush1.bf16.msra.mxu1 %v19238_v28  ;;  %v8410_v51 = vpop.f32.mrf.mxu0  ;;  %11040 = vmatprep.subr.bf16.mxu0 %v19255_v27  ;;  %v19295_v28 = vld [vmem:[#allocation2 + $0x2928] ss:$28 sps:$4 sm:$0xff]   ;;  %v19292_v38 = vld [vmem:[#allocation2 + $0x25e0] ss:$28 sps:$4 sm:$0xff]  }
 0x53c   :  { %10995 = vmatprep.subr.bf16.mxu1 %v19246_v33  ;;  %v8450_v58 = vadd.f32 %v20854_v11, %v8409_v23  ;;  %v8411_v10 = vadd.f32 %v8410_v51, %v20852_v56  ;;  %v19303_v33 = vld [vmem:[#allocation2 + $0x28f4] ss:$28 sps:$4 sm:$0xff]   ;;  %v19300_v23 = vld [vmem:[#allocation2 + $0x25ac] ss:$28 sps:$4 sm:$0xff]   ;;  %v19309_v51 = vld [vmem:[#allocation2 + $0x2544] ss:$28 sps:$4 sm:$0xff]  }
 0x53d   :  { %v8412_v63 = vpop.f32.mrf.mxu0 }
 0x53e   :  { %v20868_v32 = vmax.f32 %v5804_v0, %v8450_v58  ;;  %v8452_v34 = vadd.f32 %v20857_v29, %v8411_v10  ;;  %11041 = vmatpush1.bf16.msra.mxu0 %v19253_v48  ;;  %v19264_v29 = vld [vmem:[#allocation2 + $0x26fc] ss:$28 sps:$4 sm:$0xff]   ;;  %v19298_v58 = vld [vmem:[#allocation2 + $0x25a8] ss:$28 sps:$4 sm:$0xff]   ;;  %v19306_v63 = vld [vmem:[#allocation2 + $0x2574] ss:$28 sps:$4 sm:$0xff]  }
 0x53f   :  { %10996 = vmatpush1.bf16.msra.mxu1 %v19244_v45  ;;  %11042 = vmatprep.subr.bf16.mxu0 %v19261_v6  ;;  %v8413_v47 = vpop.f32.mrf.mxu0  ;;  %v19301_v45 = vld [vmem:[#allocation2 + $0x28f0] ss:$28 sps:$4 sm:$0xff]   ;;  %v19307_v10 = vld [vmem:[#allocation2 + $0x2540] ss:$28 sps:$4 sm:$0xff]  }
 0x540   :  { %10997 = vmatprep.subr.bf16.mxu1 %v19252_v55  ;;  %v20874_v56 = vmax.f32 %v5805_v39, %v8452_v34  ;;  %v19279_v39 = vld [vmem:[#allocation2 + $0x29d4] ss:$28 sps:$4 sm:$0xff]   ;;  %v19315_v34 = vld [vmem:[#allocation2 + $0x250c] ss:$28 sps:$4 sm:$0xff]  }
 0x542   :  { %v17303_v11 = vpop.f32.mrf.mxu1  ;;  %11043 = vmatpush2.bf16.msra.mxu0 %v19259_v57 }
 0x543   :  { %10998 = vmatpush1.bf16.msra.mxu1 %v19250_v12  ;;  %11044 = vmatprep.subr.bf16.mxu0 %v19267_v41  ;;  %v19313_v41 = vld [vmem:[#allocation2 + $0x2508] ss:$28 sps:$4 sm:$0xff]  }
 0x544   :  { %v17304_v0 = vpop.f32.mrf.mxu1  ;;  %10999 = vmatprep.subr.bf16.mxu1 %v19258_v30  ;;  %v19304_v30 = vld [vmem:[#allocation2 + $0x2570] ss:$28 sps:$4 sm:$0xff]  }
 0x545   :  { %v20876_v59 = vadd.f32 %v17304_v0, %v17303_v11  ;;  %v19312_v11 = vld [vmem:[#allocation2 + $0x2ab4] ss:$28 sps:$4 sm:$0xff]  }
 0x546   :  { %v17306_v3 = vpop.f32.mrf.mxu1  ;;  %11045 = vmatpush2.bf16.msra.mxu0 %v19265_v15 }
 0x547   :  { %11000 = vmatpush1.bf16.msra.mxu1 %v19256_v46  ;;  %11046 = vmatprep.subr.bf16.mxu0 %v19273_v14  ;;  %v19318_v46 = vld [vmem:[#allocation2 + $0x24d4] ss:$28 sps:$4 sm:$0xff]  }
 0x548   :  { %v17307_v53 = vpop.f32.mrf.mxu1  ;;  %11001 = vmatprep.subr.bf16.mxu1 %v19264_v29  ;;  %v19310_v14 = vld [vmem:[#allocation2 + $0x2ab0] ss:$28 sps:$4 sm:$0xff]  }
 0x549   :  { %v19316_v3 = vld [vmem:[#allocation2 + $0x24d0] ss:$28 sps:$4 sm:$0xff]  }
 0x54a   :  { %11047 = vmatpush2.bf16.msra.mxu0 %v19271_v61  ;;  %v19321_v61 = vld [vmem:[#allocation2 + $0x21c4] ss:$28 sps:$4 sm:$0xff]  }
 0x54b   :  { %11002 = vmatpush2.bf16.msra.mxu1 %v19262_v43  ;;  %11048 = vmatprep.subr.bf16.mxu0 %v19279_v39 }
 0x54c   :  { %11003 = vmatprep.subr.bf16.mxu1 %v19270_v24  ;;  %v19324_v24 = vld [vmem:[#allocation2 + $0x249c] ss:$28 sps:$4 sm:$0xff]  }
 0x54e   :  { %11049 = vmatpush2.bf16.msra.mxu0 %v19277_v4  ;;  %v19322_v4 = vld [vmem:[#allocation2 + $0x2498] ss:$28 sps:$4 sm:$0xff]  }
 0x54f   :  { %11004 = vmatpush2.bf16.msra.mxu1 %v19268_v62  ;;  %11050 = vmatprep.subr.bf16.mxu0 %v19285_v22 }
 0x550   :  { %11005 = vmatprep.subr.bf16.mxu1 %v19276_v7 }
 0x552   :  { %11051 = vmatpush2.bf16.msra.mxu0 %v19283_v2  ;;  %v19319_v2 = vld [vmem:[#allocation2 + $0x21c0] ss:$28 sps:$4 sm:$0xff]  }
 0x553   :  { %11006 = vmatpush2.bf16.msra.mxu1 %v19274_v17  ;;  %11052 = vmatprep.subr.bf16.mxu0 %v19291_v13 }
 0x554   :  { %11007 = vmatprep.subr.bf16.mxu1 %v19282_v5  ;;  %v19328_v5 = vld [vmem:[#allocation2 + $0x2460] ss:$28 sps:$4 sm:$0xff]  }
 0x556   :  { %11053 = vmatpush2.bf16.msra.mxu0 %v19289_v20  ;;  %v19336_v20 = vld [vmem:[#allocation2 + $0x242c] ss:$28 sps:$4 sm:$0xff]  }
 0x557   :  { %11008 = vmatpush2.bf16.msra.mxu1 %v19280_v18  ;;  %11054 = vmatprep.subr.bf16.mxu0 %v19297_v1  ;;  %v19327_v18 = vld [vmem:[#allocation2 + $0x218c] ss:$28 sps:$4 sm:$0xff]  }
 0x558   :  { %11009 = vmatprep.subr.bf16.mxu1 %v19288_v50  ;;  %v19325_v50 = vld [vmem:[#allocation2 + $0x2188] ss:$28 sps:$4 sm:$0xff]  }
 0x559   :  { %v17347_v27 = vpop.f32.mrf.mxu0  ;;  %v19334_v1 = vld [vmem:[#allocation2 + $0x2428] ss:$28 sps:$4 sm:$0xff]  }
 0x55a   :  { %11055 = vmatpush2.bf16.msra.mxu0 %v19295_v28  ;;  %v19339_v28 = vld [vmem:[#allocation2 + $0x211c] ss:$28 sps:$4 sm:$0xff]  }
 0x55b   :  { %11010 = vmatpush2.bf16.msra.mxu1 %v19286_v26  ;;  %11056 = vmatprep.subr.bf16.mxu0 %v19303_v33  ;;  %v17348_v48 = vpop.f32.mrf.mxu0  ;;  %v19340_v26 = vld [vmem:[#allocation2 + $0x23f0] ss:$28 sps:$4 sm:$0xff]   ;;  %v19337_v33 = vld [vmem:[#allocation2 + $0x2118] ss:$28 sps:$4 sm:$0xff]  }
 0x55c   :  { %11011 = vmatprep.subr.bf16.mxu1 %v19294_v31  ;;  %v17349_v55 = vadd.f32 %v17348_v48, %v17347_v27  ;;  %v19348_v31 = vld [vmem:[#allocation2 + $0x23bc] ss:$28 sps:$4 sm:$0xff]  }
 0x55d   :  { %v17350_v6 = vpop.f32.mrf.mxu0  ;;  %v19346_v27 = vld [vmem:[#allocation2 + $0x23b8] ss:$28 sps:$4 sm:$0xff]   ;;  %v19352_v48 = vld [vmem:[#allocation2 + $0x2700] ss:$28 sps:$4 sm:$0xff]  }
 0x55e   :  { %11057 = vmatpush2.bf16.msra.mxu0 %v19301_v45  ;;  %v19354_v45 = vld [vmem:[#allocation2 + $0x2704] ss:$28 sps:$4 sm:$0xff]  }
 0x55f   :  { %11012 = vmatpush2.bf16.msra.mxu1 %v19292_v38  ;;  %11149 = vmatprep.subr.bf16.mxu0 %v19309_v51  ;;  %v17351_v12 = vpop.f32.mrf.mxu0  ;;  %v19345_v38 = vld [vmem:[#allocation2 + $0x20e4] ss:$28 sps:$4 sm:$0xff]   ;;  %v19351_v51 = vld [vmem:[#allocation2 + $0x20ac] ss:$28 sps:$4 sm:$0xff]  }
 0x560   :  { %11013 = vmatprep.subr.bf16.mxu1 %v19300_v23  ;;  %v19343_v23 = vld [vmem:[#allocation2 + $0x20e0] ss:$28 sps:$4 sm:$0xff]   ;;  %v19349_v6 = vld [vmem:[#allocation2 + $0x20a8] ss:$28 sps:$4 sm:$0xff]   ;;  %v19364_v12 = vld [vmem:[#allocation2 + $0x2690] ss:$28 sps:$4 sm:$0xff]  }
 0x561   :  { %11059 = vmatmul.mubr.bf16.vlgmr.msra.gmra.mxu0 %v20573_v21 }
 0x562   :  { %v17325_v57 = vpop.f32.mrf.mxu1  ;;  %11150 = vmatpush1.bf16.msra.mxu0 %v19307_v10  ;;  %11181 = vmatprep.mubr.bf16.mxu0 %v20539_v52  ;;  %v19357_v10 = vld [vmem:[#allocation2 + $0x2074] ss:$28 sps:$4 sm:$0xff]  }
 0x563   :  { %11014 = vmatpush2.bf16.msra.mxu1 %v19298_v58  ;;  %11151 = vmatprep.subr.bf16.mxu0 %v19315_v34  ;;  %v19358_v58 = vld [vmem:[#allocation2 + $0x26c8] ss:$28 sps:$4 sm:$0xff]   ;;  %v19355_v34 = vld [vmem:[#allocation2 + $0x2070] ss:$28 sps:$4 sm:$0xff]  }
 0x564   :  { %v17326_v47 = vpop.f32.mrf.mxu1  ;;  %11015 = vmatprep.subr.bf16.mxu1 %v19306_v63  ;;  %v19366_v63 = vld [vmem:[#allocation2 + $0x2694] ss:$28 sps:$4 sm:$0xff]  }
 0x565   :  { %v17327_v15 = vadd.f32 %v17326_v47, %v17325_v57  ;;  %v19363_v57 = vld [vmem:[#allocation2 + $0x203c] ss:$28 sps:$4 sm:$0xff]  }
 0x566   :  { %v17328_v0 = vpop.f32.mrf.mxu1  ;;  %11152 = vmatpush1.bf16.msra.mxu0 %v19313_v41  ;;  %v19361_v41 = vld [vmem:[#allocation2 + $0x2038] ss:$28 sps:$4 sm:$0xff]  }
 0x567   :  { %v8531_v29 = vadd.f32 %v17327_v15, %v20876_v59  ;;  %11016 = vmatpush2.bf16.msra.mxu1 %v19304_v30  ;;  %11153 = vmatprep.subr.bf16.mxu0 %v19318_v46  ;;  %v19330_v59 = vld [vmem:[#allocation2 + $0x2464] ss:$28 sps:$4 sm:$0xff]   ;;  %v19372_v30 = vld [vmem:[#allocation2 + $0x265c] ss:$28 sps:$4 sm:$0xff]  }
 0x568   :  { %v17329_v43 = vpop.f32.mrf.mxu1  ;;  %11081 = vmatprep.subr.bf16.mxu1 %v19312_v11  ;;  %v19370_v47 = vld [vmem:[#allocation2 + $0x2658] ss:$28 sps:$4 sm:$0xff]   ;;  %v19369_v11 = vld [vmem:[#allocation2 + $0x2384] ss:$28 sps:$4 sm:$0xff]  }
 0x569   :  { %v8571_v53 = vadd.f32 %v17349_v55, %v8531_v29  ;;  %v19360_v55 = vld [vmem:[#allocation2 + $0x26cc] ss:$28 sps:$4 sm:$0xff]   ;;  %v19378_v46 = vld [vmem:[#allocation2 + $0x2624] ss:$28 sps:$4 sm:$0xff]  }
 0x56a   :  { %11018 = vmatmul.mubr.bf16.vlgmr.msra.gmra.mxu1 %v20551_v9  ;;  %v8610_v39 = vpop.f32.mrf.mxu1  ;;  %11154 = vmatpush1.bf16.msra.mxu0 %v19316_v3  ;;  %v19367_v15 = vld [vmem:[#allocation2 + $0x2380] ss:$28 sps:$4 sm:$0xff]   ;;  %v19375_v29 = vld [vmem:[#allocation2 + $0x234c] ss:$28 sps:$4 sm:$0xff]  }
 0x56b   :  { %v8611_v62 = vadd.f32 %v8610_v39, %v8571_v53  ;;  %11082 = vmatpush1.bf16.msra.mxu1 %v19310_v14  ;;  %11099 = vmatprep.mubr.bf16.mxu1 %v20438_v16  ;;  %v19376_v0 = vld [vmem:[#allocation2 + $0x2620] ss:$28 sps:$4 sm:$0xff]   ;;  %v19384_v14 = vld [vmem:[#allocation2 + $0x25ec] ss:$28 sps:$4 sm:$0xff]   ;;  %v19390_v53 = vld [vmem:[#allocation2 + $0x25b4] ss:$28 sps:$4 sm:$0xff]  }
 0x56c   :  { %v17479_v7 = vpop.f32.mrf.mxu1  ;;  %11108 = vmatprep.subr.bf16.mxu1 %v19321_v61  ;;  %11155 = vmatprep.subr.bf16.mxu0 %v19324_v24  ;;  %v19373_v3 = vld [vmem:[#allocation2 + $0x2348] ss:$28 sps:$4 sm:$0xff]   ;;  %v19381_v61 = vld [vmem:[#allocation2 + $0x2314] ss:$28 sps:$4 sm:$0xff]  }
 0x56d   :  { %v20886_v22 = vmax.f32 %v5806_v42, %v8611_v62  ;;  %v19331_v42 = vld [vmem:[#allocation2 + $0x2150] ss:$28 sps:$4 sm:$0xff]   ;;  %v19382_v43 = vld [vmem:[#allocation2 + $0x25e8] ss:$28 sps:$4 sm:$0xff]   ;;  %v19387_v62 = vld [vmem:[#allocation2 + $0x22dc] ss:$28 sps:$4 sm:$0xff]  }
 0x56e   :  { %v8613_v17 = vpop.f32.mrf.mxu1  ;;  %11156 = vmatpush1.bf16.msra.mxu0 %v19322_v4  ;;  %v19379_v24 = vld [vmem:[#allocation2 + $0x2310] ss:$28 sps:$4 sm:$0xff]   ;;  %v19396_v4 = vld [vmem:[#allocation2 + $0x257c] ss:$28 sps:$4 sm:$0xff]  }
 0x56f   :  { %11157 = vmatprep.subr.bf16.mxu0 %v19330_v59  ;;  %v19388_v39 = vld [vmem:[#allocation2 + $0x25b0] ss:$28 sps:$4 sm:$0xff]   ;;  %v19385_v59 = vld [vmem:[#allocation2 + $0x22d8] ss:$28 sps:$4 sm:$0xff]  }
 0x570   :  { %v17480_v13 = vpop.f32.mrf.mxu1  ;;  %v19394_v17 = vld [vmem:[#allocation2 + $0x2578] ss:$28 sps:$4 sm:$0xff]  }
 0x572   :  { %16665 = vmatmul.mubr.msk.bf16.vlgmr.msra.gmra.mxu1 %vm2335_vm0, %v20559_v19  ;;  %11158 = vmatpush1.bf16.msra.mxu0 %v19328_v5  ;;  %v19405_v5 = vld [vmem:[#allocation2 + $0x2abc] ss:$28 sps:$4 sm:$0xff]  }
 0x573   :  { %11109 = vmatpush1.bf16.msra.mxu1 %v19319_v2  ;;  %11159 = vmatprep.subr.bf16.mxu0 %v19336_v20  ;;  %v19393_v2 = vld [vmem:[#allocation2 + $0x22a4] ss:$28 sps:$4 sm:$0xff]  }
 0x574   :  { %11110 = vmatprep.subr.bf16.mxu1 %v19327_v18  ;;  %11140 = vmatprep.mubr.bf16.mxu1 %v20534_v49  ;;  %v19391_v20 = vld [vmem:[#allocation2 + $0x22a0] ss:$28 sps:$4 sm:$0xff]  }
 0x576   :  { %11160 = vmatpush1.bf16.msra.mxu0 %v19334_v1  ;;  %v19399_v1 = vld [vmem:[#allocation2 + $0x226c] ss:$28 sps:$4 sm:$0xff]  }
 0x577   :  { %11111 = vmatpush1.bf16.msra.mxu1 %v19325_v50  ;;  %11161 = vmatprep.subr.bf16.mxu0 %v19342_v35  ;;  %v19403_v50 = vld [vmem:[#allocation2 + $0x2ab8] ss:$28 sps:$4 sm:$0xff]   ;;  %v19409_v35 = vld [vmem:[#allocation2 + $0x2388] ss:$28 sps:$4 sm:$0xff]  }
 0x578   :  { %11112 = vmatprep.subr.bf16.mxu1 %v19333_v54 }
 0x57a   :  { %11162 = vmatpush1.bf16.msra.mxu0 %v19340_v26  ;;  %v19397_v26 = vld [vmem:[#allocation2 + $0x2268] ss:$28 sps:$4 sm:$0xff]  }
 0x57b   :  { %11113 = vmatpush1.bf16.msra.mxu1 %v19331_v42  ;;  %11163 = vmatprep.subr.bf16.mxu0 %v19348_v31 }
 0x57c   :  { %11114 = vmatprep.subr.bf16.mxu1 %v19339_v28  ;;  %v19402_v28 = vld [vmem:[#allocation2 + $0x2234] ss:$28 sps:$4 sm:$0xff]  }
 0x57e   :  { %11164 = vmatpush1.bf16.msra.mxu0 %v19346_v27  ;;  %v19400_v27 = vld [vmem:[#allocation2 + $0x2230] ss:$28 sps:$4 sm:$0xff]  }
 0x57f   :  { %11115 = vmatpush1.bf16.msra.mxu1 %v19337_v33  ;;  %11165 = vmatprep.subr.bf16.mxu0 %v19354_v45  ;;  %v19408_v45 = vld [vmem:[#allocation2 + $0x21fc] ss:$28 sps:$4 sm:$0xff]  }
 0x580   :  { %11116 = vmatprep.subr.bf16.mxu1 %v19345_v38  ;;  %v19410_v38 = vld [vmem:[#allocation2 + $0x21c8] ss:$28 sps:$4 sm:$0xff]  }
 0x582   :  { %11166 = vmatpush2.bf16.msra.mxu0 %v19352_v48 }
 0x583   :  { %11117 = vmatpush1.bf16.msra.mxu1 %v19343_v23  ;;  %11167 = vmatprep.subr.bf16.mxu0 %v19360_v55  ;;  %v19414_v23 = vld [vmem:[#allocation2 + $0x2350] ss:$28 sps:$4 sm:$0xff]  }
 0x584   :  { %11118 = vmatprep.subr.bf16.mxu1 %v19351_v51 }
 0x586   :  { %11168 = vmatpush2.bf16.msra.mxu0 %v19358_v58  ;;  %v19415_v58 = vld [vmem:[#allocation2 + $0x2190] ss:$28 sps:$4 sm:$0xff]  }
 0x587   :  { %11119 = vmatpush1.bf16.msra.mxu1 %v19349_v6  ;;  %11169 = vmatprep.subr.bf16.mxu0 %v19366_v63  ;;  %v19406_v6 = vld [vmem:[#allocation2 + $0x21f8] ss:$28 sps:$4 sm:$0xff]   ;;  %v19413_v63 = vld [vmem:[#allocation2 + $0x28c4] ss:$28 sps:$4 sm:$0xff]  }
 0x588   :  { %11120 = vmatprep.subr.bf16.mxu1 %v19357_v10 }
 0x58a   :  { %11170 = vmatpush2.bf16.msra.mxu0 %v19364_v12 }
 0x58b   :  { %11121 = vmatpush1.bf16.msra.mxu1 %v19355_v34  ;;  %11171 = vmatprep.subr.bf16.mxu0 %v19372_v30  ;;  %v19419_v34 = vld [vmem:[#allocation2 + $0x2318] ss:$28 sps:$4 sm:$0xff]  }
 0x58c   :  { %11122 = vmatprep.subr.bf16.mxu1 %v19363_v57  ;;  %v19411_v57 = vld [vmem:[#allocation2 + $0x28c0] ss:$28 sps:$4 sm:$0xff]   ;;  %v19420_v30 = vld [vmem:[#allocation2 + $0x2158] ss:$28 sps:$4 sm:$0xff]  }
 0x58e   :  { %11172 = vmatpush2.bf16.msra.mxu0 %v19370_v47  ;;  %v19418_v47 = vld [vmem:[#allocation2 + $0x288c] ss:$28 sps:$4 sm:$0xff]  }
 0x58f   :  { %11123 = vmatpush1.bf16.msra.mxu1 %v19361_v41  ;;  %11173 = vmatprep.subr.bf16.mxu0 %v19378_v46  ;;  %v19416_v46 = vld [vmem:[#allocation2 + $0x2888] ss:$28 sps:$4 sm:$0xff]  }
 0x590   :  { %11124 = vmatprep.subr.bf16.mxu1 %v19369_v11  ;;  %v19424_v11 = vld [vmem:[#allocation2 + $0x22e0] ss:$28 sps:$4 sm:$0xff]  }
 0x592   :  { %11174 = vmatpush2.bf16.msra.mxu0 %v19376_v0  ;;  %v19423_v0 = vld [vmem:[#allocation2 + $0x2854] ss:$28 sps:$4 sm:$0xff]  }
 0x593   :  { %11125 = vmatpush2.bf16.msra.mxu1 %v19367_v15  ;;  %11175 = vmatprep.subr.bf16.mxu0 %v19384_v14  ;;  %v19425_v15 = vld [vmem:[#allocation2 + $0x2120] ss:$28 sps:$4 sm:$0xff]   ;;  %v19430_v14 = vld [vmem:[#allocation2 + $0x20e8] ss:$28 sps:$4 sm:$0xff]  }
 0x594   :  { %11126 = vmatprep.subr.bf16.mxu1 %v19375_v29  ;;  %v19421_v29 = vld [vmem:[#allocation2 + $0x2850] ss:$28 sps:$4 sm:$0xff]  }
 0x596   :  { %11176 = vmatpush2.bf16.msra.mxu0 %v19382_v43  ;;  %v19434_v43 = vld [vmem:[#allocation2 + $0x2270] ss:$28 sps:$4 sm:$0xff]  }
 0x597   :  { %11127 = vmatpush2.bf16.msra.mxu1 %v19373_v3  ;;  %11177 = vmatprep.subr.bf16.mxu0 %v19390_v53  ;;  %v19428_v3 = vld [vmem:[#allocation2 + $0x281c] ss:$28 sps:$4 sm:$0xff]   ;;  %v19435_v53 = vld [vmem:[#allocation2 + $0x20b0] ss:$28 sps:$4 sm:$0xff]  }
 0x598   :  { %11128 = vmatprep.subr.bf16.mxu1 %v19381_v61  ;;  %v19426_v61 = vld [vmem:[#allocation2 + $0x2818] ss:$28 sps:$4 sm:$0xff]  }
 0x599   :  { %v10855_v7 = vpop.f32.mrf.mxu0 }
 0x59a   :  { %11178 = vmatpush2.bf16.msra.mxu0 %v19388_v39  ;;  %v19439_v39 = vld [vmem:[#allocation2 + $0x2238] ss:$28 sps:$4 sm:$0xff]  }
 0x59b   :  { %11129 = vmatpush2.bf16.msra.mxu1 %v19379_v24  ;;  %11179 = vmatprep.subr.bf16.mxu0 %v19396_v4  ;;  %v20891_v13 = vpop.f32.mrf.mxu0  ;;  %v19433_v24 = vld [vmem:[#allocation2 + $0x27e4] ss:$28 sps:$4 sm:$0xff]   ;;  %v19440_v4 = vld [vmem:[#allocation2 + $0x2078] ss:$28 sps:$4 sm:$0xff]  }
 0x59c   :  { %11130 = vmatprep.subr.bf16.mxu1 %v19387_v62  ;;  %v19431_v62 = vld [vmem:[#allocation2 + $0x27e0] ss:$28 sps:$4 sm:$0xff]  }
 0x59d   :  { %v10859_v18 = vpop.f32.mrf.mxu0 }
 0x59e   :  { %11180 = vmatpush2.bf16.msra.mxu0 %v19394_v17  ;;  %v19436_v17 = vld [vmem:[#allocation2 + $0x27a8] ss:$28 sps:$4 sm:$0xff]  }
 0x59f   :  { %11131 = vmatpush2.bf16.msra.mxu1 %v19385_v59  ;;  %11245 = vmatprep.subr.bf16.mxu0 %v19405_v5  ;;  %v10860_v54 = vpop.f32.mrf.mxu0  ;;  %v19444_v59 = vld [vmem:[#allocation2 + $0x2200] ss:$28 sps:$4 sm:$0xff]   ;;  %v19443_v5 = vld [vmem:[#allocation2 + $0x2774] ss:$28 sps:$4 sm:$0xff]   ;;  %v19449_v18 = vld [vmem:[#allocation2 + $0x2708] ss:$28 sps:$4 sm:$0xff]  }
 0x5a0   :  { %11132 = vmatprep.subr.bf16.mxu1 %v19393_v2  ;;  %v19445_v2 = vld [vmem:[#allocation2 + $0x2040] ss:$28 sps:$4 sm:$0xff]   ;;  %v19454_v54 = vld [vmem:[#allocation2 + $0x26d0] ss:$28 sps:$4 sm:$0xff]  }
 0x5a1   :  { %11182 = vmatmul.mubr.bf16.vlgmr.msra.gmra.mxu0 %v20551_v9  ;;  %v20894_v42 = vpop.f32.mrf.mxu0 }
 0x5a2   :  { %11246 = vmatpush1.bf16.msra.mxu0 %v19403_v50  ;;  %11263 = vmatprep.mubr.bf16.mxu0 %v20438_v16  ;;  %v19450_v50 = vld [vmem:[#allocation2 + $0x2548] ss:$28 sps:$4 sm:$0xff]  }
 0x5a3   :  { %11133 = vmatpush2.bf16.msra.mxu1 %v19391_v20  ;;  %v20897_v31 = vpop.f32.mrf.mxu0  ;;  %17355 = vmatprep.subr.bf16.mxu0 %v19409_v35  ;;  %v19441_v20 = vld [vmem:[#allocation2 + $0x2770] ss:$28 sps:$4 sm:$0xff]   ;;  %v19446_v35 = vld [vmem:[#allocation2 + $0x2738] ss:$28 sps:$4 sm:$0xff]  }
 0x5a4   :  { %11134 = vmatprep.subr.bf16.mxu1 %v19399_v1  ;;  %v19448_v1 = vld [vmem:[#allocation2 + $0x273c] ss:$28 sps:$4 sm:$0xff]  }
 0x5a5   :  { %v10941_v33 = vpop.f32.mrf.mxu0 }
 0x5a6   :  { %v19459_v33 = vld [vmem:[#allocation2 + $0x2698] ss:$28 sps:$4 sm:$0xff]  }
 0x5a7   :  { %11135 = vmatpush2.bf16.msra.mxu1 %v19397_v26  ;;  %v10942_v48 = vpop.f32.mrf.mxu0  ;;  %v19455_v26 = vld [vmem:[#allocation2 + $0x2510] ss:$28 sps:$4 sm:$0xff]  }
 0x5a8   :  { %11136 = vmatprep.subr.bf16.mxu1 %v19402_v28  ;;  %v19453_v28 = vld [vmem:[#allocation2 + $0x2a84] ss:$28 sps:$4 sm:$0xff]  }
 0x5a9   :  { %16666 = vmatmul.mubr.msk.bf16.vlgmr.msra.gmra.mxu0 %vm2335_vm0, %v20559_v19  ;;  %v19465_v48 = vld [vmem:[#allocation2 + $0x24a0] ss:$28 sps:$4 sm:$0xff]  }
 0x5aa   :  { %v10814_v51 = vpop.f32.mrf.mxu1  ;;  %17356 = vmatpush3.bf16.msra.mxu0 %v19410_v38  ;;  %11304 = vmatprep.mubr.bf16.mxu0 %v20534_v49  ;;  %v19429_v49 = vld [vmem:[#allocation2 + $0x22a8] ss:$28 sps:$4 sm:$0xff]   ;;  %v19460_v38 = vld [vmem:[#allocation2 + $0x24d8] ss:$28 sps:$4 sm:$0xff]  }
 0x5ab   :  { %v20901_v55 = vadd.f32 %v10855_v7, %v10814_v51  ;;  %11137 = vmatpush2.bf16.msra.mxu1 %v19400_v27  ;;  %17357 = vmatprep.subr.bf16.mxu0 %v19414_v23  ;;  %v19438_v7 = vld [vmem:[#allocation2 + $0x27ac] ss:$28 sps:$4 sm:$0xff]   ;;  %v19451_v27 = vld [vmem:[#allocation2 + $0x2a80] ss:$28 sps:$4 sm:$0xff]   ;;  %v19463_v51 = vld [vmem:[#allocation2 + $0x2a14] ss:$28 sps:$4 sm:$0xff]  }
 0x5ac   :  { %v20903_v10 = vpop.f32.mrf.mxu1  ;;  %11138 = vmatprep.subr.bf16.mxu1 %v19408_v45  ;;  %v19458_v45 = vld [vmem:[#allocation2 + $0x2a4c] ss:$28 sps:$4 sm:$0xff]   ;;  %v19464_v23 = vld [vmem:[#allocation2 + $0x2660] ss:$28 sps:$4 sm:$0xff]  }
 0x5ae   :  { %v10818_v12 = vpop.f32.mrf.mxu1  ;;  %17358 = vmatpush3.bf16.msra.mxu0 %v19415_v58  ;;  %v19461_v58 = vld [vmem:[#allocation2 + $0x2a10] ss:$28 sps:$4 sm:$0xff]  }
 0x5af   :  { %11139 = vmatpush2.bf16.msra.mxu1 %v19406_v6  ;;  %17359 = vmatprep.subr.bf16.mxu0 %v19419_v34  ;;  %v19469_v6 = vld [vmem:[#allocation2 + $0x2628] ss:$28 sps:$4 sm:$0xff]   ;;  %v19474_v34 = vld [vmem:[#allocation2 + $0x25f0] ss:$28 sps:$4 sm:$0xff]   ;;  %v19466_v12 = vld [vmem:[#allocation2 + $0x29d8] ss:$28 sps:$4 sm:$0xff]  }
 0x5b0   :  { %v10819_v41 = vpop.f32.mrf.mxu1  ;;  %11190 = vmatprep.subr.bf16.mxu1 %v19413_v63  ;;  %v19468_v63 = vld [vmem:[#allocation2 + $0x29dc] ss:$28 sps:$4 sm:$0xff]  }
 0x5b1   :  { %v19479_v41 = vld [vmem:[#allocation2 + $0x25b8] ss:$28 sps:$4 sm:$0xff]  }
 0x5b2   :  { %11141 = vmatmul.mubr.bf16.vlgmr.msra.gmra.mxu1 %v20549_v8  ;;  %17360 = vmatpush3.bf16.msra.mxu0 %v19420_v30  ;;  %v19473_v30 = vld [vmem:[#allocation2 + $0x29a4] ss:$28 sps:$4 sm:$0xff]  }
 0x5b3   :  { %11191 = vmatpush1.bf16.msra.mxu1 %v19411_v57  ;;  %17361 = vmatprep.subr.bf16.mxu0 %v19424_v11  ;;  %v19475_v57 = vld [vmem:[#allocation2 + $0x2430] ss:$28 sps:$4 sm:$0xff]   ;;  %v19480_v11 = vld [vmem:[#allocation2 + $0x23f8] ss:$28 sps:$4 sm:$0xff]  }
 0x5b4   :  { %11192 = vmatprep.subr.bf16.mxu1 %v19418_v47  ;;  %11222 = vmatprep.mubr.bf16.mxu1 %v20567_v36  ;;  %v19471_v47 = vld [vmem:[#allocation2 + $0x29a0] ss:$28 sps:$4 sm:$0xff]  }
 0x5b6   :  { %17362 = vmatpush3.bf16.msra.mxu0 %v19425_v15  ;;  %v19484_v15 = vld [vmem:[#allocation2 + $0x2580] ss:$28 sps:$4 sm:$0xff]  }
 0x5b7   :  { %11193 = vmatpush1.bf16.msra.mxu1 %v19416_v46  ;;  %17363 = vmatprep.subr.bf16.mxu0 %v19429_v49  ;;  %v19478_v46 = vld [vmem:[#allocation2 + $0x296c] ss:$28 sps:$4 sm:$0xff]  }
 0x5b8   :  { %11194 = vmatprep.subr.bf16.mxu1 %v19423_v0  ;;  %v19476_v49 = vld [vmem:[#allocation2 + $0x2968] ss:$28 sps:$4 sm:$0xff]  }
 0x5ba   :  { %17364 = vmatpush3.bf16.msra.mxu0 %v19430_v14  ;;  %v19483_v14 = vld [vmem:[#allocation2 + $0x2934] ss:$28 sps:$4 sm:$0xff]  }
 0x5bb   :  { %11195 = vmatpush1.bf16.msra.mxu1 %v19421_v29  ;;  %17365 = vmatprep.subr.bf16.mxu0 %v19434_v43  ;;  %v19485_v29 = vld [vmem:[#allocation2 + $0x23c0] ss:$28 sps:$4 sm:$0xff]   ;;  %v11441_v43 = vlaneseq }
 0x5bc   :  { %11196 = vmatprep.subr.bf16.mxu1 %v19428_v3 }
 0x5be   :  { %17366 = vmatpush3.bf16.msra.mxu0 %v19435_v53  ;;  %v19481_v53 = vld [vmem:[#allocation2 + $0x2930] ss:$28 sps:$4 sm:$0xff]  }
 0x5bf   :  { %11197 = vmatpush1.bf16.msra.mxu1 %v19426_v61  ;;  %17367 = vmatprep.subr.bf16.mxu0 %v19439_v39  ;;  %v19488_v39 = vld [vmem:[#allocation2 + $0x28fc] ss:$28 sps:$4 sm:$0xff]  }
 0x5c0   :  { %11198 = vmatprep.subr.bf16.mxu1 %v19433_v24  ;;  %v19491_v24 = vld [vmem:[#allocation2 + $0x2ac0] ss:$28 sps:$4 sm:$0xff]  }
 0x5c2   :  { %17368 = vmatpush3.bf16.msra.mxu0 %v19440_v4  ;;  %v20915_v4 = vshrl.u32 %v11441_v43, 7  ;;  %v19522_v43 = vld [vmem:[#allocation2 + $0x2900] ss:$28 sps:$4 sm:$0xff]  }
 0x5c3   :  { %11199 = vmatpush1.bf16.msra.mxu1 %v19431_v62  ;;  %17369 = vmatprep.subr.bf16.mxu0 %v19444_v59 }
 0x5c4   :  { %11200 = vmatprep.subr.bf16.mxu1 %v19438_v7  ;;  %v19495_v7 = vld [vmem:[#allocation6 + $0x74] ss:$8 sps:$4 sm:$0xff]  }
 0x5c6   :  { %17370 = vmatpush3.bf16.msra.mxu0 %v19445_v2 }
 0x5c7   :  { %11201 = vmatpush1.bf16.msra.mxu1 %v19436_v17  ;;  %17377 = vmatprep.subr.bf16.mxu0 %v19449_v18  ;;  %v10858_v17 = vadd.f32 %v20891_v13, %v20903_v10  ;;  %v19486_v18 = vld [vmem:[#allocation2 + $0x28f8] ss:$28 sps:$4 sm:$0xff]  }
 0x5c8   :  { %11202 = vmatprep.subr.bf16.mxu1 %v19443_v5  ;;  %v11447_v5 = vsub.s32 1, %v20915_v4 }
 0x5c9   :  { %11305 = vmatmul.mubr.bf16.vlgmr.msra.gmra.mxu0 %v20549_v8  ;;  %v19456_v8 = vld [vmem:[#allocation2 + $0x2a48] ss:$28 sps:$4 sm:$0xff]  }
 0x5ca   :  { %17378 = vmatpush3.bf16.msra.mxu0 %v19450_v50  ;;  %11344 = vmatprep.mubr.bf16.mxu0 %v20539_v52  ;;  %v19470_v52 = vld [vmem:[#allocation2 + $0x2468] ss:$28 sps:$4 sm:$0xff]  }
 0x5cb   :  { %11203 = vmatpush1.bf16.msra.mxu1 %v19441_v20  ;;  %17379 = vmatprep.subr.bf16.mxu0 %v19454_v54  ;;  %v19489_v50 = vld [vmem:[#allocation2 + $0x2a88] ss:$28 sps:$4 sm:$0xff]  }
 0x5cc   :  { %11204 = vmatprep.subr.bf16.mxu1 %v19448_v1  ;;  %v20927_v54 = vld [vmem:[#allocation4] sm:$0xff] }
 0x5ce   :  { %17380 = vmatpush3.bf16.msra.mxu0 %v19455_v26  ;;  %v19490_v26 = vld [vmem:[#allocation2 + $0x28c8] ss:$28 sps:$4 sm:$0xff]  }
 0x5cf   :  { %11205 = vmatpush1.bf16.msra.mxu1 %v19446_v35  ;;  %17381 = vmatprep.subr.bf16.mxu0 %v19459_v33  ;;  %v11448_v35 = vrot.slane %v20927_v54, %v11447_v5 }
 0x5d0   :  { %11206 = vmatprep.subr.bf16.mxu1 %v19453_v28  ;;  %v19493_v28 = vld [vmem:[#allocation6 + $0x70] ss:$8 sps:$4 sm:$0xff]  }
 0x5d2   :  { %17382 = vmatpush3.bf16.msra.mxu0 %v19460_v38 }
 0x5d3   :  { %11207 = vmatpush2.bf16.msra.mxu1 %v19451_v27  ;;  %17383 = vmatprep.subr.bf16.mxu0 %v19464_v23  ;;  %v19500_v27 = vld [vmem:[#allocation6 + $0x64] ss:$8 sps:$4 sm:$0xff]   ;;  %v19498_v23 = vld [vmem:[#allocation6 + $0x60] ss:$8 sps:$4 sm:$0xff]  }
 0x5d4   :  { %11208 = vmatprep.subr.bf16.mxu1 %v19458_v45 }
 0x5d6   :  { %17384 = vmatpush3.bf16.msra.mxu0 %v19465_v48  ;;  %v19505_v48 = vld [vmem:[#allocation6 + $0x54] ss:$8 sps:$4 sm:$0xff]  }
 0x5d7   :  { %11209 = vmatpush2.bf16.msra.mxu1 %v19456_v8  ;;  %17385 = vmatprep.subr.bf16.mxu0 %v19469_v6  ;;  %v19497_v8 = vld [vmem:[#allocation2 + $0x2a18] ss:$28 sps:$4 sm:$0xff]  }
 0x5d8   :  { %11210 = vmatprep.subr.bf16.mxu1 %v19463_v51 }
 0x5da   :  { %17386 = vmatpush3.bf16.msra.mxu0 %v19470_v52  ;;  %v19510_v52 = vld [vmem:[#allocation6 + $0x44] ss:$8 sps:$4 sm:$0xff]  }
 0x5db   :  { %11211 = vmatpush2.bf16.msra.mxu1 %v19461_v58  ;;  %17387 = vmatprep.subr.bf16.mxu0 %v19474_v34  ;;  %v19503_v58 = vld [vmem:[#allocation6 + $0x50] ss:$8 sps:$4 sm:$0xff]   ;;  %v19508_v34 = vld [vmem:[#allocation6 + $0x40] ss:$8 sps:$4 sm:$0xff]  }
 0x5dc   :  { %11212 = vmatprep.subr.bf16.mxu1 %v19468_v63  ;;  %v19506_v63 = vld [vmem:[#allocation2 + $0x2820] ss:$28 sps:$4 sm:$0xff]  }
 0x5de   :  { %17388 = vmatpush3.bf16.msra.mxu0 %v19475_v57  ;;  %v19511_v57 = vld [vmem:[#allocation2 + $0x27e8] ss:$28 sps:$4 sm:$0xff]  }
 0x5df   :  { %11213 = vmatpush2.bf16.msra.mxu1 %v19466_v12  ;;  %17389 = vmatprep.subr.bf16.mxu0 %v19479_v41  ;;  %v19507_v12 = vld [vmem:[#allocation2 + $0x29a8] ss:$28 sps:$4 sm:$0xff]   ;;  %v19512_v41 = vld [vmem:[#allocation2 + $0x2970] ss:$28 sps:$4 sm:$0xff]  }
 0x5e0   :  { %11214 = vmatprep.subr.bf16.mxu1 %v19473_v30  ;;  %v19513_v30 = vld [vmem:[#allocation6 + $0x30] ss:$8 sps:$4 sm:$0xff]  }
 0x5e1   :  { %v20910_v0 = vpop.f32.mrf.mxu0 }
 0x5e2   :  { %17390 = vmatpush3.bf16.msra.mxu0 %v19480_v11  ;;  %v19516_v11 = vld [vmem:[#allocation2 + $0x27b0] ss:$28 sps:$4 sm:$0xff]  }
 0x5e3   :  { %11215 = vmatpush2.bf16.msra.mxu1 %v19471_v47  ;;  %17391 = vmatprep.subr.bf16.mxu0 %v19484_v15  ;;  %v20912_v3 = vpop.f32.mrf.mxu0  ;;  %v19520_v47 = vld [vmem:[#allocation6 + $0x24] ss:$8 sps:$4 sm:$0xff]  }
 0x5e4   :  { %11216 = vmatprep.subr.bf16.mxu1 %v19478_v46  ;;  %v19518_v46 = vld [vmem:[#allocation6 + $0x20] ss:$8 sps:$4 sm:$0xff]   ;;  %v19517_v15 = vld [vmem:[#allocation2 + $0x2938] ss:$28 sps:$4 sm:$0xff]  }
 0x5e5   :  { %v10982_v61 = vpop.f32.mrf.mxu0 }
 0x5e6   :  { %17392 = vmatpush3.bf16.msra.mxu0 %v19485_v29  ;;  %v19521_v29 = vld [vmem:[#allocation2 + $0x2778] ss:$28 sps:$4 sm:$0xff]  }
 0x5e7   :  { %11217 = vmatpush2.bf16.msra.mxu1 %v19476_v49  ;;  %17481 = vmatprep.subr.bf16.mxu0 %v20439_v37  ;;  %v10983_v62 = vpop.f32.mrf.mxu0  ;;  %v19525_v49 = vld [vmem:[#allocation6 + $0x14] ss:$8 sps:$4 sm:$0xff]   ;;  %v19529_v61 = vld [vmem:[#allocation6 + $0x4] ss:$8 sps:$4 sm:$0xff]  }
 0x5e8   :  { %11218 = vmatprep.subr.bf16.mxu1 %v19483_v14  ;;  %v19523_v14 = vld [vmem:[#allocation6 + $0x10] ss:$8 sps:$4 sm:$0xff]   ;;  %v19535_v62 = vld [vmem:[#allocation6 + $0xf4] ss:$8 sps:$4 sm:$0xff]  }
 0x5e9   :  { %11345 = vmatmul.mubr.bf16.vlgmr.msra.gmra.mxu0 %v20551_v9 }
 0x5ea   :  { %v10896_v59 = vpop.f32.mrf.mxu1  ;;  %17482 = vmatpush3.bf16.msra.mxu0 %v19491_v24  ;;  %17483 = vmatprep.mubr.msk.bf16.mxu0 %vm20440_vm1, %v20439_v37  ;;  %v19527_v24 = vld [vmem:[#allocation6] ss:$8 sps:$4 sm:$0xff]  }
 0x5eb   :  { %v10897_v2 = vadd.f32 %v10896_v59, %v20901_v55  ;;  %11219 = vmatpush2.bf16.msra.mxu1 %v19481_v53  ;;  %12169 = vmatprep.subr.bf16.mxu0 %v19495_v7  ;;  %v19526_v53 = vld [vmem:[#allocation2 + $0x2740] ss:$28 sps:$4 sm:$0xff]  }
 0x5ec   :  { %v10898_v20 = vpop.f32.mrf.mxu1  ;;  %11220 = vmatprep.subr.bf16.mxu1 %v19488_v39  ;;  %v19532_v39 = vld [vmem:[#allocation6 + $0x174] ss:$8 sps:$4 sm:$0xff]   ;;  %v19530_v7 = vld [vmem:[#allocation6 + $0x170] ss:$8 sps:$4 sm:$0xff]  }
 0x5ed   :  { %v20925_v1 = vadd.f32 %v20894_v42, %v10897_v2  ;;  %v10899_v9 = vadd.f32 %v10898_v20, %v10858_v17  ;;  %v19492_v42 = vld [vmem:[#allocation2 + $0x2a50] ss:$28 sps:$4 sm:$0xff]   ;;  %v19533_v59 = vld [vmem:[#allocation6 + $0xf0] ss:$8 sps:$4 sm:$0xff]  }
 0x5ee   :  { %v10900_v13 = vpop.f32.mrf.mxu1  ;;  %v19538_v17 = vld [vmem:[#allocation6 + $0x164] ss:$8 sps:$4 sm:$0xff]   ;;  %v19539_v20 = vld [vmem:[#allocation6 + $0xe0] ss:$8 sps:$4 sm:$0xff]  }
 0x5ef   :  { %v11432_v55 = vmax.f32 %v20794_v44, %v20925_v1  ;;  %v10940_v10 = vadd.f32 %v20897_v31, %v10899_v9  ;;  %11221 = vmatpush2.bf16.msra.mxu1 %v19486_v18  ;;  %v19496_v31 = vld [vmem:[#allocation2 + $0x2890] ss:$28 sps:$4 sm:$0xff]   ;;  %v19547_v9 = vld [vmem:[#allocation6 + $0xd4] ss:$8 sps:$4 sm:$0xff]   ;;  %v19542_v13 = vld [vmem:[#allocation6 + $0x150] ss:$8 sps:$4 sm:$0xff]  }
 0x5f0   :  { %v10901_v33 = vpop.f32.mrf.mxu1  ;;  %17399 = vmatprep.subr.bf16.mxu1 %v19489_v50  ;;  %v19541_v2 = vld [vmem:[#allocation6 + $0xe4] ss:$8 sps:$4 sm:$0xff]   ;;  %v19536_v18 = vld [vmem:[#allocation6 + $0x160] ss:$8 sps:$4 sm:$0xff]   ;;  %v19544_v50 = vld [vmem:[#allocation6 + $0x154] ss:$8 sps:$4 sm:$0xff]  }
 0x5f1   :  { %v11433_v38 = vmax.f32 %v20800_v40, %v10940_v10  ;;  %17484 = vmatmul.mubr.msk.bf16.vlgmr.msra.gmra.mxu0 %vm2335_vm0, %v20559_v19  ;;  %v19501_v40 = vld [vmem:[#allocation2 + $0x2858] ss:$28 sps:$4 sm:$0xff]   ;;  %v19502_v19 = vld [vmem:[#allocation2 + $0x29e0] ss:$28 sps:$4 sm:$0xff]  }
 0x5f2   :  { %11223 = vmatmul.mubr.bf16.vlgmr.msra.gmra.mxu1 %v20573_v21  ;;  %12170 = vmatpush1.bf16.msra.mxu0 %v19493_v28  ;;  %v19545_v10 = vld [vmem:[#allocation6 + $0xd0] ss:$8 sps:$4 sm:$0xff]   ;;  %v19548_v28 = vld [vmem:[#allocation6 + $0x140] ss:$8 sps:$4 sm:$0xff]   ;;  %v19556_v33 = vld [vmem:[#allocation6 + $0x134] ss:$8 sps:$4 sm:$0xff]  }
 0x5f3   :  { %v11477_v45 = vadd.f32 %v11448_v35, %v11433_v38  ;;  %17400 = vmatpush3.bf16.msra.mxu1 %v19490_v26  ;;  %12171 = vmatprep.subr.bf16.mxu0 %v19500_v27  ;;  %v19550_v35 = vld [vmem:[#allocation6 + $0x144] ss:$8 sps:$4 sm:$0xff]   ;;  %v19554_v27 = vld [vmem:[#allocation6 + $0x130] ss:$8 sps:$4 sm:$0xff]  }
 0x5f4   :  { %17401 = vmatprep.subr.bf16.mxu1 %v19492_v42  ;;  %11384 = vmatprep.mubr.bf16.mxu1 %v20567_v36  ;;  %v19515_v36 = vld [vmem:[#allocation6 + $0x34] ss:$8 sps:$4 sm:$0xff]   ;;  %v19553_v26 = vld [vmem:[#allocation6 + $0xc4] ss:$8 sps:$4 sm:$0xff]   ;;  %v19557_v38 = vld [vmem:[#allocation6 + $0xb0] ss:$8 sps:$4 sm:$0xff]  }
 0x5f5   :  { %v11484_v51 = vmax.f32 %v11477_v45, 0.0  ;;  %v19559_v42 = vld [vmem:[#allocation6 + $0xb4] ss:$8 sps:$4 sm:$0xff]   ;;  %v11443_v45 = vsub.s32 0, %v20915_v4  ;;  %v19578_v1 = vld [vmem:[#allocation6 + $0x1f0] ss:$8 sps:$4 sm:$0xff]  }
 0x5f6   :  { %12172 = vmatpush1.bf16.msra.mxu0 %v19498_v23  ;;  %v19565_v23 = vld [vmem:[#allocation6 + $0xa4] ss:$8 sps:$4 sm:$0xff]  }
 0x5f7   :  { %17402 = vmatpush3.bf16.msra.mxu1 %v19496_v31  ;;  %v20940_v6 = vpack.c.bf16 %v11484_v51, %v11484_v51  ;;  %12173 = vmatprep.subr.bf16.mxu0 %v19505_v48  ;;  %v19562_v31 = vld [vmem:[#allocation6 + $0x124] ss:$8 sps:$4 sm:$0xff]   ;;  %v19560_v48 = vld [vmem:[#allocation6 + $0x120] ss:$8 sps:$4 sm:$0xff]  }
 0x5f8   :  { %17403 = vmatprep.subr.bf16.mxu1 %v19497_v8  ;;  %v19563_v51 = vld [vmem:[#allocation6 + $0xa0] ss:$8 sps:$4 sm:$0xff]  }
 0x5f9   :  { %12201 = vmatprep.mubr.bf16.mxu0 %v20940_v6 }
 0x5fa   :  { %12174 = vmatpush1.bf16.msra.mxu0 %v19503_v58  ;;  %v19568_v58 = vld [vmem:[#allocation6 + $0x114] ss:$8 sps:$4 sm:$0xff]  }
 0x5fb   :  { %17404 = vmatpush3.bf16.msra.mxu1 %v19501_v40  ;;  %12175 = vmatprep.subr.bf16.mxu0 %v19510_v52  ;;  %v11444_v40 = vrot.slane %v20927_v54, %v11443_v45 }
 0x5fc   :  { %17405 = vmatprep.subr.bf16.mxu1 %v19502_v19  ;;  %v19571_v19 = vld [vmem:[#allocation6 + $0x94] ss:$8 sps:$4 sm:$0xff]  }
 0x5fe   :  { %12176 = vmatpush1.bf16.msra.mxu0 %v19508_v34  ;;  %v19566_v34 = vld [vmem:[#allocation6 + $0x110] ss:$8 sps:$4 sm:$0xff]  }
 0x5ff   :  { %17406 = vmatpush3.bf16.msra.mxu1 %v19506_v63  ;;  %12177 = vmatprep.subr.bf16.mxu0 %v19515_v36  ;;  %v11476_v36 = vadd.f32 %v11444_v40, %v11432_v55  ;;  %v19602_v55 = vld [vmem:[#allocation6 + $0x270] ss:$8 sps:$4 sm:$0xff]  }
 0x600   :  { %17407 = vmatprep.subr.bf16.mxu1 %v19507_v12  ;;  %v19569_v12 = vld [vmem:[#allocation6 + $0x90] ss:$8 sps:$4 sm:$0xff]  }
 0x602   :  { %12178 = vmatpush1.bf16.msra.mxu0 %v19513_v30  ;;  %v19577_v30 = vld [vmem:[#allocation6 + $0x84] ss:$8 sps:$4 sm:$0xff]  }
 0x603   :  { %17408 = vmatpush3.bf16.msra.mxu1 %v19511_v57  ;;  %12179 = vmatprep.subr.bf16.mxu0 %v19520_v47  ;;  %v19574_v57 = vld [vmem:[#allocation6 + $0x104] ss:$8 sps:$4 sm:$0xff]  }
 0x604   :  { %17409 = vmatprep.subr.bf16.mxu1 %v19512_v41 }
 0x606   :  { %12180 = vmatpush1.bf16.msra.mxu0 %v19518_v46  ;;  %v19575_v46 = vld [vmem:[#allocation6 + $0x80] ss:$8 sps:$4 sm:$0xff]  }
 0x607   :  { %17410 = vmatpush3.bf16.msra.mxu1 %v19516_v11  ;;  %12181 = vmatprep.subr.bf16.mxu0 %v19525_v49  ;;  %v19572_v11 = vld [vmem:[#allocation6 + $0x100] ss:$8 sps:$4 sm:$0xff]  }
 0x608   :  { %17411 = vmatprep.subr.bf16.mxu1 %v19517_v15  ;;  %v11483_v15 = vmax.f32 %v11476_v36, 0.0 }
 0x60a   :  { %12182 = vmatpush1.bf16.msra.mxu0 %v19523_v14  ;;  %v19604_v14 = vld [vmem:[#allocation6 + $0x274] ss:$8 sps:$4 sm:$0xff]  }
 0x60b   :  { %17412 = vmatpush3.bf16.msra.mxu1 %v19521_v29  ;;  %12183 = vmatprep.subr.bf16.mxu0 %v19529_v61  ;;  %v19580_v29 = vld [vmem:[#allocation6 + $0x1f4] ss:$8 sps:$4 sm:$0xff]   ;;  %v20954_v61 = vpack.c.bf16 %v11483_v15, %v11483_v15  ;;  %v19620_v15 = vld [vmem:[#allocation6 + $0x210] ss:$8 sps:$4 sm:$0xff]  }
 0x60c   :  { %17413 = vmatprep.subr.bf16.mxu1 %v19522_v43 }
 0x60e   :  { %12184 = vmatpush1.bf16.msra.mxu0 %v19527_v24  ;;  %v19583_v24 = vld [vmem:[#allocation6 + $0x1e4] ss:$8 sps:$4 sm:$0xff]  }
 0x60f   :  { %17414 = vmatpush3.bf16.msra.mxu1 %v19526_v53  ;;  %12185 = vmatprep.subr.bf16.mxu0 %v19535_v62  ;;  %v11455_v62 = vsub.s32 3, %v20915_v4 }
 0x610   :  { %12210 = vmatprep.subr.bf16.mxu1 %v19532_v39  ;;  %v19607_v39 = vld [vmem:[#allocation6 + $0x264] ss:$8 sps:$4 sm:$0xff]  }
 0x612   :  { %11385 = vmatmul.mubr.bf16.vlgmr.msra.gmra.mxu1 %v20573_v21  ;;  %12186 = vmatpush2.bf16.msra.mxu0 %v19533_v59  ;;  %v19551_v21 = vld [vmem:[#allocation6 + $0xc0] ss:$8 sps:$4 sm:$0xff]  }
 0x613   :  { %12211 = vmatpush1.bf16.msra.mxu1 %v19530_v7  ;;  %12187 = vmatprep.subr.bf16.mxu0 %v19541_v2 }
 0x614   :  { %12212 = vmatprep.subr.bf16.mxu1 %v19538_v17  ;;  %v19581_v17 = vld [vmem:[#allocation6 + $0x1e0] ss:$8 sps:$4 sm:$0xff]  }
 0x616   :  { %12188 = vmatpush2.bf16.msra.mxu0 %v19539_v20  ;;  %v19610_v20 = vld [vmem:[#allocation6 + $0x254] ss:$8 sps:$4 sm:$0xff]  }
 0x617   :  { %12213 = vmatpush1.bf16.msra.mxu1 %v19536_v18  ;;  %12189 = vmatprep.subr.bf16.mxu0 %v19547_v9  ;;  %v19586_v18 = vld [vmem:[#allocation6 + $0x1d4] ss:$8 sps:$4 sm:$0xff]   ;;  %v11456_v9 = vrot.slane %v20927_v54, %v11455_v62  ;;  %v19659_v62 = vld [vmem:[#allocation6 + $0x360] ss:$8 sps:$4 sm:$0xff]  }
 0x618   :  { %12214 = vmatprep.subr.bf16.mxu1 %v19544_v50 }
 0x61a   :  { %12190 = vmatpush2.bf16.msra.mxu0 %v19545_v10 }
 0x61b   :  { %12215 = vmatpush1.bf16.msra.mxu1 %v19542_v13  ;;  %12191 = vmatprep.subr.bf16.mxu0 %v19553_v26  ;;  %v19608_v26 = vld [vmem:[#allocation6 + $0x250] ss:$8 sps:$4 sm:$0xff]  }
 0x61c   :  { %12216 = vmatprep.subr.bf16.mxu1 %v19550_v35  ;;  %v19584_v35 = vld [vmem:[#allocation6 + $0x1d0] ss:$8 sps:$4 sm:$0xff]  }
 0x61e   :  { %12192 = vmatpush2.bf16.msra.mxu0 %v19551_v21  ;;  %v19589_v21 = vld [vmem:[#allocation6 + $0x1c4] ss:$8 sps:$4 sm:$0xff]  }
 0x61f   :  { %12217 = vmatpush1.bf16.msra.mxu1 %v19548_v28  ;;  %12193 = vmatprep.subr.bf16.mxu0 %v19559_v42 }
 0x620   :  { %12218 = vmatprep.subr.bf16.mxu1 %v19556_v33  ;;  %v19613_v33 = vld [vmem:[#allocation6 + $0x244] ss:$8 sps:$4 sm:$0xff]  }
 0x621   :  { %v20945_v8 = vpop.f32.mrf.mxu0 }
 0x622   :  { %12194 = vmatpush2.bf16.msra.mxu0 %v19557_v38 }
 0x623   :  { %12219 = vmatpush1.bf16.msra.mxu1 %v19554_v27  ;;  %12195 = vmatprep.subr.bf16.mxu0 %v19565_v23  ;;  %v11062_v52 = vpop.f32.mrf.mxu0  ;;  %v19592_v23 = vld [vmem:[#allocation6 + $0x1b4] ss:$8 sps:$4 sm:$0xff]  }
 0x624   :  { %12220 = vmatprep.subr.bf16.mxu1 %v19562_v31  ;;  %v19587_v31 = vld [vmem:[#allocation6 + $0x1c0] ss:$8 sps:$4 sm:$0xff]  }
 0x625   :  { %v11064_v63 = vpop.f32.mrf.mxu0 }
 0x626   :  { %12196 = vmatpush2.bf16.msra.mxu0 %v19563_v51  ;;  %v19616_v51 = vld [vmem:[#allocation6 + $0x234] ss:$8 sps:$4 sm:$0xff]   ;;  %v19614_v63 = vld [vmem:[#allocation6 + $0x230] ss:$8 sps:$4 sm:$0xff]  }
 0x627   :  { %12221 = vmatpush1.bf16.msra.mxu1 %v19560_v48  ;;  %12197 = vmatprep.subr.bf16.mxu0 %v19571_v19  ;;  %v11065_v41 = vpop.f32.mrf.mxu0  ;;  %v19611_v48 = vld [vmem:[#allocation6 + $0x240] ss:$8 sps:$4 sm:$0xff]  }
 0x628   :  { %12222 = vmatprep.subr.bf16.mxu1 %v19568_v58  ;;  %v19590_v58 = vld [vmem:[#allocation6 + $0x1b0] ss:$8 sps:$4 sm:$0xff]   ;;  %v19622_v41 = vld [vmem:[#allocation6 + $0x214] ss:$8 sps:$4 sm:$0xff]  }
 0x62a   :  { %v11019_v47 = vpop.f32.mrf.mxu1  ;;  %12198 = vmatpush2.bf16.msra.mxu0 %v19569_v12  ;;  %v19593_v12 = vld [vmem:[#allocation6 + $0x1a0] ss:$8 sps:$4 sm:$0xff]  }
 0x62b   :  { %12223 = vmatpush1.bf16.msra.mxu1 %v19566_v34  ;;  %12199 = vmatprep.subr.bf16.mxu0 %v19577_v30  ;;  %v11020_v27 = vadd.f32 %v11019_v47, %v20910_v0  ;;  %v11451_v0 = vsub.s32 2, %v20915_v4  ;;  %v19619_v34 = vld [vmem:[#allocation6 + $0x224] ss:$8 sps:$4 sm:$0xff]   ;;  %v19617_v30 = vld [vmem:[#allocation6 + $0x220] ss:$8 sps:$4 sm:$0xff]  }
 0x62c   :  { %v11021_v49 = vpop.f32.mrf.mxu1  ;;  %12224 = vmatprep.subr.bf16.mxu1 %v19574_v57  ;;  %v19596_v47 = vld [vmem:[#allocation6 + $0x190] ss:$8 sps:$4 sm:$0xff]  }
 0x62d   :  { %v11022_v44 = vadd.f32 %v11021_v49, %v20912_v3  ;;  %v19605_v3 = vld [vmem:[#allocation6 + $0x260] ss:$8 sps:$4 sm:$0xff]   ;;  %v11061_v40 = vadd.f32 %v20945_v8, %v11020_v27  ;;  %v11452_v57 = vrot.slane %v20927_v54, %v11451_v0  ;;  %v19598_v8 = vld [vmem:[#allocation6 + $0x194] ss:$8 sps:$4 sm:$0xff]   ;;  %v19625_v49 = vld [vmem:[#allocation6 + $0x204] ss:$8 sps:$4 sm:$0xff]  }
 0x62e   :  { %v11023_v43 = vpop.f32.mrf.mxu1  ;;  %12200 = vmatpush2.bf16.msra.mxu0 %v19575_v46  ;;  %v19601_v46 = vld [vmem:[#allocation6 + $0x184] ss:$8 sps:$4 sm:$0xff]  }
 0x62f   :  { %12225 = vmatpush1.bf16.msra.mxu1 %v19572_v11  ;;  %12251 = vmatprep.subr.bf16.mxu0 %v19604_v14  ;;  %v11063_v59 = vadd.f32 %v11062_v52, %v11022_v44  ;;  %v19595_v52 = vld [vmem:[#allocation6 + $0x1a4] ss:$8 sps:$4 sm:$0xff]   ;;  %v19623_v14 = vld [vmem:[#allocation6 + $0x200] ss:$8 sps:$4 sm:$0xff]   ;;  %v19655_v43 = vld [vmem:[#allocation6 + $0x374] ss:$8 sps:$4 sm:$0xff]  }
 0x630   :  { %v11024_v53 = vpop.f32.mrf.mxu1  ;;  %12226 = vmatprep.subr.bf16.mxu1 %v19580_v29  ;;  %v19599_v29 = vld [vmem:[#allocation6 + $0x180] ss:$8 sps:$4 sm:$0xff]   ;;  %v19628_v44 = vld [vmem:[#allocation6 + $0x2f4] ss:$8 sps:$4 sm:$0xff]   ;;  %v19649_v0 = vld [vmem:[#allocation6 + $0x284] ss:$8 sps:$4 sm:$0xff]  }
 0x631   :  { %12202 = vmatmul.mubr.bf16.vlgmr.msra.gmra.mxu0 %v20954_v61  ;;  %v19626_v53 = vld [vmem:[#allocation6 + $0x2f0] ss:$8 sps:$4 sm:$0xff]  }
 0x632   :  { %v11101_v7 = vpop.f32.mrf.mxu1  ;;  %12252 = vmatpush1.bf16.msra.mxu0 %v19602_v55 }
 0x633   :  { %12227 = vmatpush2.bf16.msra.mxu1 %v19578_v1  ;;  %12253 = vmatprep.subr.bf16.mxu0 %v19607_v39  ;;  %v11102_v19 = vadd.f32 %v11101_v7, %v11061_v40  ;;  %v19653_v1 = vld [vmem:[#allocation6 + $0x370] ss:$8 sps:$4 sm:$0xff]   ;;  %v19631_v39 = vld [vmem:[#allocation6 + $0x2e4] ss:$8 sps:$4 sm:$0xff]   ;;  %v19629_v7 = vld [vmem:[#allocation6 + $0x2e0] ss:$8 sps:$4 sm:$0xff]  }
 0x634   :  { %v11103_v2 = vpop.f32.mrf.mxu1  ;;  %12228 = vmatprep.subr.bf16.mxu1 %v19583_v24  ;;  %v19661_v24 = vld [vmem:[#allocation6 + $0x364] ss:$8 sps:$4 sm:$0xff]  }
 0x635   :  { %v11104_v50 = vadd.f32 %v11103_v2, %v11063_v59  ;;  %v11434_v36 = vmax.f32 %v20831_v25, %v11102_v19  ;;  %v19667_v59 = vld [vmem:[#allocation6 + $0x354] ss:$8 sps:$4 sm:$0xff]   ;;  %v19632_v2 = vld [vmem:[#allocation6 + $0x2d0] ss:$8 sps:$4 sm:$0xff]   ;;  %v19697_v19 = vld [vmem:[#allocation6 + $0x304] ss:$8 sps:$4 sm:$0xff]  }
 0x636   :  { %v11105_v13 = vpop.f32.mrf.mxu1  ;;  %12254 = vmatpush1.bf16.msra.mxu0 %v19605_v3  ;;  %v19665_v3 = vld [vmem:[#allocation6 + $0x350] ss:$8 sps:$4 sm:$0xff]  }
 0x637   :  { %v11435_v10 = vmax.f32 %v20837_v60, %v11104_v50  ;;  %12229 = vmatpush2.bf16.msra.mxu1 %v19581_v17  ;;  %12255 = vmatprep.subr.bf16.mxu0 %v19610_v20  ;;  %v11478_v11 = vadd.f32 %v11452_v57, %v11434_v36  ;;  %v19634_v17 = vld [vmem:[#allocation6 + $0x2d4] ss:$8 sps:$4 sm:$0xff]   ;;  %v19637_v20 = vld [vmem:[#allocation6 + $0x2c4] ss:$8 sps:$4 sm:$0xff]   ;;  %v19671_v50 = vld [vmem:[#allocation6 + $0x340] ss:$8 sps:$4 sm:$0xff]  }
 0x638   :  { %v11106_v28 = vpop.f32.mrf.mxu1  ;;  %12230 = vmatprep.subr.bf16.mxu1 %v19586_v18  ;;  %v19673_v18 = vld [vmem:[#allocation6 + $0x344] ss:$8 sps:$4 sm:$0xff]   ;;  %v19679_v13 = vld [vmem:[#allocation6 + $0x334] ss:$8 sps:$4 sm:$0xff]  }
 0x639   :  { %v11479_v42 = vadd.f32 %v11456_v9, %v11435_v10  ;;  %v11485_v25 = vmax.f32 %v11478_v11, 0.0  ;;  %v19635_v9 = vld [vmem:[#allocation6 + $0x2c0] ss:$8 sps:$4 sm:$0xff]   ;;  %v19640_v10 = vld [vmem:[#allocation6 + $0x2b4] ss:$8 sps:$4 sm:$0xff]  }
 0x63a   :  { %12256 = vmatpush1.bf16.msra.mxu0 %v19608_v26  ;;  %v19638_v26 = vld [vmem:[#allocation6 + $0x2b0] ss:$8 sps:$4 sm:$0xff]   ;;  %v19685_v28 = vld [vmem:[#allocation6 + $0x324] ss:$8 sps:$4 sm:$0xff]   ;;  %v19703_v36 = vld [vmem:[#allocation6 + $0x3f4] ss:$8 sps:$4 sm:$0xff]  }
 0x63b   :  { %v11486_v38 = vmax.f32 %v11479_v42, 0.0  ;;  %12231 = vmatpush2.bf16.msra.mxu1 %v19584_v35  ;;  %12257 = vmatprep.subr.bf16.mxu0 %v19613_v33  ;;  %v20968_v55 = vpack.c.bf16 %v11485_v25, %v11485_v25  ;;  %v19677_v35 = vld [vmem:[#allocation6 + $0x330] ss:$8 sps:$4 sm:$0xff]   ;;  %v19683_v42 = vld [vmem:[#allocation6 + $0x320] ss:$8 sps:$4 sm:$0xff]  }
 0x63c   :  { %12232 = vmatprep.subr.bf16.mxu1 %v19589_v21  ;;  %v19643_v21 = vld [vmem:[#allocation6 + $0x2a4] ss:$8 sps:$4 sm:$0xff]   ;;  %v19652_v57 = vld [vmem:[#allocation6 + $0x4f4] ss:$8 sps:$4 sm:$0xff]  }
 0x63d   :  { %v20961_v60 = vpack.c.bf16 %v11486_v38, %v11486_v38  ;;  %v19641_v38 = vld [vmem:[#allocation6 + $0x2a0] ss:$8 sps:$4 sm:$0xff]  }
 0x63e   :  { %12258 = vmatpush1.bf16.msra.mxu0 %v19611_v48 }
 0x63f   :  { %12233 = vmatpush2.bf16.msra.mxu1 %v19587_v31  ;;  %12242 = vmatprep.mubr.bf16.mxu1 %v20961_v60  ;;  %v19691_v31 = vld [vmem:[#allocation6 + $0x314] ss:$8 sps:$4 sm:$0xff]  }
 0x640   :  { %12234 = vmatprep.subr.bf16.mxu1 %v19592_v23  ;;  %12259 = vmatprep.subr.bf16.mxu0 %v19616_v51  ;;  %v19646_v23 = vld [vmem:[#allocation6 + $0x294] ss:$8 sps:$4 sm:$0xff]   ;;  %v19689_v51 = vld [vmem:[#allocation6 + $0x310] ss:$8 sps:$4 sm:$0xff]  }
 0x642   :  { %12260 = vmatpush1.bf16.msra.mxu0 %v19614_v63  ;;  %v19695_v63 = vld [vmem:[#allocation6 + $0x300] ss:$8 sps:$4 sm:$0xff]  }
 0x643   :  { %12235 = vmatpush2.bf16.msra.mxu1 %v19590_v58  ;;  %12261 = vmatprep.subr.bf16.mxu0 %v19619_v34  ;;  %v19644_v58 = vld [vmem:[#allocation6 + $0x290] ss:$8 sps:$4 sm:$0xff]  }
 0x644   :  { %12236 = vmatprep.subr.bf16.mxu1 %v19595_v52 }
 0x646   :  { %12262 = vmatpush1.bf16.msra.mxu0 %v19617_v30 }
 0x647   :  { %12237 = vmatpush2.bf16.msra.mxu1 %v19593_v12  ;;  %12263 = vmatprep.subr.bf16.mxu0 %v19622_v41  ;;  %v19647_v12 = vld [vmem:[#allocation6 + $0x280] ss:$8 sps:$4 sm:$0xff]  }
 0x648   :  { %12238 = vmatprep.subr.bf16.mxu1 %v19598_v8 }
 0x64a   :  { %12264 = vmatpush1.bf16.msra.mxu0 %v19620_v15 }
 0x64b   :  { %12239 = vmatpush2.bf16.msra.mxu1 %v19596_v47  ;;  %12265 = vmatprep.subr.bf16.mxu0 %v19625_v49 }
 0x64c   :  { %12240 = vmatprep.subr.bf16.mxu1 %v19601_v46 }
 0x64e   :  { %12266 = vmatpush1.bf16.msra.mxu0 %v19623_v14 }
 0x64f   :  { %12241 = vmatpush2.bf16.msra.mxu1 %v19599_v29  ;;  %12267 = vmatprep.subr.bf16.mxu0 %v19628_v44 }
 0x650   :  { %12292 = vmatprep.subr.bf16.mxu1 %v19655_v43 }
 0x652   :  { %12243 = vmatmul.mubr.bf16.vlgmr.msra.gmra.mxu1 %v20968_v55  ;;  %12268 = vmatpush2.bf16.msra.mxu0 %v19626_v53 }
 0x653   :  { %12293 = vmatpush1.bf16.msra.mxu1 %v19653_v1  ;;  %12324 = vmatprep.mubr.bf16.mxu1 %v20438_v16 }
 0x654   :  { %12294 = vmatprep.subr.bf16.mxu1 %v19661_v24  ;;  %12269 = vmatprep.subr.bf16.mxu0 %v19631_v39  ;;  %v11459_v39 = vsub.s32 4, %v20915_v4 }
 0x656   :  { %12270 = vmatpush2.bf16.msra.mxu0 %v19629_v7 }
 0x657   :  { %12295 = vmatpush1.bf16.msra.mxu1 %v19659_v62  ;;  %12271 = vmatprep.subr.bf16.mxu0 %v19634_v17 }
 0x658   :  { %12296 = vmatprep.subr.bf16.mxu1 %v19667_v59 }
 0x65a   :  { %12272 = vmatpush2.bf16.msra.mxu0 %v19632_v2 }
 0x65b   :  { %12297 = vmatpush1.bf16.msra.mxu1 %v19665_v3  ;;  %12273 = vmatprep.subr.bf16.mxu0 %v19637_v20  ;;  %v11463_v3 = vsub.s32 5, %v20915_v4 }
 0x65c   :  { %12298 = vmatprep.subr.bf16.mxu1 %v19673_v18 }
 0x65e   :  { %12274 = vmatpush2.bf16.msra.mxu0 %v19635_v9 }
 0x65f   :  { %12299 = vmatpush1.bf16.msra.mxu1 %v19671_v50  ;;  %12275 = vmatprep.subr.bf16.mxu0 %v19640_v10  ;;  %v11460_v50 = vrot.slane %v20927_v54, %v11459_v39  ;;  %v19700_v39 = vld [vmem:[#allocation6 + $0x574] ss:$8 sps:$4 sm:$0xff]  }
 0x660   :  { %12300 = vmatprep.subr.bf16.mxu1 %v19679_v13 }
 0x661   :  { %v11183_v33 = vpop.f32.mrf.mxu0 }
 0x662   :  { %12276 = vmatpush2.bf16.msra.mxu0 %v19638_v26 }
 0x663   :  { %12301 = vmatpush1.bf16.msra.mxu1 %v19677_v35  ;;  %v11185_v27 = vpop.f32.mrf.mxu0  ;;  %12277 = vmatprep.subr.bf16.mxu0 %v19643_v21 }
 0x664   :  { %12302 = vmatprep.subr.bf16.mxu1 %v19685_v28  ;;  %v11464_v28 = vrot.slane %v20927_v54, %v11463_v3 }
 0x665   :  { %v11187_v48 = vpop.f32.mrf.mxu0 }
 0x666   :  { %12278 = vmatpush2.bf16.msra.mxu0 %v19641_v38 }
 0x667   :  { %12303 = vmatpush1.bf16.msra.mxu1 %v19683_v42  ;;  %v11188_v40 = vpop.f32.mrf.mxu0  ;;  %12279 = vmatprep.subr.bf16.mxu0 %v19646_v23 }
 0x668   :  { %12304 = vmatprep.subr.bf16.mxu1 %v19691_v31 }
 0x669   :  { %v11265_v52 = vpop.f32.mrf.mxu0 }
 0x66a   :  { %12280 = vmatpush2.bf16.msra.mxu0 %v19644_v58  ;;  %v19658_v58 = vld [vmem:[#allocation6 + $0x4e4] ss:$8 sps:$4 sm:$0xff]  }
 0x66b   :  { %12305 = vmatpush1.bf16.msra.mxu1 %v19689_v51  ;;  %v11267_v34 = vpop.f32.mrf.mxu0  ;;  %12281 = vmatprep.subr.bf16.mxu0 %v19649_v0  ;;  %v19650_v51 = vld [vmem:[#allocation6 + $0x4f0] ss:$8 sps:$4 sm:$0xff]   ;;  %v19670_v0 = vld [vmem:[#allocation6 + $0x4c4] ss:$8 sps:$4 sm:$0xff]  }
 0x66c   :  { %12306 = vmatprep.subr.bf16.mxu1 %v19697_v19  ;;  %v19664_v19 = vld [vmem:[#allocation6 + $0x4d4] ss:$8 sps:$4 sm:$0xff]  }
 0x66d   :  { %v11269_v8 = vpop.f32.mrf.mxu0 }
 0x66e   :  { %12282 = vmatpush2.bf16.msra.mxu0 %v19647_v12  ;;  %v19682_v12 = vld [vmem:[#allocation6 + $0x4a4] ss:$8 sps:$4 sm:$0xff]   ;;  %v19680_v8 = vld [vmem:[#allocation6 + $0x4a0] ss:$8 sps:$4 sm:$0xff]  }
 0x66f   :  { %12307 = vmatpush1.bf16.msra.mxu1 %v19695_v63  ;;  %v11270_v30 = vpop.f32.mrf.mxu0  ;;  %13047 = vmatprep.subr.bf16.mxu0 %v19652_v57  ;;  %v19676_v63 = vld [vmem:[#allocation6 + $0x4b4] ss:$8 sps:$4 sm:$0xff]  }
 0x670   :  { %13006 = vmatprep.subr.bf16.mxu1 %v19703_v36 }
 0x672   :  { %v11142_v41 = vpop.f32.mrf.mxu1 }
 0x673   :  { %v11184_v47 = vadd.f32 %v11183_v33, %v11142_v41  ;;  %v19688_v41 = vld [vmem:[#allocation6 + $0x494] ss:$8 sps:$4 sm:$0xff]  }
 0x674   :  { %v11144_v11 = vpop.f32.mrf.mxu1 }
 0x675   :  { %v11186_v59 = vadd.f32 %v11185_v27, %v11144_v11 }
 0x676   :  { %v11146_v46 = vpop.f32.mrf.mxu1 }
 0x677   :  { %v11467_v46 = vsub.s32 6, %v20915_v4  ;;  %v20201_v4 = vld [vmem:[#allocation12] sm:$0xff]  }
 0x678   :  { %v11147_v15 = vpop.f32.mrf.mxu1 }
 0x689   :  { %v17371_v49 = vpop.f32.mrf.mxu0 }
 0x68b   :  { %v17372_v29 = vpop.f32.mrf.mxu0 }
 0x68c   :  { %v17373_v25 = vadd.f32 %v17372_v29, %v17371_v49  ;;  %v19686_v29 = vld [vmem:[#allocation6 + $0x490] ss:$8 sps:$4 sm:$0xff]  }
 0x68d   :  { %v17374_v14 = vpop.f32.mrf.mxu0 }
 0x68f   :  { %v17375_v43 = vpop.f32.mrf.mxu0 }
 0x690   :  { %v19694_v43 = vld [vmem:[#allocation6 + $0x484] ss:$8 sps:$4 sm:$0xff]  }
 0x6a9   :  { %v17393_v44 = vpop.f32.mrf.mxu0 }
 0x6ab   :  { %v17394_v1 = vpop.f32.mrf.mxu0 }
 0x6ac   :  { %v17395_v36 = vadd.f32 %v17394_v1, %v17393_v44  ;;  %v11468_v44 = vrot.slane %v20927_v54, %v11467_v46  ;;  %v19704_v54 = vld [vmem:[#allocation6 + $0x560] ss:$8 sps:$4 sm:$0xff]   ;;  %v19757_v46 = vld [vmem:[#allocation6 + $0x464] ss:$8 sps:$4 sm:$0xff]  }
 0x6ad   :  { %v17396_v53 = vpop.f32.mrf.mxu0 }
 0x6af   :  { %v17397_v24 = vpop.f32.mrf.mxu0 }
 0x6b0   :  { %v19692_v24 = vld [vmem:[#allocation6 + $0x480] ss:$8 sps:$4 sm:$0xff]  }
 0x6b1   :  { %v11426_v7 = vpop.f32.mrf.mxu0 }
 0x6b2   :  { %v11224_v62 = vpop.f32.mrf.mxu1 }
 0x6b3   :  { %v11225_v17 = vadd.f32 %v11224_v62, %v11184_v47  ;;  %v17485_v18 = vpop.f32.mrf.mxu0  ;;  %v11347_v47 = vadd.f32 %v17395_v36, %v17373_v25  ;;  %v19740_v36 = vld [vmem:[#allocation6 + $0x500] ss:$8 sps:$4 sm:$0xff]  }
 0x6b4   :  { %v11226_v2 = vpop.f32.mrf.mxu1  ;;  %v19709_v18 = vld [vmem:[#allocation6 + $0x3e4] ss:$8 sps:$4 sm:$0xff]  }
 0x6b5   :  { %v11266_v20 = vadd.f32 %v11265_v52, %v11225_v17  ;;  %v11227_v9 = vadd.f32 %v11226_v2, %v11186_v59  ;;  %v11429_v10 = vpop.f32.mrf.mxu0  ;;  %v19668_v52 = vld [vmem:[#allocation6 + $0x4c0] ss:$8 sps:$4 sm:$0xff]   ;;  %v19698_v59 = vld [vmem:[#allocation6 + $0x570] ss:$8 sps:$4 sm:$0xff]   ;;  %v19706_v2 = vld [vmem:[#allocation6 + $0x564] ss:$8 sps:$4 sm:$0xff]  }
 0x6b6   :  { %v11228_v13 = vpop.f32.mrf.mxu1  ;;  %v19701_v17 = vld [vmem:[#allocation6 + $0x3f0] ss:$8 sps:$4 sm:$0xff]   ;;  %v19721_v10 = vld [vmem:[#allocation6 + $0x3c4] ss:$8 sps:$4 sm:$0xff]  }
 0x6b7   :  { %v11436_v35 = vmax.f32 %v20868_v32, %v11266_v20  ;;  %v11268_v26 = vadd.f32 %v11267_v34, %v11227_v9  ;;  %v17486_v33 = vpop.f32.mrf.mxu0  ;;  %v19656_v32 = vld [vmem:[#allocation6 + $0x4e0] ss:$8 sps:$4 sm:$0xff]   ;;  %v19674_v34 = vld [vmem:[#allocation6 + $0x4b0] ss:$8 sps:$4 sm:$0xff]   ;;  %v19715_v20 = vld [vmem:[#allocation6 + $0x3d4] ss:$8 sps:$4 sm:$0xff]  }
 0x6b8   :  { %v11229_v21 = vpop.f32.mrf.mxu1  ;;  %v19713_v9 = vld [vmem:[#allocation6 + $0x3d0] ss:$8 sps:$4 sm:$0xff]   ;;  %v19718_v13 = vld [vmem:[#allocation6 + $0x544] ss:$8 sps:$4 sm:$0xff]  }
 0x6b9   :  { %v11480_v42 = vadd.f32 %v11460_v50, %v11436_v35  ;;  %v11437_v27 = vmax.f32 %v20874_v56, %v11268_v26  ;;  %v19662_v56 = vld [vmem:[#allocation6 + $0x4d0] ss:$8 sps:$4 sm:$0xff]   ;;  %v19716_v35 = vld [vmem:[#allocation6 + $0x540] ss:$8 sps:$4 sm:$0xff]   ;;  %v19727_v21 = vld [vmem:[#allocation6 + $0x3b4] ss:$8 sps:$4 sm:$0xff]  }
 0x6ba   :  { %v19710_v50 = vld [vmem:[#allocation6 + $0x550] ss:$8 sps:$4 sm:$0xff]   ;;  %v19719_v26 = vld [vmem:[#allocation6 + $0x3c0] ss:$8 sps:$4 sm:$0xff]  }
 0x6bb   :  { %v11481_v38 = vadd.f32 %v11464_v28, %v11437_v27  ;;  %v11487_v31 = vmax.f32 %v11480_v42, 0.0  ;;  %v19724_v28 = vld [vmem:[#allocation6 + $0x534] ss:$8 sps:$4 sm:$0xff]   ;;  %v19722_v33 = vld [vmem:[#allocation6 + $0x530] ss:$8 sps:$4 sm:$0xff]  }
 0x6bc   :  { %v19725_v42 = vld [vmem:[#allocation6 + $0x3b0] ss:$8 sps:$4 sm:$0xff]   ;;  %v19730_v27 = vld [vmem:[#allocation6 + $0x524] ss:$8 sps:$4 sm:$0xff]  }
 0x6bd   :  { %v11488_v23 = vmax.f32 %v11481_v38, 0.0  ;;  %v20980_v40 = vpack.c.bf16 %v11487_v31, %v11487_v31  ;;  %v19733_v38 = vld [vmem:[#allocation6 + $0x3a4] ss:$8 sps:$4 sm:$0xff]  }
 0x6bf   :  { %v20978_v48 = vpack.c.bf16 %v11488_v23, %v11488_v23  ;;  %v19728_v23 = vld [vmem:[#allocation6 + $0x520] ss:$8 sps:$4 sm:$0xff]  }
 0x6c1   :  { %12283 = vmatprep.mubr.bf16.mxu0 %v20978_v48 }
 0x6c2   :  { %12284 = vmatmul.mubr.bf16.vlgmr.msra.gmra.mxu0 %v20980_v40 }
 0x6c3   :  { %13048 = vmatpush1.bf16.msra.mxu0 %v19650_v51  ;;  %13079 = vmatprep.mubr.bf16.mxu0 %v20961_v60  ;;  %v19731_v51 = vld [vmem:[#allocation6 + $0x3a0] ss:$8 sps:$4 sm:$0xff]  }
 0x6c4   :  { %13049 = vmatprep.subr.bf16.mxu0 %v19658_v58 }
 0x6c7   :  { %13050 = vmatpush1.bf16.msra.mxu0 %v19656_v32  ;;  %v19736_v32 = vld [vmem:[#allocation6 + $0x514] ss:$8 sps:$4 sm:$0xff]  }
 0x6c8   :  { %13051 = vmatprep.subr.bf16.mxu0 %v19664_v19  ;;  %v19739_v19 = vld [vmem:[#allocation6 + $0x394] ss:$8 sps:$4 sm:$0xff]  }
 0x6cb   :  { %13052 = vmatpush1.bf16.msra.mxu0 %v19662_v56 }
 0x6cc   :  { %13053 = vmatprep.subr.bf16.mxu0 %v19670_v0  ;;  %v19734_v0 = vld [vmem:[#allocation6 + $0x510] ss:$8 sps:$4 sm:$0xff]  }
 0x6cf   :  { %13054 = vmatpush1.bf16.msra.mxu0 %v19668_v52  ;;  %v19737_v52 = vld [vmem:[#allocation6 + $0x390] ss:$8 sps:$4 sm:$0xff]  }
 0x6d0   :  { %13055 = vmatprep.subr.bf16.mxu0 %v19676_v63 }
 0x6d2   :  { %v17415_v57 = vpop.f32.mrf.mxu1 }
 0x6d3   :  { %13056 = vmatpush1.bf16.msra.mxu0 %v19674_v34  ;;  %v19742_v34 = vld [vmem:[#allocation6 + $0x504] ss:$8 sps:$4 sm:$0xff]  }
 0x6d4   :  { %v17416_v30 = vpop.f32.mrf.mxu1  ;;  %13057 = vmatprep.subr.bf16.mxu0 %v19682_v12  ;;  %v19745_v12 = vld [vmem:[#allocation6 + $0x384] ss:$8 sps:$4 sm:$0xff]  }
 0x6d5   :  { %v17417_v11 = vadd.f32 %v17416_v30, %v17415_v57  ;;  %v19743_v57 = vld [vmem:[#allocation6 + $0x380] ss:$8 sps:$4 sm:$0xff]   ;;  %v19751_v30 = vld [vmem:[#allocation6 + $0x474] ss:$8 sps:$4 sm:$0xff]  }
 0x6d6   :  { %v17418_v15 = vpop.f32.mrf.mxu1 }
 0x6d7   :  { %v11387_v49 = vadd.f32 %v17417_v11, %v11347_v47  ;;  %13058 = vmatpush1.bf16.msra.mxu0 %v19680_v8  ;;  %v19748_v8 = vld [vmem:[#allocation6 + $0x6f4] ss:$8 sps:$4 sm:$0xff]   ;;  %v19749_v47 = vld [vmem:[#allocation6 + $0x470] ss:$8 sps:$4 sm:$0xff]   ;;  %v19754_v11 = vld [vmem:[#allocation6 + $0x6e4] ss:$8 sps:$4 sm:$0xff]  }
 0x6d8   :  { %v17419_v14 = vpop.f32.mrf.mxu1  ;;  %13059 = vmatprep.subr.bf16.mxu0 %v19688_v41  ;;  %v19746_v41 = vld [vmem:[#allocation6 + $0x6f0] ss:$8 sps:$4 sm:$0xff]   ;;  %v19752_v15 = vld [vmem:[#allocation6 + $0x6e0] ss:$8 sps:$4 sm:$0xff]  }
 0x6d9   :  { %v11427_v53 = vadd.f32 %v11426_v7, %v11387_v49  ;;  %v19712_v7 = vld [vmem:[#allocation6 + $0x554] ss:$8 sps:$4 sm:$0xff]   ;;  %v19755_v49 = vld [vmem:[#allocation6 + $0x460] ss:$8 sps:$4 sm:$0xff]  }
 0x6da   :  { %v19763_v14 = vld [vmem:[#allocation6 + $0x454] ss:$8 sps:$4 sm:$0xff]  }
 0x6db   :  { %v11438_v1 = vmax.f32 %v20886_v22, %v11427_v53  ;;  %13060 = vmatpush1.bf16.msra.mxu0 %v19686_v29  ;;  %v19707_v22 = vld [vmem:[#allocation6 + $0x3e0] ss:$8 sps:$4 sm:$0xff]   ;;  %v19760_v29 = vld [vmem:[#allocation6 + $0x6d4] ss:$8 sps:$4 sm:$0xff]   ;;  %v19761_v53 = vld [vmem:[#allocation6 + $0x450] ss:$8 sps:$4 sm:$0xff]  }
 0x6dc   :  { %13061 = vmatprep.subr.bf16.mxu0 %v19694_v43  ;;  %v19758_v43 = vld [vmem:[#allocation6 + $0x6d0] ss:$8 sps:$4 sm:$0xff]  }
 0x6dd   :  { %v11482_v25 = vadd.f32 %v11468_v44, %v11438_v1  ;;  %v19766_v44 = vld [vmem:[#allocation6 + $0x6c4] ss:$8 sps:$4 sm:$0xff]  }
 0x6de   :  { %v19769_v1 = vld [vmem:[#allocation6 + $0x444] ss:$8 sps:$4 sm:$0xff]  }
 0x6df   :  { %v11489_v62 = vmax.f32 %v11482_v25, 0.0  ;;  %13062 = vmatpush1.bf16.msra.mxu0 %v19692_v24  ;;  %v19764_v24 = vld [vmem:[#allocation6 + $0x6c0] ss:$8 sps:$4 sm:$0xff]   ;;  %v19772_v25 = vld [vmem:[#allocation6 + $0x6b4] ss:$8 sps:$4 sm:$0xff]  }
 0x6e0   :  { %13063 = vmatprep.subr.bf16.mxu0 %v19700_v39  ;;  %v19767_v39 = vld [vmem:[#allocation6 + $0x440] ss:$8 sps:$4 sm:$0xff]  }
 0x6e1   :  { %v20988_v3 = vpack.c.bf16 %v11489_v62, %v11489_v62  ;;  %v19775_v62 = vld [vmem:[#allocation6 + $0x434] ss:$8 sps:$4 sm:$0xff]  }
 0x6e3   :  { %13064 = vmatpush2.bf16.msra.mxu0 %v19698_v59  ;;  %12325 = vmatmul.mubr.bf16.vlgmr.msra.gmra.mxu1 %v20988_v3  ;;  %v19770_v59 = vld [vmem:[#allocation6 + $0x6b0] ss:$8 sps:$4 sm:$0xff]  }
 0x6e4   :  { %13007 = vmatpush1.bf16.msra.mxu1 %v19701_v17  ;;  %13038 = vmatprep.mubr.bf16.mxu1 %v20940_v6  ;;  %v19773_v17 = vld [vmem:[#allocation6 + $0x430] ss:$8 sps:$4 sm:$0xff]  }
 0x6e5   :  { %13065 = vmatprep.subr.bf16.mxu0 %v19706_v2  ;;  %13008 = vmatprep.subr.bf16.mxu1 %v19709_v18  ;;  %v19778_v2 = vld [vmem:[#allocation6 + $0x6a4] ss:$8 sps:$4 sm:$0xff]  }
 0x6e6   :  { %v19781_v18 = vld [vmem:[#allocation6 + $0x424] ss:$8 sps:$4 sm:$0xff]  }
 0x6e7   :  { %13066 = vmatpush2.bf16.msra.mxu0 %v19704_v54 }
 0x6e8   :  { %13009 = vmatpush1.bf16.msra.mxu1 %v19707_v22  ;;  %13067 = vmatprep.subr.bf16.mxu0 %v19712_v7  ;;  %v19776_v7 = vld [vmem:[#allocation6 + $0x6a0] ss:$8 sps:$4 sm:$0xff]  }
 0x6e9   :  { %13010 = vmatprep.subr.bf16.mxu1 %v19715_v20 }
 0x6eb   :  { %13068 = vmatpush2.bf16.msra.mxu0 %v19710_v50  ;;  %v19779_v50 = vld [vmem:[#allocation6 + $0x420] ss:$8 sps:$4 sm:$0xff]  }
 0x6ec   :  { %13011 = vmatpush1.bf16.msra.mxu1 %v19713_v9  ;;  %13069 = vmatprep.subr.bf16.mxu0 %v19718_v13  ;;  %v19784_v9 = vld [vmem:[#allocation6 + $0x694] ss:$8 sps:$4 sm:$0xff]  }
 0x6ed   :  { %13012 = vmatprep.subr.bf16.mxu1 %v19721_v10  ;;  %v19787_v10 = vld [vmem:[#allocation6 + $0x414] ss:$8 sps:$4 sm:$0xff]  }
 0x6ef   :  { %13070 = vmatpush2.bf16.msra.mxu0 %v19716_v35 }
 0x6f0   :  { %13013 = vmatpush1.bf16.msra.mxu1 %v19719_v26  ;;  %13071 = vmatprep.subr.bf16.mxu0 %v19724_v28  ;;  %v19782_v26 = vld [vmem:[#allocation6 + $0x690] ss:$8 sps:$4 sm:$0xff]  }
 0x6f1   :  { %13014 = vmatprep.subr.bf16.mxu1 %v19727_v21  ;;  %v20992_v31 = vpop.f32.mrf.mxu0  ;;  %v19785_v21 = vld [vmem:[#allocation6 + $0x410] ss:$8 sps:$4 sm:$0xff]  }
 0x6f3   :  { %13072 = vmatpush2.bf16.msra.mxu0 %v19722_v33  ;;  %v20994_v58 = vpop.f32.mrf.mxu0  ;;  %v19790_v33 = vld [vmem:[#allocation6 + $0x684] ss:$8 sps:$4 sm:$0xff]  }
 0x6f4   :  { %13015 = vmatpush1.bf16.msra.mxu1 %v19725_v42  ;;  %13073 = vmatprep.subr.bf16.mxu0 %v19730_v27  ;;  %v19793_v42 = vld [vmem:[#allocation6 + $0x404] ss:$8 sps:$4 sm:$0xff]   ;;  %v19788_v27 = vld [vmem:[#allocation6 + $0x680] ss:$8 sps:$4 sm:$0xff]  }
 0x6f5   :  { %13016 = vmatprep.subr.bf16.mxu1 %v19733_v38  ;;  %v12207_v56 = vpop.f32.mrf.mxu0  ;;  %v19791_v38 = vld [vmem:[#allocation6 + $0x400] ss:$8 sps:$4 sm:$0xff]  }
 0x6f6   :  { %v19800_v56 = vld [vmem:[#allocation6 + $0x760] ss:$8 sps:$4 sm:$0xff]  }
 0x6f7   :  { %13074 = vmatpush2.bf16.msra.mxu0 %v19728_v23  ;;  %v12208_v63 = vpop.f32.mrf.mxu0  ;;  %v19799_v23 = vld [vmem:[#allocation6 + $0x5f4] ss:$8 sps:$4 sm:$0xff]  }
 0x6f8   :  { %13017 = vmatpush1.bf16.msra.mxu1 %v19731_v51  ;;  %13075 = vmatprep.subr.bf16.mxu0 %v19736_v32  ;;  %v19794_v51 = vld [vmem:[#allocation6 + $0x770] ss:$8 sps:$4 sm:$0xff]   ;;  %v19802_v32 = vld [vmem:[#allocation6 + $0x764] ss:$8 sps:$4 sm:$0xff]   ;;  %v19811_v63 = vld [vmem:[#allocation6 + $0x5d4] ss:$8 sps:$4 sm:$0xff]  }
 0x6f9   :  { %13018 = vmatprep.subr.bf16.mxu1 %v19739_v19  ;;  %v19805_v19 = vld [vmem:[#allocation6 + $0x5e4] ss:$8 sps:$4 sm:$0xff]  }
 0x6fb   :  { %13076 = vmatpush2.bf16.msra.mxu0 %v19734_v0  ;;  %v19803_v0 = vld [vmem:[#allocation6 + $0x5e0] ss:$8 sps:$4 sm:$0xff]  }
 0x6fc   :  { %13019 = vmatpush1.bf16.msra.mxu1 %v19737_v52  ;;  %13077 = vmatprep.subr.bf16.mxu0 %v19742_v34  ;;  %v19808_v52 = vld [vmem:[#allocation6 + $0x754] ss:$8 sps:$4 sm:$0xff]   ;;  %v19806_v34 = vld [vmem:[#allocation6 + $0x750] ss:$8 sps:$4 sm:$0xff]  }
 0x6fd   :  { %13020 = vmatprep.subr.bf16.mxu1 %v19745_v12  ;;  %v19809_v12 = vld [vmem:[#allocation6 + $0x5d0] ss:$8 sps:$4 sm:$0xff]  }
 0x6ff   :  { %13078 = vmatpush2.bf16.msra.mxu0 %v19740_v36  ;;  %v19814_v36 = vld [vmem:[#allocation6 + $0x744] ss:$8 sps:$4 sm:$0xff]  }
 0x700   :  { %13021 = vmatpush1.bf16.msra.mxu1 %v19743_v57  ;;  %13129 = vmatprep.subr.bf16.mxu0 %v19748_v8  ;;  %v19817_v57 = vld [vmem:[#allocation6 + $0x5c4] ss:$8 sps:$4 sm:$0xff]   ;;  %v19812_v8 = vld [vmem:[#allocation6 + $0x740] ss:$8 sps:$4 sm:$0xff]  }
 0x701   :  { %13022 = vmatprep.subr.bf16.mxu1 %v19751_v30  ;;  %v19815_v30 = vld [vmem:[#allocation6 + $0x5c0] ss:$8 sps:$4 sm:$0xff]  }
 0x702   :  { %13080 = vmatmul.mubr.bf16.vlgmr.msra.gmra.mxu0 %v20968_v55 }
 0x703   :  { %13130 = vmatpush1.bf16.msra.mxu0 %v19746_v41  ;;  %13161 = vmatprep.mubr.bf16.mxu0 %v20438_v16  ;;  %v19820_v41 = vld [vmem:[#allocation6 + $0x734] ss:$8 sps:$4 sm:$0xff]  }
 0x704   :  { %13023 = vmatpush2.bf16.msra.mxu1 %v19749_v47  ;;  %13131 = vmatprep.subr.bf16.mxu0 %v19754_v11  ;;  %v19823_v47 = vld [vmem:[#allocation6 + $0x5b4] ss:$8 sps:$4 sm:$0xff]   ;;  %v19818_v11 = vld [vmem:[#allocation6 + $0x730] ss:$8 sps:$4 sm:$0xff]  }
 0x705   :  { %13024 = vmatprep.subr.bf16.mxu1 %v19757_v46  ;;  %v19821_v46 = vld [vmem:[#allocation6 + $0x5b0] ss:$8 sps:$4 sm:$0xff]  }
 0x707   :  { %13132 = vmatpush1.bf16.msra.mxu0 %v19752_v15  ;;  %v19826_v15 = vld [vmem:[#allocation6 + $0x724] ss:$8 sps:$4 sm:$0xff]  }
 0x708   :  { %13025 = vmatpush2.bf16.msra.mxu1 %v19755_v49  ;;  %13133 = vmatprep.subr.bf16.mxu0 %v19760_v29  ;;  %v19829_v49 = vld [vmem:[#allocation6 + $0x5a4] ss:$8 sps:$4 sm:$0xff]   ;;  %v19824_v29 = vld [vmem:[#allocation6 + $0x720] ss:$8 sps:$4 sm:$0xff]  }
 0x709   :  { %13026 = vmatprep.subr.bf16.mxu1 %v19763_v14  ;;  %v19827_v14 = vld [vmem:[#allocation6 + $0x5a0] ss:$8 sps:$4 sm:$0xff]  }
 0x70b   :  { %13134 = vmatpush1.bf16.msra.mxu0 %v19758_v43  ;;  %v19832_v43 = vld [vmem:[#allocation6 + $0x714] ss:$8 sps:$4 sm:$0xff]  }
 0x70c   :  { %13027 = vmatpush2.bf16.msra.mxu1 %v19761_v53  ;;  %13135 = vmatprep.subr.bf16.mxu0 %v19766_v44  ;;  %v19835_v53 = vld [vmem:[#allocation6 + $0x594] ss:$8 sps:$4 sm:$0xff]   ;;  %v19830_v44 = vld [vmem:[#allocation6 + $0x710] ss:$8 sps:$4 sm:$0xff]  }
 0x70d   :  { %13028 = vmatprep.subr.bf16.mxu1 %v19769_v1  ;;  %v19833_v1 = vld [vmem:[#allocation6 + $0x590] ss:$8 sps:$4 sm:$0xff]  }
 0x70f   :  { %13136 = vmatpush1.bf16.msra.mxu0 %v19764_v24  ;;  %v19838_v24 = vld [vmem:[#allocation6 + $0x704] ss:$8 sps:$4 sm:$0xff]  }
 0x710   :  { %13029 = vmatpush2.bf16.msra.mxu1 %v19767_v39  ;;  %13137 = vmatprep.subr.bf16.mxu0 %v19772_v25  ;;  %v19841_v39 = vld [vmem:[#allocation6 + $0x584] ss:$8 sps:$4 sm:$0xff]   ;;  %v19836_v25 = vld [vmem:[#allocation6 + $0x700] ss:$8 sps:$4 sm:$0xff]  }
 0x711   :  { %13030 = vmatprep.subr.bf16.mxu1 %v19775_v62  ;;  %v19839_v62 = vld [vmem:[#allocation6 + $0x580] ss:$8 sps:$4 sm:$0xff]  }
 0x712   :  { %v12244_v54 = vpop.f32.mrf.mxu1 }
 0x713   :  { %v20999_v22 = vadd.f32 %v12244_v54, %v20992_v31  ;;  %13138 = vmatpush1.bf16.msra.mxu0 %v19770_v59  ;;  %v19796_v31 = vld [vmem:[#allocation6 + $0x774] ss:$8 sps:$4 sm:$0xff]   ;;  %v19850_v54 = vld [vmem:[#allocation6 + $0x7e4] ss:$8 sps:$4 sm:$0xff]  }
 0x714   :  { %13031 = vmatpush2.bf16.msra.mxu1 %v19773_v17  ;;  %v12246_v20 = vpop.f32.mrf.mxu1  ;;  %13139 = vmatprep.subr.bf16.mxu0 %v19778_v2  ;;  %v19844_v59 = vld [vmem:[#allocation6 + $0x7f4] ss:$8 sps:$4 sm:$0xff]   ;;  %v19842_v2 = vld [vmem:[#allocation6 + $0x7f0] ss:$8 sps:$4 sm:$0xff]  }
 0x715   :  { %v21002_v13 = vadd.f32 %v12246_v20, %v20994_v58  ;;  %13032 = vmatprep.subr.bf16.mxu1 %v19781_v18  ;;  %v19797_v58 = vld [vmem:[#allocation6 + $0x5f0] ss:$8 sps:$4 sm:$0xff]   ;;  %v19847_v17 = vld [vmem:[#allocation6 + $0x674] ss:$8 sps:$4 sm:$0xff]   ;;  %v19848_v20 = vld [vmem:[#allocation6 + $0x7e0] ss:$8 sps:$4 sm:$0xff]  }
 0x716   :  { %v12248_v35 = vpop.f32.mrf.mxu1  ;;  %v19845_v18 = vld [vmem:[#allocation6 + $0x670] ss:$8 sps:$4 sm:$0xff]  }
 0x717   :  { %13140 = vmatpush1.bf16.msra.mxu0 %v19776_v7  ;;  %v19853_v7 = vld [vmem:[#allocation6 + $0x664] ss:$8 sps:$4 sm:$0xff]   ;;  %v19854_v35 = vld [vmem:[#allocation6 + $0x7d0] ss:$8 sps:$4 sm:$0xff]  }
 0x718   :  { %13033 = vmatpush2.bf16.msra.mxu1 %v19779_v50  ;;  %v12249_v28 = vpop.f32.mrf.mxu1  ;;  %13141 = vmatprep.subr.bf16.mxu0 %v19784_v9  ;;  %v19851_v50 = vld [vmem:[#allocation6 + $0x660] ss:$8 sps:$4 sm:$0xff]   ;;  %v19856_v9 = vld [vmem:[#allocation6 + $0x7d4] ss:$8 sps:$4 sm:$0xff]  }
 0x719   :  { %13034 = vmatprep.subr.bf16.mxu1 %v19787_v10  ;;  %v19859_v10 = vld [vmem:[#allocation6 + $0x654] ss:$8 sps:$4 sm:$0xff]   ;;  %v19862_v28 = vld [vmem:[#allocation6 + $0x7c4] ss:$8 sps:$4 sm:$0xff]  }
 0x71b   :  { %13142 = vmatpush1.bf16.msra.mxu0 %v19782_v26  ;;  %v19857_v26 = vld [vmem:[#allocation6 + $0x650] ss:$8 sps:$4 sm:$0xff]  }
 0x71c   :  { %13035 = vmatpush2.bf16.msra.mxu1 %v19785_v21  ;;  %13143 = vmatprep.subr.bf16.mxu0 %v19790_v33  ;;  %v19865_v21 = vld [vmem:[#allocation6 + $0x644] ss:$8 sps:$4 sm:$0xff]   ;;  %v19860_v33 = vld [vmem:[#allocation6 + $0x7c0] ss:$8 sps:$4 sm:$0xff]  }
 0x71d   :  { %13036 = vmatprep.subr.bf16.mxu1 %v19793_v42  ;;  %v19863_v42 = vld [vmem:[#allocation6 + $0x640] ss:$8 sps:$4 sm:$0xff]  }
 0x71f   :  { %13144 = vmatpush1.bf16.msra.mxu0 %v19788_v27  ;;  %v19868_v27 = vld [vmem:[#allocation6 + $0x7b4] ss:$8 sps:$4 sm:$0xff]  }
 0x720   :  { %13037 = vmatpush2.bf16.msra.mxu1 %v19791_v38  ;;  %13845 = vmatprep.subr.bf16.mxu0 %v19796_v31  ;;  %v19871_v38 = vld [vmem:[#allocation6 + $0x634] ss:$8 sps:$4 sm:$0xff]   ;;  %v19866_v31 = vld [vmem:[#allocation6 + $0x7b0] ss:$8 sps:$4 sm:$0xff]  }
 0x721   :  { %13088 = vmatprep.subr.bf16.mxu1 %v19799_v23  ;;  %v19869_v23 = vld [vmem:[#allocation6 + $0x630] ss:$8 sps:$4 sm:$0xff]  }
 0x722   :  { %13162 = vmatmul.mubr.bf16.vlgmr.msra.gmra.mxu0 %v20988_v3 }
 0x723   :  { %13039 = vmatmul.mubr.bf16.vlgmr.msra.gmra.mxu1 %v20954_v61  ;;  %13846 = vmatpush1.bf16.msra.mxu0 %v19794_v51  ;;  %v19874_v51 = vld [vmem:[#allocation6 + $0x7a4] ss:$8 sps:$4 sm:$0xff]  }
 0x724   :  { %13877 = vmatprep.mubr.bf16.mxu0 %v20940_v6  ;;  %13089 = vmatpush1.bf16.msra.mxu1 %v19797_v58  ;;  %v19877_v58 = vld [vmem:[#allocation6 + $0x624] ss:$8 sps:$4 sm:$0xff]  }
 0x725   :  { %13120 = vmatprep.mubr.bf16.mxu1 %v20978_v48  ;;  %13847 = vmatprep.subr.bf16.mxu0 %v19802_v32  ;;  %v19872_v32 = vld [vmem:[#allocation6 + $0x7a0] ss:$8 sps:$4 sm:$0xff]  }
 0x726   :  { %13090 = vmatprep.subr.bf16.mxu1 %v19805_v19  ;;  %v19875_v19 = vld [vmem:[#allocation6 + $0x620] ss:$8 sps:$4 sm:$0xff]  }
 0x727   :  { %13848 = vmatpush1.bf16.msra.mxu0 %v19800_v56  ;;  %v19880_v56 = vld [vmem:[#allocation6 + $0x794] ss:$8 sps:$4 sm:$0xff]  }
 0x728   :  { %13091 = vmatpush1.bf16.msra.mxu1 %v19803_v0  ;;  %13849 = vmatprep.subr.bf16.mxu0 %v19808_v52  ;;  %v19883_v0 = vld [vmem:[#allocation6 + $0x614] ss:$8 sps:$4 sm:$0xff]   ;;  %v19878_v52 = vld [vmem:[#allocation6 + $0x790] ss:$8 sps:$4 sm:$0xff]  }
 0x729   :  { %13092 = vmatprep.subr.bf16.mxu1 %v19811_v63  ;;  %v19881_v63 = vld [vmem:[#allocation6 + $0x610] ss:$8 sps:$4 sm:$0xff]  }
 0x72b   :  { %13850 = vmatpush1.bf16.msra.mxu0 %v19806_v34  ;;  %v19886_v34 = vld [vmem:[#allocation6 + $0x784] ss:$8 sps:$4 sm:$0xff]  }
 0x72c   :  { %13093 = vmatpush1.bf16.msra.mxu1 %v19809_v12  ;;  %13851 = vmatprep.subr.bf16.mxu0 %v19814_v36  ;;  %v19889_v12 = vld [vmem:[#allocation6 + $0x604] ss:$8 sps:$4 sm:$0xff]   ;;  %v19884_v36 = vld [vmem:[#allocation6 + $0x780] ss:$8 sps:$4 sm:$0xff]  }
 0x72d   :  { %13094 = vmatprep.subr.bf16.mxu1 %v19817_v57  ;;  %v19887_v57 = vld [vmem:[#allocation6 + $0x600] ss:$8 sps:$4 sm:$0xff]  }
 0x72f   :  { %13852 = vmatpush1.bf16.msra.mxu0 %v19812_v8  ;;  %v19892_v8 = vld [vmem:[#allocation6 + $0x974] ss:$8 sps:$4 sm:$0xff]  }
 0x730   :  { %13095 = vmatpush1.bf16.msra.mxu1 %v19815_v30  ;;  %13853 = vmatprep.subr.bf16.mxu0 %v19820_v41  ;;  %v19895_v30 = vld [vmem:[#allocation6 + $0x874] ss:$8 sps:$4 sm:$0xff]   ;;  %v19890_v41 = vld [vmem:[#allocation6 + $0x970] ss:$8 sps:$4 sm:$0xff]  }
 0x731   :  { %13096 = vmatprep.subr.bf16.mxu1 %v19823_v47  ;;  %v19893_v47 = vld [vmem:[#allocation6 + $0x870] ss:$8 sps:$4 sm:$0xff]  }
 0x733   :  { %13854 = vmatpush1.bf16.msra.mxu0 %v19818_v11  ;;  %v19898_v11 = vld [vmem:[#allocation6 + $0x964] ss:$8 sps:$4 sm:$0xff]  }
 0x734   :  { %13097 = vmatpush1.bf16.msra.mxu1 %v19821_v46  ;;  %13855 = vmatprep.subr.bf16.mxu0 %v19826_v15  ;;  %v19901_v46 = vld [vmem:[#allocation6 + $0x864] ss:$8 sps:$4 sm:$0xff]   ;;  %v19896_v15 = vld [vmem:[#allocation6 + $0x960] ss:$8 sps:$4 sm:$0xff]  }
 0x735   :  { %13098 = vmatprep.subr.bf16.mxu1 %v19829_v49  ;;  %v19899_v49 = vld [vmem:[#allocation6 + $0x860] ss:$8 sps:$4 sm:$0xff]  }
 0x737   :  { %13856 = vmatpush1.bf16.msra.mxu0 %v19824_v29  ;;  %v19904_v29 = vld [vmem:[#allocation6 + $0x954] ss:$8 sps:$4 sm:$0xff]  }
 0x738   :  { %13099 = vmatpush1.bf16.msra.mxu1 %v19827_v14  ;;  %13857 = vmatprep.subr.bf16.mxu0 %v19832_v43  ;;  %v19907_v14 = vld [vmem:[#allocation6 + $0x854] ss:$8 sps:$4 sm:$0xff]   ;;  %v19902_v43 = vld [vmem:[#allocation6 + $0x950] ss:$8 sps:$4 sm:$0xff]  }
 0x739   :  { %13100 = vmatprep.subr.bf16.mxu1 %v19835_v53  ;;  %v19905_v53 = vld [vmem:[#allocation6 + $0x850] ss:$8 sps:$4 sm:$0xff]  }
 0x73b   :  { %13858 = vmatpush1.bf16.msra.mxu0 %v19830_v44  ;;  %v19910_v44 = vld [vmem:[#allocation6 + $0x944] ss:$8 sps:$4 sm:$0xff]  }
 0x73c   :  { %13101 = vmatpush1.bf16.msra.mxu1 %v19833_v1  ;;  %13859 = vmatprep.subr.bf16.mxu0 %v19838_v24  ;;  %v19913_v1 = vld [vmem:[#allocation6 + $0x844] ss:$8 sps:$4 sm:$0xff]   ;;  %v19908_v24 = vld [vmem:[#allocation6 + $0x940] ss:$8 sps:$4 sm:$0xff]  }
 0x73d   :  { %13102 = vmatprep.subr.bf16.mxu1 %v19841_v39  ;;  %v19911_v39 = vld [vmem:[#allocation6 + $0x840] ss:$8 sps:$4 sm:$0xff]  }
 0x73f   :  { %13860 = vmatpush1.bf16.msra.mxu0 %v19836_v25  ;;  %v19916_v25 = vld [vmem:[#allocation6 + $0x934] ss:$8 sps:$4 sm:$0xff]  }
 0x740   :  { %13103 = vmatpush1.bf16.msra.mxu1 %v19839_v62  ;;  %13861 = vmatprep.subr.bf16.mxu0 %v19844_v59  ;;  %v19919_v62 = vld [vmem:[#allocation6 + $0x834] ss:$8 sps:$4 sm:$0xff]   ;;  %v19914_v59 = vld [vmem:[#allocation6 + $0x930] ss:$8 sps:$4 sm:$0xff]  }
 0x741   :  { %13104 = vmatprep.subr.bf16.mxu1 %v19847_v17  ;;  %v19917_v17 = vld [vmem:[#allocation6 + $0x830] ss:$8 sps:$4 sm:$0xff]  }
 0x743   :  { %13862 = vmatpush2.bf16.msra.mxu0 %v19842_v2  ;;  %v19922_v2 = vld [vmem:[#allocation6 + $0x924] ss:$8 sps:$4 sm:$0xff]  }
 0x744   :  { %13105 = vmatpush2.bf16.msra.mxu1 %v19845_v18  ;;  %13863 = vmatprep.subr.bf16.mxu0 %v19850_v54  ;;  %v19925_v18 = vld [vmem:[#allocation6 + $0x824] ss:$8 sps:$4 sm:$0xff]   ;;  %v19920_v54 = vld [vmem:[#allocation6 + $0x920] ss:$8 sps:$4 sm:$0xff]  }
 0x745   :  { %13106 = vmatprep.subr.bf16.mxu1 %v19853_v7  ;;  %v19923_v7 = vld [vmem:[#allocation6 + $0x820] ss:$8 sps:$4 sm:$0xff]  }
 0x747   :  { %13864 = vmatpush2.bf16.msra.mxu0 %v19848_v20  ;;  %v19928_v20 = vld [vmem:[#allocation6 + $0x914] ss:$8 sps:$4 sm:$0xff]  }
 0x748   :  { %13107 = vmatpush2.bf16.msra.mxu1 %v19851_v50  ;;  %13865 = vmatprep.subr.bf16.mxu0 %v19856_v9  ;;  %v19931_v50 = vld [vmem:[#allocation6 + $0x814] ss:$8 sps:$4 sm:$0xff]   ;;  %v19926_v9 = vld [vmem:[#allocation6 + $0x910] ss:$8 sps:$4 sm:$0xff]  }
 0x749   :  { %13108 = vmatprep.subr.bf16.mxu1 %v19859_v10  ;;  %v19929_v10 = vld [vmem:[#allocation6 + $0x810] ss:$8 sps:$4 sm:$0xff]  }
 0x74b   :  { %13866 = vmatpush2.bf16.msra.mxu0 %v19854_v35  ;;  %v19934_v35 = vld [vmem:[#allocation6 + $0x904] ss:$8 sps:$4 sm:$0xff]  }
 0x74c   :  { %13109 = vmatpush2.bf16.msra.mxu1 %v19857_v26  ;;  %13867 = vmatprep.subr.bf16.mxu0 %v19862_v28  ;;  %v19937_v26 = vld [vmem:[#allocation6 + $0x804] ss:$8 sps:$4 sm:$0xff]   ;;  %v19932_v28 = vld [vmem:[#allocation6 + $0x900] ss:$8 sps:$4 sm:$0xff]  }
 0x74d   :  { %13110 = vmatprep.subr.bf16.mxu1 %v19865_v21  ;;  %v19935_v21 = vld [vmem:[#allocation6 + $0x800] ss:$8 sps:$4 sm:$0xff]  }
 0x74f   :  { %13868 = vmatpush2.bf16.msra.mxu0 %v19860_v33  ;;  %v19940_v33 = vld [vmem:[#allocation6 + $0x9f4] ss:$8 sps:$4 sm:$0xff]  }
 0x750   :  { %13111 = vmatpush2.bf16.msra.mxu1 %v19863_v42  ;;  %13869 = vmatprep.subr.bf16.mxu0 %v19868_v27  ;;  %v19943_v42 = vld [vmem:[#allocation6 + $0x8f4] ss:$8 sps:$4 sm:$0xff]   ;;  %v19938_v27 = vld [vmem:[#allocation6 + $0x9f0] ss:$8 sps:$4 sm:$0xff]  }
 0x751   :  { %13112 = vmatprep.subr.bf16.mxu1 %v19871_v38  ;;  %v19941_v38 = vld [vmem:[#allocation6 + $0x8f0] ss:$8 sps:$4 sm:$0xff]  }
 0x753   :  { %13870 = vmatpush2.bf16.msra.mxu0 %v19866_v31  ;;  %v19946_v31 = vld [vmem:[#allocation6 + $0x9e4] ss:$8 sps:$4 sm:$0xff]  }
 0x754   :  { %13113 = vmatpush2.bf16.msra.mxu1 %v19869_v23  ;;  %13871 = vmatprep.subr.bf16.mxu0 %v19874_v51  ;;  %v19949_v23 = vld [vmem:[#allocation6 + $0x8e4] ss:$8 sps:$4 sm:$0xff]  }
 0x755   :  { %13114 = vmatprep.subr.bf16.mxu1 %v19877_v58 }
 0x757   :  { %13872 = vmatpush2.bf16.msra.mxu0 %v19872_v32  ;;  %v19944_v32 = vld [vmem:[#allocation6 + $0x9e0] ss:$8 sps:$4 sm:$0xff]  }
 0x758   :  { %13115 = vmatpush2.bf16.msra.mxu1 %v19875_v19  ;;  %13873 = vmatprep.subr.bf16.mxu0 %v19880_v56  ;;  %v19947_v56 = vld [vmem:[#allocation6 + $0x8e0] ss:$8 sps:$4 sm:$0xff]  }
 0x759   :  { %13116 = vmatprep.subr.bf16.mxu1 %v19883_v0  ;;  %v19952_v0 = vld [vmem:[#allocation6 + $0x9d4] ss:$8 sps:$4 sm:$0xff]  }
 0x75b   :  { %13874 = vmatpush2.bf16.msra.mxu0 %v19878_v52 }
 0x75c   :  { %13117 = vmatpush2.bf16.msra.mxu1 %v19881_v63  ;;  %13875 = vmatprep.subr.bf16.mxu0 %v19886_v34  ;;  %v19955_v63 = vld [vmem:[#allocation6 + $0x8d4] ss:$8 sps:$4 sm:$0xff]  }
 0x75d   :  { %13118 = vmatprep.subr.bf16.mxu1 %v19889_v12  ;;  %v19950_v12 = vld [vmem:[#allocation6 + $0x9d0] ss:$8 sps:$4 sm:$0xff]  }
 0x75f   :  { %13876 = vmatpush2.bf16.msra.mxu0 %v19884_v36 }
 0x760   :  { %13119 = vmatpush2.bf16.msra.mxu1 %v19887_v57  ;;  %13927 = vmatprep.subr.bf16.mxu0 %v19892_v8  ;;  %v19958_v57 = vld [vmem:[#allocation6 + $0x9c4] ss:$8 sps:$4 sm:$0xff]  }
 0x761   :  { %13886 = vmatprep.subr.bf16.mxu1 %v19895_v30  ;;  %v19961_v8 = vld [vmem:[#allocation6 + $0x8c4] ss:$8 sps:$4 sm:$0xff]   ;;  %v19956_v30 = vld [vmem:[#allocation6 + $0x9c0] ss:$8 sps:$4 sm:$0xff]  }
 0x762   :  { %13878 = vmatmul.mubr.bf16.vlgmr.msra.gmra.mxu0 %v20954_v61 }
 0x763   :  { %13121 = vmatmul.mubr.bf16.vlgmr.msra.gmra.mxu1 %v20980_v40  ;;  %13928 = vmatpush1.bf16.msra.mxu0 %v19890_v41  ;;  %v19959_v41 = vld [vmem:[#allocation6 + $0x8c0] ss:$8 sps:$4 sm:$0xff]  }
 0x764   :  { %13959 = vmatprep.mubr.bf16.mxu0 %v20978_v48  ;;  %13887 = vmatpush1.bf16.msra.mxu1 %v19893_v47  ;;  %v19964_v47 = vld [vmem:[#allocation6 + $0x9b4] ss:$8 sps:$4 sm:$0xff]  }
 0x765   :  { %13918 = vmatprep.mubr.bf16.mxu1 %v20961_v60  ;;  %13929 = vmatprep.subr.bf16.mxu0 %v19898_v11  ;;  %v19962_v11 = vld [vmem:[#allocation6 + $0x9b0] ss:$8 sps:$4 sm:$0xff]  }
 0x766   :  { %13888 = vmatprep.subr.bf16.mxu1 %v19901_v46  ;;  %v19965_v46 = vld [vmem:[#allocation6 + $0x8b0] ss:$8 sps:$4 sm:$0xff]  }
 0x767   :  { %13930 = vmatpush1.bf16.msra.mxu0 %v19896_v15  ;;  %v19970_v15 = vld [vmem:[#allocation6 + $0x9a4] ss:$8 sps:$4 sm:$0xff]  }
 0x768   :  { %13889 = vmatpush1.bf16.msra.mxu1 %v19899_v49  ;;  %13931 = vmatprep.subr.bf16.mxu0 %v19904_v29  ;;  %v19973_v49 = vld [vmem:[#allocation6 + $0x8a4] ss:$8 sps:$4 sm:$0xff]   ;;  %v19968_v29 = vld [vmem:[#allocation6 + $0x9a0] ss:$8 sps:$4 sm:$0xff]  }
 0x769   :  { %13890 = vmatprep.subr.bf16.mxu1 %v19907_v14  ;;  %v19971_v14 = vld [vmem:[#allocation6 + $0x8a0] ss:$8 sps:$4 sm:$0xff]  }
 0x76b   :  { %13932 = vmatpush1.bf16.msra.mxu0 %v19902_v43  ;;  %v19976_v43 = vld [vmem:[#allocation6 + $0x994] ss:$8 sps:$4 sm:$0xff]  }
 0x76c   :  { %13891 = vmatpush1.bf16.msra.mxu1 %v19905_v53  ;;  %13933 = vmatprep.subr.bf16.mxu0 %v19910_v44  ;;  %v19979_v53 = vld [vmem:[#allocation6 + $0x894] ss:$8 sps:$4 sm:$0xff]   ;;  %v19974_v44 = vld [vmem:[#allocation6 + $0x990] ss:$8 sps:$4 sm:$0xff]  }
 0x76d   :  { %13892 = vmatprep.subr.bf16.mxu1 %v19913_v1  ;;  %v19977_v1 = vld [vmem:[#allocation6 + $0x890] ss:$8 sps:$4 sm:$0xff]  }
 0x76f   :  { %13934 = vmatpush1.bf16.msra.mxu0 %v19908_v24  ;;  %v19982_v24 = vld [vmem:[#allocation6 + $0x984] ss:$8 sps:$4 sm:$0xff]  }
 0x770   :  { %13893 = vmatpush1.bf16.msra.mxu1 %v19911_v39  ;;  %13935 = vmatprep.subr.bf16.mxu0 %v19916_v25  ;;  %v19985_v39 = vld [vmem:[#allocation6 + $0x884] ss:$8 sps:$4 sm:$0xff]   ;;  %v19980_v25 = vld [vmem:[#allocation6 + $0x980] ss:$8 sps:$4 sm:$0xff]  }
 0x771   :  { %13894 = vmatprep.subr.bf16.mxu1 %v19919_v62  ;;  %v19983_v62 = vld [vmem:[#allocation6 + $0x880] ss:$8 sps:$4 sm:$0xff]  }
 0x773   :  { %13936 = vmatpush1.bf16.msra.mxu0 %v19914_v59  ;;  %v19988_v59 = vld [vmem:[#allocation6 + $0xbf4] ss:$8 sps:$4 sm:$0xff]  }
 0x774   :  { %13895 = vmatpush1.bf16.msra.mxu1 %v19917_v17  ;;  %13937 = vmatprep.subr.bf16.mxu0 %v19922_v2  ;;  %v19991_v17 = vld [vmem:[#allocation6 + $0xa74] ss:$8 sps:$4 sm:$0xff]   ;;  %v19986_v2 = vld [vmem:[#allocation6 + $0xbf0] ss:$8 sps:$4 sm:$0xff]  }
 0x775   :  { %13896 = vmatprep.subr.bf16.mxu1 %v19925_v18  ;;  %v19989_v18 = vld [vmem:[#allocation6 + $0xa70] ss:$8 sps:$4 sm:$0xff]  }
 0x777   :  { %13938 = vmatpush1.bf16.msra.mxu0 %v19920_v54  ;;  %v19994_v54 = vld [vmem:[#allocation6 + $0xbe4] ss:$8 sps:$4 sm:$0xff]  }
 0x778   :  { %13897 = vmatpush1.bf16.msra.mxu1 %v19923_v7  ;;  %13939 = vmatprep.subr.bf16.mxu0 %v19928_v20  ;;  %v19997_v7 = vld [vmem:[#allocation6 + $0xa64] ss:$8 sps:$4 sm:$0xff]  }
 0x779   :  { %13898 = vmatprep.subr.bf16.mxu1 %v19931_v50  ;;  %v19992_v50 = vld [vmem:[#allocation6 + $0xbe0] ss:$8 sps:$4 sm:$0xff]  }
 0x77b   :  { %13940 = vmatpush1.bf16.msra.mxu0 %v19926_v9 }
 0x77c   :  { %13899 = vmatpush1.bf16.msra.mxu1 %v19929_v10  ;;  %13941 = vmatprep.subr.bf16.mxu0 %v19934_v35  ;;  %v19995_v10 = vld [vmem:[#allocation6 + $0xa60] ss:$8 sps:$4 sm:$0xff]   ;;  %v20000_v35 = vld [vmem:[#allocation6 + $0xbd4] ss:$8 sps:$4 sm:$0xff]  }
 0x77d   :  { %13900 = vmatprep.subr.bf16.mxu1 %v19937_v26 }
 0x77f   :  { %13942 = vmatpush1.bf16.msra.mxu0 %v19932_v28  ;;  %v20003_v28 = vld [vmem:[#allocation6 + $0xa54] ss:$8 sps:$4 sm:$0xff]  }
 0x780   :  { %13901 = vmatpush1.bf16.msra.mxu1 %v19935_v21  ;;  %13943 = vmatprep.subr.bf16.mxu0 %v19940_v33 }
 0x781   :  { %13902 = vmatprep.subr.bf16.mxu1 %v19943_v42  ;;  %v19998_v42 = vld [vmem:[#allocation6 + $0xbd0] ss:$8 sps:$4 sm:$0xff]  }
 0x782   :  { %v12285_v51 = vpop.f32.mrf.mxu0 }
 0x783   :  { %v21013_v58 = vadd.f32 %v12285_v51, %v20999_v22  ;;  %13944 = vmatpush2.bf16.msra.mxu0 %v19938_v27  ;;  %v19953_v22 = vld [vmem:[#allocation6 + $0x8d0] ss:$8 sps:$4 sm:$0xff]   ;;  %v20006_v27 = vld [vmem:[#allocation6 + $0xbc4] ss:$8 sps:$4 sm:$0xff]   ;;  %v20007_v51 = vld [vmem:[#allocation6 + $0xa40] ss:$8 sps:$4 sm:$0xff]  }
 0x784   :  { %13903 = vmatpush2.bf16.msra.mxu1 %v19941_v38  ;;  %v12287_v19 = vpop.f32.mrf.mxu0  ;;  %13945 = vmatprep.subr.bf16.mxu0 %v19946_v31  ;;  %v20009_v31 = vld [vmem:[#allocation6 + $0xa44] ss:$8 sps:$4 sm:$0xff]  }
 0x785   :  { %v21016_v52 = vadd.f32 %v12287_v19, %v21002_v13  ;;  %13904 = vmatprep.subr.bf16.mxu1 %v19949_v23  ;;  %v19967_v13 = vld [vmem:[#allocation6 + $0x8b4] ss:$8 sps:$4 sm:$0xff]   ;;  %v20004_v23 = vld [vmem:[#allocation6 + $0xbc0] ss:$8 sps:$4 sm:$0xff]   ;;  %v20010_v19 = vld [vmem:[#allocation6 + $0xbb0] ss:$8 sps:$4 sm:$0xff]  }
 0x786   :  { %v12289_v34 = vpop.f32.mrf.mxu0 }
 0x787   :  { %13946 = vmatpush2.bf16.msra.mxu0 %v19944_v32  ;;  %v20015_v32 = vld [vmem:[#allocation6 + $0xa34] ss:$8 sps:$4 sm:$0xff]   ;;  %v20019_v34 = vld [vmem:[#allocation6 + $0xa20] ss:$8 sps:$4 sm:$0xff]  }
 0x788   :  { %13905 = vmatpush2.bf16.msra.mxu1 %v19947_v56  ;;  %v12290_v36 = vpop.f32.mrf.mxu0  ;;  %13947 = vmatprep.subr.bf16.mxu0 %v19952_v0  ;;  %v20013_v56 = vld [vmem:[#allocation6 + $0xa30] ss:$8 sps:$4 sm:$0xff]   ;;  %v20018_v0 = vld [vmem:[#allocation6 + $0xba4] ss:$8 sps:$4 sm:$0xff]  }
 0x789   :  { %13906 = vmatprep.subr.bf16.mxu1 %v19955_v63  ;;  %v20016_v63 = vld [vmem:[#allocation6 + $0xba0] ss:$8 sps:$4 sm:$0xff]   ;;  %v20027_v36 = vld [vmem:[#allocation6 + $0xa14] ss:$8 sps:$4 sm:$0xff]  }
 0x78b   :  { %13948 = vmatpush2.bf16.msra.mxu0 %v19950_v12  ;;  %v20024_v12 = vld [vmem:[#allocation6 + $0xb94] ss:$8 sps:$4 sm:$0xff]  }
 0x78c   :  { %13907 = vmatpush2.bf16.msra.mxu1 %v19953_v22  ;;  %13949 = vmatprep.subr.bf16.mxu0 %v19958_v57  ;;  %v20022_v22 = vld [vmem:[#allocation6 + $0xb90] ss:$8 sps:$4 sm:$0xff]  }
 0x78d   :  { %13908 = vmatprep.subr.bf16.mxu1 %v19961_v8  ;;  %v20025_v57 = vld [vmem:[#allocation6 + $0xa10] ss:$8 sps:$4 sm:$0xff]   ;;  %v20030_v8 = vld [vmem:[#allocation6 + $0xb84] ss:$8 sps:$4 sm:$0xff]  }
 0x78f   :  { %13950 = vmatpush2.bf16.msra.mxu0 %v19956_v30  ;;  %v20033_v30 = vld [vmem:[#allocation6 + $0xa04] ss:$8 sps:$4 sm:$0xff]  }
 0x790   :  { %13909 = vmatpush2.bf16.msra.mxu1 %v19959_v41  ;;  %13951 = vmatprep.subr.bf16.mxu0 %v19964_v47  ;;  %v20028_v41 = vld [vmem:[#allocation6 + $0xb80] ss:$8 sps:$4 sm:$0xff]  }
 0x791   :  { %13910 = vmatprep.subr.bf16.mxu1 %v19967_v13  ;;  %v20031_v47 = vld [vmem:[#allocation6 + $0xa00] ss:$8 sps:$4 sm:$0xff]   ;;  %v20036_v13 = vld [vmem:[#allocation6 + $0xc74] ss:$8 sps:$4 sm:$0xff]  }
 0x793   :  { %13952 = vmatpush2.bf16.msra.mxu0 %v19962_v11  ;;  %v20039_v11 = vld [vmem:[#allocation6 + $0xaf4] ss:$8 sps:$4 sm:$0xff]  }
 0x794   :  { %13911 = vmatpush2.bf16.msra.mxu1 %v19965_v46  ;;  %13953 = vmatprep.subr.bf16.mxu0 %v19970_v15  ;;  %v20034_v46 = vld [vmem:[#allocation6 + $0xc70] ss:$8 sps:$4 sm:$0xff]  }
 0x795   :  { %13912 = vmatprep.subr.bf16.mxu1 %v19973_v49  ;;  %v20037_v15 = vld [vmem:[#allocation6 + $0xaf0] ss:$8 sps:$4 sm:$0xff]   ;;  %v20042_v49 = vld [vmem:[#allocation6 + $0xc64] ss:$8 sps:$4 sm:$0xff]  }
 0x797   :  { %13954 = vmatpush2.bf16.msra.mxu0 %v19968_v29  ;;  %v20045_v29 = vld [vmem:[#allocation6 + $0xae4] ss:$8 sps:$4 sm:$0xff]  }
 0x798   :  { %13913 = vmatpush2.bf16.msra.mxu1 %v19971_v14  ;;  %13955 = vmatprep.subr.bf16.mxu0 %v19976_v43  ;;  %v20040_v43 = vld [vmem:[#allocation6 + $0xc60] ss:$8 sps:$4 sm:$0xff]  }
 0x799   :  { %13914 = vmatprep.subr.bf16.mxu1 %v19979_v53 }
 0x79b   :  { %13956 = vmatpush2.bf16.msra.mxu0 %v19974_v44  ;;  %v20043_v44 = vld [vmem:[#allocation6 + $0xae0] ss:$8 sps:$4 sm:$0xff]  }
 0x79c   :  { %13915 = vmatpush2.bf16.msra.mxu1 %v19977_v1  ;;  %13957 = vmatprep.subr.bf16.mxu0 %v19982_v24  ;;  %v20048_v1 = vld [vmem:[#allocation6 + $0xc54] ss:$8 sps:$4 sm:$0xff]  }
 0x79d   :  { %13916 = vmatprep.subr.bf16.mxu1 %v19985_v39  ;;  %v20051_v24 = vld [vmem:[#allocation6 + $0xad4] ss:$8 sps:$4 sm:$0xff]  }
 0x79f   :  { %13958 = vmatpush2.bf16.msra.mxu0 %v19980_v25  ;;  %v20046_v25 = vld [vmem:[#allocation6 + $0xc50] ss:$8 sps:$4 sm:$0xff]  }
 0x7a0   :  { %13917 = vmatpush2.bf16.msra.mxu1 %v19983_v62  ;;  %14725 = vmatprep.subr.bf16.mxu0 %v19988_v59  ;;  %v20049_v59 = vld [vmem:[#allocation6 + $0xad0] ss:$8 sps:$4 sm:$0xff]  }
 0x7a1   :  { %13968 = vmatprep.subr.bf16.mxu1 %v19991_v17  ;;  %v20054_v17 = vld [vmem:[#allocation6 + $0xc44] ss:$8 sps:$4 sm:$0xff]  }
 0x7a2   :  { %13960 = vmatmul.mubr.bf16.vlgmr.msra.gmra.mxu0 %v20980_v40 }
 0x7a3   :  { %13919 = vmatmul.mubr.bf16.vlgmr.msra.gmra.mxu1 %v20968_v55  ;;  %14726 = vmatpush1.bf16.msra.mxu0 %v19986_v2  ;;  %v12326_v20 = vpop.f32.mrf.mxu1  ;;  %v20057_v2 = vld [vmem:[#allocation6 + $0xac4] ss:$8 sps:$4 sm:$0xff]  }
 0x7a4   :  { %14757 = vmatprep.mubr.bf16.mxu0 %v20961_v60  ;;  %v21022_v9 = vadd.f32 %v12326_v20, %v21013_v58  ;;  %13969 = vmatpush1.bf16.msra.mxu1 %v19989_v18  ;;  %v20001_v60 = vld [vmem:[#allocation6 + $0xa50] ss:$8 sps:$4 sm:$0xff]   ;;  %v20012_v58 = vld [vmem:[#allocation6 + $0xbb4] ss:$8 sps:$4 sm:$0xff]   ;;  %v20052_v18 = vld [vmem:[#allocation6 + $0xc40] ss:$8 sps:$4 sm:$0xff]  }
 0x7a5   :  { %v12328_v26 = vpop.f32.mrf.mxu1  ;;  %14727 = vmatprep.subr.bf16.mxu0 %v19994_v54  ;;  %13970 = vmatprep.subr.bf16.mxu1 %v19997_v7  ;;  %v20060_v54 = vld [vmem:[#allocation6 + $0xc34] ss:$8 sps:$4 sm:$0xff]   ;;  %v20058_v20 = vld [vmem:[#allocation6 + $0xc30] ss:$8 sps:$4 sm:$0xff]  }
 0x7a6   :  { %v21025_v21 = vadd.f32 %v12328_v26, %v21016_v52  ;;  %14000 = vmatprep.mubr.bf16.mxu1 %v20438_v16  ;;  %v20021_v52 = vld [vmem:[#allocation6 + $0xa24] ss:$8 sps:$4 sm:$0xff]   ;;  %v20063_v7 = vld [vmem:[#allocation6 + $0xab4] ss:$8 sps:$4 sm:$0xff]   ;;  %v20064_v26 = vld [vmem:[#allocation6 + $0xc20] ss:$8 sps:$4 sm:$0xff]  }
 0x7a7   :  { %14728 = vmatpush1.bf16.msra.mxu0 %v19992_v50  ;;  %v12330_v33 = vpop.f32.mrf.mxu1  ;;  %v20061_v50 = vld [vmem:[#allocation6 + $0xab0] ss:$8 sps:$4 sm:$0xff]  }
 0x7a8   :  { %13971 = vmatpush1.bf16.msra.mxu1 %v19995_v10  ;;  %14729 = vmatprep.subr.bf16.mxu0 %v20000_v35  ;;  %v20066_v10 = vld [vmem:[#allocation6 + $0xc24] ss:$8 sps:$4 sm:$0xff]   ;;  %v20072_v33 = vld [vmem:[#allocation6 + $0xc14] ss:$8 sps:$4 sm:$0xff]  }
 0x7a9   :  { %v12331_v38 = vpop.f32.mrf.mxu1  ;;  %13972 = vmatprep.subr.bf16.mxu1 %v20003_v28  ;;  %v20069_v35 = vld [vmem:[#allocation6 + $0xaa4] ss:$8 sps:$4 sm:$0xff]   ;;  %v20067_v28 = vld [vmem:[#allocation6 + $0xaa0] ss:$8 sps:$4 sm:$0xff]  }
 0x7aa   :  { %v20078_v38 = vld [vmem:[#allocation6 + $0xc04] ss:$8 sps:$4 sm:$0xff]  }
 0x7ab   :  { %14730 = vmatpush1.bf16.msra.mxu0 %v19998_v42  ;;  %v20075_v42 = vld [vmem:[#allocation6 + $0xa94] ss:$8 sps:$4 sm:$0xff]  }
 0x7ac   :  { %13973 = vmatpush1.bf16.msra.mxu1 %v20001_v60  ;;  %14731 = vmatprep.subr.bf16.mxu0 %v20006_v27  ;;  %v20070_v60 = vld [vmem:[#allocation6 + $0xc10] ss:$8 sps:$4 sm:$0xff]  }
 0x7ad   :  { %13974 = vmatprep.subr.bf16.mxu1 %v20009_v31  ;;  %v20073_v27 = vld [vmem:[#allocation6 + $0xa90] ss:$8 sps:$4 sm:$0xff]   ;;  %v20081_v31 = vld [vmem:[#allocation6 + $0xa84] ss:$8 sps:$4 sm:$0xff]  }
 0x7af   :  { %14732 = vmatpush1.bf16.msra.mxu0 %v20004_v23  ;;  %v20076_v23 = vld [vmem:[#allocation6 + $0xc00] ss:$8 sps:$4 sm:$0xff]  }
 0x7b0   :  { %13975 = vmatpush1.bf16.msra.mxu1 %v20007_v51  ;;  %14733 = vmatprep.subr.bf16.mxu0 %v20012_v58  ;;  %v20079_v51 = vld [vmem:[#allocation6 + $0xa80] ss:$8 sps:$4 sm:$0xff]   ;;  %v20084_v58 = vld [vmem:[#allocation6 + $0xdf4] ss:$8 sps:$4 sm:$0xff]  }
 0x7b1   :  { %13976 = vmatprep.subr.bf16.mxu1 %v20015_v32  ;;  %v20087_v32 = vld [vmem:[#allocation6 + $0xb74] ss:$8 sps:$4 sm:$0xff]  }
 0x7b3   :  { %14734 = vmatpush1.bf16.msra.mxu0 %v20010_v19  ;;  %v20082_v19 = vld [vmem:[#allocation6 + $0xdf0] ss:$8 sps:$4 sm:$0xff]  }
 0x7b4   :  { %13977 = vmatpush1.bf16.msra.mxu1 %v20013_v56  ;;  %14735 = vmatprep.subr.bf16.mxu0 %v20018_v0  ;;  %v20085_v56 = vld [vmem:[#allocation6 + $0xb70] ss:$8 sps:$4 sm:$0xff]   ;;  %v20090_v0 = vld [vmem:[#allocation6 + $0xde4] ss:$8 sps:$4 sm:$0xff]  }
 0x7b5   :  { %13978 = vmatprep.subr.bf16.mxu1 %v20021_v52  ;;  %v20093_v52 = vld [vmem:[#allocation6 + $0xb64] ss:$8 sps:$4 sm:$0xff]  }
 0x7b7   :  { %14736 = vmatpush1.bf16.msra.mxu0 %v20016_v63 }
 0x7b8   :  { %13979 = vmatpush1.bf16.msra.mxu1 %v20019_v34  ;;  %14737 = vmatprep.subr.bf16.mxu0 %v20024_v12  ;;  %v20088_v12 = vld [vmem:[#allocation6 + $0xde0] ss:$8 sps:$4 sm:$0xff]  }
 0x7b9   :  { %13980 = vmatprep.subr.bf16.mxu1 %v20027_v36 }
 0x7bb   :  { %14738 = vmatpush1.bf16.msra.mxu0 %v20022_v22 }
 0x7bc   :  { %13981 = vmatpush1.bf16.msra.mxu1 %v20025_v57  ;;  %14739 = vmatprep.subr.bf16.mxu0 %v20030_v8  ;;  %v20091_v57 = vld [vmem:[#allocation6 + $0xb60] ss:$8 sps:$4 sm:$0xff]   ;;  %v20096_v8 = vld [vmem:[#allocation6 + $0xdd4] ss:$8 sps:$4 sm:$0xff]  }
 0x7bd   :  { %13982 = vmatprep.subr.bf16.mxu1 %v20033_v30 }
 0x7bf   :  { %14740 = vmatpush1.bf16.msra.mxu0 %v20028_v41  ;;  %v20099_v41 = vld [vmem:[#allocation6 + $0xb54] ss:$8 sps:$4 sm:$0xff]  }
 0x7c0   :  { %13983 = vmatpush1.bf16.msra.mxu1 %v20031_v47  ;;  %14741 = vmatprep.subr.bf16.mxu0 %v20036_v13 }
 0x7c1   :  { %14684 = vmatprep.subr.bf16.mxu1 %v20039_v11  ;;  %v20094_v11 = vld [vmem:[#allocation6 + $0xdd0] ss:$8 sps:$4 sm:$0xff]  }
 0x7c2   :  { %v21028_v14 = vpop.f32.mrf.mxu0 }
 0x7c3   :  { %14001 = vmatmul.mubr.bf16.vlgmr.msra.gmra.mxu1 %v20988_v3  ;;  %14742 = vmatpush2.bf16.msra.mxu0 %v20034_v46  ;;  %v20097_v46 = vld [vmem:[#allocation6 + $0xb50] ss:$8 sps:$4 sm:$0xff]  }
 0x7c4   :  { %v21031_v53 = vpop.f32.mrf.mxu0  ;;  %14685 = vmatpush1.bf16.msra.mxu1 %v20037_v15  ;;  %14716 = vmatprep.mubr.bf16.mxu1 %v20940_v6  ;;  %v20055_v6 = vld [vmem:[#allocation6 + $0xac0] ss:$8 sps:$4 sm:$0xff]   ;;  %v20102_v15 = vld [vmem:[#allocation6 + $0xdc4] ss:$8 sps:$4 sm:$0xff]  }
 0x7c5   :  { %14743 = vmatprep.subr.bf16.mxu0 %v20042_v49  ;;  %14686 = vmatprep.subr.bf16.mxu1 %v20045_v29  ;;  %v20105_v29 = vld [vmem:[#allocation6 + $0xb44] ss:$8 sps:$4 sm:$0xff]  }
 0x7c6   :  { %v13085_v39 = vpop.f32.mrf.mxu0 }
 0x7c7   :  { %14744 = vmatpush2.bf16.msra.mxu0 %v20040_v43  ;;  %v20103_v43 = vld [vmem:[#allocation6 + $0xb40] ss:$8 sps:$4 sm:$0xff]   ;;  %v20114_v39 = vld [vmem:[#allocation6 + $0xda4] ss:$8 sps:$4 sm:$0xff]  }
 0x7c8   :  { %v13086_v62 = vpop.f32.mrf.mxu0  ;;  %14687 = vmatpush1.bf16.msra.mxu1 %v20043_v44  ;;  %14745 = vmatprep.subr.bf16.mxu0 %v20048_v1  ;;  %v20108_v44 = vld [vmem:[#allocation6 + $0xdb4] ss:$8 sps:$4 sm:$0xff]   ;;  %v20106_v1 = vld [vmem:[#allocation6 + $0xdb0] ss:$8 sps:$4 sm:$0xff]  }
 0x7c9   :  { %14688 = vmatprep.subr.bf16.mxu1 %v20051_v24  ;;  %v20109_v24 = vld [vmem:[#allocation6 + $0xb30] ss:$8 sps:$4 sm:$0xff]   ;;  %v20112_v62 = vld [vmem:[#allocation6 + $0xda0] ss:$8 sps:$4 sm:$0xff]  }
 0x7cb   :  { %14746 = vmatpush2.bf16.msra.mxu0 %v20046_v25  ;;  %v20117_v25 = vld [vmem:[#allocation6 + $0xb24] ss:$8 sps:$4 sm:$0xff]  }
 0x7cc   :  { %14689 = vmatpush1.bf16.msra.mxu1 %v20049_v59  ;;  %14747 = vmatprep.subr.bf16.mxu0 %v20054_v17  ;;  %v20115_v59 = vld [vmem:[#allocation6 + $0xb20] ss:$8 sps:$4 sm:$0xff]   ;;  %v20120_v17 = vld [vmem:[#allocation6 + $0xd94] ss:$8 sps:$4 sm:$0xff]  }
 0x7cd   :  { %14690 = vmatprep.subr.bf16.mxu1 %v20057_v2  ;;  %v20123_v2 = vld [vmem:[#allocation6 + $0xb14] ss:$8 sps:$4 sm:$0xff]  }
 0x7cf   :  { %14748 = vmatpush2.bf16.msra.mxu0 %v20052_v18  ;;  %v20118_v18 = vld [vmem:[#allocation6 + $0xd90] ss:$8 sps:$4 sm:$0xff]  }
 0x7d0   :  { %14691 = vmatpush1.bf16.msra.mxu1 %v20055_v6  ;;  %14749 = vmatprep.subr.bf16.mxu0 %v20060_v54  ;;  %v20121_v6 = vld [vmem:[#allocation6 + $0xb10] ss:$8 sps:$4 sm:$0xff]   ;;  %v20126_v54 = vld [vmem:[#allocation6 + $0xd84] ss:$8 sps:$4 sm:$0xff]  }
 0x7d1   :  { %14692 = vmatprep.subr.bf16.mxu1 %v20063_v7  ;;  %v20129_v7 = vld [vmem:[#allocation6 + $0xb04] ss:$8 sps:$4 sm:$0xff]  }
 0x7d3   :  { %14750 = vmatpush2.bf16.msra.mxu0 %v20058_v20  ;;  %v20124_v20 = vld [vmem:[#allocation6 + $0xd80] ss:$8 sps:$4 sm:$0xff]  }
 0x7d4   :  { %14693 = vmatpush1.bf16.msra.mxu1 %v20061_v50  ;;  %14751 = vmatprep.subr.bf16.mxu0 %v20066_v10  ;;  %v20127_v50 = vld [vmem:[#allocation6 + $0xb00] ss:$8 sps:$4 sm:$0xff]   ;;  %v20132_v10 = vld [vmem:[#allocation6 + $0xcf4] ss:$8 sps:$4 sm:$0xff]  }
 0x7d5   :  { %14694 = vmatprep.subr.bf16.mxu1 %v20069_v35  ;;  %v20130_v35 = vld [vmem:[#allocation6 + $0xcf0] ss:$8 sps:$4 sm:$0xff]  }
 0x7d7   :  { %14752 = vmatpush2.bf16.msra.mxu0 %v20064_v26  ;;  %v20135_v26 = vld [vmem:[#allocation6 + $0xce4] ss:$8 sps:$4 sm:$0xff]  }
 0x7d8   :  { %14695 = vmatpush1.bf16.msra.mxu1 %v20067_v28  ;;  %14753 = vmatprep.subr.bf16.mxu0 %v20072_v33  ;;  %v20133_v28 = vld [vmem:[#allocation6 + $0xce0] ss:$8 sps:$4 sm:$0xff]   ;;  %v20138_v33 = vld [vmem:[#allocation6 + $0xcd4] ss:$8 sps:$4 sm:$0xff]  }
 0x7d9   :  { %14696 = vmatprep.subr.bf16.mxu1 %v20075_v42  ;;  %v20136_v42 = vld [vmem:[#allocation6 + $0xcd0] ss:$8 sps:$4 sm:$0xff]  }
 0x7db   :  { %14754 = vmatpush2.bf16.msra.mxu0 %v20070_v60  ;;  %v20141_v60 = vld [vmem:[#allocation6 + $0xcc4] ss:$8 sps:$4 sm:$0xff]  }
 0x7dc   :  { %14697 = vmatpush1.bf16.msra.mxu1 %v20073_v27  ;;  %14755 = vmatprep.subr.bf16.mxu0 %v20078_v38  ;;  %v20139_v27 = vld [vmem:[#allocation6 + $0xcc0] ss:$8 sps:$4 sm:$0xff]   ;;  %v20144_v38 = vld [vmem:[#allocation6 + $0xcb4] ss:$8 sps:$4 sm:$0xff]  }
 0x7dd   :  { %14698 = vmatprep.subr.bf16.mxu1 %v20081_v31  ;;  %v20142_v31 = vld [vmem:[#allocation6 + $0xcb0] ss:$8 sps:$4 sm:$0xff]  }
 0x7df   :  { %14756 = vmatpush2.bf16.msra.mxu0 %v20076_v23  ;;  %v20150_v23 = vld [vmem:[#allocation6 + $0xc94] ss:$8 sps:$4 sm:$0xff]  }
 0x7e0   :  { %14699 = vmatpush1.bf16.msra.mxu1 %v20079_v51  ;;  %14807 = vmatprep.subr.bf16.mxu0 %v20084_v58  ;;  %v20153_v51 = vld [vmem:[#allocation6 + $0xc84] ss:$8 sps:$4 sm:$0xff]   ;;  %v20151_v58 = vld [vmem:[#allocation6 + $0xc80] ss:$8 sps:$4 sm:$0xff]  }
 0x7e1   :  { %14700 = vmatprep.subr.bf16.mxu1 %v20087_v32  ;;  %v20156_v32 = vld [vmem:[#allocation6 + $0xd74] ss:$8 sps:$4 sm:$0xff]  }
 0x7e2   :  { %v21034_v63 = vpop.f32.mrf.mxu0  ;;  %14758 = vmatmul.mubr.bf16.vlgmr.msra.gmra.mxu0 %v20968_v55 }
 0x7e3   :  { %v13040_v34 = vpop.f32.mrf.mxu1  ;;  %14808 = vmatpush1.bf16.msra.mxu0 %v20082_v19  ;;  %14839 = vmatprep.mubr.bf16.mxu0 %v20438_v16  ;;  %v20154_v19 = vld [vmem:[#allocation6 + $0xd70] ss:$8 sps:$4 sm:$0xff]  }
 0x7e4   :  { %v21039_v36 = vadd.f32 %v21028_v14, %v13040_v34  ;;  %v21041_v22 = vpop.f32.mrf.mxu0  ;;  %14701 = vmatpush2.bf16.msra.mxu1 %v20085_v56  ;;  %14809 = vmatprep.subr.bf16.mxu0 %v20090_v0  ;;  %v20100_v14 = vld [vmem:[#allocation6 + $0xdc0] ss:$8 sps:$4 sm:$0xff]   ;;  %v20159_v56 = vld [vmem:[#allocation6 + $0xd64] ss:$8 sps:$4 sm:$0xff]  }
 0x7e5   :  { %v13042_v30 = vpop.f32.mrf.mxu1  ;;  %14702 = vmatprep.subr.bf16.mxu1 %v20093_v52 }
 0x7e6   :  { %v21044_v47 = vadd.f32 %v21031_v53, %v13042_v30  ;;  %v13167_v55 = vpop.f32.mrf.mxu0  ;;  %v20111_v53 = vld [vmem:[#allocation6 + $0xb34] ss:$8 sps:$4 sm:$0xff]  }
 0x7e7   :  { %v13044_v13 = vpop.f32.mrf.mxu1  ;;  %14810 = vmatpush1.bf16.msra.mxu0 %v20088_v12  ;;  %v20162_v30 = vld [vmem:[#allocation6 + $0xd54] ss:$8 sps:$4 sm:$0xff]  }
 0x7e8   :  { %v13168_v16 = vpop.f32.mrf.mxu0  ;;  %14703 = vmatpush2.bf16.msra.mxu1 %v20091_v57  ;;  %14811 = vmatprep.subr.bf16.mxu0 %v20096_v8  ;;  %v20157_v57 = vld [vmem:[#allocation6 + $0xd60] ss:$8 sps:$4 sm:$0xff]  }
 0x7e9   :  { %v13045_v49 = vpop.f32.mrf.mxu1  ;;  %14704 = vmatprep.subr.bf16.mxu1 %v20099_v41 }
 0x7eb   :  { %14812 = vmatpush1.bf16.msra.mxu0 %v20094_v11 }
 0x7ec   :  { %14705 = vmatpush2.bf16.msra.mxu1 %v20097_v46  ;;  %14813 = vmatprep.subr.bf16.mxu0 %v20102_v15 }
 0x7ed   :  { %14706 = vmatprep.subr.bf16.mxu1 %v20105_v29  ;;  %v20165_v29 = vld [vmem:[#allocation6 + $0xd44] ss:$8 sps:$4 sm:$0xff]  }
 0x7ef   :  { %14814 = vmatpush1.bf16.msra.mxu0 %v20100_v14  ;;  %v20163_v14 = vld [vmem:[#allocation6 + $0xd40] ss:$8 sps:$4 sm:$0xff]  }
 0x7f0   :  { %14707 = vmatpush2.bf16.msra.mxu1 %v20103_v43  ;;  %14815 = vmatprep.subr.bf16.mxu0 %v20108_v44  ;;  %v20166_v43 = vld [vmem:[#allocation6 + $0xd30] ss:$8 sps:$4 sm:$0xff]   ;;  %v20169_v44 = vld [vmem:[#allocation6 + $0xd20] ss:$8 sps:$4 sm:$0xff]  }
 0x7f1   :  { %14708 = vmatprep.subr.bf16.mxu1 %v20111_v53  ;;  %v20174_v53 = vld [vmem:[#allocation6 + $0xd14] ss:$8 sps:$4 sm:$0xff]  }
 0x7f3   :  { %14816 = vmatpush1.bf16.msra.mxu0 %v20106_v1  ;;  %v20172_v1 = vld [vmem:[#allocation6 + $0xd10] ss:$8 sps:$4 sm:$0xff]  }
 0x7f4   :  { %14709 = vmatpush2.bf16.msra.mxu1 %v20109_v24  ;;  %14817 = vmatprep.subr.bf16.mxu0 %v20114_v39  ;;  %v20177_v24 = vld [vmem:[#allocation6 + $0xd04] ss:$8 sps:$4 sm:$0xff]   ;;  %v20175_v39 = vld [vmem:[#allocation6 + $0xd00] ss:$8 sps:$4 sm:$0xff]  }
 0x7f5   :  { %14710 = vmatprep.subr.bf16.mxu1 %v20117_v25  ;;  %v20178_v25 = vld [vmem:[#allocation9 + $0x78] sm:$0xff]  }
 0x7f7   :  { %14818 = vmatpush1.bf16.msra.mxu0 %v20112_v62  ;;  %v20179_v62 = vld [vmem:[#allocation9 + $0x38] sm:$0xff]  }
 0x7f8   :  { %14711 = vmatpush2.bf16.msra.mxu1 %v20115_v59  ;;  %14819 = vmatprep.subr.bf16.mxu0 %v20120_v17  ;;  %v20180_v59 = vld [vmem:[#allocation9 + $0x70] sm:$0xff]  }
 0x7f9   :  { %14712 = vmatprep.subr.bf16.mxu1 %v20123_v2  ;;  %v20181_v17 = vld [vmem:[#allocation9 + $0x30] sm:$0xff]   ;;  %v20182_v2 = vld [vmem:[#allocation9 + $0x68] sm:$0xff]  }
 0x7fb   :  { %14820 = vmatpush1.bf16.msra.mxu0 %v20118_v18  ;;  %v20183_v18 = vld [vmem:[#allocation9 + $0x28] sm:$0xff]  }
 0x7fc   :  { %14713 = vmatpush2.bf16.msra.mxu1 %v20121_v6  ;;  %14821 = vmatprep.subr.bf16.mxu0 %v20126_v54  ;;  %v20184_v6 = vld [vmem:[#allocation9 + $0x60] sm:$0xff]  }
 0x7fd   :  { %14714 = vmatprep.subr.bf16.mxu1 %v20129_v7  ;;  %v20185_v54 = vld [vmem:[#allocation9 + $0x20] sm:$0xff]  }
 0x7ff   :  { %14822 = vmatpush1.bf16.msra.mxu0 %v20124_v20 }
 0x800   :  { %14715 = vmatpush2.bf16.msra.mxu1 %v20127_v50  ;;  %17423 = vmatprep.subr.bf16.mxu0 %v20178_v25 }
 0x801   :  { %14766 = vmatprep.subr.bf16.mxu1 %v20132_v10 }
 0x802   :  { %14840 = vmatmul.mubr.bf16.vlgmr.msra.gmra.mxu0 %v20988_v3  ;;  %v20147_v3 = vld [vmem:[#allocation6 + $0xca4] ss:$8 sps:$4 sm:$0xff]  }
 0x803   :  { %14717 = vmatmul.mubr.bf16.vlgmr.msra.gmra.mxu1 %v20954_v61  ;;  %v20145_v61 = vld [vmem:[#allocation6 + $0xca0] ss:$8 sps:$4 sm:$0xff]   ;;  %17424 = vmatpush3.bf16.msra.mxu0 %v20179_v62 }
 0x804   :  { %14767 = vmatpush1.bf16.msra.mxu1 %v20130_v35  ;;  %14798 = vmatprep.mubr.bf16.mxu1 %v20978_v48  ;;  %v20148_v48 = vld [vmem:[#allocation6 + $0xc90] ss:$8 sps:$4 sm:$0xff]  }
 0x805   :  { %14768 = vmatprep.subr.bf16.mxu1 %v20135_v26  ;;  %17425 = vmatprep.subr.bf16.mxu0 %v20180_v59 }
 0x807   :  { %17426 = vmatpush3.bf16.msra.mxu0 %v20181_v17 }
 0x808   :  { %14769 = vmatpush1.bf16.msra.mxu1 %v20133_v28  ;;  %17427 = vmatprep.subr.bf16.mxu0 %v20182_v2 }
 0x809   :  { %14770 = vmatprep.subr.bf16.mxu1 %v20138_v33 }
 0x80b   :  { %17428 = vmatpush3.bf16.msra.mxu0 %v20183_v18 }
 0x80c   :  { %14771 = vmatpush1.bf16.msra.mxu1 %v20136_v42  ;;  %17429 = vmatprep.subr.bf16.mxu0 %v20184_v6 }
 0x80d   :  { %14772 = vmatprep.subr.bf16.mxu1 %v20141_v60 }
 0x80f   :  { %17430 = vmatpush3.bf16.msra.mxu0 %v20185_v54 }
 0x810   :  { %14773 = vmatpush1.bf16.msra.mxu1 %v20139_v27 }
 0x811   :  { %14774 = vmatprep.subr.bf16.mxu1 %v20144_v38  ;;  %v20186_v38 = vld [vmem:[#allocation9 + $0x58] sm:$0xff]  }
 0x812   :  { %17431 = vmatprep.subr.bf16.mxu0 %v20186_v38 }
 0x814   :  { %14775 = vmatpush1.bf16.msra.mxu1 %v20142_v31 }
 0x815   :  { %14776 = vmatprep.subr.bf16.mxu1 %v20147_v3  ;;  %v20187_v3 = vld [vmem:[#allocation9 + $0x18] sm:$0xff]  }
 0x816   :  { %17432 = vmatpush3.bf16.msra.mxu0 %v20187_v3 }
 0x818   :  { %14777 = vmatpush1.bf16.msra.mxu1 %v20145_v61 }
 0x819   :  { %14778 = vmatprep.subr.bf16.mxu1 %v20150_v23 }
 0x81c   :  { %14779 = vmatpush1.bf16.msra.mxu1 %v20148_v48 }
 0x81d   :  { %14780 = vmatprep.subr.bf16.mxu1 %v20153_v51 }
 0x820   :  { %14781 = vmatpush1.bf16.msra.mxu1 %v20151_v58  ;;  %v20188_v58 = vld [vmem:[#allocation9 + $0x50] sm:$0xff]  }
 0x821   :  { %14782 = vmatprep.subr.bf16.mxu1 %v20156_v32  ;;  %17433 = vmatprep.subr.bf16.mxu0 %v20188_v58 }
 0x822   :  { %v21049_v0 = vpop.f32.mrf.mxu0 }
 0x823   :  { %v13122_v52 = vpop.f32.mrf.mxu1 }
 0x824   :  { %v13123_v34 = vadd.f32 %v13122_v52, %v21039_v36  ;;  %v21052_v12 = vpop.f32.mrf.mxu0  ;;  %14783 = vmatpush2.bf16.msra.mxu1 %v20154_v19  ;;  %v20160_v36 = vld [vmem:[#allocation6 + $0xd50] ss:$8 sps:$4 sm:$0xff]  }
 0x825   :  { %v13124_v8 = vpop.f32.mrf.mxu1  ;;  %14784 = vmatprep.subr.bf16.mxu1 %v20159_v56  ;;  %v20189_v19 = vld [vmem:[#allocation9 + $0x10] sm:$0xff]   ;;  %v20190_v52 = vld [vmem:[#allocation9 + $0x48] sm:$0xff]  }
 0x826   :  { %v21055_v41 = vadd.f32 %v21034_v63, %v13123_v34  ;;  %v13125_v55 = vadd.f32 %v13124_v8, %v21044_v47  ;;  %v13883_v13 = vpop.f32.mrf.mxu0  ;;  %v20168_v47 = vld [vmem:[#allocation6 + $0xd34] ss:$8 sps:$4 sm:$0xff]   ;;  %17434 = vmatpush3.bf16.msra.mxu0 %v20189_v19  ;;  %v20191_v34 = vld [vmem:[#allocation9 + $0x8] sm:$0xff]  }
 0x827   :  { %v13126_v11 = vpop.f32.mrf.mxu1  ;;  %17435 = vmatprep.subr.bf16.mxu0 %v20190_v52  ;;  %v20195_v8 = vld [vmem:[#allocation12 + $0x30] sm:$0xff]  }
 0x828   :  { %v21059_v16 = vadd.f32 %v21041_v22, %v13125_v55  ;;  %v13884_v46 = vpop.f32.mrf.mxu0  ;;  %14785 = vmatpush2.bf16.msra.mxu1 %v20157_v57  ;;  %v13170_v15 = vmax.f32 %v21022_v9, %v21055_v41  ;;  %v20171_v22 = vld [vmem:[#allocation6 + $0xd24] ss:$8 sps:$4 sm:$0xff]   ;;  %v20194_v9 = vld [vmem:[#allocation12 + $0x38] sm:$0xff]  }
 0x829   :  { %v13127_v49 = vpop.f32.mrf.mxu1  ;;  %14786 = vmatprep.subr.bf16.mxu1 %v20162_v30  ;;  %v20193_v57 = vld [vmem:[#allocation9] sm:$0xff]   ;;  %v20208_v19 = vld [vmem:[#allocation15 + $0x8] sm:$0xff]  }
 0x82a   :  { %v13171_v63 = vmax.f32 %v21025_v21, %v21059_v16  ;;  %17436 = vmatpush3.bf16.msra.mxu0 %v20191_v34  ;;  %v20196_v21 = vld [vmem:[#allocation12 + $0x28] sm:$0xff]   ;;  %v20197_v30 = vld [vmem:[#allocation12 + $0x20] sm:$0xff]   ;;  %v20198_v41 = vld [vmem:[#allocation12 + $0x18] sm:$0xff]  }
 0x82c   :  { %14787 = vmatpush2.bf16.msra.mxu1 %v20160_v36 }
 0x82d   :  { %14788 = vmatprep.subr.bf16.mxu1 %v20165_v29 }
 0x830   :  { %14789 = vmatpush2.bf16.msra.mxu1 %v20163_v14 }
 0x831   :  { %14790 = vmatprep.subr.bf16.mxu1 %v20168_v47 }
 0x834   :  { %14791 = vmatpush2.bf16.msra.mxu1 %v20166_v43 }
 0x835   :  { %14792 = vmatprep.subr.bf16.mxu1 %v20171_v22 }
 0x838   :  { %14793 = vmatpush2.bf16.msra.mxu1 %v20169_v44  ;;  %v14850_v44 = vld [vmem:[#allocation7] sm:$0x3] }
 0x839   :  { %14794 = vmatprep.subr.bf16.mxu1 %v20174_v53  ;;  %v14855_v25 = vrot.slane %v14850_v44, %v11443_v45  ;;  %v14859_v18 = vrot.slane %v14850_v44, %v11447_v5  ;;  %v20199_v45 = vld [vmem:[#allocation12 + $0x10] sm:$0xff]   ;;  %v20202_v5 = vld [vmem:[#allocation15 + $0x38] sm:$0xff]  }
 0x83c   :  { %14795 = vmatpush2.bf16.msra.mxu1 %v20172_v1 }
 0x83d   :  { %14796 = vmatprep.subr.bf16.mxu1 %v20177_v24 }
 0x840   :  { %14797 = vmatpush2.bf16.msra.mxu1 %v20175_v39 }
 0x841   :  { %17487 = vmatprep.subr.bf16.mxu1 %v20439_v37 }
 0x843   :  { %14799 = vmatmul.mubr.bf16.vlgmr.msra.gmra.mxu1 %v20980_v40 }
 0x844   :  { %17503 = vmatprep.mubr.msk.bf16.mxu1 %vm20440_vm1, %v20439_v37  ;;  %17488 = vmatpush3.bf16.msra.mxu1 %v20194_v9 }
 0x845   :  { %17489 = vmatprep.subr.bf16.mxu1 %v20439_v37 }
 0x848   :  { %17490 = vmatpush3.bf16.msra.mxu1 %v20195_v8 }
 0x849   :  { %17491 = vmatprep.subr.bf16.mxu1 %v20439_v37 }
 0x84c   :  { %17492 = vmatpush3.bf16.msra.mxu1 %v20196_v21 }
 0x84d   :  { %17493 = vmatprep.subr.bf16.mxu1 %v20439_v37 }
 0x850   :  { %17494 = vmatpush3.bf16.msra.mxu1 %v20197_v30  ;;  %v17142_v30 = vld [vmem:[#allocation16] ss:$0 sm:$0xff] }
 0x851   :  { %17495 = vmatprep.subr.bf16.mxu1 %v20439_v37 }
 0x854   :  { %17496 = vmatpush3.bf16.msra.mxu1 %v20198_v41 }
 0x855   :  { %17497 = vmatprep.subr.bf16.mxu1 %v20439_v37 }
 0x858   :  { %17498 = vmatpush3.bf16.msra.mxu1 %v20199_v45 }
 0x859   :  { %17499 = vmatprep.subr.bf16.mxu1 %v20439_v37 }
 0x862   :  { %v13961_v40 = vpop.f32.mrf.mxu0 }
 0x863   :  { %v13920_v7 = vpop.f32.mrf.mxu1 }
 0x864   :  { %v13921_v20 = vadd.f32 %v13920_v7, %v21049_v0  ;;  %v13963_v50 = vpop.f32.mrf.mxu0 }
 0x865   :  { %v13922_v10 = vpop.f32.mrf.mxu1 }
 0x866   :  { %v13923_v35 = vadd.f32 %v13922_v10, %v21052_v12  ;;  %v13965_v26 = vpop.f32.mrf.mxu0  ;;  %v13962_v28 = vadd.f32 %v13961_v40, %v13921_v20  ;;  %v20192_v12 = vld [vmem:[#allocation9 + $0x40] sm:$0xff]  }
 0x867   :  { %v13924_v33 = vpop.f32.mrf.mxu1  ;;  %17437 = vmatprep.subr.bf16.mxu0 %v20192_v12  ;;  %v20200_v26 = vld [vmem:[#allocation12 + $0x8] sm:$0xff]  }
 0x868   :  { %v13966_v42 = vpop.f32.mrf.mxu0  ;;  %v13964_v60 = vadd.f32 %v13963_v50, %v13923_v35  ;;  %17438 = vmatpush3.bf16.msra.mxu0 %v20193_v57  ;;  %17500 = vmatpush3.bf16.msra.mxu1 %v20200_v26  ;;  %v20204_v33 = vld [vmem:[#allocation15 + $0x28] sm:$0xff]  }
 0x869   :  { %v13925_v27 = vpop.f32.mrf.mxu1  ;;  %17507 = vmatprep.subr.bf16.mxu0 %v20439_v37  ;;  %17501 = vmatprep.subr.bf16.mxu1 %v20439_v37  ;;  %v20205_v42 = vld [vmem:[#allocation15 + $0x20] sm:$0xff]  }
 0x86a   :  { %v20207_v27 = vld [vmem:[#allocation15 + $0x10] sm:$0xff]  }
 0x86c   :  { %17502 = vmatpush3.bf16.msra.mxu1 %v20201_v4 }
 0x883   :  { %v14002_v31 = vpop.f32.mrf.mxu1 }
 0x884   :  { %v14003_v61 = vadd.f32 %v14002_v31, %v13962_v28  ;;  %v20203_v28 = vld [vmem:[#allocation15 + $0x30] sm:$0xff]   ;;  %v17116_v31 = vld [vmem:[#allocation10] ss:$0 sm:$0xff] }
 0x885   :  { %v14004_v23 = vpop.f32.mrf.mxu1 }
 0x886   :  { %v14009_v48 = vmax.f32 %v13170_v15, %v14003_v61  ;;  %v14005_v51 = vadd.f32 %v14004_v23, %v13964_v60  ;;  %v20206_v60 = vld [vmem:[#allocation15 + $0x18] sm:$0xff]  }
 0x887   :  { %v14006_v32 = vpop.f32.mrf.mxu1 }
 0x888   :  { %v14010_v56 = vmax.f32 %v13171_v63, %v14005_v51 }
 0x889   :  { %v14007_v0 = vpop.f32.mrf.mxu1 }
 0x88a   :  { %v17133_v0 = vld [vmem:[#allocation13] ss:$0 sm:$0xff] }
 0x8a2   :  { %v14759_v55 = vpop.f32.mrf.mxu0 }
 0x8a4   :  { %v14761_v13 = vpop.f32.mrf.mxu0 }
 0x8a6   :  { %v14763_v11 = vpop.f32.mrf.mxu0 }
 0x8a8   :  { %v14764_v16 = vpop.f32.mrf.mxu0 }
 0x8c2   :  { %v14841_v46 = vpop.f32.mrf.mxu0 }
 0x8c3   :  { %v14718_v36 = vpop.f32.mrf.mxu1 }
 0x8c4   :  { %v14760_v15 = vadd.f32 %v14759_v55, %v14718_v36  ;;  %v14843_v49 = vpop.f32.mrf.mxu0 }
 0x8c5   :  { %v14720_v29 = vpop.f32.mrf.mxu1 }
 0x8c6   :  { %v14845_v63 = vpop.f32.mrf.mxu0  ;;  %v14762_v53 = vadd.f32 %v14761_v13, %v14720_v29 }
 0x8c7   :  { %v14722_v14 = vpop.f32.mrf.mxu1 }
 0x8c8   :  { %v14846_v47 = vpop.f32.mrf.mxu0 }
 0x8c9   :  { %v14723_v43 = vpop.f32.mrf.mxu1 }
 0x903   :  { %v14800_v22 = vpop.f32.mrf.mxu1 }
 0x904   :  { %v14801_v1 = vadd.f32 %v14800_v22, %v14760_v15 }
 0x905   :  { %v14802_v24 = vpop.f32.mrf.mxu1 }
 0x906   :  { %v14842_v39 = vadd.f32 %v14841_v46, %v14801_v1  ;;  %v14803_v62 = vadd.f32 %v14802_v24, %v14762_v53 }
 0x907   :  { %v14804_v59 = vpop.f32.mrf.mxu1 }
 0x908   :  { %v14848_v17 = vmax.f32 %v14009_v48, %v14842_v39  ;;  %v14844_v2 = vadd.f32 %v14843_v49, %v14803_v62 }
 0x909   :  { %v14805_v6 = vpop.f32.mrf.mxu1 }
 0x90a   :  { %v14862_v54 = vadd.f32 %v14855_v25, %v14848_v17  ;;  %v14849_v40 = vmax.f32 %v14010_v56, %v14844_v2  ;;  %v20209_v56 = vld [vmem:[#allocation15] sm:$0xff]  }
 0x90c   :  { %v14863_v7 = vadd.f32 %v14859_v18, %v14849_v40  ;;  %v14864_v20 = vmax.f32 %v14862_v54, 0.0 }
 0x90e   :  { %v14865_v50 = vmax.f32 %v14863_v7, 0.0  ;;  %v14866_v35 = vpack.c.bf16 %v14864_v20, %v14864_v20 }
 0x910   :  { %v14867_v10 = vpack.c.bf16 %v14865_v50, %v14865_v50 }
 0x912   :  { %15035 = vmatprep.mubr.bf16.mxu0 %v14867_v10 }
 0x913   :  { %15036 = vmatmul.mubr.bf16.vlgmr.msra.gmra.mxu0 %v14866_v35 }
 0x914   :  { %17523 = vmatprep.mubr.msk.bf16.mxu0 %vm20440_vm1, %v20439_v37  ;;  %17508 = vmatpush3.bf16.msra.mxu0 %v20202_v5 }
 0x915   :  { %17509 = vmatprep.subr.bf16.mxu0 %v20439_v37 }
 0x918   :  { %17510 = vmatpush3.bf16.msra.mxu0 %v20203_v28 }
 0x919   :  { %17511 = vmatprep.subr.bf16.mxu0 %v20439_v37 }
 0x91c   :  { %17512 = vmatpush3.bf16.msra.mxu0 %v20204_v33 }
 0x91d   :  { %17513 = vmatprep.subr.bf16.mxu0 %v20439_v37 }
 0x920   :  { %17514 = vmatpush3.bf16.msra.mxu0 %v20205_v42 }
 0x921   :  { %17515 = vmatprep.subr.bf16.mxu0 %v20439_v37 }
 0x924   :  { %17516 = vmatpush3.bf16.msra.mxu0 %v20206_v60 }
 0x925   :  { %17517 = vmatprep.subr.bf16.mxu0 %v20439_v37 }
 0x928   :  { %17518 = vmatpush3.bf16.msra.mxu0 %v20207_v27 }
 0x929   :  { %17519 = vmatprep.subr.bf16.mxu0 %v20439_v37 }
 0x92c   :  { %17520 = vmatpush3.bf16.msra.mxu0 %v20208_v19 }
 0x92d   :  { %17521 = vmatprep.subr.bf16.mxu0 %v20439_v37 }
 0x930   :  { %17522 = vmatpush3.bf16.msra.mxu0 %v20209_v56 }
 0x9d3   :  { %v17439_v38 = vpop.f32.mrf.mxu0 }
 0x9d5   :  { %v17440_v3 = vpop.f32.mrf.mxu0 }
 0x9d6   :  { %v17441_v61 = vadd.f32 %v17440_v3, %v17439_v38 }
 0x9d7   :  { %v17442_v23 = vpop.f32.mrf.mxu0 }
 0x9d8   :  { %v15038_v48 = vadd.f32 %v17441_v61, %v17116_v31 }
 0x9d9   :  { %v17443_v51 = vpop.f32.mrf.mxu0 }
 0x9da   :  { %v15043_v58 = vmax.f32 %v15038_v48, 0.0 }
 0x9dc   :  { %v15044_v32 = vpack.c.bf16 %v15043_v58, %v15043_v58 }
 0x9de   :  { %17504 = vmatmul.mubr.bf16.vlgmr.msra.gmra.mxu1 %v15044_v32 }
 0xa9e   :  { %v15150_v52 = vpop.f32.mrf.mxu1 }
 0xa9f   :  { %v15151_v34 = vadd.f32 %v17133_v0, %v15150_v52 }
 0xaa0   :  { %v17505_v12 = vpop.f32.mrf.mxu1 }
 0xaa1   :  { %v15156_v57 = vmax.f32 %v15151_v34, 0.0 }
 0xaa2   :  { %v15153_v9 = vpop.f32.mrf.mxu1 }
 0xaa3   :  { %v15157_v8 = vpack.c.bf16 %v15156_v57, %v15156_v57 }
 0xaa4   :  { %v17506_v21 = vpop.f32.mrf.mxu1 }
 0xaa5   :  { %17524 = vmatmul.mubr.bf16.vlgmr.msra.gmra.mxu0 %v15157_v8 }
 0xb65   :  { %v15263_v41 = vpop.f32.mrf.mxu0 }
 0xb66   :  { %v15264_v55 = vadd.f32 %v17142_v30, %v15263_v41 }
 0xb67   :  { %v17525_v13 = vpop.f32.mrf.mxu0 }
 0xb68   :  { %15269 = vst [vmem:[%s21112_s11] sm:$0xff] %v15264_v55 }
 0xb69   :  { %v15266_v37 = vpop.f32.mrf.mxu0 }
 0xb6b   :  { %v17526_v11 = vpop.f32.mrf.mxu0 }
 0xb6c   :  { %15274 = vsyncpa [#allocation3], 1 }
 0xb6d   :  { %15275 = vsyncpa [#allocation5], 1 }
 0xb6e   :  { %15276 = vsyncpa [#allocation8], 1 }
 0xb6f   :  { %15277 = vsyncpa [#allocation11], 1 }
 0xb70   :  { %15278 = vsyncpa [#allocation14], 1 }
 0xb71   :  { %15279 = vsyncpa [#allocation17], 1 }

</bundles_post_ra>
